<compile_context>
chip_gen: v5e
topology: v5e:2x2
jax: 0.10.0
libtpu: 0.0.40
codegen_flags: <defaults>
</compile_context>

<pallas_src>
import functools

import jax
import jax.numpy as jnp
from jax.experimental import pallas as pl
from jax.experimental.pallas import tpu as pltpu


def _round_up(x, m):
    return (x + m - 1) // m * m


# ------------------------------ Pallas kernel ------------------------------ #

def _double_conv_kernel(*refs, use_in, s_offsets, front, Pw, cin_p1, cout_p,
                        inv_n, eps):
    """Fused [conv3x3x3 + InstanceNorm3d + ReLU] x 2 for one batch element.

    refs (use_in=True):  x, w1, w2, mask, out, xs, y1
    refs (use_in=False): x, w1, w2, b1, b2, mask, out, xs, y1

    x   : (1, cin_p1, PE)  bf16 extended frame (zeros outside the padded volume)
    w1  : (cout_p, 27*cin_p1) bf16, all taps folded into the contraction dim
    w2  : (cout_p, 27*cout_p) bf16
    b1/2: (cout_p, 1) f32  (only when use_in=False; cancelled by IN otherwise)
    mask: (1, Pw) f32, 1.0 at valid output voxels, 0.0 at pad voxels / tail
    out : (1, cout, Pw) f32, full-width lane-aligned store of the padded frame
    xs  : (27*max(cin_p1,cout_p), Pw) bf16 scratch — tap-folded operand
    y1  : (cout_p, PE) bf16 scratch — conv1 activation in extended-frame layout
    """
    if use_in:
        x_ref, w1_ref, w2_ref, m_ref, o_ref, xs_ref, y1_ref = refs
        b1_ref = b2_ref = None
    else:
        (x_ref, w1_ref, w2_ref, b1_ref, b2_ref, m_ref, o_ref,
         xs_ref, y1_ref) = refs

    m = m_ref[...]                                       # (1, Pw) f32

    def fused_conv(src_slab, cin_p, w_ref, b_ref):
        # Tap-folded operand: xs[t*cin_p + c, p] = src[c, s_offsets[t] + p].
        # Destination rows are multiples of 16 (bf16 sublane tiles); dest lanes
        # are full-width aligned; only the sources carry the inherent shifts.
        for t, s in enumerate(s_offsets):
            xs_ref[t * cin_p:(t + 1) * cin_p, :] = src_slab(s)
        # Single MXU matmul: (cout_p, 27*cin_p) x (27*cin_p, Pw) -> f32 acc.
        acc = jax.lax.dot_general(
            w_ref[...], xs_ref[0:27 * cin_p, :],
            dimension_numbers=(((1,), (0,)), ((), ())),
            preferred_element_type=jnp.float32)
        if b_ref is not None:                            # only when use_in=False
            acc = acc + b_ref[...]
        if use_in:
            # One-pass masked InstanceNorm3d (affine=False, biased variance):
            # mean = E[x], var = E[x^2] - mean^2 over the valid voxels only.
            am = acc * m
            mean = jnp.sum(am, axis=1, keepdims=True) * inv_n
            ex2 = jnp.sum(am * acc, axis=1, keepdims=True) * inv_n
            var = ex2 - mean * mean
            acc = (acc - mean) * jax.lax.rsqrt(var + eps)
        # ReLU; multiplying by the mask makes every pad/tail position exactly
        # zero, so the result is directly the next conv's zero-padded frame.
        return jnp.maximum(acc, 0.0) * m

    # --- conv1: read from the extended input frame, keep the result in VMEM. -
    a1 = fused_conv(lambda s: x_ref[0, :, s:s + Pw], cin_p1, w1_ref, b1_ref)
    pe = y1_ref.shape[1]
    # All three stores are full-width and 128-lane-aligned (front % 128 == 0).
    y1_ref[:, 0:front] = jnp.zeros((cout_p, front), y1_ref.dtype)
    y1_ref[:, front:front + Pw] = a1.astype(y1_ref.dtype)
    y1_ref[:, front + Pw:pe] = jnp.zeros((cout_p, pe - front - Pw),
                                         y1_ref.dtype)

    # --- conv2: consume y1 straight from VMEM; one unmasked full-width store. -
    a2 = fused_conv(lambda s: y1_ref[:, s:s + Pw], cout_p, w2_ref, b2_ref)
    o_ref[0, :, :] = a2[0:o_ref.shape[1], :].astype(o_ref.dtype)


# ------------------------------ conv wrapper -------------------------------- #

def _fold_weight(weight, cin_p, cout_p):
    """(cout, cin, 3,3,3) -> (cout_p, 27*cin_p) bf16, taps folded into K."""
    cout, cin = weight.shape[0], weight.shape[1]
    w_p = jnp.zeros((cout_p, cin_p, 3, 3, 3), jnp.float32)
    w_p = w_p.at[:cout, :cin].set(weight.astype(jnp.float32))
    w_f = jnp.transpose(w_p, (0, 2, 3, 4, 1)).reshape(cout_p, 27 * cin_p)
    return w_f.astype(jnp.bfloat16)


def unet_conv3(params, x_ncdhw, *, is_batchnorm=True, eps=1e-5):
    """Two fused (Conv3d 3x3x3 pad=1 + InstanceNorm3d + ReLU) blocks, NCDHW."""
    N, C, D, H, W = x_ncdhw.shape
    Dp, Hp, Wp = D + 2, H + 2, W + 2
    ptot = Dp * Hp * Wp
    halo = Hp * Wp + Wp + 1                  # max |tap offset| in the flat frame
    front = _round_up(halo, 128)             # lane-aligned frame origin
    pw = _round_up(ptot, 128)                # lane-aligned compute/store width
    pe = pw + 2 * front                      # extended frame length

    cout = params["w1"].shape[0]
    cin_p1 = _round_up(C, 16)                # bf16 sublane-tile alignment
    cout_p = _round_up(cout, 16)

    # XLA prep (single small fused pass): channel pad + spatial pad + flatten +
    # place the frame at `front` inside the extended buffer + bf16 cast.
    xp = jnp.pad(x_ncdhw, ((0, 0), (0, cin_p1 - C), (1, 1), (1, 1), (1, 1)))
    x_ext = jnp.pad(xp.reshape(N, cin_p1, ptot),
                    ((0, 0), (0, 0), (front, pe - front - ptot)))
    x_ext = x_ext.astype(jnp.bfloat16)

    # Tap-folded weights for both convs.
    w1f = _fold_weight(params["w1"], cin_p1, cout_p)
    w2f = _fold_weight(params["w2"], cout_p, cout_p)

    # (1, Pw) validity mask over padded-frame positions (d/h/w pads and tail 0).
    p = jnp.arange(pw)
    d = p // (Hp * Wp)
    h = (p // Wp) % Hp
    w = p % Wp
    valid = ((p < ptot) & (d >= 1) & (d <= D) & (h >= 1) & (h <= H)
             & (w >= 1) & (w <= W))
    mask = valid.astype(jnp.float32).reshape(1, pw)

    # Per-tap source offsets into the extended frame (static Python ints).
    s_offsets = tuple((front - halo) + kd * Hp * Wp + kh * Wp + kw
                      for kd in range(3) for kh in range(3) for kw in range(3))

    operands = [x_ext, w1f, w2f]
    in_specs = [
        pl.BlockSpec((1, cin_p1, pe), lambda n: (n, 0, 0)),
        pl.BlockSpec((cout_p, 27 * cin_p1), lambda n: (0, 0)),
        pl.BlockSpec((cout_p, 27 * cout_p), lambda n: (0, 0)),
    ]
    if not is_batchnorm:
        # Bias only matters without InstanceNorm (IN cancels per-channel consts),
        # so its input / DMA / add are skipped entirely otherwise.
        b1 = jnp.zeros((cout_p, 1), jnp.float32).at[:cout, 0].set(
            params["b1"].astype(jnp.float32))
        b2 = jnp.zeros((cout_p, 1), jnp.float32).at[:cout, 0].set(
            params["b2"].astype(jnp.float32))
        operands += [b1, b2]
        in_specs += [pl.BlockSpec((cout_p, 1), lambda n: (0, 0)),
                     pl.BlockSpec((cout_p, 1), lambda n: (0, 0))]
    operands.append(mask)
    in_specs.append(pl.BlockSpec((1, pw), lambda n: (0, 0)))

    max_c = max(cin_p1, cout_p)
    scratch_shapes = [
        pltpu.VMEM((27 * max_c, pw), jnp.bfloat16),   # tap-folded operand (shared)
        pltpu.VMEM((cout_p, pe), jnp.bfloat16),       # conv1 activation frame
    ]

    # Shape-derived VMEM budget (double-buffered blocks + scratch + headroom),
    # capped well below v7x's 64 MiB physical VMEM.
    vmem_need = (2 * cin_p1 * pe * 2
                 + cout_p * 27 * cin_p1 * 2 + cout_p * 27 * cout_p * 2
                 + pw * 4
                 + 2 * cout * pw * 4
                 + 27 * max_c * pw * 2
                 + cout_p * pe * 2
                 + (0 if is_batchnorm else 2 * cout_p * 4))
    vmem_limit = int(min(48 * 1024 * 1024, 2 * vmem_need + (8 << 20)))

    kernel = functools.partial(
        _double_conv_kernel, use_in=is_batchnorm, s_offsets=s_offsets,
        front=front, Pw=pw, cin_p1=cin_p1, cout_p=cout_p,
        inv_n=1.0 / float(D * H * W), eps=eps)

    y = pl.pallas_call(
        kernel,
        out_shape=jax.ShapeDtypeStruct((N, cout, pw), jnp.float32),
        grid_spec=pltpu.PrefetchScalarGridSpec(
            num_scalar_prefetch=0,
            grid=(N,),
            in_specs=in_specs,
            out_specs=pl.BlockSpec((1, cout, pw), lambda n: (n, 0, 0)),
            scratch_shapes=scratch_shapes),
        compiler_params=pltpu.CompilerParams(
            dimension_semantics=("parallel",),
            vmem_limit_bytes=vmem_limit),
    )(*operands)

    # Crop the valid voxels out of the padded frame (single XLA slice).
    out = y[:, :, :ptot].reshape(N, cout, Dp, Hp, Wp)
    return out[:, :, 1:D + 1, 1:H + 1, 1:W + 1]


# ---------------------------- plain-JAX glue ops ---------------------------- #

def _linear_resize_axis(x, axis, out_size):
    """1-D linear resize matching PyTorch align_corners=False semantics."""
    in_size = x.shape[axis]
    if out_size == in_size:
        return x
    scale = in_size / out_size
    src = (jnp.arange(out_size, dtype=jnp.float32) + 0.5) * scale - 0.5
    src = jnp.maximum(src, 0.0)
    i0 = jnp.clip(jnp.floor(src).astype(jnp.int32), 0, in_size - 1)
    i1 = jnp.minimum(i0 + 1, in_size - 1)
    lam = src - i0.astype(jnp.float32)
    x0 = jnp.take(x, i0, axis=axis)
    x1 = jnp.take(x, i1, axis=axis)
    shape = [1] * x.ndim
    shape[axis] = out_size
    lam = lam.reshape(shape)
    return x0 * (1.0 - lam) + x1 * lam


def trilinear_resize(x_ncdhw, out_dhw):
    # F.interpolate(mode='trilinear', align_corners=False) — separable.
    x = _linear_resize_axis(x_ncdhw, 2, out_dhw[0])
    x = _linear_resize_axis(x, 3, out_dhw[1])
    x = _linear_resize_axis(x, 4, out_dhw[2])
    return x


# ------------------------------- InterpConv --------------------------------- #

def init_params(key, in_size, out_size):
    c_in1 = in_size + out_size
    k1, k2, k3, k4 = jax.random.split(key, 4)
    return dict(
        w1=0.1 * jax.random.normal(k1, (out_size, c_in1, 3, 3, 3), jnp.float32),
        b1=0.1 * jax.random.normal(k2, (out_size,), jnp.float32),
        w2=0.1 * jax.random.normal(k3, (out_size, out_size, 3, 3, 3), jnp.float32),
        b2=0.1 * jax.random.normal(k4, (out_size,), jnp.float32),
    )


def interp_conv_forward(params, inputs1, inputs2, *, is_batchnorm=True):
    """InterpConv.forward — inputs in PyTorch NCDHW layout (f32)."""
    N, C1, D1, H1, W1 = inputs1.shape
    _, C2, D2, H2, W2 = inputs2.shape

    # self.up: Upsample(scale_factor=2, mode='trilinear', align_corners=False)
    outputs2 = trilinear_resize(inputs2, (2 * D2, 2 * H2, 2 * W2))

    offset = outputs2.shape[2] - inputs1.shape[2]
    o2 = offset // 2
    # F.pad(inputs1, [o2, o2, 0, o2, o2, 0]) -> W:(o2,o2), H:(0,o2), D:(o2,0)
    outputs1 = jnp.pad(inputs1, ((0, 0), (0, 0), (o2, 0), (0, o2), (o2, o2)))

    if outputs1.shape[4] != outputs2.shape[4]:
        outputs1 = trilinear_resize(outputs1, (D1, H1, W1))
        outputs2 = trilinear_resize(outputs2, (D1, H1, W1))

    x = jnp.concatenate([outputs1, outputs2], axis=1)   # (N, C1+C2, D, H, W)
    return unet_conv3(params, x, is_batchnorm=is_batchnorm)


if __name__ == "__main__":
    key = jax.random.PRNGKey(0)
    in_size, out_size = 4, 8
    N, D, H, W = 2, 8, 8, 8

    k1, k2, kp = jax.random.split(key, 3)
    inputs1 = jax.random.normal(k1, (N, in_size, D, H, W), jnp.float32)
    inputs2 = jax.random.normal(k2, (N, out_size, D // 2, H // 2, W // 2),
                                jnp.float32)
    params = init_params(kp, in_size, out_size)

    out = interp_conv_forward(params, inputs1, inputs2, is_batchnorm=True)
    out = jax.block_until_ready(out)
    assert out.shape == (N, out_size, D, H, W), out.shape
    assert bool(jnp.all(jnp.isfinite(out)))
    print("KERNEL_OK")
</pallas_src>

<mosaic_0001>
module attributes {stable_mosaic.version = 11 : i64} {
  func.func @_double_conv_kernel(%arg0: i32, %arg1: memref<1x16x1280xbf16, #tpu.memory_space<vmem>>, %arg2: memref<16x432xbf16, #tpu.memory_space<vmem>>, %arg3: memref<16x432xbf16, #tpu.memory_space<vmem>>, %arg4: memref<1x1024xf32, #tpu.memory_space<vmem>>, %arg5: memref<1x8x1024xf32, #tpu.memory_space<vmem>>, %arg6: memref<432x1024xbf16, #tpu.memory_space<vmem>>, %arg7: memref<16x1280xbf16, #tpu.memory_space<vmem>>) attributes {dimension_semantics = [#tpu.dimension_semantics<parallel>], iteration_bounds = array<i64: 2>, scalar_prefetch = 0 : i64, scratch_operands = 2 : i64, tpu.core_type = #tpu.core_type<tc>, window_params = [{transform_indices = @transform_0, window_bounds = array<i64: 1, 16, 1280>}, {pipeline_mode = #tpu.pipeline_mode<synchronous>, transform_indices = @transform_1, window_bounds = array<i64: 16, 432>}, {pipeline_mode = #tpu.pipeline_mode<synchronous>, transform_indices = @transform_2, window_bounds = array<i64: 16, 432>}, {pipeline_mode = #tpu.pipeline_mode<synchronous>, transform_indices = @transform_3, window_bounds = array<i64: 1, 1024>}, {transform_indices = @transform_4, window_bounds = array<i64: 1, 8, 1024>}]} {
    %c0 = arith.constant 0 : index
    %c0_0 = arith.constant 0 : index
    %0 = vector.load %arg4[%c0, %c0_0] : memref<1x1024xf32, #tpu.memory_space<vmem>>, vector<1x1024xf32>
    %c0_1 = arith.constant 0 : index
    %c0_2 = arith.constant 0 : index
    %c17 = arith.constant 17 : index
    %1 = vector.load %arg1[%c0_1, %c0_2, %c17] : memref<1x16x1280xbf16, #tpu.memory_space<vmem>>, vector<1x16x1024xbf16>
    %2 = vector.shape_cast %1 : vector<1x16x1024xbf16> to vector<16x1024xbf16>
    %c0_3 = arith.constant 0 : index
    %c0_4 = arith.constant 0 : index
    %3 = vector.load %arg6[%c0_3, %c0_4] : memref<432x1024xbf16, #tpu.memory_space<vmem>>, vector<16x1024xbf16>
    tpu.vector_store %arg6[%c0_3, %c0_4], %2 {strides = array<i32>} : memref<432x1024xbf16, #tpu.memory_space<vmem>>, vector<16x1024xbf16>,
    %c0_5 = arith.constant 0 : index
    %c0_6 = arith.constant 0 : index
    %c18 = arith.constant 18 : index
    %4 = vector.load %arg1[%c0_5, %c0_6, %c18] : memref<1x16x1280xbf16, #tpu.memory_space<vmem>>, vector<1x16x1024xbf16>
    %5 = vector.shape_cast %4 : vector<1x16x1024xbf16> to vector<16x1024xbf16>
    %c16 = arith.constant 16 : index
    %c0_7 = arith.constant 0 : index
    %6 = vector.load %arg6[%c16, %c0_7] : memref<432x1024xbf16, #tpu.memory_space<vmem>>, vector<16x1024xbf16>
    tpu.vector_store %arg6[%c16, %c0_7], %5 {strides = array<i32>} : memref<432x1024xbf16, #tpu.memory_space<vmem>>, vector<16x1024xbf16>,
    %c0_8 = arith.constant 0 : index
    %c0_9 = arith.constant 0 : index
    %c19 = arith.constant 19 : index
    %7 = vector.load %arg1[%c0_8, %c0_9, %c19] : memref<1x16x1280xbf16, #tpu.memory_space<vmem>>, vector<1x16x1024xbf16>
    %8 = vector.shape_cast %7 : vector<1x16x1024xbf16> to vector<16x1024xbf16>
    %c32 = arith.constant 32 : index
    %c0_10 = arith.constant 0 : index
    %9 = vector.load %arg6[%c32, %c0_10] : memref<432x1024xbf16, #tpu.memory_space<vmem>>, vector<16x1024xbf16>
    tpu.vector_store %arg6[%c32, %c0_10], %8 {strides = array<i32>} : memref<432x1024xbf16, #tpu.memory_space<vmem>>, vector<16x1024xbf16>,
    %c0_11 = arith.constant 0 : index
    %c0_12 = arith.constant 0 : index
    %c27 = arith.constant 27 : index
    %10 = vector.load %arg1[%c0_11, %c0_12, %c27] : memref<1x16x1280xbf16, #tpu.memory_space<vmem>>, vector<1x16x1024xbf16>
    %11 = vector.shape_cast %10 : vector<1x16x1024xbf16> to vector<16x1024xbf16>
    %c48 = arith.constant 48 : index
    %c0_13 = arith.constant 0 : index
    %12 = vector.load %arg6[%c48, %c0_13] : memref<432x1024xbf16, #tpu.memory_space<vmem>>, vector<16x1024xbf16>
    tpu.vector_store %arg6[%c48, %c0_13], %11 {strides = array<i32>} : memref<432x1024xbf16, #tpu.memory_space<vmem>>, vector<16x1024xbf16>,
    %c0_14 = arith.constant 0 : index
    %c0_15 = arith.constant 0 : index
    %c28 = arith.constant 28 : index
    %13 = vector.load %arg1[%c0_14, %c0_15, %c28] : memref<1x16x1280xbf16, #tpu.memory_space<vmem>>, vector<1x16x1024xbf16>
    %14 = vector.shape_cast %13 : vector<1x16x1024xbf16> to vector<16x1024xbf16>
    %c64 = arith.constant 64 : index
    %c0_16 = arith.constant 0 : index
    %15 = vector.load %arg6[%c64, %c0_16] : memref<432x1024xbf16, #tpu.memory_space<vmem>>, vector<16x1024xbf16>
    tpu.vector_store %arg6[%c64, %c0_16], %14 {strides = array<i32>} : memref<432x1024xbf16, #tpu.memory_space<vmem>>, vector<16x1024xbf16>,
    %c0_17 = arith.constant 0 : index
    %c0_18 = arith.constant 0 : index
    %c29 = arith.constant 29 : index
    %16 = vector.load %arg1[%c0_17, %c0_18, %c29] : memref<1x16x1280xbf16, #tpu.memory_space<vmem>>, vector<1x16x1024xbf16>
    %17 = vector.shape_cast %16 : vector<1x16x1024xbf16> to vector<16x1024xbf16>
    %c80 = arith.constant 80 : index
    %c0_19 = arith.constant 0 : index
    %18 = vector.load %arg6[%c80, %c0_19] : memref<432x1024xbf16, #tpu.memory_space<vmem>>, vector<16x1024xbf16>
    tpu.vector_store %arg6[%c80, %c0_19], %17 {strides = array<i32>} : memref<432x1024xbf16, #tpu.memory_space<vmem>>, vector<16x1024xbf16>,
    %c0_20 = arith.constant 0 : index
    %c0_21 = arith.constant 0 : index
    %c37 = arith.constant 37 : index
    %19 = vector.load %arg1[%c0_20, %c0_21, %c37] : memref<1x16x1280xbf16, #tpu.memory_space<vmem>>, vector<1x16x1024xbf16>
    %20 = vector.shape_cast %19 : vector<1x16x1024xbf16> to vector<16x1024xbf16>
    %c96 = arith.constant 96 : index
    %c0_22 = arith.constant 0 : index
    %21 = vector.load %arg6[%c96, %c0_22] : memref<432x1024xbf16, #tpu.memory_space<vmem>>, vector<16x1024xbf16>
    tpu.vector_store %arg6[%c96, %c0_22], %20 {strides = array<i32>} : memref<432x1024xbf16, #tpu.memory_space<vmem>>, vector<16x1024xbf16>,
    %c0_23 = arith.constant 0 : index
    %c0_24 = arith.constant 0 : index
    %c38 = arith.constant 38 : index
    %22 = vector.load %arg1[%c0_23, %c0_24, %c38] : memref<1x16x1280xbf16, #tpu.memory_space<vmem>>, vector<1x16x1024xbf16>
    %23 = vector.shape_cast %22 : vector<1x16x1024xbf16> to vector<16x1024xbf16>
    %c112 = arith.constant 112 : index
    %c0_25 = arith.constant 0 : index
    %24 = vector.load %arg6[%c112, %c0_25] : memref<432x1024xbf16, #tpu.memory_space<vmem>>, vector<16x1024xbf16>
    tpu.vector_store %arg6[%c112, %c0_25], %23 {strides = array<i32>} : memref<432x1024xbf16, #tpu.memory_space<vmem>>, vector<16x1024xbf16>,
    %c0_26 = arith.constant 0 : index
    %c0_27 = arith.constant 0 : index
    %c39 = arith.constant 39 : index
    %25 = vector.load %arg1[%c0_26, %c0_27, %c39] : memref<1x16x1280xbf16, #tpu.memory_space<vmem>>, vector<1x16x1024xbf16>
    %26 = vector.shape_cast %25 : vector<1x16x1024xbf16> to vector<16x1024xbf16>
    %c128 = arith.constant 128 : index
    %c0_28 = arith.constant 0 : index
    %27 = vector.load %arg6[%c128, %c0_28] : memref<432x1024xbf16, #tpu.memory_space<vmem>>, vector<16x1024xbf16>
    tpu.vector_store %arg6[%c128, %c0_28], %26 {strides = array<i32>} : memref<432x1024xbf16, #tpu.memory_space<vmem>>, vector<16x1024xbf16>,
    %c0_29 = arith.constant 0 : index
    %c0_30 = arith.constant 0 : index
    %c117 = arith.constant 117 : index
    %28 = vector.load %arg1[%c0_29, %c0_30, %c117] : memref<1x16x1280xbf16, #tpu.memory_space<vmem>>, vector<1x16x1024xbf16>
    %29 = vector.shape_cast %28 : vector<1x16x1024xbf16> to vector<16x1024xbf16>
    %c144 = arith.constant 144 : index
    %c0_31 = arith.constant 0 : index
    %30 = vector.load %arg6[%c144, %c0_31] : memref<432x1024xbf16, #tpu.memory_space<vmem>>, vector<16x1024xbf16>
    tpu.vector_store %arg6[%c144, %c0_31], %29 {strides = array<i32>} : memref<432x1024xbf16, #tpu.memory_space<vmem>>, vector<16x1024xbf16>,
    %c0_32 = arith.constant 0 : index
    %c0_33 = arith.constant 0 : index
    %c118 = arith.constant 118 : index
    %31 = vector.load %arg1[%c0_32, %c0_33, %c118] : memref<1x16x1280xbf16, #tpu.memory_space<vmem>>, vector<1x16x1024xbf16>
    %32 = vector.shape_cast %31 : vector<1x16x1024xbf16> to vector<16x1024xbf16>
    %c160 = arith.constant 160 : index
    %c0_34 = arith.constant 0 : index
    %33 = vector.load %arg6[%c160, %c0_34] : memref<432x1024xbf16, #tpu.memory_space<vmem>>, vector<16x1024xbf16>
    tpu.vector_store %arg6[%c160, %c0_34], %32 {strides = array<i32>} : memref<432x1024xbf16, #tpu.memory_space<vmem>>, vector<16x1024xbf16>,
    %c0_35 = arith.constant 0 : index
    %c0_36 = arith.constant 0 : index
    %c119 = arith.constant 119 : index
    %34 = vector.load %arg1[%c0_35, %c0_36, %c119] : memref<1x16x1280xbf16, #tpu.memory_space<vmem>>, vector<1x16x1024xbf16>
    %35 = vector.shape_cast %34 : vector<1x16x1024xbf16> to vector<16x1024xbf16>
    %c176 = arith.constant 176 : index
    %c0_37 = arith.constant 0 : index
    %36 = vector.load %arg6[%c176, %c0_37] : memref<432x1024xbf16, #tpu.memory_space<vmem>>, vector<16x1024xbf16>
    tpu.vector_store %arg6[%c176, %c0_37], %35 {strides = array<i32>} : memref<432x1024xbf16, #tpu.memory_space<vmem>>, vector<16x1024xbf16>,
    %c0_38 = arith.constant 0 : index
    %c0_39 = arith.constant 0 : index
    %c127 = arith.constant 127 : index
    %37 = vector.load %arg1[%c0_38, %c0_39, %c127] : memref<1x16x1280xbf16, #tpu.memory_space<vmem>>, vector<1x16x1024xbf16>
    %38 = vector.shape_cast %37 : vector<1x16x1024xbf16> to vector<16x1024xbf16>
    %c192 = arith.constant 192 : index
    %c0_40 = arith.constant 0 : index
    %39 = vector.load %arg6[%c192, %c0_40] : memref<432x1024xbf16, #tpu.memory_space<vmem>>, vector<16x1024xbf16>
    tpu.vector_store %arg6[%c192, %c0_40], %38 {strides = array<i32>} : memref<432x1024xbf16, #tpu.memory_space<vmem>>, vector<16x1024xbf16>,
    %c0_41 = arith.constant 0 : index
    %c0_42 = arith.constant 0 : index
    %c128_43 = arith.constant 128 : index
    %40 = vector.load %arg1[%c0_41, %c0_42, %c128_43] : memref<1x16x1280xbf16, #tpu.memory_space<vmem>>, vector<1x16x1024xbf16>
    %41 = vector.shape_cast %40 : vector<1x16x1024xbf16> to vector<16x1024xbf16>
    %c208 = arith.constant 208 : index
    %c0_44 = arith.constant 0 : index
    %42 = vector.load %arg6[%c208, %c0_44] : memref<432x1024xbf16, #tpu.memory_space<vmem>>, vector<16x1024xbf16>
    tpu.vector_store %arg6[%c208, %c0_44], %41 {strides = array<i32>} : memref<432x1024xbf16, #tpu.memory_space<vmem>>, vector<16x1024xbf16>,
    %c0_45 = arith.constant 0 : index
    %c0_46 = arith.constant 0 : index
    %c129 = arith.constant 129 : index
    %43 = vector.load %arg1[%c0_45, %c0_46, %c129] : memref<1x16x1280xbf16, #tpu.memory_space<vmem>>, vector<1x16x1024xbf16>
    %44 = vector.shape_cast %43 : vector<1x16x1024xbf16> to vector<16x1024xbf16>
    %c224 = arith.constant 224 : index
    %c0_47 = arith.constant 0 : index
    %45 = vector.load %arg6[%c224, %c0_47] : memref<432x1024xbf16, #tpu.memory_space<vmem>>, vector<16x1024xbf16>
    tpu.vector_store %arg6[%c224, %c0_47], %44 {strides = array<i32>} : memref<432x1024xbf16, #tpu.memory_space<vmem>>, vector<16x1024xbf16>,
    %c0_48 = arith.constant 0 : index
    %c0_49 = arith.constant 0 : index
    %c137 = arith.constant 137 : index
    %46 = vector.load %arg1[%c0_48, %c0_49, %c137] : memref<1x16x1280xbf16, #tpu.memory_space<vmem>>, vector<1x16x1024xbf16>
    %47 = vector.shape_cast %46 : vector<1x16x1024xbf16> to vector<16x1024xbf16>
    %c240 = arith.constant 240 : index
    %c0_50 = arith.constant 0 : index
    %48 = vector.load %arg6[%c240, %c0_50] : memref<432x1024xbf16, #tpu.memory_space<vmem>>, vector<16x1024xbf16>
    tpu.vector_store %arg6[%c240, %c0_50], %47 {strides = array<i32>} : memref<432x1024xbf16, #tpu.memory_space<vmem>>, vector<16x1024xbf16>,
    %c0_51 = arith.constant 0 : index
    %c0_52 = arith.constant 0 : index
    %c138 = arith.constant 138 : index
    %49 = vector.load %arg1[%c0_51, %c0_52, %c138] : memref<1x16x1280xbf16, #tpu.memory_space<vmem>>, vector<1x16x1024xbf16>
    %50 = vector.shape_cast %49 : vector<1x16x1024xbf16> to vector<16x1024xbf16>
    %c256 = arith.constant 256 : index
    %c0_53 = arith.constant 0 : index
    %51 = vector.load %arg6[%c256, %c0_53] : memref<432x1024xbf16, #tpu.memory_space<vmem>>, vector<16x1024xbf16>
    tpu.vector_store %arg6[%c256, %c0_53], %50 {strides = array<i32>} : memref<432x1024xbf16, #tpu.memory_space<vmem>>, vector<16x1024xbf16>,
    %c0_54 = arith.constant 0 : index
    %c0_55 = arith.constant 0 : index
    %c139 = arith.constant 139 : index
    %52 = vector.load %arg1[%c0_54, %c0_55, %c139] : memref<1x16x1280xbf16, #tpu.memory_space<vmem>>, vector<1x16x1024xbf16>
    %53 = vector.shape_cast %52 : vector<1x16x1024xbf16> to vector<16x1024xbf16>
    %c272 = arith.constant 272 : index
    %c0_56 = arith.constant 0 : index
    %54 = vector.load %arg6[%c272, %c0_56] : memref<432x1024xbf16, #tpu.memory_space<vmem>>, vector<16x1024xbf16>
    tpu.vector_store %arg6[%c272, %c0_56], %53 {strides = array<i32>} : memref<432x1024xbf16, #tpu.memory_space<vmem>>, vector<16x1024xbf16>,
    %c0_57 = arith.constant 0 : index
    %c0_58 = arith.constant 0 : index
    %c217 = arith.constant 217 : index
    %55 = vector.load %arg1[%c0_57, %c0_58, %c217] : memref<1x16x1280xbf16, #tpu.memory_space<vmem>>, vector<1x16x1024xbf16>
    %56 = vector.shape_cast %55 : vector<1x16x1024xbf16> to vector<16x1024xbf16>
    %c288 = arith.constant 288 : index
    %c0_59 = arith.constant 0 : index
    %57 = vector.load %arg6[%c288, %c0_59] : memref<432x1024xbf16, #tpu.memory_space<vmem>>, vector<16x1024xbf16>
    tpu.vector_store %arg6[%c288, %c0_59], %56 {strides = array<i32>} : memref<432x1024xbf16, #tpu.memory_space<vmem>>, vector<16x1024xbf16>,
    %c0_60 = arith.constant 0 : index
    %c0_61 = arith.constant 0 : index
    %c218 = arith.constant 218 : index
    %58 = vector.load %arg1[%c0_60, %c0_61, %c218] : memref<1x16x1280xbf16, #tpu.memory_space<vmem>>, vector<1x16x1024xbf16>
    %59 = vector.shape_cast %58 : vector<1x16x1024xbf16> to vector<16x1024xbf16>
    %c304 = arith.constant 304 : index
    %c0_62 = arith.constant 0 : index
    %60 = vector.load %arg6[%c304, %c0_62] : memref<432x1024xbf16, #tpu.memory_space<vmem>>, vector<16x1024xbf16>
    tpu.vector_store %arg6[%c304, %c0_62], %59 {strides = array<i32>} : memref<432x1024xbf16, #tpu.memory_space<vmem>>, vector<16x1024xbf16>,
    %c0_63 = arith.constant 0 : index
    %c0_64 = arith.constant 0 : index
    %c219 = arith.constant 219 : index
    %61 = vector.load %arg1[%c0_63, %c0_64, %c219] : memref<1x16x1280xbf16, #tpu.memory_space<vmem>>, vector<1x16x1024xbf16>
    %62 = vector.shape_cast %61 : vector<1x16x1024xbf16> to vector<16x1024xbf16>
    %c320 = arith.constant 320 : index
    %c0_65 = arith.constant 0 : index
    %63 = vector.load %arg6[%c320, %c0_65] : memref<432x1024xbf16, #tpu.memory_space<vmem>>, vector<16x1024xbf16>
    tpu.vector_store %arg6[%c320, %c0_65], %62 {strides = array<i32>} : memref<432x1024xbf16, #tpu.memory_space<vmem>>, vector<16x1024xbf16>,
    %c0_66 = arith.constant 0 : index
    %c0_67 = arith.constant 0 : index
    %c227 = arith.constant 227 : index
    %64 = vector.load %arg1[%c0_66, %c0_67, %c227] : memref<1x16x1280xbf16, #tpu.memory_space<vmem>>, vector<1x16x1024xbf16>
    %65 = vector.shape_cast %64 : vector<1x16x1024xbf16> to vector<16x1024xbf16>
    %c336 = arith.constant 336 : index
    %c0_68 = arith.constant 0 : index
    %66 = vector.load %arg6[%c336, %c0_68] : memref<432x1024xbf16, #tpu.memory_space<vmem>>, vector<16x1024xbf16>
    tpu.vector_store %arg6[%c336, %c0_68], %65 {strides = array<i32>} : memref<432x1024xbf16, #tpu.memory_space<vmem>>, vector<16x1024xbf16>,
    %c0_69 = arith.constant 0 : index
    %c0_70 = arith.constant 0 : index
    %c228 = arith.constant 228 : index
    %67 = vector.load %arg1[%c0_69, %c0_70, %c228] : memref<1x16x1280xbf16, #tpu.memory_space<vmem>>, vector<1x16x1024xbf16>
    %68 = vector.shape_cast %67 : vector<1x16x1024xbf16> to vector<16x1024xbf16>
    %c352 = arith.constant 352 : index
    %c0_71 = arith.constant 0 : index
    %69 = vector.load %arg6[%c352, %c0_71] : memref<432x1024xbf16, #tpu.memory_space<vmem>>, vector<16x1024xbf16>
    tpu.vector_store %arg6[%c352, %c0_71], %68 {strides = array<i32>} : memref<432x1024xbf16, #tpu.memory_space<vmem>>, vector<16x1024xbf16>,
    %c0_72 = arith.constant 0 : index
    %c0_73 = arith.constant 0 : index
    %c229 = arith.constant 229 : index
    %70 = vector.load %arg1[%c0_72, %c0_73, %c229] : memref<1x16x1280xbf16, #tpu.memory_space<vmem>>, vector<1x16x1024xbf16>
    %71 = vector.shape_cast %70 : vector<1x16x1024xbf16> to vector<16x1024xbf16>
    %c368 = arith.constant 368 : index
    %c0_74 = arith.constant 0 : index
    %72 = vector.load %arg6[%c368, %c0_74] : memref<432x1024xbf16, #tpu.memory_space<vmem>>, vector<16x1024xbf16>
    tpu.vector_store %arg6[%c368, %c0_74], %71 {strides = array<i32>} : memref<432x1024xbf16, #tpu.memory_space<vmem>>, vector<16x1024xbf16>,
    %c0_75 = arith.constant 0 : index
    %c0_76 = arith.constant 0 : index
    %c237 = arith.constant 237 : index
    %73 = vector.load %arg1[%c0_75, %c0_76, %c237] : memref<1x16x1280xbf16, #tpu.memory_space<vmem>>, vector<1x16x1024xbf16>
    %74 = vector.shape_cast %73 : vector<1x16x1024xbf16> to vector<16x1024xbf16>
    %c384 = arith.constant 384 : index
    %c0_77 = arith.constant 0 : index
    %75 = vector.load %arg6[%c384, %c0_77] : memref<432x1024xbf16, #tpu.memory_space<vmem>>, vector<16x1024xbf16>
    tpu.vector_store %arg6[%c384, %c0_77], %74 {strides = array<i32>} : memref<432x1024xbf16, #tpu.memory_space<vmem>>, vector<16x1024xbf16>,
    %c0_78 = arith.constant 0 : index
    %c0_79 = arith.constant 0 : index
    %c238 = arith.constant 238 : index
    %76 = vector.load %arg1[%c0_78, %c0_79, %c238] : memref<1x16x1280xbf16, #tpu.memory_space<vmem>>, vector<1x16x1024xbf16>
    %77 = vector.shape_cast %76 : vector<1x16x1024xbf16> to vector<16x1024xbf16>
    %c400 = arith.constant 400 : index
    %c0_80 = arith.constant 0 : index
    %78 = vector.load %arg6[%c400, %c0_80] : memref<432x1024xbf16, #tpu.memory_space<vmem>>, vector<16x1024xbf16>
    tpu.vector_store %arg6[%c400, %c0_80], %77 {strides = array<i32>} : memref<432x1024xbf16, #tpu.memory_space<vmem>>, vector<16x1024xbf16>,
    %c0_81 = arith.constant 0 : index
    %c0_82 = arith.constant 0 : index
    %c239 = arith.constant 239 : index
    %79 = vector.load %arg1[%c0_81, %c0_82, %c239] : memref<1x16x1280xbf16, #tpu.memory_space<vmem>>, vector<1x16x1024xbf16>
    %80 = vector.shape_cast %79 : vector<1x16x1024xbf16> to vector<16x1024xbf16>
    %c416 = arith.constant 416 : index
    %c0_83 = arith.constant 0 : index
    %81 = vector.load %arg6[%c416, %c0_83] : memref<432x1024xbf16, #tpu.memory_space<vmem>>, vector<16x1024xbf16>
    tpu.vector_store %arg6[%c416, %c0_83], %80 {strides = array<i32>} : memref<432x1024xbf16, #tpu.memory_space<vmem>>, vector<16x1024xbf16>,
    %c0_84 = arith.constant 0 : index
    %c0_85 = arith.constant 0 : index
    %82 = vector.load %arg2[%c0_84, %c0_85] : memref<16x432xbf16, #tpu.memory_space<vmem>>, vector<16x432xbf16>
    %c0_86 = arith.constant 0 : index
    %c0_87 = arith.constant 0 : index
    %83 = vector.load %arg6[%c0_86, %c0_87] : memref<432x1024xbf16, #tpu.memory_space<vmem>>, vector<432x1024xbf16>
    %cst = arith.constant dense<0.000000e+00> : vector<16x1024xf32>
    %84 = tpu.matmul %82, %83, %cst {dimension_numbers = #tpu.dot_dimension_numbers<[1], [0], [0], [1], [0, 0, 1, 1], [], []>} : vector<16x432xbf16>, vector<432x1024xbf16>, vector<16x1024xf32> -> vector<16x1024xf32>
    %85 = vector.broadcast %0 : vector<1x1024xf32> to vector<16x1024xf32>
    %86 = arith.mulf %84, %85 : vector<16x1024xf32>
    %cst_88 = arith.constant dense<0.000000e+00> : vector<16xf32>
    %87 = vector.multi_reduction <add>, %86, %cst_88 [1] : vector<16x1024xf32> to vector<16xf32>
    %88 = vector.shape_cast %87 : vector<16xf32> to vector<16x1xf32>
    %cst_89 = arith.constant 0.001953125 : f32
    %89 = vector.broadcast %cst_89 : f32 to vector<16x1xf32>
    %90 = arith.mulf %88, %89 : vector<16x1xf32>
    %91 = arith.mulf %86, %84 : vector<16x1024xf32>
    %cst_90 = arith.constant dense<0.000000e+00> : vector<16xf32>
    %92 = vector.multi_reduction <add>, %91, %cst_90 [1] : vector<16x1024xf32> to vector<16xf32>
    %93 = vector.shape_cast %92 : vector<16xf32> to vector<16x1xf32>
    %cst_91 = arith.constant 0.001953125 : f32
    %94 = vector.broadcast %cst_91 : f32 to vector<16x1xf32>
    %95 = arith.mulf %93, %94 : vector<16x1xf32>
    %96 = arith.mulf %90, %90 : vector<16x1xf32>
    %97 = arith.subf %95, %96 : vector<16x1xf32>
    %98 = vector.broadcast %90 : vector<16x1xf32> to vector<16x1024xf32>
    %99 = arith.subf %84, %98 : vector<16x1024xf32>
    %cst_92 = arith.constant 9.99999974E-6 : f32
    %100 = vector.broadcast %cst_92 : f32 to vector<16x1xf32>
    %101 = arith.addf %97, %100 : vector<16x1xf32>
    %102 = math.rsqrt %101 : vector<16x1xf32>
    %103 = vector.broadcast %102 : vector<16x1xf32> to vector<16x1024xf32>
    %104 = arith.mulf %99, %103 : vector<16x1024xf32>
    %cst_93 = arith.constant 0.000000e+00 : f32
    %105 = vector.broadcast %cst_93 : f32 to vector<16x1024xf32>
    %106 = arith.maximumf %104, %105 : vector<16x1024xf32>
    %107 = vector.broadcast %0 : vector<1x1024xf32> to vector<16x1024xf32>
    %108 = arith.mulf %106, %107 : vector<16x1024xf32>
    %cst_94 = arith.constant 0.000000e+00 : bf16
    %109 = vector.broadcast %cst_94 : bf16 to vector<16x128xbf16>
    %c0_95 = arith.constant 0 : index
    %c0_96 = arith.constant 0 : index
    %110 = vector.load %arg7[%c0_95, %c0_96] : memref<16x1280xbf16, #tpu.memory_space<vmem>>, vector<16x128xbf16>
    tpu.vector_store %arg7[%c0_95, %c0_96], %109 {strides = array<i32>} : memref<16x1280xbf16, #tpu.memory_space<vmem>>, vector<16x128xbf16>,
    %111 = arith.truncf %108 : vector<16x1024xf32> to vector<16x1024xbf16>
    %c0_97 = arith.constant 0 : index
    %c128_98 = arith.constant 128 : index
    %112 = vector.load %arg7[%c0_97, %c128_98] : memref<16x1280xbf16, #tpu.memory_space<vmem>>, vector<16x1024xbf16>
    tpu.vector_store %arg7[%c0_97, %c128_98], %111 {strides = array<i32>} : memref<16x1280xbf16, #tpu.memory_space<vmem>>, vector<16x1024xbf16>,
    %cst_99 = arith.constant 0.000000e+00 : bf16
    %113 = vector.broadcast %cst_99 : bf16 to vector<16x128xbf16>
    %c0_100 = arith.constant 0 : index
    %c1152 = arith.constant 1152 : index
    %114 = vector.load %arg7[%c0_100, %c1152] : memref<16x1280xbf16, #tpu.memory_space<vmem>>, vector<16x128xbf16>
    tpu.vector_store %arg7[%c0_100, %c1152], %113 {strides = array<i32>} : memref<16x1280xbf16, #tpu.memory_space<vmem>>, vector<16x128xbf16>,
    %c0_101 = arith.constant 0 : index
    %c17_102 = arith.constant 17 : index
    %115 = vector.load %arg7[%c0_101, %c17_102] : memref<16x1280xbf16, #tpu.memory_space<vmem>>, vector<16x1024xbf16>
    %c0_103 = arith.constant 0 : index
    %c0_104 = arith.constant 0 : index
    %116 = vector.load %arg6[%c0_103, %c0_104] : memref<432x1024xbf16, #tpu.memory_space<vmem>>, vector<16x1024xbf16>
    tpu.vector_store %arg6[%c0_103, %c0_104], %115 {strides = array<i32>} : memref<432x1024xbf16, #tpu.memory_space<vmem>>, vector<16x1024xbf16>,
    %c0_105 = arith.constant 0 : index
    %c18_106 = arith.constant 18 : index
    %117 = vector.load %arg7[%c0_105, %c18_106] : memref<16x1280xbf16, #tpu.memory_space<vmem>>, vector<16x1024xbf16>
    %c16_107 = arith.constant 16 : index
    %c0_108 = arith.constant 0 : index
    %118 = vector.load %arg6[%c16_107, %c0_108] : memref<432x1024xbf16, #tpu.memory_space<vmem>>, vector<16x1024xbf16>
    tpu.vector_store %arg6[%c16_107, %c0_108], %117 {strides = array<i32>} : memref<432x1024xbf16, #tpu.memory_space<vmem>>, vector<16x1024xbf16>,
    %c0_109 = arith.constant 0 : index
    %c19_110 = arith.constant 19 : index
    %119 = vector.load %arg7[%c0_109, %c19_110] : memref<16x1280xbf16, #tpu.memory_space<vmem>>, vector<16x1024xbf16>
    %c32_111 = arith.constant 32 : index
    %c0_112 = arith.constant 0 : index
    %120 = vector.load %arg6[%c32_111, %c0_112] : memref<432x1024xbf16, #tpu.memory_space<vmem>>, vector<16x1024xbf16>
    tpu.vector_store %arg6[%c32_111, %c0_112], %119 {strides = array<i32>} : memref<432x1024xbf16, #tpu.memory_space<vmem>>, vector<16x1024xbf16>,
    %c0_113 = arith.constant 0 : index
    %c27_114 = arith.constant 27 : index
    %121 = vector.load %arg7[%c0_113, %c27_114] : memref<16x1280xbf16, #tpu.memory_space<vmem>>, vector<16x1024xbf16>
    %c48_115 = arith.constant 48 : index
    %c0_116 = arith.constant 0 : index
    %122 = vector.load %arg6[%c48_115, %c0_116] : memref<432x1024xbf16, #tpu.memory_space<vmem>>, vector<16x1024xbf16>
    tpu.vector_store %arg6[%c48_115, %c0_116], %121 {strides = array<i32>} : memref<432x1024xbf16, #tpu.memory_space<vmem>>, vector<16x1024xbf16>,
    %c0_117 = arith.constant 0 : index
    %c28_118 = arith.constant 28 : index
    %123 = vector.load %arg7[%c0_117, %c28_118] : memref<16x1280xbf16, #tpu.memory_space<vmem>>, vector<16x1024xbf16>
    %c64_119 = arith.constant 64 : index
    %c0_120 = arith.constant 0 : index
    %124 = vector.load %arg6[%c64_119, %c0_120] : memref<432x1024xbf16, #tpu.memory_space<vmem>>, vector<16x1024xbf16>
    tpu.vector_store %arg6[%c64_119, %c0_120], %123 {strides = array<i32>} : memref<432x1024xbf16, #tpu.memory_space<vmem>>, vector<16x1024xbf16>,
    %c0_121 = arith.constant 0 : index
    %c29_122 = arith.constant 29 : index
    %125 = vector.load %arg7[%c0_121, %c29_122] : memref<16x1280xbf16, #tpu.memory_space<vmem>>, vector<16x1024xbf16>
    %c80_123 = arith.constant 80 : index
    %c0_124 = arith.constant 0 : index
    %126 = vector.load %arg6[%c80_123, %c0_124] : memref<432x1024xbf16, #tpu.memory_space<vmem>>, vector<16x1024xbf16>
    tpu.vector_store %arg6[%c80_123, %c0_124], %125 {strides = array<i32>} : memref<432x1024xbf16, #tpu.memory_space<vmem>>, vector<16x1024xbf16>,
    %c0_125 = arith.constant 0 : index
    %c37_126 = arith.constant 37 : index
    %127 = vector.load %arg7[%c0_125, %c37_126] : memref<16x1280xbf16, #tpu.memory_space<vmem>>, vector<16x1024xbf16>
    %c96_127 = arith.constant 96 : index
    %c0_128 = arith.constant 0 : index
    %128 = vector.load %arg6[%c96_127, %c0_128] : memref<432x1024xbf16, #tpu.memory_space<vmem>>, vector<16x1024xbf16>
    tpu.vector_store %arg6[%c96_127, %c0_128], %127 {strides = array<i32>} : memref<432x1024xbf16, #tpu.memory_space<vmem>>, vector<16x1024xbf16>,
    %c0_129 = arith.constant 0 : index
    %c38_130 = arith.constant 38 : index
    %129 = vector.load %arg7[%c0_129, %c38_130] : memref<16x1280xbf16, #tpu.memory_space<vmem>>, vector<16x1024xbf16>
    %c112_131 = arith.constant 112 : index
    %c0_132 = arith.constant 0 : index
    %130 = vector.load %arg6[%c112_131, %c0_132] : memref<432x1024xbf16, #tpu.memory_space<vmem>>, vector<16x1024xbf16>
    tpu.vector_store %arg6[%c112_131, %c0_132], %129 {strides = array<i32>} : memref<432x1024xbf16, #tpu.memory_space<vmem>>, vector<16x1024xbf16>,
    %c0_133 = arith.constant 0 : index
    %c39_134 = arith.constant 39 : index
    %131 = vector.load %arg7[%c0_133, %c39_134] : memref<16x1280xbf16, #tpu.memory_space<vmem>>, vector<16x1024xbf16>
    %c128_135 = arith.constant 128 : index
    %c0_136 = arith.constant 0 : index
    %132 = vector.load %arg6[%c128_135, %c0_136] : memref<432x1024xbf16, #tpu.memory_space<vmem>>, vector<16x1024xbf16>
    tpu.vector_store %arg6[%c128_135, %c0_136], %131 {strides = array<i32>} : memref<432x1024xbf16, #tpu.memory_space<vmem>>, vector<16x1024xbf16>,
    %c0_137 = arith.constant 0 : index
    %c117_138 = arith.constant 117 : index
    %133 = vector.load %arg7[%c0_137, %c117_138] : memref<16x1280xbf16, #tpu.memory_space<vmem>>, vector<16x1024xbf16>
    %c144_139 = arith.constant 144 : index
    %c0_140 = arith.constant 0 : index
    %134 = vector.load %arg6[%c144_139, %c0_140] : memref<432x1024xbf16, #tpu.memory_space<vmem>>, vector<16x1024xbf16>
    tpu.vector_store %arg6[%c144_139, %c0_140], %133 {strides = array<i32>} : memref<432x1024xbf16, #tpu.memory_space<vmem>>, vector<16x1024xbf16>,
    %c0_141 = arith.constant 0 : index
    %c118_142 = arith.constant 118 : index
    %135 = vector.load %arg7[%c0_141, %c118_142] : memref<16x1280xbf16, #tpu.memory_space<vmem>>, vector<16x1024xbf16>
    %c160_143 = arith.constant 160 : index
    %c0_144 = arith.constant 0 : index
    %136 = vector.load %arg6[%c160_143, %c0_144] : memref<432x1024xbf16, #tpu.memory_space<vmem>>, vector<16x1024xbf16>
    tpu.vector_store %arg6[%c160_143, %c0_144], %135 {strides = array<i32>} : memref<432x1024xbf16, #tpu.memory_space<vmem>>, vector<16x1024xbf16>,
    %c0_145 = arith.constant 0 : index
    %c119_146 = arith.constant 119 : index
    %137 = vector.load %arg7[%c0_145, %c119_146] : memref<16x1280xbf16, #tpu.memory_space<vmem>>, vector<16x1024xbf16>
    %c176_147 = arith.constant 176 : index
    %c0_148 = arith.constant 0 : index
    %138 = vector.load %arg6[%c176_147, %c0_148] : memref<432x1024xbf16, #tpu.memory_space<vmem>>, vector<16x1024xbf16>
    tpu.vector_store %arg6[%c176_147, %c0_148], %137 {strides = array<i32>} : memref<432x1024xbf16, #tpu.memory_space<vmem>>, vector<16x1024xbf16>,
    %c0_149 = arith.constant 0 : index
    %c127_150 = arith.constant 127 : index
    %139 = vector.load %arg7[%c0_149, %c127_150] : memref<16x1280xbf16, #tpu.memory_space<vmem>>, vector<16x1024xbf16>
    %c192_151 = arith.constant 192 : index
    %c0_152 = arith.constant 0 : index
    %140 = vector.load %arg6[%c192_151, %c0_152] : memref<432x1024xbf16, #tpu.memory_space<vmem>>, vector<16x1024xbf16>
    tpu.vector_store %arg6[%c192_151, %c0_152], %139 {strides = array<i32>} : memref<432x1024xbf16, #tpu.memory_space<vmem>>, vector<16x1024xbf16>,
    %c0_153 = arith.constant 0 : index
    %c128_154 = arith.constant 128 : index
    %141 = vector.load %arg7[%c0_153, %c128_154] : memref<16x1280xbf16, #tpu.memory_space<vmem>>, vector<16x1024xbf16>
    %c208_155 = arith.constant 208 : index
    %c0_156 = arith.constant 0 : index
    %142 = vector.load %arg6[%c208_155, %c0_156] : memref<432x1024xbf16, #tpu.memory_space<vmem>>, vector<16x1024xbf16>
    tpu.vector_store %arg6[%c208_155, %c0_156], %141 {strides = array<i32>} : memref<432x1024xbf16, #tpu.memory_space<vmem>>, vector<16x1024xbf16>,
    %c0_157 = arith.constant 0 : index
    %c129_158 = arith.constant 129 : index
    %143 = vector.load %arg7[%c0_157, %c129_158] : memref<16x1280xbf16, #tpu.memory_space<vmem>>, vector<16x1024xbf16>
    %c224_159 = arith.constant 224 : index
    %c0_160 = arith.constant 0 : index
    %144 = vector.load %arg6[%c224_159, %c0_160] : memref<432x1024xbf16, #tpu.memory_space<vmem>>, vector<16x1024xbf16>
    tpu.vector_store %arg6[%c224_159, %c0_160], %143 {strides = array<i32>} : memref<432x1024xbf16, #tpu.memory_space<vmem>>, vector<16x1024xbf16>,
    %c0_161 = arith.constant 0 : index
    %c137_162 = arith.constant 137 : index
    %145 = vector.load %arg7[%c0_161, %c137_162] : memref<16x1280xbf16, #tpu.memory_space<vmem>>, vector<16x1024xbf16>
    %c240_163 = arith.constant 240 : index
    %c0_164 = arith.constant 0 : index
    %146 = vector.load %arg6[%c240_163, %c0_164] : memref<432x1024xbf16, #tpu.memory_space<vmem>>, vector<16x1024xbf16>
    tpu.vector_store %arg6[%c240_163, %c0_164], %145 {strides = array<i32>} : memref<432x1024xbf16, #tpu.memory_space<vmem>>, vector<16x1024xbf16>,
    %c0_165 = arith.constant 0 : index
    %c138_166 = arith.constant 138 : index
    %147 = vector.load %arg7[%c0_165, %c138_166] : memref<16x1280xbf16, #tpu.memory_space<vmem>>, vector<16x1024xbf16>
    %c256_167 = arith.constant 256 : index
    %c0_168 = arith.constant 0 : index
    %148 = vector.load %arg6[%c256_167, %c0_168] : memref<432x1024xbf16, #tpu.memory_space<vmem>>, vector<16x1024xbf16>
    tpu.vector_store %arg6[%c256_167, %c0_168], %147 {strides = array<i32>} : memref<432x1024xbf16, #tpu.memory_space<vmem>>, vector<16x1024xbf16>,
    %c0_169 = arith.constant 0 : index
    %c139_170 = arith.constant 139 : index
    %149 = vector.load %arg7[%c0_169, %c139_170] : memref<16x1280xbf16, #tpu.memory_space<vmem>>, vector<16x1024xbf16>
    %c272_171 = arith.constant 272 : index
    %c0_172 = arith.constant 0 : index
    %150 = vector.load %arg6[%c272_171, %c0_172] : memref<432x1024xbf16, #tpu.memory_space<vmem>>, vector<16x1024xbf16>
    tpu.vector_store %arg6[%c272_171, %c0_172], %149 {strides = array<i32>} : memref<432x1024xbf16, #tpu.memory_space<vmem>>, vector<16x1024xbf16>,
    %c0_173 = arith.constant 0 : index
    %c217_174 = arith.constant 217 : index
    %151 = vector.load %arg7[%c0_173, %c217_174] : memref<16x1280xbf16, #tpu.memory_space<vmem>>, vector<16x1024xbf16>
    %c288_175 = arith.constant 288 : index
    %c0_176 = arith.constant 0 : index
    %152 = vector.load %arg6[%c288_175, %c0_176] : memref<432x1024xbf16, #tpu.memory_space<vmem>>, vector<16x1024xbf16>
    tpu.vector_store %arg6[%c288_175, %c0_176], %151 {strides = array<i32>} : memref<432x1024xbf16, #tpu.memory_space<vmem>>, vector<16x1024xbf16>,
    %c0_177 = arith.constant 0 : index
    %c218_178 = arith.constant 218 : index
    %153 = vector.load %arg7[%c0_177, %c218_178] : memref<16x1280xbf16, #tpu.memory_space<vmem>>, vector<16x1024xbf16>
    %c304_179 = arith.constant 304 : index
    %c0_180 = arith.constant 0 : index
    %154 = vector.load %arg6[%c304_179, %c0_180] : memref<432x1024xbf16, #tpu.memory_space<vmem>>, vector<16x1024xbf16>
    tpu.vector_store %arg6[%c304_179, %c0_180], %153 {strides = array<i32>} : memref<432x1024xbf16, #tpu.memory_space<vmem>>, vector<16x1024xbf16>,
    %c0_181 = arith.constant 0 : index
    %c219_182 = arith.constant 219 : index
    %155 = vector.load %arg7[%c0_181, %c219_182] : memref<16x1280xbf16, #tpu.memory_space<vmem>>, vector<16x1024xbf16>
    %c320_183 = arith.constant 320 : index
    %c0_184 = arith.constant 0 : index
    %156 = vector.load %arg6[%c320_183, %c0_184] : memref<432x1024xbf16, #tpu.memory_space<vmem>>, vector<16x1024xbf16>
    tpu.vector_store %arg6[%c320_183, %c0_184], %155 {strides = array<i32>} : memref<432x1024xbf16, #tpu.memory_space<vmem>>, vector<16x1024xbf16>,
    %c0_185 = arith.constant 0 : index
    %c227_186 = arith.constant 227 : index
    %157 = vector.load %arg7[%c0_185, %c227_186] : memref<16x1280xbf16, #tpu.memory_space<vmem>>, vector<16x1024xbf16>
    %c336_187 = arith.constant 336 : index
    %c0_188 = arith.constant 0 : index
    %158 = vector.load %arg6[%c336_187, %c0_188] : memref<432x1024xbf16, #tpu.memory_space<vmem>>, vector<16x1024xbf16>
    tpu.vector_store %arg6[%c336_187, %c0_188], %157 {strides = array<i32>} : memref<432x1024xbf16, #tpu.memory_space<vmem>>, vector<16x1024xbf16>,
    %c0_189 = arith.constant 0 : index
    %c228_190 = arith.constant 228 : index
    %159 = vector.load %arg7[%c0_189, %c228_190] : memref<16x1280xbf16, #tpu.memory_space<vmem>>, vector<16x1024xbf16>
    %c352_191 = arith.constant 352 : index
    %c0_192 = arith.constant 0 : index
    %160 = vector.load %arg6[%c352_191, %c0_192] : memref<432x1024xbf16, #tpu.memory_space<vmem>>, vector<16x1024xbf16>
    tpu.vector_store %arg6[%c352_191, %c0_192], %159 {strides = array<i32>} : memref<432x1024xbf16, #tpu.memory_space<vmem>>, vector<16x1024xbf16>,
    %c0_193 = arith.constant 0 : index
    %c229_194 = arith.constant 229 : index
    %161 = vector.load %arg7[%c0_193, %c229_194] : memref<16x1280xbf16, #tpu.memory_space<vmem>>, vector<16x1024xbf16>
    %c368_195 = arith.constant 368 : index
    %c0_196 = arith.constant 0 : index
    %162 = vector.load %arg6[%c368_195, %c0_196] : memref<432x1024xbf16, #tpu.memory_space<vmem>>, vector<16x1024xbf16>
    tpu.vector_store %arg6[%c368_195, %c0_196], %161 {strides = array<i32>} : memref<432x1024xbf16, #tpu.memory_space<vmem>>, vector<16x1024xbf16>,
    %c0_197 = arith.constant 0 : index
    %c237_198 = arith.constant 237 : index
    %163 = vector.load %arg7[%c0_197, %c237_198] : memref<16x1280xbf16, #tpu.memory_space<vmem>>, vector<16x1024xbf16>
    %c384_199 = arith.constant 384 : index
    %c0_200 = arith.constant 0 : index
    %164 = vector.load %arg6[%c384_199, %c0_200] : memref<432x1024xbf16, #tpu.memory_space<vmem>>, vector<16x1024xbf16>
    tpu.vector_store %arg6[%c384_199, %c0_200], %163 {strides = array<i32>} : memref<432x1024xbf16, #tpu.memory_space<vmem>>, vector<16x1024xbf16>,
    %c0_201 = arith.constant 0 : index
    %c238_202 = arith.constant 238 : index
    %165 = vector.load %arg7[%c0_201, %c238_202] : memref<16x1280xbf16, #tpu.memory_space<vmem>>, vector<16x1024xbf16>
    %c400_203 = arith.constant 400 : index
    %c0_204 = arith.constant 0 : index
    %166 = vector.load %arg6[%c400_203, %c0_204] : memref<432x1024xbf16, #tpu.memory_space<vmem>>, vector<16x1024xbf16>
    tpu.vector_store %arg6[%c400_203, %c0_204], %165 {strides = array<i32>} : memref<432x1024xbf16, #tpu.memory_space<vmem>>, vector<16x1024xbf16>,
    %c0_205 = arith.constant 0 : index
    %c239_206 = arith.constant 239 : index
    %167 = vector.load %arg7[%c0_205, %c239_206] : memref<16x1280xbf16, #tpu.memory_space<vmem>>, vector<16x1024xbf16>
    %c416_207 = arith.constant 416 : index
    %c0_208 = arith.constant 0 : index
    %168 = vector.load %arg6[%c416_207, %c0_208] : memref<432x1024xbf16, #tpu.memory_space<vmem>>, vector<16x1024xbf16>
    tpu.vector_store %arg6[%c416_207, %c0_208], %167 {strides = array<i32>} : memref<432x1024xbf16, #tpu.memory_space<vmem>>, vector<16x1024xbf16>,
    %c0_209 = arith.constant 0 : index
    %c0_210 = arith.constant 0 : index
    %169 = vector.load %arg3[%c0_209, %c0_210] : memref<16x432xbf16, #tpu.memory_space<vmem>>, vector<16x432xbf16>
    %c0_211 = arith.constant 0 : index
    %c0_212 = arith.constant 0 : index
    %170 = vector.load %arg6[%c0_211, %c0_212] : memref<432x1024xbf16, #tpu.memory_space<vmem>>, vector<432x1024xbf16>
    %cst_213 = arith.constant dense<0.000000e+00> : vector<16x1024xf32>
    %171 = tpu.matmul %169, %170, %cst_213 {dimension_numbers = #tpu.dot_dimension_numbers<[1], [0], [0], [1], [0, 0, 1, 1], [], []>} : vector<16x432xbf16>, vector<432x1024xbf16>, vector<16x1024xf32> -> vector<16x1024xf32>
    %172 = vector.broadcast %0 : vector<1x1024xf32> to vector<16x1024xf32>
    %173 = arith.mulf %171, %172 : vector<16x1024xf32>
    %cst_214 = arith.constant dense<0.000000e+00> : vector<16xf32>
    %174 = vector.multi_reduction <add>, %173, %cst_214 [1] : vector<16x1024xf32> to vector<16xf32>
    %175 = vector.shape_cast %174 : vector<16xf32> to vector<16x1xf32>
    %cst_215 = arith.constant 0.001953125 : f32
    %176 = vector.broadcast %cst_215 : f32 to vector<16x1xf32>
    %177 = arith.mulf %175, %176 : vector<16x1xf32>
    %178 = arith.mulf %173, %171 : vector<16x1024xf32>
    %cst_216 = arith.constant dense<0.000000e+00> : vector<16xf32>
    %179 = vector.multi_reduction <add>, %178, %cst_216 [1] : vector<16x1024xf32> to vector<16xf32>
    %180 = vector.shape_cast %179 : vector<16xf32> to vector<16x1xf32>
    %cst_217 = arith.constant 0.001953125 : f32
    %181 = vector.broadcast %cst_217 : f32 to vector<16x1xf32>
    %182 = arith.mulf %180, %181 : vector<16x1xf32>
    %183 = arith.mulf %177, %177 : vector<16x1xf32>
    %184 = arith.subf %182, %183 : vector<16x1xf32>
    %185 = vector.broadcast %177 : vector<16x1xf32> to vector<16x1024xf32>
    %186 = arith.subf %171, %185 : vector<16x1024xf32>
    %cst_218 = arith.constant 9.99999974E-6 : f32
    %187 = vector.broadcast %cst_218 : f32 to vector<16x1xf32>
    %188 = arith.addf %184, %187 : vector<16x1xf32>
    %189 = math.rsqrt %188 : vector<16x1xf32>
    %190 = vector.broadcast %189 : vector<16x1xf32> to vector<16x1024xf32>
    %191 = arith.mulf %186, %190 : vector<16x1024xf32>
    %cst_219 = arith.constant 0.000000e+00 : f32
    %192 = vector.broadcast %cst_219 : f32 to vector<16x1024xf32>
    %193 = arith.maximumf %191, %192 : vector<16x1024xf32>
    %194 = vector.broadcast %0 : vector<1x1024xf32> to vector<16x1024xf32>
    %195 = arith.mulf %193, %194 : vector<16x1024xf32>
    %196 = vector.extract_strided_slice %195 {offsets = [0, 0], sizes = [8, 1024], strides = [1, 1]} : vector<16x1024xf32> to vector<8x1024xf32>
    %c0_220 = arith.constant 0 : index
    %c0_221 = arith.constant 0 : index
    %c0_222 = arith.constant 0 : index
    %197 = vector.load %arg5[%c0_220, %c0_221, %c0_222] : memref<1x8x1024xf32, #tpu.memory_space<vmem>>, vector<1x8x1024xf32>
    %198 = vector.shape_cast %197 : vector<1x8x1024xf32> to vector<8x1024xf32>
    %199 = vector.shape_cast %196 : vector<8x1024xf32> to vector<1x8x1024xf32>
    tpu.vector_store %arg5[%c0_220, %c0_221, %c0_222], %199 {strides = array<i32>} : memref<1x8x1024xf32, #tpu.memory_space<vmem>>, vector<1x8x1024xf32>,
    return
  }
  func.func @transform_0(%arg0: i32) -> (i32, i32, i32) {
    %c0_i32 = arith.constant 0 : i32
    %c0_i32_0 = arith.constant 0 : i32
    %c0_i32_1 = arith.constant 0 : i32
    return %arg0, %c0_i32, %c0_i32_0 : i32, i32, i32
  }
  func.func @transform_1(%arg0: i32) -> (i32, i32) {
    %c0_i32 = arith.constant 0 : i32
    %c0_i32_0 = arith.constant 0 : i32
    %c0_i32_1 = arith.constant 0 : i32
    return %c0_i32, %c0_i32_0 : i32, i32
  }
  func.func @transform_2(%arg0: i32) -> (i32, i32) {
    %c0_i32 = arith.constant 0 : i32
    %c0_i32_0 = arith.constant 0 : i32
    %c0_i32_1 = arith.constant 0 : i32
    return %c0_i32, %c0_i32_0 : i32, i32
  }
  func.func @transform_3(%arg0: i32) -> (i32, i32) {
    %c0_i32 = arith.constant 0 : i32
    %c0_i32_0 = arith.constant 0 : i32
    %c0_i32_1 = arith.constant 0 : i32
    return %c0_i32, %c0_i32_0 : i32, i32
  }
  func.func @transform_4(%arg0: i32) -> (i32, i32, i32) {
    %c0_i32 = arith.constant 0 : i32
    %c0_i32_0 = arith.constant 0 : i32
    %c0_i32_1 = arith.constant 0 : i32
    return %arg0, %c0_i32, %c0_i32_0 : i32, i32, i32
  }
}

</mosaic_0001>

<bundles_post_ra>
// kernel: tpu_custom_call.1
= control target key start
LH: loop header
LB: loop body
LE: loop exit
PB: predicated region body
PF: predicated region fallthrough
CT: control target
= control target key end

     0   :  { %9 = vsyncpa [#allocation5], 0  ;;  %s14633_s0 = inlined_call_operand.hbm [shape: bf16[2,16,1280], index: 0, kind: input, shape index: {}]   ;;  %s14634_s1 = inlined_call_operand.hbm [shape: bf16[16,432], index: 1, kind: input, shape index: {}]   ;;  %s14635_s2 = inlined_call_operand.hbm [shape: bf16[16,432], index: 2, kind: input, shape index: {}]   ;;  %s14636_s3 = inlined_call_operand.hbm [shape: f32[1,1024], index: 3, kind: input, shape index: {}]   ;;  %s14637_s4 = inlined_call_operand.hbm [shape: f32[2,8,1024], index: 4, kind: output, shape index: {}]  }
   0x1   :  { %11 = vsyncpa [#allocation5 + $0x1], 0 }
   0x2   :  { %12 = vsyncpa [#allocation8], 0 }
   0x3   :  { %13 = vsyncpa [#allocation11], 0 }
   0x4   :  { %14 = vsyncpa [#allocation6], 0 }
   0x5   :  { %16 = vsyncpa [#allocation6 + $0x1], 0  ;;  %s11110_s15 = smov 0   ;;  %s11112_s16 = smov 0  }
   0x6   :  { %s11114_s17 = smov 0   ;;  %s11116_s18 = smov 0  }
   0x7 LB: > { %s11131_s19 = sadd.s32 4294967295, %s11049_s18   ;;  %s8504_s20 = sadd.s32 4294967294, %s11049_s18   ;;  %s11049_s18 = sphi %s11116_s18, %s14922_s18   ;;  %s11045_s17 = sphi %s11114_s17, %s14921_s17   ;;  %s11041_s16 = sphi %s11112_s16, %s14920_s16   ;;  %s11037_s15 = sphi %s11110_s15, %s14919_s15  }
   0x8   : > { %p42_p0 = scmp.ne.s32.totalorder %s11041_s16, %s11037_s15  ;;  %p43_p1 = scmp.eq.s32.totalorder %s11131_s19, 0 }
   0x9   : > { %p129_p2 = scmp.eq.s32.totalorder %s11131_s19, 1  ;;  %p135_p3 = scmp.eq.s32.totalorder %s8504_s20, 1 }
   0xa   : > { %p11140_p4 = por %p43_p1, %p42_p0  ;;  %p8505_p5 = scmp.ge.s32.totalorder %s11049_s18, 1 }
   0xb   : > { %p11145_p6 = por %p135_p3, %p42_p0  ;;  %p142_p7 = scmp.lt.s32.totalorder %s11049_s18, 3 }
   0xc   : > { %s153_s25 = sshll.u32 %s14634_s1, 4  ;;  %s11051_s27 = smov [#allocation7]   ;;  %s154_s25 = int_to_ptr.hbm [resolvable:$true] %s153_s25 }
   0xd   : > { %p11153_p8 = pnand %p8505_p5, %p142_p7  ;;  %s155_s28 = sshll.u32 %s11051_s27, 4  ;;  %s156_s28 = int_to_ptr.vmem [resolvable:$true] %s155_s28 }
   0xe   : > { %s167_s6 = sshll.u32 %s14635_s2, 4  ;;  %s11052_s7 = smov 256   ;;  %s168_s6 = int_to_ptr.hbm [resolvable:$true] %s167_s6 }
   0xf   : > { %p10757_p9 = pneg %p11153_p8  ;;  %s11053_s8 = smov 16  }
  0x10   : > { %s11054_s9 = smov [#allocation9]   ;;  %s182_s13 = sshll.u32 %s14636_s3, 4  ;;  %s183_s13 = int_to_ptr.hbm [resolvable:$true] %s182_s13 }
  0x11   : > { %p11161_p10 = pnand %p10757_p9, %p43_p1  ;;  %s169_s10 = sshll.u32 %s11054_s9, 4  ;;  %s170_s10 = int_to_ptr.vmem [resolvable:$true] %s169_s10 }
  0x12   : > { %s11055_s14 = smov [#allocation10]   ;;  %s11177_s23 = sadd.s32 1, %s11049_s18  }
  0x13   : > { %10760 = dma.hbm_to_vmem [thread:$0]  (!%p11161_p10), %s154_s25, 512, %s156_s28, [#allocation8], %s11052_s7, %s11052_s7, %s11053_s8  }
  0x14   : > { %10763 = dma.hbm_to_vmem [thread:$0]  (!%p11161_p10), %s168_s6, 512, %s170_s10, [#allocation8], %s11052_s7, %s11052_s7, %s11053_s8  }
  0x15   : > { %s184_s20 = sshll.u32 %s11055_s14, 4  ;;  %s26_s24 = ssub.s32 %s11049_s18, %s11177_s23  ;;  %s185_s20 = int_to_ptr.vmem [resolvable:$true] %s184_s20 }
  0x16   : > { %10766 = dma.hbm_to_vmem [thread:$0]  (!%p11161_p10), %s183_s13, 128, %s185_s20, [#allocation11]  }
  0x17   : > { %s29_s25 = sadd.s32 1, %s11045_s17  ;;  %p27_p12 = scmp.eq.s32.totalorder %s26_s24, 0 }
  0x18   : > { %p36_p13 = scmp.ne.s32.totalorder %s11045_s17, %s11041_s16  ;;  %p37_p0 = scmp.eq.s32.totalorder %s11049_s18, 0 }
  0x19   : > { %p10778_p3 = scmp.lt.s32.totalorder %s11049_s18, 2  ;;  %s195_s30 = sand.u32 1, %s11045_s17  }
  0x1a   : > { %s11189_s27 = scalar_select %p27_p12, %s11045_s17, %s29_s25  }
  0x1b   : > { %p38_p5 = por %p37_p0, %p36_p13  ;;  %p11193_p7 = por %p129_p2, %p36_p13 }
  0x1c   : > { %s10739_s5 = smul.u32 80, %s11049_s18  ;;  %s196_s13 = scalar_lea.sflag [#allocation5], %s195_s30 }
  0x1d   : > { %s10738_s6 = smul.u32 80, %s195_s30  ;;  %p11202_p9 = pnand %p10778_p3, %p38_p5 }
  0x1e   : > { %s204_s8 = scalar_lea.hbm %s14633_s0, %s10739_s5  ;;  %s10952_s5 = scalar_lea.hbm %s14633_s0, 160 }
  0x1f   : > { %s205_s10 = sshll.u32 %s204_s8, 4  ;;  %s199_s11 = scalar_lea.vmem [#allocation4], %s10738_s6  ;;  %s206_s10 = int_to_ptr.hbm [resolvable:$true] %s205_s10 }
  0x20   : > { %s207_s12 = sshll.u32 %s199_s11, 4  ;;  %s10945_s14 = sshra.s32 %s206_s10, 4  ;;  %s208_s12 = int_to_ptr.vmem [resolvable:$true] %s207_s12  ;;  %s10946_s14 = int_to_ptr.hbm [resolvable:$true] %s10945_s14 }
  0x21   : > { %s10947_s20 = scalar_lea.hbm %s10946_s14, 80  ;;  %p10949_p10 = pneg %p11202_p9 }
  0x22   : > { %p10948_p2 = scmp.ne.s32.totalorder %s10946_s14, %s10947_s20  ;;  %p10953_p0 = scmp.lt.s32.totalorder %s10946_s14, %s14633_s0 }
  0x23   : > { %p10954_p3 = scmp.lt.s32.totalorder %s10952_s5, %s10947_s20 }
  0x24   : > { %p10950_p12 = pnand %p10949_p10, %p10948_p2 }
  0x25   : > { %p10955_p5 = por %p10954_p3, %p10953_p0 }
  0x26   : > { %p10951_p13 = pneg %p10950_p12 }
  0x28   : > { %p10956_p11 = pnand %p10955_p5, %p10951_p13 }
  0x2a   : > { %10959 = shalt.err (!%p10956_p11)
}
  0x2b   : > { %s11056_s30 = smov 640   ;;  %s11057_s6 = smov 40  }
  0x2c   : > { %10770 = dma.hbm_to_vmem [thread:$0]  (!%p11202_p9), %s206_s10, 1280, %s208_s12, %s196_s13, %s11056_s30, %s11056_s30, %s11057_s6  }
  0x2d   : > { %219 = sbr.rel (%p11153_p8) target bundleno = 2544 (0x9f0), region = 36  ;;  %s11219_s8 = sand.u32 (!%p11153_p8), 1, %s11041_s16  }
  0x2e   : > { %s10740_s11 = smul.u32 (!%p11153_p8), 80, %s11219_s8  ;;  %s222_s14 = scalar_lea.sflag (!%p11153_p8), [#allocation5], %s11219_s8 }
  0x30   : > { %s11223_s20 = scalar_lea.vmem (!%p11153_p8), [#allocation4], %s10740_s11 }
  0x32   : > { %11020 = dma.done.wait (%p11140_p4), %s222_s14, 1280  }
  0x33   : > { %11022 = vsyncadd (%p11140_p4), %s222_s14, 4294966016 }
  0x34   : > { %11024 = dma.done.wait (%p43_p1), [#allocation8], 1024  }
  0x35   : > { %11026 = vsyncadd (%p43_p1), [#allocation8], 4294966272 }
  0x36   : > { %11028 = dma.done.wait (%p43_p1), [#allocation11], 128  }
  0x37   : > { %11030 = vsyncadd (%p43_p1), [#allocation11], 4294967168  ;;  %v11238_v0 = vld [vmem:[%s11223_s20 + $0x10] sm:$0xff]  ;;  %v11241_v1 = vld [vmem:[%s11223_s20] sm:$0xff]  ;;  %s11058_s21 = smov 111   ;;  %s11059_s26 = smov 110  }
  0x38   : > { %292 = vrot.lane.b32.xlu1 %v11238_v0, %s11058_s21  ;;  %288 = vrot.lane.b32.xlu0 %v11241_v1, %s11058_s21  ;;  %v272_v2 = vld [vmem:[%s11223_s20 + $0x20] sm:$0xf]  ;;  %v11250_v3 = vld [vmem:[%s11223_s20 + $0x18] sm:$0xff]  ;;  %s11060_s9 = smov 109   ;;  %s11061_s10 = smov 101   ;;  %vm318_vm0 = vcmask 1043456  }
  0x39   : > { %296 = vrot.lane.b32.xlu2 %v272_v2, %s11058_s21  ;;  %v11253_v4 = vld [vmem:[%s11223_s20 + $0x8] sm:$0xff]  ;;  %v11265_v6 = vld [vmem:[%s11223_s20 + $0x38] sm:$0xff]  ;;  %v11268_v7 = vld [vmem:[%s11223_s20 + $0x30] sm:$0xff]  ;;  %s11062_s12 = smov 100   ;;  %vm320_vm1 = vcmask 908288   ;;  %s11063_s13 = smov 99  }
  0x3a   : > { %v11256_v5 = vld [vmem:[%s11223_s20 + $0x28] sm:$0xff]  ;;  %v11271_v8 = vld [vmem:[%s11223_s20 + $0x40] sm:$0xff]  ;;  %vm403_vm2 = vcmask 900096   ;;  %s11064_s24 = smov 91   ;;  %vm486_vm3 = vcmask 891904   ;;  %s11065_s25 = smov 90  }
  0x3b   : > { %v277_v9 = vld [vmem:[%s11223_s20 + $0x48] sm:$0xf]  ;;  %v356_v10 = vld [vmem:[%s11223_s20 + $0x20] sm:$0xf]  ;;  %vm569_vm4 = vcmask 826368   ;;  %s11066_s5 = smov 89  }
  0x3c   : > { %v361_v11 = vld [vmem:[%s11223_s20 + $0x48] sm:$0xf]  ;;  %v439_v12 = vld [vmem:[%s11223_s20 + $0x20] sm:$0xf]  ;;  %vm652_vm5 = vcmask 818176   ;;  %s11067_s29 = smov 11  }
  0x3d   : > { %v444_v13 = vld [vmem:[%s11223_s20 + $0x48] sm:$0xf]  ;;  %v522_v14 = vld [vmem:[%s11223_s20 + $0x20] sm:$0xf]  ;;  %vm735_vm6 = vcmask 809984   ;;  %s11068_s7 = smov 10  }
  0x3e   : > { %v527_v17 = vld [vmem:[%s11223_s20 + $0x48] sm:$0xf]  ;;  %v605_v19 = vld [vmem:[%s11223_s20 + $0x20] sm:$0xf]  ;;  %vm818_vm7 = vcmask 744448   ;;  %s11069_s30 = smov 9  }
  0x3f   : > { %v610_v35 = vld [vmem:[%s11223_s20 + $0x48] sm:$0xf]  ;;  %v688_v61 = vld [vmem:[%s11223_s20 + $0x20] sm:$0xf]  ;;  %vm901_vm8 = vcmask 736256   ;;  %s11070_s6 = smov 1  }
  0x40   : > { %294 = vrot.lane.b32.xlu1 %v11250_v3, %s11058_s21  ;;  %290 = vrot.lane.b32.xlu0 %v11253_v4, %s11058_s21  ;;  %vm984_vm9 = vcmask 728064   ;;  %s14638_s11 = smov 127   ;;  %vm1067_vm10 = vcmask 89088   ;;  %s14640_s14 = smov 119   ;;  %vm1150_vm11 = vcmask 80896   ;;  %vm1233_vm12 = vcmask 72704  }
  0x41   : > { %298 = vrot.lane.b32.xlu2 %v11256_v5, %s11058_s21  ;;  %vm14674_vm13 = vcmask 7168   ;;  %vm14651_vm14 = vcmask 1039360   ;;  %vm14648_vm15 = vcmask 973824  }
  0x48   : > { %302 = vrot.lane.b32.xlu1 %v11265_v6, %s11058_s21  ;;  %300 = vrot.lane.b32.xlu0 %v11268_v7, %s11058_s21 }
  0x49   : > { %304 = vrot.lane.b32.xlu2 %v11271_v8, %s11058_s21 }
  0x50   : > { %372 = vrot.lane.b32.xlu1 %v11241_v1, %s11059_s26  ;;  %306 = vrot.lane.b32.xlu0 %v277_v9, %s11058_s21 }
  0x51   : > { %374 = vrot.lane.b32.xlu2 %v11253_v4, %s11059_s26 }
  0x58   : > { %378 = vrot.lane.b32.xlu1 %v11250_v3, %s11059_s26  ;;  %376 = vrot.lane.b32.xlu0 %v11238_v0, %s11059_s26 }
  0x59   : > { %380 = vrot.lane.b32.xlu2 %v356_v10, %s11059_s26 }
  0x60   : > { %384 = vrot.lane.b32.xlu1 %v11268_v7, %s11059_s26  ;;  %382 = vrot.lane.b32.xlu0 %v11256_v5, %s11059_s26 }
  0x61   : > { %386 = vrot.lane.b32.xlu2 %v11265_v6, %s11059_s26 }
  0x68   : > { %390 = vrot.lane.b32.xlu1 %v361_v11, %s11059_s26  ;;  %388 = vrot.lane.b32.xlu0 %v11271_v8, %s11059_s26 }
  0x69   : > { %455 = vrot.lane.b32.xlu2 %v11241_v1, %s11060_s9 }
  0x70   : > { %459 = vrot.lane.b32.xlu1 %v11238_v0, %s11060_s9  ;;  %457 = vrot.lane.b32.xlu0 %v11253_v4, %s11060_s9 }
  0x71   : > { %461 = vrot.lane.b32.xlu2 %v11250_v3, %s11060_s9 }
  0x78   : > { %465 = vrot.lane.b32.xlu1 %v11256_v5, %s11060_s9  ;;  %463 = vrot.lane.b32.xlu0 %v439_v12, %s11060_s9 }
  0x79   : > { %467 = vrot.lane.b32.xlu2 %v11268_v7, %s11060_s9 }
  0x80   : > { %471 = vrot.lane.b32.xlu1 %v11271_v8, %s11060_s9  ;;  %469 = vrot.lane.b32.xlu0 %v11265_v6, %s11060_s9 }
  0x81   : > { %473 = vrot.lane.b32.xlu2 %v444_v13, %s11060_s9 }
  0x88   : > { %540 = vrot.lane.b32.xlu1 %v11253_v4, %s11061_s10  ;;  %538 = vrot.lane.b32.xlu0 %v11241_v1, %s11061_s10 }
  0x89   : > { %542 = vrot.lane.b32.xlu2 %v11238_v0, %s11061_s10 }
  0x90   : > { %546 = vrot.lane.b32.xlu1 %v522_v14, %s11061_s10  ;;  %544 = vrot.lane.b32.xlu0 %v11250_v3, %s11061_s10 }
  0x91   : > { %548 = vrot.lane.b32.xlu2 %v11256_v5, %s11061_s10 }
  0x93   : > { %v297_v15 = vpop.permute.xlu2 %296 }
  0x94   : > { %v312_v23 = vrot.slane %v297_v15, 4 }
  0x98   : > { %552 = vrot.lane.b32.xlu1 %v11265_v6, %s11061_s10  ;;  %550 = vrot.lane.b32.xlu0 %v11268_v7, %s11061_s10 }
  0x99   : > { %554 = vrot.lane.b32.xlu2 %v11271_v8, %s11061_s10 }
  0x9b   : > { %v299_v16 = vpop.permute.xlu2 %298 }
  0x9c   : > { %v313_v40 = vrot.slane %v299_v16, 4 }
  0xa0   : > { %621 = vrot.lane.b32.xlu1 %v11241_v1, %s11062_s12  ;;  %556 = vrot.lane.b32.xlu0 %v527_v17, %s11061_s10 }
  0xa1   : > { %623 = vrot.lane.b32.xlu2 %v11253_v4, %s11062_s12 }
  0xa3   : > { %v11345_v18 = vpop.permute.xlu2 %304 }
  0xa4   : > { %v316_v41 = vrot.slane %v11345_v18, 4 }
  0xa8   : > { %627 = vrot.lane.b32.xlu1 %v11250_v3, %s11062_s12  ;;  %625 = vrot.lane.b32.xlu0 %v11238_v0, %s11062_s12 }
  0xa9   : > { %629 = vrot.lane.b32.xlu2 %v605_v19, %s11062_s12 }
  0xaa   : > { %v293_v20 = vpop.permute.xlu1 %292  ;;  %v289_v21 = vpop.permute.xlu0 %288 }
  0xab   : > { %v11353_v22 = vpop.permute.xlu2 %374  ;;  %v310_v26 = vrot.slane %v293_v20, 4  ;;  %v308_v27 = vrot.slane %v289_v21, 4 }
  0xac   : > { %v393_v53 = vrot.slane %v11353_v22, 4 }
  0xb0   : > { %633 = vrot.lane.b32.xlu1 %v11268_v7, %s11062_s12  ;;  %631 = vrot.lane.b32.xlu0 %v11256_v5, %s11062_s12 }
  0xb1   : > { %635 = vrot.lane.b32.xlu2 %v11265_v6, %s11062_s12 }
  0xb2   : > { %v295_v24 = vpop.permute.xlu1 %294  ;;  %v291_v25 = vpop.permute.xlu0 %290 }
  0xb3   : > { %v311_v28 = vrot.slane %v295_v24, 4  ;;  %v309_v29 = vrot.slane %v291_v25, 4  ;;  %v381_v30 = vpop.permute.xlu2 %380 }
  0xb4   : > { %v396_v2 = vrot.slane %v381_v30, 4 }
  0xb5   : > { %v324_v31 = vsel %vm318_vm0, %v310_v26, %v311_v28  ;;  %v326_v32 = vsel %vm318_vm0, %v311_v28, %v312_v23  ;;  %v319_v33 = vsel %vm318_vm0, %v308_v27, %v309_v29  ;;  %v322_v34 = vsel %vm318_vm0, %v309_v29, %v310_v26 }
  0xb6   : > { %v325_v36 = vsel %vm320_vm1, %v293_v20, %v324_v31  ;;  %v327_v37 = vsel %vm320_vm1, %v295_v24, %v326_v32  ;;  %v321_v38 = vsel %vm320_vm1, %v289_v21, %v319_v33  ;;  %v323_v39 = vsel %vm320_vm1, %v291_v25, %v322_v34  ;;  %v693_v20 = vld [vmem:[%s11223_s20 + $0x48] sm:$0xf] }
  0xb7   : > { %346 = vst [vmem:[#allocation2 + $0x10] sm:$0xff] %v325_v36 }
  0xb8   : > { %347 = vst [vmem:[#allocation2 + $0x18] sm:$0xff] %v327_v37  ;;  %639 = vrot.lane.b32.xlu1 %v610_v35, %s11062_s12  ;;  %637 = vrot.lane.b32.xlu0 %v11271_v8, %s11062_s12 }
  0xb9   : > { %344 = vst [vmem:[#allocation2] sm:$0xff] %v321_v38  ;;  %704 = vrot.lane.b32.xlu2 %v11241_v1, %s11063_s13  ;;  %v771_v38 = vld [vmem:[%s11223_s20 + $0x20] sm:$0xf] }
  0xba   : > { %345 = vst [vmem:[#allocation2 + $0x8] sm:$0xff] %v323_v39  ;;  %v303_v42 = vpop.permute.xlu1 %302  ;;  %v301_v43 = vpop.permute.xlu0 %300 }
  0xbb   : > { %v315_v44 = vrot.slane %v303_v42, 4  ;;  %v314_v45 = vrot.slane %v301_v43, 4  ;;  %v11376_v46 = vpop.permute.xlu2 %386 }
  0xbc   : > { %v399_v21 = vrot.slane %v11376_v46, 4 }
  0xbd   : > { %v332_v47 = vsel %vm318_vm0, %v315_v44, %v316_v41  ;;  %v328_v48 = vsel %vm318_vm0, %v313_v40, %v314_v45  ;;  %v330_v49 = vsel %vm318_vm0, %v314_v45, %v315_v44 }
  0xbe   : > { %v333_v50 = vsel %vm320_vm1, %v303_v42, %v332_v47  ;;  %v329_v51 = vsel %vm320_vm1, %v299_v16, %v328_v48  ;;  %v331_v52 = vsel %vm320_vm1, %v301_v43, %v330_v49 }
  0xbf   : > { %350 = vst [vmem:[#allocation2 + $0x30] sm:$0xff] %v333_v50 }
  0xc0   : > { %348 = vst [vmem:[#allocation2 + $0x20] sm:$0xff] %v329_v51  ;;  %708 = vrot.lane.b32.xlu1 %v11238_v0, %s11063_s13  ;;  %706 = vrot.lane.b32.xlu0 %v11253_v4, %s11063_s13 }
  0xc1   : > { %349 = vst [vmem:[#allocation2 + $0x28] sm:$0xff] %v331_v52  ;;  %710 = vrot.lane.b32.xlu2 %v11250_v3, %s11063_s13 }
  0xc2   : > { %v373_v54 = vpop.permute.xlu1 %372  ;;  %v307_v55 = vpop.permute.xlu0 %306 }
  0xc3   : > { %v392_v56 = vrot.slane %v373_v54, 4  ;;  %v317_v57 = vrot.slane %v307_v55, 4  ;;  %v11391_v58 = vpop.permute.xlu2 %455 }
  0xc5   : > { %v402_v59 = vsel %vm318_vm0, %v392_v56, %v393_v53  ;;  %v334_v60 = vsel %vm318_vm0, %v316_v41, %v317_v57  ;;  %v475_v41 = vrot.slane %v11391_v58, 4 }
  0xc6   : > { %v404_v62 = vsel %vm403_vm2, %v373_v54, %v402_v59  ;;  %v335_v63 = vsel %vm320_vm1, %v11345_v18, %v334_v60 }
  0xc7   : > { %427 = vst [vmem:[#allocation2 + $0x40] sm:$0xff] %v404_v62  ;;  %v776_v62 = vld [vmem:[%s11223_s20 + $0x48] sm:$0xf] }
  0xc8   : > { %351 = vst [vmem:[#allocation2 + $0x38] sm:$0xff] %v335_v63  ;;  %714 = vrot.lane.b32.xlu1 %v11256_v5, %s11063_s13  ;;  %712 = vrot.lane.b32.xlu0 %v688_v61, %s11063_s13 }
  0xc9   : > { %716 = vrot.lane.b32.xlu2 %v11268_v7, %s11063_s13 }
  0xca   : > { %v379_v9 = vpop.permute.xlu1 %378  ;;  %v377_v10 = vpop.permute.xlu0 %376 }
  0xcb   : > { %v395_v11 = vrot.slane %v379_v9, 4  ;;  %v394_v12 = vrot.slane %v377_v10, 4  ;;  %v11404_v13 = vpop.permute.xlu2 %461 }
  0xcc   : > { %v478_v42 = vrot.slane %v11404_v13, 4 }
  0xcd   : > { %v409_v14 = vsel %vm318_vm0, %v395_v11, %v396_v2  ;;  %v405_v15 = vsel %vm318_vm0, %v393_v53, %v394_v12  ;;  %v407_v16 = vsel %vm318_vm0, %v394_v12, %v395_v11 }
  0xce   : > { %v410_v17 = vsel %vm403_vm2, %v379_v9, %v409_v14  ;;  %v406_v18 = vsel %vm403_vm2, %v11353_v22, %v405_v15  ;;  %v408_v19 = vsel %vm403_vm2, %v377_v10, %v407_v16 }
  0xcf   : > { %430 = vst [vmem:[#allocation2 + $0x58] sm:$0xff] %v410_v17 }
  0xd0   : > { %428 = vst [vmem:[#allocation2 + $0x48] sm:$0xff] %v406_v18  ;;  %720 = vrot.lane.b32.xlu1 %v11271_v8, %s11063_s13  ;;  %718 = vrot.lane.b32.xlu0 %v11265_v6, %s11063_s13 }
  0xd1   : > { %429 = vst [vmem:[#allocation2 + $0x50] sm:$0xff] %v408_v19  ;;  %722 = vrot.lane.b32.xlu2 %v693_v20, %s11063_s13 }
  0xd2   : > { %v385_v23 = vpop.permute.xlu1 %384  ;;  %v383_v24 = vpop.permute.xlu0 %382 }
  0xd3   : > { %v398_v25 = vrot.slane %v385_v23, 4  ;;  %v397_v22 = vrot.slane %v383_v24, 4  ;;  %v11420_v26 = vpop.permute.xlu2 %467 }
  0xd4   : > { %v481_v54 = vrot.slane %v11420_v26, 4 }
  0xd5   : > { %v413_v27 = vsel %vm318_vm0, %v398_v25, %v399_v21  ;;  %v411_v28 = vsel %vm318_vm0, %v397_v22, %v398_v25 }
  0xd6   : > { %v414_v29 = vsel %vm403_vm2, %v385_v23, %v413_v27  ;;  %v412_v30 = vsel %vm403_vm2, %v383_v24, %v411_v28 }
  0xd7   : > { %432 = vst [vmem:[#allocation2 + $0x68] sm:$0xff] %v414_v29 }
  0xd8   : > { %431 = vst [vmem:[#allocation2 + $0x60] sm:$0xff] %v412_v30  ;;  %789 = vrot.lane.b32.xlu1 %v11253_v4, %s11064_s24  ;;  %787 = vrot.lane.b32.xlu0 %v11241_v1, %s11064_s24 }
  0xd9   : > { %791 = vrot.lane.b32.xlu2 %v11238_v0, %s11064_s24 }
  0xda   : > { %v391_v31 = vpop.permute.xlu1 %390  ;;  %v389_v32 = vpop.permute.xlu0 %388 }
  0xdb   : > { %v401_v33 = vrot.slane %v391_v31, 4  ;;  %v400_v34 = vrot.slane %v389_v32, 4  ;;  %v474_v35 = vpop.permute.xlu2 %473 }
  0xdc   : > { %v484_v9 = vrot.slane %v474_v35, 4 }
  0xdd   : > { %v415_v36 = vsel %vm318_vm0, %v399_v21, %v400_v34  ;;  %v417_v37 = vsel %vm318_vm0, %v400_v34, %v401_v33  ;;  %v854_v21 = vld [vmem:[%s11223_s20 + $0x20] sm:$0xf] }
  0xde   : > { %v416_v39 = vsel %vm403_vm2, %v11376_v46, %v415_v36  ;;  %v418_v40 = vsel %vm403_vm2, %v389_v32, %v417_v37 }
  0xdf   : > { %433 = vst [vmem:[#allocation2 + $0x70] sm:$0xff] %v416_v39  ;;  %v859_v39 = vld [vmem:[%s11223_s20 + $0x48] sm:$0xf] }
  0xe0   : > { %434 = vst [vmem:[#allocation2 + $0x78] sm:$0xff] %v418_v40  ;;  %795 = vrot.lane.b32.xlu1 %v771_v38, %s11064_s24  ;;  %793 = vrot.lane.b32.xlu0 %v11250_v3, %s11064_s24 }
  0xe1   : > { %797 = vrot.lane.b32.xlu2 %v11256_v5, %s11064_s24 }
  0xe2   : > { %v460_v43 = vpop.permute.xlu1 %459  ;;  %v458_v44 = vpop.permute.xlu0 %457 }
  0xe3   : > { %v477_v45 = vrot.slane %v460_v43, 4  ;;  %v476_v46 = vrot.slane %v458_v44, 4  ;;  %v11445_v47 = vpop.permute.xlu2 %542 }
  0xe4   : > { %v560_v23 = vrot.slane %v11445_v47, 4 }
  0xe5   : > { %v490_v48 = vsel %vm318_vm0, %v477_v45, %v478_v42  ;;  %v485_v49 = vsel %vm318_vm0, %v475_v41, %v476_v46  ;;  %v488_v50 = vsel %vm318_vm0, %v476_v46, %v477_v45 }
  0xe6   : > { %v491_v51 = vsel %vm486_vm3, %v460_v43, %v490_v48  ;;  %v487_v52 = vsel %vm486_vm3, %v11391_v58, %v485_v49  ;;  %v489_v53 = vsel %vm486_vm3, %v458_v44, %v488_v50 }
  0xe7   : > { %512 = vst [vmem:[#allocation2 + $0x90] sm:$0xff] %v491_v51 }
  0xe8   : > { %510 = vst [vmem:[#allocation2 + $0x80] sm:$0xff] %v487_v52  ;;  %801 = vrot.lane.b32.xlu1 %v11265_v6, %s11064_s24  ;;  %799 = vrot.lane.b32.xlu0 %v11268_v7, %s11064_s24 }
  0xe9   : > { %511 = vst [vmem:[#allocation2 + $0x88] sm:$0xff] %v489_v53  ;;  %803 = vrot.lane.b32.xlu2 %v11271_v8, %s11064_s24 }
  0xea   : > { %v466_v55 = vpop.permute.xlu1 %465  ;;  %v464_v56 = vpop.permute.xlu0 %463 }
  0xeb   : > { %v480_v57 = vrot.slane %v466_v55, 4  ;;  %v479_v58 = vrot.slane %v464_v56, 4  ;;  %v11461_v59 = vpop.permute.xlu2 %548 }
  0xed   : > { %v494_v60 = vsel %vm318_vm0, %v480_v57, %v481_v54  ;;  %v492_v61 = vsel %vm318_vm0, %v478_v42, %v479_v58  ;;  %v563_v42 = vrot.slane %v11461_v59, 4 }
  0xee   : > { %v495_v63 = vsel %vm486_vm3, %v466_v55, %v494_v60  ;;  %v493_v2 = vsel %vm486_vm3, %v11404_v13, %v492_v61 }
  0xef   : > { %514 = vst [vmem:[#allocation2 + $0xa0] sm:$0xff] %v495_v63  ;;  %v937_v63 = vld [vmem:[%s11223_s20 + $0x20] sm:$0xf] }
  0xf0   : > { %513 = vst [vmem:[#allocation2 + $0x98] sm:$0xff] %v493_v2  ;;  %870 = vrot.lane.b32.xlu1 %v11241_v1, %s11065_s25  ;;  %805 = vrot.lane.b32.xlu0 %v776_v62, %s11064_s24 }
  0xf1   : > { %872 = vrot.lane.b32.xlu2 %v11253_v4, %s11065_s25 }
  0xf2   : > { %v472_v10 = vpop.permute.xlu1 %471  ;;  %v470_v11 = vpop.permute.xlu0 %469 }
  0xf3   : > { %v483_v12 = vrot.slane %v472_v10, 4  ;;  %v482_v14 = vrot.slane %v470_v11, 4  ;;  %v11474_v15 = vpop.permute.xlu2 %554 }
  0xf4   : > { %v566_v43 = vrot.slane %v11474_v15, 4 }
  0xf5   : > { %v500_v13 = vsel %vm318_vm0, %v483_v12, %v484_v9  ;;  %v496_v16 = vsel %vm318_vm0, %v481_v54, %v482_v14  ;;  %v498_v17 = vsel %vm318_vm0, %v482_v14, %v483_v12 }
  0xf6   : > { %v501_v18 = vsel %vm486_vm3, %v472_v10, %v500_v13  ;;  %v497_v19 = vsel %vm486_vm3, %v11420_v26, %v496_v16  ;;  %v499_v20 = vsel %vm486_vm3, %v470_v11, %v498_v17 }
  0xf7   : > { %517 = vst [vmem:[#allocation2 + $0xb8] sm:$0xff] %v501_v18 }
  0xf8   : > { %515 = vst [vmem:[#allocation2 + $0xa8] sm:$0xff] %v497_v19  ;;  %876 = vrot.lane.b32.xlu1 %v11250_v3, %s11065_s25  ;;  %874 = vrot.lane.b32.xlu0 %v11238_v0, %s11065_s25 }
  0xf9   : > { %516 = vst [vmem:[#allocation2 + $0xb0] sm:$0xff] %v499_v20  ;;  %878 = vrot.lane.b32.xlu2 %v854_v21, %s11065_s25 }
  0xfa   : > { %v541_v24 = vpop.permute.xlu1 %540  ;;  %v539_v25 = vpop.permute.xlu0 %538 }
  0xfb   : > { %v559_v22 = vrot.slane %v541_v24, 4  ;;  %v558_v26 = vrot.slane %v539_v25, 4  ;;  %v11490_v27 = vpop.permute.xlu2 %623 }
  0xfc   : > { %v642_v55 = vrot.slane %v11490_v27, 4 }
  0xfd   : > { %v571_v28 = vsel %vm318_vm0, %v559_v22, %v560_v23  ;;  %v568_v29 = vsel %vm318_vm0, %v558_v26, %v559_v22 }
  0xfe   : > { %v572_v30 = vsel %vm569_vm4, %v541_v24, %v571_v28  ;;  %v570_v31 = vsel %vm569_vm4, %v539_v25, %v568_v29 }
  0xff   : > { %594 = vst [vmem:[#allocation2 + $0xc8] sm:$0xff] %v572_v30 }
 0x100   : > { %593 = vst [vmem:[#allocation2 + $0xc0] sm:$0xff] %v570_v31  ;;  %882 = vrot.lane.b32.xlu1 %v11268_v7, %s11065_s25  ;;  %880 = vrot.lane.b32.xlu0 %v11256_v5, %s11065_s25 }
 0x101   : > { %884 = vrot.lane.b32.xlu2 %v11265_v6, %s11065_s25 }
 0x102   : > { %v547_v32 = vpop.permute.xlu1 %546  ;;  %v545_v33 = vpop.permute.xlu0 %544 }
 0x103   : > { %v562_v34 = vrot.slane %v547_v32, 4  ;;  %v561_v35 = vrot.slane %v545_v33, 4  ;;  %v630_v36 = vpop.permute.xlu2 %629 }
 0x104   : > { %v645_v10 = vrot.slane %v630_v36, 4 }
 0x105   : > { %v573_v37 = vsel %vm318_vm0, %v560_v23, %v561_v35  ;;  %v575_v38 = vsel %vm318_vm0, %v561_v35, %v562_v34  ;;  %v942_v23 = vld [vmem:[%s11223_s20 + $0x48] sm:$0xf] }
 0x106   : > { %v574_v40 = vsel %vm569_vm4, %v11445_v47, %v573_v37  ;;  %v576_v41 = vsel %vm569_vm4, %v545_v33, %v575_v38 }
 0x107   : > { %595 = vst [vmem:[#allocation2 + $0xd0] sm:$0xff] %v574_v40  ;;  %v1020_v40 = vld [vmem:[%s11223_s20 + $0x20] sm:$0xf] }
 0x108   : > { %596 = vst [vmem:[#allocation2 + $0xd8] sm:$0xff] %v576_v41  ;;  %888 = vrot.lane.b32.xlu1 %v859_v39, %s11065_s25  ;;  %886 = vrot.lane.b32.xlu0 %v11271_v8, %s11065_s25 }
 0x109   : > { %953 = vrot.lane.b32.xlu2 %v11241_v1, %s11066_s5 }
 0x10a   : > { %v553_v44 = vpop.permute.xlu1 %552  ;;  %v551_v45 = vpop.permute.xlu0 %550 }
 0x10b   : > { %v565_v46 = vrot.slane %v553_v44, 4  ;;  %v564_v47 = vrot.slane %v551_v45, 4  ;;  %v11515_v48 = vpop.permute.xlu2 %635 }
 0x10c   : > { %v648_v24 = vrot.slane %v11515_v48, 4 }
 0x10d   : > { %v581_v49 = vsel %vm318_vm0, %v565_v46, %v566_v43  ;;  %v577_v50 = vsel %vm318_vm0, %v563_v42, %v564_v47  ;;  %v579_v51 = vsel %vm318_vm0, %v564_v47, %v565_v46 }
 0x10e   : > { %v582_v52 = vsel %vm569_vm4, %v553_v44, %v581_v49  ;;  %v578_v53 = vsel %vm569_vm4, %v11461_v59, %v577_v50  ;;  %v580_v54 = vsel %vm569_vm4, %v551_v45, %v579_v51 }
 0x10f   : > { %599 = vst [vmem:[#allocation2 + $0xf0] sm:$0xff] %v582_v52 }
 0x110   : > { %597 = vst [vmem:[#allocation2 + $0xe0] sm:$0xff] %v578_v53  ;;  %957 = vrot.lane.b32.xlu1 %v11238_v0, %s11066_s5  ;;  %955 = vrot.lane.b32.xlu0 %v11253_v4, %s11066_s5 }
 0x111   : > { %598 = vst [vmem:[#allocation2 + $0xe8] sm:$0xff] %v580_v54  ;;  %959 = vrot.lane.b32.xlu2 %v11250_v3, %s11066_s5 }
 0x112   : > { %v622_v56 = vpop.permute.xlu1 %621  ;;  %v557_v57 = vpop.permute.xlu0 %556 }
 0x113   : > { %v641_v58 = vrot.slane %v622_v56, 4  ;;  %v567_v59 = vrot.slane %v557_v57, 4  ;;  %v11531_v60 = vpop.permute.xlu2 %704 }
 0x115   : > { %v651_v61 = vsel %vm318_vm0, %v641_v58, %v642_v55  ;;  %v583_v62 = vsel %vm318_vm0, %v566_v43, %v567_v59  ;;  %v724_v43 = vrot.slane %v11531_v60, 4 }
 0x116   : > { %v653_v2 = vsel %vm652_vm5, %v622_v56, %v651_v61  ;;  %v584_v9 = vsel %vm569_vm4, %v11474_v15, %v583_v62 }
 0x117   : > { %676 = vst [vmem:[#allocation2 + $0x100] sm:$0xff] %v653_v2 }
 0x118   : > { %600 = vst [vmem:[#allocation2 + $0xf8] sm:$0xff] %v584_v9  ;;  %963 = vrot.lane.b32.xlu1 %v11256_v5, %s11066_s5  ;;  %961 = vrot.lane.b32.xlu0 %v937_v63, %s11066_s5 }
 0x119   : > { %965 = vrot.lane.b32.xlu2 %v11268_v7, %s11066_s5 }
 0x11a   : > { %v628_v11 = vpop.permute.xlu1 %627  ;;  %v626_v12 = vpop.permute.xlu0 %625 }
 0x11b   : > { %v644_v14 = vrot.slane %v628_v11, 4  ;;  %v643_v13 = vrot.slane %v626_v12, 4  ;;  %v11544_v16 = vpop.permute.xlu2 %710 }
 0x11c   : > { %v727_v44 = vrot.slane %v11544_v16, 4 }
 0x11d   : > { %v658_v15 = vsel %vm318_vm0, %v644_v14, %v645_v10  ;;  %v654_v17 = vsel %vm318_vm0, %v642_v55, %v643_v13  ;;  %v656_v18 = vsel %vm318_vm0, %v643_v13, %v644_v14 }
 0x11e   : > { %v659_v19 = vsel %vm652_vm5, %v628_v11, %v658_v15  ;;  %v655_v20 = vsel %vm652_vm5, %v11490_v27, %v654_v17  ;;  %v657_v21 = vsel %vm652_vm5, %v626_v12, %v656_v18 }
 0x11f   : > { %679 = vst [vmem:[#allocation2 + $0x118] sm:$0xff] %v659_v19 }
 0x120   : > { %677 = vst [vmem:[#allocation2 + $0x108] sm:$0xff] %v655_v20  ;;  %969 = vrot.lane.b32.xlu1 %v11271_v8, %s11066_s5  ;;  %967 = vrot.lane.b32.xlu0 %v11265_v6, %s11066_s5 }
 0x121   : > { %678 = vst [vmem:[#allocation2 + $0x110] sm:$0xff] %v657_v21  ;;  %971 = vrot.lane.b32.xlu2 %v942_v23, %s11066_s5  ;;  %v1103_v21 = vld [vmem:[%s11223_s20 + $0x20] sm:$0xf] }
 0x122   : > { %v634_v25 = vpop.permute.xlu1 %633  ;;  %v632_v22 = vpop.permute.xlu0 %631 }
 0x123   : > { %v647_v26 = vrot.slane %v634_v25, 4  ;;  %v646_v27 = vrot.slane %v632_v22, 4  ;;  %v11560_v28 = vpop.permute.xlu2 %716 }
 0x124   : > { %v730_v56 = vrot.slane %v11560_v28, 4 }
 0x125   : > { %v662_v29 = vsel %vm318_vm0, %v647_v26, %v648_v24  ;;  %v660_v30 = vsel %vm318_vm0, %v646_v27, %v647_v26 }
 0x126   : > { %v663_v31 = vsel %vm652_vm5, %v634_v25, %v662_v29  ;;  %v661_v32 = vsel %vm652_vm5, %v632_v22, %v660_v30  ;;  %v11637_v29 = vld [vmem:[%s11223_s20 + $0x38] sm:$0xff] }
 0x127   : > { %681 = vst [vmem:[#allocation2 + $0x128] sm:$0xff] %v663_v31 }
 0x128   : > { %680 = vst [vmem:[#allocation2 + $0x120] sm:$0xff] %v661_v32  ;;  %1038 = vrot.lane.b32.xlu1 %v11253_v4, %s11067_s29  ;;  %1036 = vrot.lane.b32.xlu0 %v11241_v1, %s11067_s29 }
 0x129   : > { %1040 = vrot.lane.b32.xlu2 %v11238_v0, %s11067_s29 }
 0x12a   : > { %v640_v33 = vpop.permute.xlu1 %639  ;;  %v638_v34 = vpop.permute.xlu0 %637 }
 0x12b   : > { %v650_v35 = vrot.slane %v640_v33, 4  ;;  %v649_v36 = vrot.slane %v638_v34, 4  ;;  %v723_v37 = vpop.permute.xlu2 %722 }
 0x12c   : > { %v733_v10 = vrot.slane %v723_v37, 4  ;;  %v1108_v37 = vld [vmem:[%s11223_s20 + $0x48] sm:$0xf] }
 0x12d   : > { %v664_v38 = vsel %vm318_vm0, %v648_v24, %v649_v36  ;;  %v666_v39 = vsel %vm318_vm0, %v649_v36, %v650_v35 }
 0x12e   : > { %v665_v41 = vsel %vm652_vm5, %v11515_v48, %v664_v38  ;;  %v667_v42 = vsel %vm652_vm5, %v638_v34, %v666_v39 }
 0x12f   : > { %682 = vst [vmem:[#allocation2 + $0x130] sm:$0xff] %v665_v41 }
 0x130   : > { %683 = vst [vmem:[#allocation2 + $0x138] sm:$0xff] %v667_v42  ;;  %1044 = vrot.lane.b32.xlu1 %v1020_v40, %s11067_s29  ;;  %1042 = vrot.lane.b32.xlu0 %v11250_v3, %s11067_s29 }
 0x131   : > { %1046 = vrot.lane.b32.xlu2 %v11256_v5, %s11067_s29 }
 0x132   : > { %v709_v45 = vpop.permute.xlu1 %708  ;;  %v707_v46 = vpop.permute.xlu0 %706 }
 0x133   : > { %v726_v47 = vrot.slane %v709_v45, 4  ;;  %v725_v48 = vrot.slane %v707_v46, 4  ;;  %v11585_v49 = vpop.permute.xlu2 %791 }
 0x135   : > { %v739_v50 = vsel %vm318_vm0, %v726_v47, %v727_v44  ;;  %v734_v51 = vsel %vm318_vm0, %v724_v43, %v725_v48  ;;  %v737_v52 = vsel %vm318_vm0, %v725_v48, %v726_v47  ;;  %v11667_v48 = vld [vmem:[%s11223_s20 + $0x10] sm:$0xff] }
 0x136   : > { %v740_v53 = vsel %vm735_vm6, %v709_v45, %v739_v50  ;;  %v736_v54 = vsel %vm735_vm6, %v11531_v60, %v734_v51  ;;  %v738_v55 = vsel %vm735_vm6, %v707_v46, %v737_v52 }
 0x137   : > { %761 = vst [vmem:[#allocation2 + $0x150] sm:$0xff] %v740_v53  ;;  %v11677_v53 = vld [vmem:[%s11223_s20 + $0x18] sm:$0xff] }
 0x138   : > { %759 = vst [vmem:[#allocation2 + $0x140] sm:$0xff] %v736_v54  ;;  %1050 = vrot.lane.b32.xlu1 %v11265_v6, %s11067_s29  ;;  %1048 = vrot.lane.b32.xlu0 %v11268_v7, %s11067_s29  ;;  %v1025_v6 = vld [vmem:[%s11223_s20 + $0x48] sm:$0xf] }
 0x139   : > { %760 = vst [vmem:[#allocation2 + $0x148] sm:$0xff] %v738_v55  ;;  %1052 = vrot.lane.b32.xlu2 %v11271_v8, %s11067_s29 }
 0x13a   : > { %v715_v57 = vpop.permute.xlu1 %714  ;;  %v713_v58 = vpop.permute.xlu0 %712 }
 0x13b   : > { %v729_v59 = vrot.slane %v715_v57, 4  ;;  %v728_v60 = vrot.slane %v713_v58, 4  ;;  %v11601_v61 = vpop.permute.xlu2 %797 }
 0x13c   : > { %v812_v39 = vrot.slane %v11601_v61, 4 }
 0x13d   : > { %v743_v62 = vsel %vm318_vm0, %v729_v59, %v730_v56  ;;  %v741_v63 = vsel %vm318_vm0, %v727_v44, %v728_v60 }
 0x13e   : > { %v744_v2 = vsel %vm735_vm6, %v715_v57, %v743_v62  ;;  %v742_v9 = vsel %vm735_vm6, %v11544_v16, %v741_v63  ;;  %v11691_v62 = vld [vmem:[%s11223_s20 + $0x28] sm:$0xff]  ;;  %v1186_v63 = vld [vmem:[%s11223_s20 + $0x20] sm:$0xf] }
 0x13f   : > { %763 = vst [vmem:[#allocation2 + $0x160] sm:$0xff] %v744_v2 }
 0x140   : > { %762 = vst [vmem:[#allocation2 + $0x158] sm:$0xff] %v742_v9  ;;  %1119 = vrot.lane.b32.xlu1 %v11241_v1, %s11068_s7  ;;  %1054 = vrot.lane.b32.xlu0 %v1025_v6, %s11067_s29  ;;  %v11698_v9 = vld [vmem:[%s11223_s20 + $0x30] sm:$0xff] }
 0x141   : > { %1121 = vrot.lane.b32.xlu2 %v11253_v4, %s11068_s7  ;;  %v809_v4 = vrot.slane %v11585_v49, 4 }
 0x142   : > { %v721_v11 = vpop.permute.xlu1 %720  ;;  %v719_v12 = vpop.permute.xlu0 %718 }
 0x143   : > { %v732_v14 = vrot.slane %v721_v11, 4  ;;  %v731_v13 = vrot.slane %v719_v12, 4  ;;  %v11614_v15 = vpop.permute.xlu2 %803 }
 0x144   : > { %v815_v40 = vrot.slane %v11614_v15, 4 }
 0x145   : > { %v749_v16 = vsel %vm318_vm0, %v732_v14, %v733_v10  ;;  %v745_v17 = vsel %vm318_vm0, %v730_v56, %v731_v13  ;;  %v747_v18 = vsel %vm318_vm0, %v731_v13, %v732_v14 }
 0x146   : > { %v750_v1 = vsel %vm735_vm6, %v721_v11, %v749_v16  ;;  %v746_v19 = vsel %vm735_vm6, %v11560_v28, %v745_v17  ;;  %v748_v20 = vsel %vm735_vm6, %v719_v12, %v747_v18 }
 0x147   : > { %766 = vst [vmem:[#allocation2 + $0x178] sm:$0xff] %v750_v1  ;;  %v11711_v1 = vld [vmem:[%s11223_s20 + $0x40] sm:$0xff] }
 0x148   : > { %764 = vst [vmem:[#allocation2 + $0x168] sm:$0xff] %v746_v19  ;;  %1125 = vrot.lane.b32.xlu1 %v11250_v3, %s11068_s7  ;;  %1123 = vrot.lane.b32.xlu0 %v11238_v0, %s11068_s7 }
 0x149   : > { %765 = vst [vmem:[#allocation2 + $0x170] sm:$0xff] %v748_v20  ;;  %1127 = vrot.lane.b32.xlu2 %v1103_v21, %s11068_s7 }
 0x14a   : > { %v790_v23 = vpop.permute.xlu1 %789  ;;  %v788_v24 = vpop.permute.xlu0 %787 }
 0x14b   : > { %v808_v25 = vrot.slane %v790_v23, 4  ;;  %v807_v22 = vrot.slane %v788_v24, 4  ;;  %v11630_v26 = vpop.permute.xlu2 %872 }
 0x14c   : > { %v891_v54 = vrot.slane %v11630_v26, 4 }
 0x14d   : > { %v820_v27 = vsel %vm318_vm0, %v808_v25, %v809_v4  ;;  %v817_v3 = vsel %vm318_vm0, %v807_v22, %v808_v25 }
 0x14e   : > { %v821_v28 = vsel %vm818_vm7, %v790_v23, %v820_v27  ;;  %v819_v0 = vsel %vm818_vm7, %v788_v24, %v817_v3  ;;  %v11724_v24 = vld [vmem:[%s11223_s20 + $0x4] sm:$0xff] }
 0x14f   : > { %843 = vst [vmem:[#allocation2 + $0x188] sm:$0xff] %v821_v28 }
 0x150   : > { %842 = vst [vmem:[#allocation2 + $0x180] sm:$0xff] %v819_v0  ;;  %1131 = vrot.lane.b32.xlu1 %v11268_v7, %s11068_s7  ;;  %1129 = vrot.lane.b32.xlu0 %v11256_v5, %s11068_s7  ;;  %v11652_v5 = vld [vmem:[%s11223_s20] sm:$0xff] }
 0x151   : > { %1133 = vrot.lane.b32.xlu2 %v11637_v29, %s11068_s7  ;;  %1356 = vst [vmem:[#allocation2 + $0x340] sm:$0xff] %v11724_v24 }
 0x152   : > { %v796_v30 = vpop.permute.xlu1 %795  ;;  %v794_v31 = vpop.permute.xlu0 %793 }
 0x153   : > { %v811_v32 = vrot.slane %v796_v30, 4  ;;  %v810_v33 = vrot.slane %v794_v31, 4  ;;  %v879_v34 = vpop.permute.xlu2 %878 }
 0x154   : > { %v894_v10 = vrot.slane %v879_v34, 4 }
 0x155   : > { %v822_v35 = vsel %vm318_vm0, %v809_v4, %v810_v33  ;;  %v824_v36 = vsel %vm318_vm0, %v810_v33, %v811_v32  ;;  %v1191_v4 = vld [vmem:[%s11223_s20 + $0x48] sm:$0xf] }
 0x156   : > { %v823_v38 = vsel %vm818_vm7, %v11585_v49, %v822_v35  ;;  %v825_v7 = vsel %vm818_vm7, %v794_v31, %v824_v36  ;;  %v11670_v49 = vld [vmem:[%s11223_s20 + $0x8] sm:$0xff] }
 0x157   : > { %844 = vst [vmem:[#allocation2 + $0x190] sm:$0xff] %v823_v38 }
 0x158   : > { %845 = vst [vmem:[#allocation2 + $0x198] sm:$0xff] %v825_v7  ;;  %1137 = vrot.lane.b32.xlu1 %v1108_v37, %s11068_s7  ;;  %1135 = vrot.lane.b32.xlu0 %v11271_v8, %s11068_s7  ;;  %v1269_v7 = vld [vmem:[%s11223_s20 + $0x20] sm:$0xf] }
 0x159   : > { %1202 = vrot.lane.b32.xlu2 %v11652_v5, %s11069_s30 }
 0x15a   : > { %v802_v41 = vpop.permute.xlu1 %801  ;;  %v800_v42 = vpop.permute.xlu0 %799 }
 0x15b   : > { %v814_v43 = vrot.slane %v802_v41, 4  ;;  %v813_v44 = vrot.slane %v800_v42, 4  ;;  %v11661_v45 = vpop.permute.xlu2 %884 }
 0x15c   : > { %v897_v23 = vrot.slane %v11661_v45, 4 }
 0x15d   : > { %v830_v46 = vsel %vm318_vm0, %v814_v43, %v815_v40  ;;  %v826_v47 = vsel %vm318_vm0, %v812_v39, %v813_v44  ;;  %v828_v8 = vsel %vm318_vm0, %v813_v44, %v814_v43  ;;  %v11752_v43 = vld [vmem:[%s11223_s20 + $0x2c] sm:$0xff] }
 0x15e   : > { %v831_v50 = vsel %vm818_vm7, %v802_v41, %v830_v46  ;;  %v827_v51 = vsel %vm818_vm7, %v11601_v61, %v826_v47  ;;  %v829_v52 = vsel %vm818_vm7, %v800_v42, %v828_v8  ;;  %1360 = vst [vmem:[#allocation2 + $0x360] sm:$0xff] %v11752_v43 }
 0x15f   : > { %848 = vst [vmem:[#allocation2 + $0x1b0] sm:$0xff] %v831_v50  ;;  %v8726_v50 = vld [vmem:[#allocation2 + $0x180] sm:$0xf] }
 0x160   : > { %846 = vst [vmem:[#allocation2 + $0x1a0] sm:$0xff] %v827_v51  ;;  %1206 = vrot.lane.b32.xlu1 %v11667_v48, %s11069_s30  ;;  %1204 = vrot.lane.b32.xlu0 %v11670_v49, %s11069_s30 }
 0x161   : > { %847 = vst [vmem:[#allocation2 + $0x1a8] sm:$0xff] %v829_v52  ;;  %1208 = vrot.lane.b32.xlu2 %v11677_v53, %s11069_s30 }
 0x162   : > { %v871_v55 = vpop.permute.xlu1 %870  ;;  %v806_v56 = vpop.permute.xlu0 %805 }
 0x163   : > { %v890_v57 = vrot.slane %v871_v55, 4  ;;  %v816_v58 = vrot.slane %v806_v56, 4  ;;  %v11686_v59 = vpop.permute.xlu2 %953  ;;  %v10345_v56 = vld [vmem:[#allocation2 + $0x15c] sm:$0xf0] }
 0x164   : > { %v973_v44 = vrot.slane %v11686_v59, 4 }
 0x165   : > { %v900_v60 = vsel %vm318_vm0, %v890_v57, %v891_v54  ;;  %v832_v61 = vsel %vm318_vm0, %v815_v40, %v816_v58 }
 0x166   : > { %v902_v6 = vsel %vm901_vm8, %v871_v55, %v900_v60  ;;  %v833_v2 = vsel %vm818_vm7, %v11614_v15, %v832_v61  ;;  %v8694_v61 = vld [vmem:[#allocation2 + $0x140] sm:$0xf] }
 0x167   : > { %925 = vst [vmem:[#allocation2 + $0x1c0] sm:$0xff] %v902_v6  ;;  %v10353_v47 = vld [vmem:[#allocation2 + $0x19c] sm:$0xf0] }
 0x168   : > { %849 = vst [vmem:[#allocation2 + $0x1b8] sm:$0xff] %v833_v2  ;;  %1212 = vrot.lane.b32.xlu1 %v11691_v62, %s11069_s30  ;;  %1210 = vrot.lane.b32.xlu0 %v1186_v63, %s11069_s30  ;;  %v8727_v51 = vor.u32 %v10353_v47, %v8726_v50  ;;  %v10337_v6 = vld [vmem:[#allocation2 + $0x11c] sm:$0xf0]  ;;  %v11819_v50 = vld [vmem:[%s11223_s20 + $0x34] sm:$0xff] }
 0x169   : > { %1214 = vrot.lane.b32.xlu2 %v11698_v9, %s11069_s30  ;;  %v8534_v47 = vld [vmem:[#allocation2] sm:$0xf] }
 0x16a   : > { %v877_v11 = vpop.permute.xlu1 %876  ;;  %v875_v12 = vpop.permute.xlu0 %874 }
 0x16b   : > { %v893_v14 = vrot.slane %v877_v11, 4  ;;  %v892_v13 = vrot.slane %v875_v12, 4  ;;  %v11705_v15 = vpop.permute.xlu2 %959 }
 0x16c   : > { %v976_v46 = vrot.slane %v11705_v15, 4 }
 0x16d   : > { %v907_v16 = vsel %vm318_vm0, %v893_v14, %v894_v10  ;;  %v903_v17 = vsel %vm318_vm0, %v891_v54, %v892_v13  ;;  %v905_v18 = vsel %vm318_vm0, %v892_v13, %v893_v14 }
 0x16e   : > { %v908_v19 = vsel %vm901_vm8, %v877_v11, %v907_v16  ;;  %v904_v20 = vsel %vm901_vm8, %v11630_v26, %v903_v17  ;;  %v906_v21 = vsel %vm901_vm8, %v875_v12, %v905_v18  ;;  %v8758_v40 = vld [vmem:[#allocation2 + $0x1c0] sm:$0xf]  ;;  %v1274_v16 = vld [vmem:[%s11223_s20 + $0x48] sm:$0xf] }
 0x16f   : > { %928 = vst [vmem:[#allocation2 + $0x1d8] sm:$0xff] %v908_v19  ;;  %v8662_v12 = vld [vmem:[#allocation2 + $0x100] sm:$0xf] }
 0x170   : > { %926 = vst [vmem:[#allocation2 + $0x1c8] sm:$0xff] %v904_v20  ;;  %1218 = vrot.lane.b32.xlu1 %v11711_v1, %s11069_s30  ;;  %1216 = vrot.lane.b32.xlu0 %v11637_v29, %s11069_s30  ;;  %v10329_v17 = vld [vmem:[#allocation2 + $0xdc] sm:$0xf0] }
 0x171   : > { %927 = vst [vmem:[#allocation2 + $0x1d0] sm:$0xff] %v906_v21  ;;  %1220 = vrot.lane.b32.xlu2 %v1191_v4, %s11069_s30  ;;  %v11784_v20 = vld [vmem:[%s11223_s20 + $0xc] sm:$0xff] }
 0x172   : > { %v883_v25 = vpop.permute.xlu1 %882  ;;  %v881_v22 = vpop.permute.xlu0 %880 }
 0x173   : > { %v896_v26 = vrot.slane %v883_v25, 4  ;;  %v895_v27 = vrot.slane %v881_v22, 4  ;;  %v11728_v3 = vpop.permute.xlu2 %965 }
 0x174   : > { %v979_v63 = vrot.slane %v11728_v3, 4 }
 0x175   : > { %v911_v28 = vsel %vm318_vm0, %v896_v26, %v897_v23  ;;  %v909_v0 = vsel %vm318_vm0, %v895_v27, %v896_v26  ;;  %v8598_v27 = vld [vmem:[#allocation2 + $0x80] sm:$0xf] }
 0x176   : > { %v912_v30 = vsel %vm901_vm8, %v883_v25, %v911_v28  ;;  %v910_v31 = vsel %vm901_vm8, %v881_v22, %v909_v0 }
 0x177   : > { %930 = vst [vmem:[#allocation2 + $0x1e8] sm:$0xff] %v912_v30 }
 0x178   : > { %929 = vst [vmem:[#allocation2 + $0x1e0] sm:$0xff] %v910_v31  ;;  %1287 = vrot.lane.b32.xlu1 %v11670_v49, %s11070_s6  ;;  %1285 = vrot.lane.b32.xlu0 %v11652_v5, %s11070_s6 }
 0x179   : > { %1289 = vrot.lane.b32.xlu2 %v11667_v48, %s11070_s6 }
 0x17a   : > { %v889_v32 = vpop.permute.xlu1 %888  ;;  %v887_v33 = vpop.permute.xlu0 %886 }
 0x17b   : > { %v899_v34 = vrot.slane %v889_v32, 4  ;;  %v898_v35 = vrot.slane %v887_v33, 4  ;;  %v11740_v36 = vpop.permute.xlu2 %971 }
 0x17c   : > { %v982_v4 = vrot.slane %v11740_v36, 4 }
 0x17d   : > { %v913_v37 = vsel %vm318_vm0, %v897_v23, %v898_v35  ;;  %v915_v38 = vsel %vm318_vm0, %v898_v35, %v899_v34  ;;  %v10321_v23 = vld [vmem:[#allocation2 + $0x9c] sm:$0xf0]  ;;  %v11801_v34 = vld [vmem:[%s11223_s20 + $0x14] sm:$0xff] }
 0x17e   : > { %v914_v39 = vsel %vm901_vm8, %v11661_v45, %v913_v37  ;;  %v916_v5 = vsel %vm901_vm8, %v887_v33, %v915_v38  ;;  %v8599_v28 = vor.u32 %v10321_v23, %v8598_v27  ;;  %v11798_v33 = vld [vmem:[%s11223_s20 + $0x1c] sm:$0xff] }
 0x17f   : > { %931 = vst [vmem:[#allocation2 + $0x1f0] sm:$0xff] %v914_v39  ;;  %v10361_v41 = vld [vmem:[#allocation2 + $0x1dc] sm:$0xf0]  ;;  %v1368_v39 = vld [vmem:[%s11223_s20 + $0x24] sm:$0xf] }
 0x180   : > { %932 = vst [vmem:[#allocation2 + $0x1f8] sm:$0xff] %v916_v5  ;;  %1293 = vrot.lane.b32.xlu1 %v1269_v7, %s11070_s6  ;;  %1291 = vrot.lane.b32.xlu0 %v11677_v53, %s11070_s6  ;;  %v8759_v42 = vor.u32 %v10361_v41, %v8758_v40  ;;  %v10313_v35 = vld [vmem:[#allocation2 + $0x5c] sm:$0xf0] }
 0x181   : > { %1295 = vrot.lane.b32.xlu2 %v11691_v62, %s11070_s6  ;;  %v8695_v62 = vor.u32 %v10345_v56, %v8694_v61  ;;  %v8566_v7 = vld [vmem:[#allocation2 + $0x40] sm:$0xf] }
 0x182   : > { %3766 = vmatpush.bf16.msra.mxu0 %v8759_v42  ;;  %v958_v45 = vpop.permute.xlu1 %957  ;;  %v956_v8 = vpop.permute.xlu0 %955  ;;  %v8567_v5 = vor.u32 %v10313_v35, %v8566_v7  ;;  %v10305_v41 = vld [vmem:[#allocation2 + $0x1c] sm:$0xf0] }
 0x183   : > { %v975_v48 = vrot.slane %v958_v45, 4  ;;  %v974_v49 = vrot.slane %v956_v8, 4  ;;  %v11759_v52 = vpop.permute.xlu2 %1040 }
 0x184   : > { %v1058_v40 = vrot.slane %v11759_v52, 4 }
 0x185   : > { %v988_v53 = vsel %vm318_vm0, %v975_v48, %v976_v46  ;;  %v983_v54 = vsel %vm318_vm0, %v973_v44, %v974_v49  ;;  %v986_v55 = vsel %vm318_vm0, %v974_v49, %v975_v48 }
 0x186   : > { %v989_v57 = vsel %vm984_vm9, %v958_v45, %v988_v53  ;;  %v985_v58 = vsel %vm984_vm9, %v11686_v59, %v983_v54  ;;  %v987_v60 = vsel %vm984_vm9, %v956_v8, %v986_v55  ;;  %3767 = vmatpush.bf16.msra.mxu0 %v8727_v51  ;;  %v8535_v45 = vor.u32 %v10305_v41, %v8534_v47  ;;  %v11824_v54 = vld [vmem:[%s11223_s20 + $0x3c] sm:$0xff] }
 0x187   : > { %1010 = vst [vmem:[#allocation2 + $0x210] sm:$0xff] %v989_v57 }
 0x188   : > { %1008 = vst [vmem:[#allocation2 + $0x200] sm:$0xff] %v985_v58  ;;  %1299 = vrot.lane.b32.xlu1 %v11637_v29, %s11070_s6  ;;  %1297 = vrot.lane.b32.xlu0 %v11698_v9, %s11070_s6  ;;  %v8663_v29 = vor.u32 %v10337_v6, %v8662_v12  ;;  %v11836_v6 = vld [vmem:[%s11223_s20 + $0x44] sm:$0xff] }
 0x189   : > { %1009 = vst [vmem:[#allocation2 + $0x208] sm:$0xff] %v987_v60  ;;  %1301 = vrot.lane.b32.xlu2 %v11711_v1, %s11070_s6  ;;  %v8630_v1 = vld [vmem:[#allocation2 + $0xc0] sm:$0xf] }
 0x18a   : > { %3768 = vmatpush.bf16.msra.mxu0 %v8695_v62  ;;  %v964_v59 = vpop.permute.xlu1 %963  ;;  %v962_v2 = vpop.permute.xlu0 %961  ;;  %v8631_v21 = vor.u32 %v10329_v17, %v8630_v1 }
 0x18b   : > { %v978_v10 = vrot.slane %v964_v59, 4  ;;  %v977_v11 = vrot.slane %v962_v2, 4  ;;  %v11775_v14 = vpop.permute.xlu2 %1046 }
 0x18d   : > { %v992_v9 = vsel %vm318_vm0, %v978_v10, %v979_v63  ;;  %v990_v13 = vsel %vm318_vm0, %v976_v46, %v977_v11  ;;  %v1061_v10 = vrot.slane %v11775_v14, 4 }
 0x18e   : > { %v993_v18 = vsel %vm984_vm9, %v964_v59, %v992_v9  ;;  %v991_v19 = vsel %vm984_vm9, %v11705_v15, %v990_v13  ;;  %3769 = vmatpush.bf16.msra.mxu0 %v8663_v29 }
 0x18f   : > { %1012 = vst [vmem:[#allocation2 + $0x220] sm:$0xff] %v993_v18 }
 0x190   : > { %1011 = vst [vmem:[#allocation2 + $0x218] sm:$0xff] %v991_v19  ;;  %1384 = vrot.lane.b32.xlu1 %v11724_v24, %s14638_s11  ;;  %1303 = vrot.lane.b32.xlu0 %v1274_v16, %s11070_s6 }
 0x191   : > { %1386 = vrot.lane.b32.xlu2 %v11784_v20, %s14638_s11 }
 0x192   : > { %3770 = vmatpush.bf16.msra.mxu0 %v8631_v21  ;;  %v970_v15 = vpop.permute.xlu1 %969  ;;  %v968_v25 = vpop.permute.xlu0 %967 }
 0x193   : > { %v981_v22 = vrot.slane %v970_v15, 4  ;;  %v980_v26 = vrot.slane %v968_v25, 4  ;;  %v11792_v0 = vpop.permute.xlu2 %1052 }
 0x194   : > { %v1064_v11 = vrot.slane %v11792_v0, 4 }
 0x195   : > { %v998_v30 = vsel %vm318_vm0, %v981_v22, %v982_v4  ;;  %v994_v31 = vsel %vm318_vm0, %v979_v63, %v980_v26  ;;  %v996_v32 = vsel %vm318_vm0, %v980_v26, %v981_v22  ;;  %v1373_v63 = vld [vmem:[%s11223_s20 + $0x4c] sm:$0xf] }
 0x196   : > { %v999_v36 = vsel %vm984_vm9, %v970_v15, %v998_v30  ;;  %v995_v37 = vsel %vm984_vm9, %v11728_v3, %v994_v31  ;;  %v997_v38 = vsel %vm984_vm9, %v968_v25, %v996_v32  ;;  %3771 = vmatpush.bf16.msra.mxu0 %v8599_v28  ;;  %v1451_v28 = vld [vmem:[%s11223_s20 + $0x24] sm:$0xf] }
 0x197   : > { %1015 = vst [vmem:[#allocation2 + $0x238] sm:$0xff] %v999_v36 }
 0x198   : > { %1013 = vst [vmem:[#allocation2 + $0x228] sm:$0xff] %v995_v37  ;;  %1390 = vrot.lane.b32.xlu1 %v11798_v33, %s14638_s11  ;;  %1388 = vrot.lane.b32.xlu0 %v11801_v34, %s14638_s11 }
 0x199   : > { %1014 = vst [vmem:[#allocation2 + $0x230] sm:$0xff] %v997_v38  ;;  %1392 = vrot.lane.b32.xlu2 %v1368_v39, %s14638_s11 }
 0x19a   : > { %3772 = vmatpush.bf16.msra.mxu0 %v8567_v5  ;;  %v1039_v3 = vpop.permute.xlu1 %1038  ;;  %v1037_v42 = vpop.permute.xlu0 %1036 }
 0x19b   : > { %v1057_v44 = vrot.slane %v1039_v3, 4  ;;  %v1056_v46 = vrot.slane %v1037_v42, 4  ;;  %v11814_v8 = vpop.permute.xlu2 %1121 }
 0x19c   : > { %v1140_v4 = vrot.slane %v11814_v8, 4 }
 0x19d   : > { %v1069_v48 = vsel %vm318_vm0, %v1057_v44, %v1058_v40  ;;  %v1066_v49 = vsel %vm318_vm0, %v1056_v46, %v1057_v44 }
 0x19e   : > { %v1070_v51 = vsel %vm1067_vm10, %v1039_v3, %v1069_v48  ;;  %v1068_v53 = vsel %vm1067_vm10, %v1037_v42, %v1066_v49  ;;  %3773 = vmatpush.bf16.msra.mxu0 %v8535_v45  ;;  %v1456_v42 = vld [vmem:[%s11223_s20 + $0x4c] sm:$0xf] }
 0x19f   : > { %1092 = vst [vmem:[#allocation2 + $0x248] sm:$0xff] %v1070_v51 }
 0x1a0   : > { %1091 = vst [vmem:[#allocation2 + $0x240] sm:$0xff] %v1068_v53  ;;  %1396 = vrot.lane.b32.xlu1 %v11819_v50, %s14638_s11  ;;  %1394 = vrot.lane.b32.xlu0 %v11752_v43, %s14638_s11 }
 0x1a1   : > { %1398 = vrot.lane.b32.xlu2 %v11824_v54, %s14638_s11 }
 0x1a2   : > { %v1045_v55 = vpop.permute.xlu1 %1044  ;;  %v1043_v56 = vpop.permute.xlu0 %1042 }
 0x1a3   : > { %v1060_v57 = vrot.slane %v1045_v55, 4  ;;  %v1059_v58 = vrot.slane %v1043_v56, 4  ;;  %v1128_v60 = vpop.permute.xlu2 %1127 }
 0x1a4   : > { %v1143_v32 = vrot.slane %v1128_v60, 4 }
 0x1a5   : > { %v1071_v61 = vsel %vm318_vm0, %v1058_v40, %v1059_v58  ;;  %v1073_v62 = vsel %vm318_vm0, %v1059_v58, %v1060_v57 }
 0x1a6   : > { %v1072_v59 = vsel %vm1067_vm10, %v11759_v52, %v1071_v61  ;;  %v1074_v2 = vsel %vm1067_vm10, %v1043_v56, %v1073_v62 }
 0x1a7   : > { %1093 = vst [vmem:[#allocation2 + $0x250] sm:$0xff] %v1072_v59  ;;  %v1534_v59 = vld [vmem:[%s11223_s20 + $0x24] sm:$0xf] }
 0x1a8   : > { %1094 = vst [vmem:[#allocation2 + $0x258] sm:$0xff] %v1074_v2  ;;  %1402 = vrot.lane.b32.xlu1 %v1373_v63, %s14638_s11  ;;  %1400 = vrot.lane.b32.xlu0 %v11836_v6, %s14638_s11  ;;  %s14642_s11 = smov 118  }
 0x1a9   : > { %1467 = vrot.lane.b32.xlu2 %v11724_v24, %s14640_s14 }
 0x1aa   : > { %v1051_v12 = vpop.permute.xlu1 %1050  ;;  %v1049_v29 = vpop.permute.xlu0 %1048 }
 0x1ab   : > { %v1063_v52 = vrot.slane %v1051_v12, 4  ;;  %v1062_v9 = vrot.slane %v1049_v29, 4  ;;  %v11848_v13 = vpop.permute.xlu2 %1133 }
 0x1ac   : > { %v1146_v44 = vrot.slane %v11848_v13, 4 }
 0x1ad   : > { %v1079_v16 = vsel %vm318_vm0, %v1063_v52, %v1064_v11  ;;  %v1075_v17 = vsel %vm318_vm0, %v1061_v10, %v1062_v9  ;;  %v1077_v18 = vsel %vm318_vm0, %v1062_v9, %v1063_v52 }
 0x1ae   : > { %v1080_v19 = vsel %vm1067_vm10, %v1051_v12, %v1079_v16  ;;  %v1076_v1 = vsel %vm1067_vm10, %v11775_v14, %v1075_v17  ;;  %v1078_v21 = vsel %vm1067_vm10, %v1049_v29, %v1077_v18 }
 0x1af   : > { %1097 = vst [vmem:[#allocation2 + $0x270] sm:$0xff] %v1080_v19 }
 0x1b0   : > { %1095 = vst [vmem:[#allocation2 + $0x260] sm:$0xff] %v1076_v1  ;;  %1471 = vrot.lane.b32.xlu1 %v11801_v34, %s14640_s14  ;;  %1469 = vrot.lane.b32.xlu0 %v11784_v20, %s14640_s14 }
 0x1b1   : > { %1096 = vst [vmem:[#allocation2 + $0x268] sm:$0xff] %v1078_v21  ;;  %1473 = vrot.lane.b32.xlu2 %v11798_v33, %s14640_s14 }
 0x1b2   : > { %v1120_v23 = vpop.permute.xlu1 %1119  ;;  %v1055_v15 = vpop.permute.xlu0 %1054 }
 0x1b3   : > { %v1139_v14 = vrot.slane %v1120_v23, 4  ;;  %v1065_v25 = vrot.slane %v1055_v15, 4  ;;  %v11864_v22 = vpop.permute.xlu2 %1202 }
 0x1b5   : > { %v1149_v26 = vsel %vm318_vm0, %v1139_v14, %v1140_v4  ;;  %v1081_v27 = vsel %vm318_vm0, %v1064_v11, %v1065_v25  ;;  %v1222_v11 = vrot.slane %v11864_v22, 4 }
 0x1b6   : > { %v1151_v30 = vsel %vm1150_vm11, %v1120_v23, %v1149_v26  ;;  %v1082_v31 = vsel %vm1067_vm10, %v11792_v0, %v1081_v27 }
 0x1b7   : > { %1174 = vst [vmem:[#allocation2 + $0x280] sm:$0xff] %v1151_v30  ;;  %v1539_v30 = vld [vmem:[%s11223_s20 + $0x4c] sm:$0xf] }
 0x1b8   : > { %1098 = vst [vmem:[#allocation2 + $0x278] sm:$0xff] %v1082_v31  ;;  %1477 = vrot.lane.b32.xlu1 %v11752_v43, %s14640_s14  ;;  %1475 = vrot.lane.b32.xlu0 %v1451_v28, %s14640_s14 }
 0x1b9   : > { %1479 = vrot.lane.b32.xlu2 %v11819_v50, %s14640_s14 }
 0x1ba   : > { %v1126_v35 = vpop.permute.xlu1 %1125  ;;  %v1124_v36 = vpop.permute.xlu0 %1123 }
 0x1bb   : > { %v1142_v37 = vrot.slane %v1126_v35, 4  ;;  %v1141_v38 = vrot.slane %v1124_v36, 4  ;;  %v11877_v7 = vpop.permute.xlu2 %1208 }
 0x1bc   : > { %v1225_v12 = vrot.slane %v11877_v7, 4 }
 0x1bd   : > { %v1156_v0 = vsel %vm318_vm0, %v1142_v37, %v1143_v32  ;;  %v1152_v39 = vsel %vm318_vm0, %v1140_v4, %v1141_v38  ;;  %v1154_v5 = vsel %vm318_vm0, %v1141_v38, %v1142_v37 }
 0x1be   : > { %v1157_v40 = vsel %vm1150_vm11, %v1126_v35, %v1156_v0  ;;  %v1153_v41 = vsel %vm1150_vm11, %v11814_v8, %v1152_v39  ;;  %v1155_v3 = vsel %vm1150_vm11, %v1124_v36, %v1154_v5 }
 0x1bf   : > { %1177 = vst [vmem:[#allocation2 + $0x298] sm:$0xff] %v1157_v40 }
 0x1c0   : > { %1175 = vst [vmem:[#allocation2 + $0x288] sm:$0xff] %v1153_v41  ;;  %1483 = vrot.lane.b32.xlu1 %v11836_v6, %s14640_s14  ;;  %1481 = vrot.lane.b32.xlu0 %v11824_v54, %s14640_s14 }
 0x1c1   : > { %1176 = vst [vmem:[#allocation2 + $0x290] sm:$0xff] %v1155_v3  ;;  %1485 = vrot.lane.b32.xlu2 %v1456_v42, %s14640_s14  ;;  %s14644_s14 = smov 117  }
 0x1c2   : > { %v1132_v46 = vpop.permute.xlu1 %1131  ;;  %v1130_v47 = vpop.permute.xlu0 %1129 }
 0x1c3   : > { %v1145_v45 = vrot.slane %v1132_v46, 4  ;;  %v1144_v8 = vrot.slane %v1130_v47, 4  ;;  %v11893_v48 = vpop.permute.xlu2 %1214 }
 0x1c4   : > { %v1228_v23 = vrot.slane %v11893_v48, 4 }
 0x1c5   : > { %v1160_v49 = vsel %vm318_vm0, %v1145_v45, %v1146_v44  ;;  %v1158_v51 = vsel %vm318_vm0, %v1144_v8, %v1145_v45 }
 0x1c6   : > { %v1161_v53 = vsel %vm1150_vm11, %v1132_v46, %v1160_v49  ;;  %v1159_v55 = vsel %vm1150_vm11, %v1130_v47, %v1158_v51 }
 0x1c7   : > { %1179 = vst [vmem:[#allocation2 + $0x2a8] sm:$0xff] %v1161_v53 }
 0x1c8   : > { %1178 = vst [vmem:[#allocation2 + $0x2a0] sm:$0xff] %v1159_v55  ;;  %1552 = vrot.lane.b32.xlu1 %v11784_v20, %s14642_s11  ;;  %1550 = vrot.lane.b32.xlu0 %v11724_v24, %s14642_s11 }
 0x1c9   : > { %1554 = vrot.lane.b32.xlu2 %v11801_v34, %s14642_s11 }
 0x1ca   : > { %v1138_v56 = vpop.permute.xlu1 %1137  ;;  %v1136_v57 = vpop.permute.xlu0 %1135 }
 0x1cb   : > { %v1148_v58 = vrot.slane %v1138_v56, 4  ;;  %v1147_v60 = vrot.slane %v1136_v57, 4  ;;  %v1221_v61 = vpop.permute.xlu2 %1220 }
 0x1cc   : > { %v1231_v35 = vrot.slane %v1221_v61, 4 }
 0x1cd   : > { %v1162_v62 = vsel %vm318_vm0, %v1146_v44, %v1147_v60  ;;  %v1164_v63 = vsel %vm318_vm0, %v1147_v60, %v1148_v58  ;;  %v1617_v44 = vld [vmem:[%s11223_s20 + $0x24] sm:$0xf] }
 0x1ce   : > { %v1163_v2 = vsel %vm1150_vm11, %v11848_v13, %v1162_v62  ;;  %v1165_v10 = vsel %vm1150_vm11, %v1136_v57, %v1164_v63 }
 0x1cf   : > { %1180 = vst [vmem:[#allocation2 + $0x2b0] sm:$0xff] %v1163_v2  ;;  %v1622_v2 = vld [vmem:[%s11223_s20 + $0x4c] sm:$0xf] }
 0x1d0   : > { %1181 = vst [vmem:[#allocation2 + $0x2b8] sm:$0xff] %v1165_v10  ;;  %1558 = vrot.lane.b32.xlu1 %v1534_v59, %s14642_s11  ;;  %1556 = vrot.lane.b32.xlu0 %v11798_v33, %s14642_s11 }
 0x1d1   : > { %1560 = vrot.lane.b32.xlu2 %v11752_v43, %s14642_s11 }
 0x1d2   : > { %v1207_v29 = vpop.permute.xlu1 %1206  ;;  %v1205_v52 = vpop.permute.xlu0 %1204 }
 0x1d3   : > { %v1224_v9 = vrot.slane %v1207_v29, 4  ;;  %v1223_v13 = vrot.slane %v1205_v52, 4  ;;  %v11918_v16 = vpop.permute.xlu2 %1289 }
 0x1d4   : > { %v1307_v46 = vrot.slane %v11918_v16, 4 }
 0x1d5   : > { %v1237_v17 = vsel %vm318_vm0, %v1224_v9, %v1225_v12  ;;  %v1232_v18 = vsel %vm318_vm0, %v1222_v11, %v1223_v13  ;;  %v1235_v19 = vsel %vm318_vm0, %v1223_v13, %v1224_v9 }
 0x1d6   : > { %v1238_v1 = vsel %vm1233_vm12, %v1207_v29, %v1237_v17  ;;  %v1234_v21 = vsel %vm1233_vm12, %v11864_v22, %v1232_v18  ;;  %v1236_v4 = vsel %vm1233_vm12, %v1205_v52, %v1235_v19 }
 0x1d7   : > { %1259 = vst [vmem:[#allocation2 + $0x2d0] sm:$0xff] %v1238_v1 }
 0x1d8   : > { %1257 = vst [vmem:[#allocation2 + $0x2c0] sm:$0xff] %v1234_v21  ;;  %1564 = vrot.lane.b32.xlu1 %v11824_v54, %s14642_s11  ;;  %1562 = vrot.lane.b32.xlu0 %v11819_v50, %s14642_s11 }
 0x1d9   : > { %1258 = vst [vmem:[#allocation2 + $0x2c8] sm:$0xff] %v1236_v4  ;;  %1566 = vrot.lane.b32.xlu2 %v11836_v6, %s14642_s11 }
 0x1da   : > { %v1213_v15 = vpop.permute.xlu1 %1212  ;;  %v1211_v14 = vpop.permute.xlu0 %1210 }
 0x1db   : > { %v1227_v25 = vrot.slane %v1213_v15, 4  ;;  %v1226_v22 = vrot.slane %v1211_v14, 4  ;;  %v11934_v26 = vpop.permute.xlu2 %1295 }
 0x1dd   : > { %v1241_v27 = vsel %vm318_vm0, %v1227_v25, %v1228_v23  ;;  %v1239_v28 = vsel %vm318_vm0, %v1225_v12, %v1226_v22  ;;  %v1310_v12 = vrot.slane %v11934_v26, 4 }
 0x1de   : > { %v1242_v31 = vsel %vm1233_vm12, %v1213_v15, %v1241_v27  ;;  %v1240_v32 = vsel %vm1233_vm12, %v11877_v7, %v1239_v28 }
 0x1df   : > { %1261 = vst [vmem:[#allocation2 + $0x2e0] sm:$0xff] %v1242_v31  ;;  %v1700_v31 = vld [vmem:[%s11223_s20 + $0x24] sm:$0xf] }
 0x1e0   : > { %1260 = vst [vmem:[#allocation2 + $0x2d8] sm:$0xff] %v1240_v32  ;;  %1633 = vrot.lane.b32.xlu1 %v11724_v24, %s14644_s14  ;;  %1568 = vrot.lane.b32.xlu0 %v1539_v30, %s14642_s11  ;;  %s14646_s11 = smov 39  }
 0x1e1   : > { %1635 = vrot.lane.b32.xlu2 %v11784_v20, %s14644_s14 }
 0x1e2   : > { %v1219_v36 = vpop.permute.xlu1 %1218  ;;  %v1217_v37 = vpop.permute.xlu0 %1216 }
 0x1e3   : > { %v1230_v38 = vrot.slane %v1219_v36, 4  ;;  %v1229_v0 = vrot.slane %v1217_v37, 4  ;;  %v11947_v39 = vpop.permute.xlu2 %1301 }
 0x1e4   : > { %v1313_v29 = vrot.slane %v11947_v39, 4 }
 0x1e5   : > { %v1247_v7 = vsel %vm318_vm0, %v1230_v38, %v1231_v35  ;;  %v1243_v5 = vsel %vm318_vm0, %v1228_v23, %v1229_v0  ;;  %v1245_v40 = vsel %vm318_vm0, %v1229_v0, %v1230_v38 }
 0x1e6   : > { %v1248_v41 = vsel %vm1233_vm12, %v1219_v36, %v1247_v7  ;;  %v1244_v3 = vsel %vm1233_vm12, %v11893_v48, %v1243_v5  ;;  %v1246_v42 = vsel %vm1233_vm12, %v1217_v37, %v1245_v40 }
 0x1e7   : > { %1264 = vst [vmem:[#allocation2 + $0x2f8] sm:$0xff] %v1248_v41 }
 0x1e8   : > { %1262 = vst [vmem:[#allocation2 + $0x2e8] sm:$0xff] %v1244_v3  ;;  %1639 = vrot.lane.b32.xlu1 %v11798_v33, %s14644_s14  ;;  %1637 = vrot.lane.b32.xlu0 %v11801_v34, %s14644_s14 }
 0x1e9   : > { %1263 = vst [vmem:[#allocation2 + $0x2f0] sm:$0xff] %v1246_v42  ;;  %1641 = vrot.lane.b32.xlu2 %v1617_v44, %s14644_s14 }
 0x1ea   : > { %v1288_v47 = vpop.permute.xlu1 %1287  ;;  %v1286_v45 = vpop.permute.xlu0 %1285 }
 0x1eb   : > { %v1306_v8 = vrot.slane %v1288_v47, 4  ;;  %v1305_v48 = vrot.slane %v1286_v45, 4  ;;  %v11963_v49 = vpop.permute.xlu2 %1386 }
 0x1ec   : > { %v1405_v15 = vrot.slane %v11963_v49, 4 }
 0x1ed   : > { %v1318_v51 = vsel %vm318_vm0, %v1306_v8, %v1307_v46  ;;  %v1315_v53 = vsel %vm318_vm0, %v1305_v48, %v1306_v8 }
 0x1ee   : > { %v1319_v55 = vsel %vm14674_vm13, %v1288_v47, %v1318_v51  ;;  %v1317_v56 = vsel %vm14674_vm13, %v1286_v45, %v1315_v53 }
 0x1ef   : > { %1341 = vst [vmem:[#allocation2 + $0x308] sm:$0xff] %v1319_v55 }
 0x1f0   : > { %1340 = vst [vmem:[#allocation2 + $0x300] sm:$0xff] %v1317_v56  ;;  %1645 = vrot.lane.b32.xlu1 %v11819_v50, %s14644_s14  ;;  %1643 = vrot.lane.b32.xlu0 %v11752_v43, %s14644_s14 }
 0x1f1   : > { %1647 = vrot.lane.b32.xlu2 %v11824_v54, %s14644_s14 }
 0x1f2   : > { %v1294_v57 = vpop.permute.xlu1 %1293  ;;  %v1292_v58 = vpop.permute.xlu0 %1291 }
 0x1f3   : > { %v1309_v60 = vrot.slane %v1294_v57, 4  ;;  %v1308_v61 = vrot.slane %v1292_v58, 4  ;;  %v1393_v62 = vpop.permute.xlu2 %1392 }
 0x1f4   : > { %v1408_v36 = vrot.slane %v1393_v62, 4 }
 0x1f5   : > { %v1320_v63 = vsel %vm318_vm0, %v1307_v46, %v1308_v61  ;;  %v1322_v59 = vsel %vm318_vm0, %v1308_v61, %v1309_v60  ;;  %v1705_v46 = vld [vmem:[%s11223_s20 + $0x4c] sm:$0xf] }
 0x1f6   : > { %v1321_v10 = vsel %vm14674_vm13, %v11918_v16, %v1320_v63  ;;  %v1323_v11 = vsel %vm14674_vm13, %v1292_v58, %v1322_v59 }
 0x1f7   : > { %1342 = vst [vmem:[#allocation2 + $0x310] sm:$0xff] %v1321_v10  ;;  %v1783_v10 = vld [vmem:[%s11223_s20 + $0x24] sm:$0xf] }
 0x1f8   : > { %1343 = vst [vmem:[#allocation2 + $0x318] sm:$0xff] %v1323_v11  ;;  %1651 = vrot.lane.b32.xlu1 %v1622_v2, %s14644_s14  ;;  %1649 = vrot.lane.b32.xlu0 %v11836_v6, %s14644_s14  ;;  %s14649_s14 = smov 38  }
 0x1f9   : > { %1716 = vrot.lane.b32.xlu2 %v11724_v24, %s14646_s11 }
 0x1fa   : > { %v1300_v52 = vpop.permute.xlu1 %1299  ;;  %v1298_v9 = vpop.permute.xlu0 %1297 }
 0x1fb   : > { %v1312_v13 = vrot.slane %v1300_v52, 4  ;;  %v1311_v16 = vrot.slane %v1298_v9, 4  ;;  %v11988_v17 = vpop.permute.xlu2 %1398 }
 0x1fc   : > { %v1411_v47 = vrot.slane %v11988_v17, 4 }
 0x1fd   : > { %v1328_v18 = vsel %vm318_vm0, %v1312_v13, %v1313_v29  ;;  %v1324_v19 = vsel %vm318_vm0, %v1310_v12, %v1311_v16  ;;  %v1326_v1 = vsel %vm318_vm0, %v1311_v16, %v1312_v13 }
 0x1fe   : > { %v1329_v21 = vsel %vm14674_vm13, %v1300_v52, %v1328_v18  ;;  %v1325_v4 = vsel %vm14674_vm13, %v11934_v26, %v1324_v19  ;;  %v1327_v23 = vsel %vm14674_vm13, %v1298_v9, %v1326_v1 }
 0x1ff   : > { %1346 = vst [vmem:[#allocation2 + $0x330] sm:$0xff] %v1329_v21 }
 0x200   : > { %1344 = vst [vmem:[#allocation2 + $0x320] sm:$0xff] %v1325_v4  ;;  %1720 = vrot.lane.b32.xlu1 %v11801_v34, %s14646_s11  ;;  %1718 = vrot.lane.b32.xlu0 %v11784_v20, %s14646_s11 }
 0x201   : > { %1345 = vst [vmem:[#allocation2 + $0x328] sm:$0xff] %v1327_v23  ;;  %1722 = vrot.lane.b32.xlu2 %v11798_v33, %s14646_s11 }
 0x202   : > { %v1385_v14 = vpop.permute.xlu1 %1384  ;;  %v1304_v25 = vpop.permute.xlu0 %1303 }
 0x203   : > { %v1404_v22 = vrot.slane %v1385_v14, 4  ;;  %v1314_v26 = vrot.slane %v1304_v25, 4  ;;  %v12004_v27 = vpop.permute.xlu2 %1467 }
 0x205   : > { %v1414_v28 = vsel %vm318_vm0, %v1404_v22, %v1405_v15  ;;  %v1330_v30 = vsel %vm318_vm0, %v1313_v29, %v1314_v26  ;;  %v1487_v29 = vrot.slane %v12004_v27, 4 }
 0x206   : > { %v1416_v32 = vsel %vm14651_vm14, %v1385_v14, %v1414_v28  ;;  %v1331_v35 = vsel %vm14674_vm13, %v11947_v39, %v1330_v30 }
 0x207   : > { %1439 = vst [vmem:[#allocation2 + $0x380] sm:$0xff] %v1416_v32  ;;  %v1788_v32 = vld [vmem:[%s11223_s20 + $0x4c] sm:$0xf] }
 0x208   : > { %1347 = vst [vmem:[#allocation2 + $0x338] sm:$0xff] %v1331_v35  ;;  %1726 = vrot.lane.b32.xlu1 %v11752_v43, %s14646_s11  ;;  %1724 = vrot.lane.b32.xlu0 %v1700_v31, %s14646_s11 }
 0x209   : > { %1728 = vrot.lane.b32.xlu2 %v11819_v50, %s14646_s11 }
 0x20a   : > { %v1391_v37 = vpop.permute.xlu1 %1390  ;;  %v1389_v38 = vpop.permute.xlu0 %1388 }
 0x20b   : > { %v1407_v0 = vrot.slane %v1391_v37, 4  ;;  %v1406_v7 = vrot.slane %v1389_v38, 4  ;;  %v12017_v5 = vpop.permute.xlu2 %1473 }
 0x20c   : > { %v1490_v52 = vrot.slane %v12017_v5, 4 }
 0x20d   : > { %v1421_v39 = vsel %vm318_vm0, %v1407_v0, %v1408_v36  ;;  %v1417_v40 = vsel %vm318_vm0, %v1405_v15, %v1406_v7  ;;  %v1419_v41 = vsel %vm318_vm0, %v1406_v7, %v1407_v0 }
 0x20e   : > { %v1422_v3 = vsel %vm14651_vm14, %v1391_v37, %v1421_v39  ;;  %v1418_v42 = vsel %vm14651_vm14, %v11963_v49, %v1417_v40  ;;  %v1420_v44 = vsel %vm14651_vm14, %v1389_v38, %v1419_v41 }
 0x20f   : > { %1442 = vst [vmem:[#allocation2 + $0x398] sm:$0xff] %v1422_v3 }
 0x210   : > { %1440 = vst [vmem:[#allocation2 + $0x388] sm:$0xff] %v1418_v42  ;;  %1732 = vrot.lane.b32.xlu1 %v11836_v6, %s14646_s11  ;;  %1730 = vrot.lane.b32.xlu0 %v11824_v54, %s14646_s11 }
 0x211   : > { %1441 = vst [vmem:[#allocation2 + $0x390] sm:$0xff] %v1420_v44  ;;  %1734 = vrot.lane.b32.xlu2 %v1705_v46, %s14646_s11  ;;  %s14652_s11 = smov 37  }
 0x212   : > { %v1397_v45 = vpop.permute.xlu1 %1396  ;;  %v1395_v8 = vpop.permute.xlu0 %1394 }
 0x213   : > { %v1410_v48 = vrot.slane %v1397_v45, 4  ;;  %v1409_v49 = vrot.slane %v1395_v8, 4  ;;  %v12033_v51 = vpop.permute.xlu2 %1479 }
 0x214   : > { %v1493_v14 = vrot.slane %v12033_v51, 4 }
 0x215   : > { %v1425_v53 = vsel %vm318_vm0, %v1410_v48, %v1411_v47  ;;  %v1423_v55 = vsel %vm318_vm0, %v1409_v49, %v1410_v48 }
 0x216   : > { %v1426_v56 = vsel %vm14651_vm14, %v1397_v45, %v1425_v53  ;;  %v1424_v57 = vsel %vm14651_vm14, %v1395_v8, %v1423_v55  ;;  %v1866_v53 = vld [vmem:[%s11223_s20 + $0x24] sm:$0xf]  ;;  %v8982_v55 = vld [vmem:[#allocation2 + $0x380] sm:$0xf] }
 0x217   : > { %1444 = vst [vmem:[#allocation2 + $0x3a8] sm:$0xff] %v1426_v56 }
 0x218   : > { %1443 = vst [vmem:[#allocation2 + $0x3a0] sm:$0xff] %v1424_v57  ;;  %1801 = vrot.lane.b32.xlu1 %v11784_v20, %s14649_s14  ;;  %1799 = vrot.lane.b32.xlu0 %v11724_v24, %s14649_s14  ;;  %v10413_v57 = vld [vmem:[#allocation2 + $0x384] sm:$0xf] }
 0x219   : > { %1803 = vrot.lane.b32.xlu2 %v11801_v34, %s14649_s14 }
 0x21a   : > { %v1403_v58 = vpop.permute.xlu1 %1402  ;;  %v1401_v60 = vpop.permute.xlu0 %1400 }
 0x21b   : > { %v1413_v61 = vrot.slane %v1403_v58, 4  ;;  %v1412_v62 = vrot.slane %v1401_v60, 4  ;;  %v1486_v63 = vpop.permute.xlu2 %1485 }
 0x21c   : > { %v1496_v37 = vrot.slane %v1486_v63, 4 }
 0x21d   : > { %v1427_v59 = vsel %vm318_vm0, %v1411_v47, %v1412_v62  ;;  %v1429_v2 = vsel %vm318_vm0, %v1412_v62, %v1413_v61  ;;  %v10409_v61 = vld [vmem:[#allocation2 + $0x35c] sm:$0xf0] }
 0x21e   : > { %v1428_v11 = vsel %vm14651_vm14, %v11988_v17, %v1427_v59  ;;  %v1430_v12 = vsel %vm14651_vm14, %v1401_v60, %v1429_v2  ;;  %v8950_v60 = vld [vmem:[#allocation2 + $0x340] sm:$0xf]  ;;  %v10405_v59 = vld [vmem:[#allocation2 + $0x344] sm:$0xf]  ;;  %vm14657_vm14 = vcmask 957440  }
 0x21f   : > { %1445 = vst [vmem:[#allocation2 + $0x3b0] sm:$0xff] %v1428_v11  ;;  %v10417_v56 = vld [vmem:[#allocation2 + $0x39c] sm:$0xf0]  ;;  %v8952_v2 = vld [vmem:[#allocation2 + $0x360] sm:$0xf0] }
 0x220   : > { %1446 = vst [vmem:[#allocation2 + $0x3b8] sm:$0xff] %v1430_v12  ;;  %1807 = vrot.lane.b32.xlu1 %v1783_v10, %s14649_s14  ;;  %1805 = vrot.lane.b32.xlu0 %v11798_v33, %s14649_s14  ;;  %v8983_v11 = vor.u32 %v10417_v56, %v8982_v55 }
 0x221   : > { %1809 = vrot.lane.b32.xlu2 %v11752_v43, %s14649_s14 }
 0x222   : > { %v1472_v9 = vpop.permute.xlu1 %1471  ;;  %v1470_v13 = vpop.permute.xlu0 %1469 }
 0x223   : > { %v1489_v16 = vrot.slane %v1472_v9, 4  ;;  %v1488_v17 = vrot.slane %v1470_v13, 4  ;;  %v12058_v18 = vpop.permute.xlu2 %1554 }
 0x224   : > { %v1572_v58 = vrot.slane %v12058_v18, 4 }
 0x225   : > { %v1502_v19 = vsel %vm318_vm0, %v1489_v16, %v1490_v52  ;;  %v1497_v1 = vsel %vm318_vm0, %v1487_v29, %v1488_v17  ;;  %v1500_v21 = vsel %vm318_vm0, %v1488_v17, %v1489_v16  ;;  %v8951_v29 = vor.u32 %v10409_v61, %v8950_v60 }
 0x226   : > { %v1503_v4 = vsel %vm14648_vm15, %v1472_v9, %v1502_v19  ;;  %v1499_v23 = vsel %vm14648_vm15, %v12004_v27, %v1497_v1  ;;  %v1501_v15 = vsel %vm14648_vm15, %v1470_v13, %v1500_v21  ;;  %v8955_v16 = vor.u32 %v10405_v59, %v8952_v2  ;;  %v10401_v1 = vld [vmem:[#allocation2 + $0x31c] sm:$0xf0]  ;;  %v8920_v21 = vld [vmem:[#allocation2 + $0x320] sm:$0xf0] }
 0x227   : > { %1524 = vst [vmem:[#allocation2 + $0x3d0] sm:$0xff] %v1503_v4 }
 0x228   : > { %1522 = vst [vmem:[#allocation2 + $0x3c0] sm:$0xff] %v1499_v23  ;;  %1813 = vrot.lane.b32.xlu1 %v11824_v54, %s14649_s14  ;;  %1811 = vrot.lane.b32.xlu0 %v11819_v50, %s14649_s14 }
 0x229   : > { %1523 = vst [vmem:[#allocation2 + $0x3c8] sm:$0xff] %v1501_v15  ;;  %1815 = vrot.lane.b32.xlu2 %v11836_v6, %s14649_s14  ;;  %v8918_v15 = vld [vmem:[#allocation2 + $0x300] sm:$0xf] }
 0x22a   : > { %v1478_v25 = vpop.permute.xlu1 %1477  ;;  %v1476_v22 = vpop.permute.xlu0 %1475 }
 0x22b   : > { %v1492_v26 = vrot.slane %v1478_v25, 4  ;;  %v1491_v27 = vrot.slane %v1476_v22, 4  ;;  %v12074_v28 = vpop.permute.xlu2 %1560 }
 0x22d   : > { %v1506_v30 = vsel %vm318_vm0, %v1492_v26, %v1493_v14  ;;  %v1504_v31 = vsel %vm318_vm0, %v1490_v52, %v1491_v27  ;;  %v8919_v26 = vor.u32 %v10401_v1, %v8918_v15 }
 0x22e   : > { %v1507_v35 = vsel %vm14648_vm15, %v1478_v25, %v1506_v30  ;;  %v1505_v36 = vsel %vm14648_vm15, %v12017_v5, %v1504_v31  ;;  %v8888_v30 = vld [vmem:[#allocation2 + $0x2e0] sm:$0xf0] }
 0x22f   : > { %1526 = vst [vmem:[#allocation2 + $0x3e0] sm:$0xff] %v1507_v35  ;;  %v10421_v45 = vld [vmem:[#allocation2 + $0x3c4] sm:$0xf]  ;;  %v1871_v35 = vld [vmem:[%s11223_s20 + $0x4c] sm:$0xf] }
 0x230   : > { %1525 = vst [vmem:[#allocation2 + $0x3d8] sm:$0xff] %v1505_v36  ;;  %1882 = vrot.lane.b32.xlu1 %v11724_v24, %s14652_s11  ;;  %1817 = vrot.lane.b32.xlu0 %v1788_v32, %s14649_s14  ;;  %v9014_v24 = vld [vmem:[#allocation2 + $0x3c0] sm:$0xf]  ;;  %s14655_s14 = smov 29  }
 0x231   : > { %1884 = vrot.lane.b32.xlu2 %v11784_v20, %s14652_s11 }
 0x232   : > { %v1484_v38 = vpop.permute.xlu1 %1483  ;;  %v1482_v0 = vpop.permute.xlu0 %1481 }
 0x233   : > { %v1495_v7 = vrot.slane %v1484_v38, 4  ;;  %v1494_v39 = vrot.slane %v1482_v0, 4  ;;  %v12087_v40 = vpop.permute.xlu2 %1566 }
 0x235   : > { %v1512_v5 = vsel %vm318_vm0, %v1495_v7, %v1496_v37  ;;  %v1508_v41 = vsel %vm318_vm0, %v1493_v14, %v1494_v39  ;;  %v1510_v3 = vsel %vm318_vm0, %v1494_v39, %v1495_v7  ;;  %v10397_v14 = vld [vmem:[#allocation2 + $0x304] sm:$0xf] }
 0x236   : > { %v1513_v42 = vsel %vm14648_vm15, %v1484_v38, %v1512_v5  ;;  %v1509_v44 = vsel %vm14648_vm15, %v12033_v51, %v1508_v41  ;;  %v1511_v46 = vsel %vm14648_vm15, %v1482_v0, %v1510_v3  ;;  %v10425_v47 = vld [vmem:[#allocation2 + $0x3dc] sm:$0xf0]  ;;  %v9016_v8 = vld [vmem:[#allocation2 + $0x3e0] sm:$0xf0]  ;;  %vm14654_vm15 = vcmask 965632  }
 0x237   : > { %1529 = vst [vmem:[#allocation2 + $0x3f8] sm:$0xff] %v1513_v42  ;;  %v9015_v48 = vor.u32 %v10425_v47, %v9014_v24  ;;  %v9019_v49 = vor.u32 %v10421_v45, %v9016_v8  ;;  %v8984_v51 = vld [vmem:[#allocation2 + $0x3a0] sm:$0xf0]  ;;  %v8923_v27 = vor.u32 %v10397_v14, %v8920_v21  ;;  %v8886_v38 = vld [vmem:[#allocation2 + $0x2c0] sm:$0xf]  ;;  %v1575_v24 = vrot.slane %v12074_v28, 4 }
 0x238   : > { %1527 = vst [vmem:[#allocation2 + $0x3e8] sm:$0xff] %v1509_v44  ;;  %1888 = vrot.lane.b32.xlu1 %v11798_v33, %s14652_s11  ;;  %1886 = vrot.lane.b32.xlu0 %v11801_v34, %s14652_s11  ;;  %v8987_v12 = vor.u32 %v10413_v57, %v8984_v51  ;;  %v10389_v0 = vld [vmem:[#allocation2 + $0x2c4] sm:$0xf]  ;;  %v10385_v41 = vld [vmem:[#allocation2 + $0x29c] sm:$0xf0] }
 0x239   : > { %1528 = vst [vmem:[#allocation2 + $0x3f0] sm:$0xff] %v1511_v46  ;;  %3780 = vmatpush.bf16.msra.mxu1 %v9015_v48  ;;  %3836 = vmatpush.bf16.msrb.mxu0 %v9019_v49  ;;  %v8891_v39 = vor.u32 %v10389_v0, %v8888_v30  ;;  %v12124_v5 = vld [vmem:[%s11223_s20 + $0x4] sm:$0xff]  ;;  %v8854_v46 = vld [vmem:[#allocation2 + $0x280] sm:$0xf]  ;;  %v1954_v0 = vld [vmem:[%s11223_s20 + $0x4c] sm:$0xf] }
 0x23a   : > { %v1553_v62 = vpop.permute.xlu1 %1552  ;;  %v1551_v63 = vpop.permute.xlu0 %1550  ;;  %1890 = vrot.lane.b32.xlu2 %v1866_v53, %s14652_s11  ;;  %v8856_v3 = vld [vmem:[#allocation2 + $0x2a0] sm:$0xf0]  ;;  %v8855_v48 = vor.u32 %v10385_v41, %v8854_v46  ;;  %v10377_v49 = vld [vmem:[#allocation2 + $0x25c] sm:$0xf0] }
 0x23b   : > { %v1571_v33 = vrot.slane %v1553_v62, 4  ;;  %v1570_v10 = vrot.slane %v1551_v63, 4  ;;  %v12103_v52 = vpop.permute.xlu2 %1635  ;;  %v10381_v47 = vld [vmem:[#allocation2 + $0x284] sm:$0xf] }
 0x23c   : > { %v8824_v53 = vld [vmem:[#allocation2 + $0x260] sm:$0xf0] }
 0x23d   : > { %v1583_v9 = vsel %vm318_vm0, %v1571_v33, %v1572_v58  ;;  %v1580_v13 = vsel %vm318_vm0, %v1570_v10, %v1571_v33  ;;  %3781 = vmatpush.bf16.msra.mxu1 %v8983_v11  ;;  %3837 = vmatpush.bf16.msrb.mxu0 %v8987_v12  ;;  %v10369_v33 = vld [vmem:[#allocation2 + $0x21c] sm:$0xf0]  ;;  %v8792_v11 = vld [vmem:[#allocation2 + $0x220] sm:$0xf0] }
 0x23e   : > { %v1584_v17 = vsel %vm14654_vm15, %v1553_v62, %v1583_v9  ;;  %v1582_v19 = vsel %vm14654_vm15, %v1551_v63, %v1580_v13  ;;  %v8822_v62 = vld [vmem:[#allocation2 + $0x240] sm:$0xf]  ;;  %v10373_v63 = vld [vmem:[#allocation2 + $0x244] sm:$0xf] }
 0x23f   : > { %1606 = vst [vmem:[#allocation2 + $0x408] sm:$0xff] %v1584_v17  ;;  %v8823_v59 = vor.u32 %v10377_v49, %v8822_v62  ;;  %v8827_v2 = vor.u32 %v10373_v63, %v8824_v53  ;;  %v12143_v10 = vld [vmem:[%s11223_s20 + $0x1c] sm:$0xff] }
 0x240   : > { %1605 = vst [vmem:[#allocation2 + $0x400] sm:$0xff] %v1582_v19  ;;  %1894 = vrot.lane.b32.xlu1 %v11819_v50, %s14652_s11  ;;  %1892 = vrot.lane.b32.xlu0 %v11752_v43, %s14652_s11  ;;  %v10393_v50 = vld [vmem:[#allocation2 + $0x2dc] sm:$0xf0] }
 0x241   : > { %3782 = vmatpush.bf16.msra.mxu1 %v8951_v29  ;;  %3838 = vmatpush.bf16.msrb.mxu0 %v8955_v16  ;;  %v8887_v7 = vor.u32 %v10393_v50, %v8886_v38  ;;  %v8790_v12 = vld [vmem:[#allocation2 + $0x200] sm:$0xf]  ;;  %v10365_v16 = vld [vmem:[#allocation2 + $0x204] sm:$0xf] }
 0x242   : > { %v1559_v4 = vpop.permute.xlu1 %1558  ;;  %v1557_v23 = vpop.permute.xlu0 %1556  ;;  %1896 = vrot.lane.b32.xlu2 %v11824_v54, %s14652_s11  ;;  %v8791_v13 = vor.u32 %v10369_v33, %v8790_v12  ;;  %v8795_v17 = vor.u32 %v10365_v16, %v8792_v11  ;;  %v12228_v12 = vld [vmem:[%s11223_s20 + $0x3c] sm:$0xff] }
 0x243   : > { %v1574_v25 = vrot.slane %v1559_v4, 4  ;;  %v1573_v22 = vrot.slane %v1557_v23, 4  ;;  %v12115_v43 = vpop.permute.xlu2 %1641  ;;  %v12157_v4 = vld [vmem:[%s11223_s20 + $0x2c] sm:$0xff] }
 0x245   : > { %v1585_v31 = vsel %vm318_vm0, %v1572_v58, %v1573_v22  ;;  %v1587_v32 = vsel %vm318_vm0, %v1573_v22, %v1574_v25  ;;  %3783 = vmatpush.bf16.msra.mxu1 %v8919_v26  ;;  %3839 = vmatpush.bf16.msrb.mxu0 %v8923_v27  ;;  %v12164_v25 = vld [vmem:[%s11223_s20 + $0x34] sm:$0xff]  ;;  %v1657_v22 = vrot.slane %v12115_v43, 4 }
 0x246   : > { %v1586_v36 = vsel %vm14654_vm15, %v12058_v18, %v1585_v31  ;;  %v1588_v37 = vsel %vm14654_vm15, %v1557_v23, %v1587_v32  ;;  %v1578_v18 = vrot.slane %v12087_v40, 4  ;;  %v1949_v23 = vld [vmem:[%s11223_s20 + $0x24] sm:$0xf] }
 0x247   : > { %1607 = vst [vmem:[#allocation2 + $0x410] sm:$0xff] %v1586_v36  ;;  %v12178_v36 = vld [vmem:[%s11223_s20 + $0x44] sm:$0xff] }
 0x248   : > { %1608 = vst [vmem:[#allocation2 + $0x418] sm:$0xff] %v1588_v37  ;;  %1900 = vrot.lane.b32.xlu1 %v1871_v35, %s14652_s11  ;;  %1898 = vrot.lane.b32.xlu0 %v11836_v6, %s14652_s11  ;;  %v8859_v6 = vor.u32 %v10381_v47, %v8856_v3  ;;  %v12201_v47 = vld [vmem:[%s11223_s20 + $0x14] sm:$0xff]  ;;  %s14658_s11 = smov 28  }
 0x249   : > { %3784 = vmatpush.bf16.msra.mxu1 %v8887_v7  ;;  %3840 = vmatpush.bf16.msrb.mxu0 %v8891_v39 }
 0x24a   : > { %v1565_v42 = vpop.permute.xlu1 %1564  ;;  %v1563_v44 = vpop.permute.xlu0 %1562  ;;  %1965 = vrot.lane.b32.xlu2 %v12124_v5, %s14655_s14 }
 0x24b   : > { %v1577_v45 = vrot.slane %v1565_v42, 4  ;;  %v1576_v8 = vrot.slane %v1563_v44, 4  ;;  %v12133_v55 = vpop.permute.xlu2 %1647 }
 0x24c   : > { %v1660_v7 = vrot.slane %v12133_v55, 4 }
 0x24d   : > { %v1593_v56 = vsel %vm318_vm0, %v1577_v45, %v1578_v18  ;;  %v1589_v57 = vsel %vm318_vm0, %v1575_v24, %v1576_v8  ;;  %v1591_v51 = vsel %vm318_vm0, %v1576_v8, %v1577_v45  ;;  %3785 = vmatpush.bf16.msra.mxu1 %v8855_v48  ;;  %3841 = vmatpush.bf16.msrb.mxu0 %v8859_v6 }
 0x24e   : > { %v1594_v58 = vsel %vm14654_vm15, %v1565_v42, %v1593_v56  ;;  %v1590_v60 = vsel %vm14654_vm15, %v12074_v28, %v1589_v57  ;;  %v1592_v61 = vsel %vm14654_vm15, %v1563_v44, %v1591_v51  ;;  %v1654_v28 = vrot.slane %v12103_v52, 4  ;;  %v12196_v44 = vld [vmem:[%s11223_s20 + $0xc] sm:$0xff]  ;;  %v2032_v57 = vld [vmem:[%s11223_s20 + $0x24] sm:$0xf] }
 0x24f   : > { %1611 = vst [vmem:[#allocation2 + $0x430] sm:$0xff] %v1594_v58 }
 0x250   : > { %1609 = vst [vmem:[#allocation2 + $0x420] sm:$0xff] %v1590_v60  ;;  %1969 = vrot.lane.b32.xlu1 %v11801_v34, %s14655_s14  ;;  %1967 = vrot.lane.b32.xlu0 %v11784_v20, %s14655_s14 }
 0x251   : > { %1610 = vst [vmem:[#allocation2 + $0x428] sm:$0xff] %v1592_v61  ;;  %3786 = vmatpush.bf16.msra.mxu1 %v8823_v59  ;;  %3842 = vmatpush.bf16.msrb.mxu0 %v8827_v2 }
 0x252   : > { %v1634_v29 = vpop.permute.xlu1 %1633  ;;  %v1569_v9 = vpop.permute.xlu0 %1568  ;;  %1971 = vrot.lane.b32.xlu2 %v12143_v10, %s14655_s14 }
 0x253   : > { %v1653_v34 = vrot.slane %v1634_v29, 4  ;;  %v1579_v20 = vrot.slane %v1569_v9, 4  ;;  %v12152_v19 = vpop.permute.xlu2 %1716 }
 0x254   : > { %v1736_v60 = vrot.slane %v12152_v19, 4 }
 0x255   : > { %v1663_v1 = vsel %vm318_vm0, %v1653_v34, %v1654_v28  ;;  %v1595_v21 = vsel %vm318_vm0, %v1578_v18, %v1579_v20  ;;  %3787 = vmatpush.bf16.msra.mxu1 %v8791_v13  ;;  %3843 = vmatpush.bf16.msrb.mxu0 %v8795_v17 }
 0x256   : > { %v1665_v15 = vsel %vm14657_vm14, %v1634_v29, %v1663_v1  ;;  %v1596_v14 = vsel %vm14654_vm15, %v12087_v40, %v1595_v21  ;;  %vm14660_vm15 = vcmask 318464  }
 0x257   : > { %1688 = vst [vmem:[#allocation2 + $0x440] sm:$0xff] %v1665_v15  ;;  %v2037_v15 = vld [vmem:[%s11223_s20 + $0x4c] sm:$0xf] }
 0x258   : > { %1612 = vst [vmem:[#allocation2 + $0x438] sm:$0xff] %v1596_v14  ;;  %1975 = vrot.lane.b32.xlu1 %v12157_v4, %s14655_s14  ;;  %1973 = vrot.lane.b32.xlu0 %v1949_v23, %s14655_s14 }
 0x25a   : > { %v1640_v26 = vpop.permute.xlu1 %1639  ;;  %v1638_v27 = vpop.permute.xlu0 %1637  ;;  %1977 = vrot.lane.b32.xlu2 %v12164_v25, %s14655_s14 }
 0x25b   : > { %v1656_v50 = vrot.slane %v1640_v26, 4  ;;  %v1655_v40 = vrot.slane %v1638_v27, 4  ;;  %v12172_v30 = vpop.permute.xlu2 %1722 }
 0x25c   : > { %v1739_v61 = vrot.slane %v12172_v30, 4 }
 0x25d   : > { %v1670_v31 = vsel %vm318_vm0, %v1656_v50, %v1657_v22  ;;  %v1666_v32 = vsel %vm318_vm0, %v1654_v28, %v1655_v40  ;;  %v1668_v35 = vsel %vm318_vm0, %v1655_v40, %v1656_v50 }
 0x25e   : > { %v1671_v37 = vsel %vm14657_vm14, %v1640_v26, %v1670_v31  ;;  %v1667_v43 = vsel %vm14657_vm14, %v12103_v52, %v1666_v32  ;;  %v1669_v38 = vsel %vm14657_vm14, %v1638_v27, %v1668_v35 }
 0x25f   : > { %1691 = vst [vmem:[#allocation2 + $0x458] sm:$0xff] %v1671_v37 }
 0x260   : > { %1689 = vst [vmem:[#allocation2 + $0x448] sm:$0xff] %v1667_v43  ;;  %1981 = vrot.lane.b32.xlu1 %v12178_v36, %s14655_s14  ;;  %1979 = vrot.lane.b32.xlu0 %v11824_v54, %s14655_s14 }
 0x261   : > { %1690 = vst [vmem:[#allocation2 + $0x450] sm:$0xff] %v1669_v38 }
 0x262   : > { %v1646_v39 = vpop.permute.xlu1 %1645  ;;  %v1644_v41 = vpop.permute.xlu0 %1643  ;;  %1983 = vrot.lane.b32.xlu2 %v1954_v0, %s14655_s14  ;;  %s14661_s14 = smov 27  }
 0x263   : > { %v1659_v52 = vrot.slane %v1646_v39, 4  ;;  %v1658_v3 = vrot.slane %v1644_v41, 4  ;;  %v12191_v24 = vpop.permute.xlu2 %1728 }
 0x264   : > { %v1742_v16 = vrot.slane %v12191_v24, 4 }
 0x265   : > { %v1674_v18 = vsel %vm318_vm0, %v1659_v52, %v1660_v7  ;;  %v1672_v42 = vsel %vm318_vm0, %v1658_v3, %v1659_v52 }
 0x266   : > { %v1675_v46 = vsel %vm14657_vm14, %v1646_v39, %v1674_v18  ;;  %v1673_v54 = vsel %vm14657_vm14, %v1644_v41, %v1672_v42 }
 0x267   : > { %1693 = vst [vmem:[#allocation2 + $0x468] sm:$0xff] %v1675_v46 }
 0x268   : > { %1692 = vst [vmem:[#allocation2 + $0x460] sm:$0xff] %v1673_v54  ;;  %2050 = vrot.lane.b32.xlu1 %v12196_v44, %s14658_s11  ;;  %2048 = vrot.lane.b32.xlu0 %v12124_v5, %s14658_s11 }
 0x26a   : > { %v1652_v45 = vpop.permute.xlu1 %1651  ;;  %v1650_v8 = vpop.permute.xlu0 %1649  ;;  %2052 = vrot.lane.b32.xlu2 %v12201_v47, %s14658_s11 }
 0x26b   : > { %v1662_v48 = vrot.slane %v1652_v45, 4  ;;  %v1661_v6 = vrot.slane %v1650_v8, 4  ;;  %v1735_v49 = vpop.permute.xlu2 %1734 }
 0x26c   : > { %v1745_v26 = vrot.slane %v1735_v49, 4 }
 0x26d   : > { %v1676_v53 = vsel %vm318_vm0, %v1660_v7, %v1661_v6  ;;  %v1678_v56 = vsel %vm318_vm0, %v1661_v6, %v1662_v48  ;;  %v2115_v7 = vld [vmem:[%s11223_s20 + $0x24] sm:$0xf] }
 0x26e   : > { %v1677_v51 = vsel %vm14657_vm14, %v12133_v55, %v1676_v53  ;;  %v1679_v58 = vsel %vm14657_vm14, %v1650_v8, %v1678_v56  ;;  %vm14663_vm14 = vcmask 310272  }
 0x26f   : > { %1694 = vst [vmem:[#allocation2 + $0x470] sm:$0xff] %v1677_v51  ;;  %v2120_v51 = vld [vmem:[%s11223_s20 + $0x4c] sm:$0xf] }
 0x270   : > { %1695 = vst [vmem:[#allocation2 + $0x478] sm:$0xff] %v1679_v58  ;;  %2056 = vrot.lane.b32.xlu1 %v2032_v57, %s14658_s11  ;;  %2054 = vrot.lane.b32.xlu0 %v12143_v10, %s14658_s11 }
 0x272   : > { %v1721_v62 = vpop.permute.xlu1 %1720  ;;  %v1719_v63 = vpop.permute.xlu0 %1718  ;;  %2058 = vrot.lane.b32.xlu2 %v12157_v4, %s14658_s11 }
 0x273   : > { %v1738_v55 = vrot.slane %v1721_v62, 4  ;;  %v1737_v59 = vrot.slane %v1719_v63, 4  ;;  %v12222_v2 = vpop.permute.xlu2 %1803 }
 0x274   : > { %v1821_v39 = vrot.slane %v12222_v2, 4 }
 0x275   : > { %v1751_v33 = vsel %vm318_vm0, %v1738_v55, %v1739_v61  ;;  %v1746_v11 = vsel %vm318_vm0, %v1736_v60, %v1737_v59  ;;  %v1749_v28 = vsel %vm318_vm0, %v1737_v59, %v1738_v55 }
 0x276   : > { %v1752_v29 = vsel %vm14660_vm15, %v1721_v62, %v1751_v33  ;;  %v1748_v9 = vsel %vm14660_vm15, %v12152_v19, %v1746_v11  ;;  %v1750_v13 = vsel %vm14660_vm15, %v1719_v63, %v1749_v28 }
 0x277   : > { %1773 = vst [vmem:[#allocation2 + $0x490] sm:$0xff] %v1752_v29 }
 0x278   : > { %1771 = vst [vmem:[#allocation2 + $0x480] sm:$0xff] %v1748_v9  ;;  %2062 = vrot.lane.b32.xlu1 %v12228_v12, %s14658_s11  ;;  %2060 = vrot.lane.b32.xlu0 %v12164_v25, %s14658_s11 }
 0x279   : > { %1772 = vst [vmem:[#allocation2 + $0x488] sm:$0xff] %v1750_v13 }
 0x27a   : > { %v1727_v34 = vpop.permute.xlu1 %1726  ;;  %v1725_v20 = vpop.permute.xlu0 %1724  ;;  %2064 = vrot.lane.b32.xlu2 %v12178_v36, %s14658_s11 }
 0x27b   : > { %v1741_v17 = vrot.slane %v1727_v34, 4  ;;  %v1740_v19 = vrot.slane %v1725_v20, 4  ;;  %v12241_v1 = vpop.permute.xlu2 %1809 }
 0x27d   : > { %v1755_v21 = vsel %vm318_vm0, %v1741_v17, %v1742_v16  ;;  %v1753_v23 = vsel %vm318_vm0, %v1739_v61, %v1740_v19  ;;  %v1824_v61 = vrot.slane %v12241_v1, 4 }
 0x27e   : > { %v1756_v14 = vsel %vm14660_vm15, %v1727_v34, %v1755_v21  ;;  %v1754_v22 = vsel %vm14660_vm15, %v12172_v30, %v1753_v23 }
 0x27f   : > { %1775 = vst [vmem:[#allocation2 + $0x4a0] sm:$0xff] %v1756_v14  ;;  %v2198_v14 = vld [vmem:[%s11223_s20 + $0x24] sm:$0xf] }
 0x280   : > { %1774 = vst [vmem:[#allocation2 + $0x498] sm:$0xff] %v1754_v22  ;;  %2131 = vrot.lane.b32.xlu1 %v12124_v5, %s14661_s14  ;;  %2066 = vrot.lane.b32.xlu0 %v2037_v15, %s14658_s11  ;;  %s14664_s11 = smov 19  }
 0x282   : > { %v1733_v27 = vpop.permute.xlu1 %1732  ;;  %v1731_v50 = vpop.permute.xlu0 %1730  ;;  %2133 = vrot.lane.b32.xlu2 %v12196_v44, %s14661_s14 }
 0x283   : > { %v1744_v40 = vrot.slane %v1733_v27, 4  ;;  %v1743_v31 = vrot.slane %v1731_v50, 4  ;;  %v12254_v32 = vpop.permute.xlu2 %1815 }
 0x284   : > { %v1827_v62 = vrot.slane %v12254_v32, 4 }
 0x285   : > { %v1761_v30 = vsel %vm318_vm0, %v1744_v40, %v1745_v26  ;;  %v1757_v35 = vsel %vm318_vm0, %v1742_v16, %v1743_v31  ;;  %v1759_v37 = vsel %vm318_vm0, %v1743_v31, %v1744_v40 }
 0x286   : > { %v1762_v43 = vsel %vm14660_vm15, %v1733_v27, %v1761_v30  ;;  %v1758_v38 = vsel %vm14660_vm15, %v12191_v24, %v1757_v35  ;;  %v1760_v0 = vsel %vm14660_vm15, %v1731_v50, %v1759_v37  ;;  %vm14666_vm15 = vcmask 302080  }
 0x287   : > { %1778 = vst [vmem:[#allocation2 + $0x4b8] sm:$0xff] %v1762_v43 }
 0x288   : > { %1776 = vst [vmem:[#allocation2 + $0x4a8] sm:$0xff] %v1758_v38  ;;  %2137 = vrot.lane.b32.xlu1 %v12143_v10, %s14661_s14  ;;  %2135 = vrot.lane.b32.xlu0 %v12201_v47, %s14661_s14 }
 0x289   : > { %1777 = vst [vmem:[#allocation2 + $0x4b0] sm:$0xff] %v1760_v0 }
 0x28a   : > { %v1802_v41 = vpop.permute.xlu1 %1801  ;;  %v1800_v52 = vpop.permute.xlu0 %1799  ;;  %2139 = vrot.lane.b32.xlu2 %v2115_v7, %s14661_s14 }
 0x28b   : > { %v1820_v3 = vrot.slane %v1802_v41, 4  ;;  %v1819_v24 = vrot.slane %v1800_v52, 4  ;;  %v12270_v18 = vpop.permute.xlu2 %1884 }
 0x28c   : > { %v1903_v34 = vrot.slane %v12270_v18, 4 }
 0x28d   : > { %v1832_v42 = vsel %vm318_vm0, %v1820_v3, %v1821_v39  ;;  %v1829_v46 = vsel %vm318_vm0, %v1819_v24, %v1820_v3 }
 0x28e   : > { %v1833_v54 = vsel %vm14663_vm14, %v1802_v41, %v1832_v42  ;;  %v1831_v45 = vsel %vm14663_vm14, %v1800_v52, %v1829_v46 }
 0x28f   : > { %1855 = vst [vmem:[#allocation2 + $0x4c8] sm:$0xff] %v1833_v54 }
 0x290   : > { %1854 = vst [vmem:[#allocation2 + $0x4c0] sm:$0xff] %v1831_v45  ;;  %2143 = vrot.lane.b32.xlu1 %v12164_v25, %s14661_s14  ;;  %2141 = vrot.lane.b32.xlu0 %v12157_v4, %s14661_s14 }
 0x292   : > { %v1808_v8 = vpop.permute.xlu1 %1807  ;;  %v1806_v48 = vpop.permute.xlu0 %1805  ;;  %2145 = vrot.lane.b32.xlu2 %v12228_v12, %s14661_s14 }
 0x293   : > { %v1823_v6 = vrot.slane %v1808_v8, 4  ;;  %v1822_v49 = vrot.slane %v1806_v48, 4 }
 0x294   : > { %v1891_v53 = vpop.permute.xlu2 %1890 }
 0x295   : > { %v1834_v56 = vsel %vm318_vm0, %v1821_v39, %v1822_v49  ;;  %v1836_v57 = vsel %vm318_vm0, %v1822_v49, %v1823_v6  ;;  %v1906_v27 = vrot.slane %v1891_v53, 4  ;;  %v2203_v39 = vld [vmem:[%s11223_s20 + $0x4c] sm:$0xf] }
 0x296   : > { %v1835_v58 = vsel %vm14663_vm14, %v12222_v2, %v1834_v56  ;;  %v1837_v60 = vsel %vm14663_vm14, %v1806_v48, %v1836_v57 }
 0x297   : > { %1856 = vst [vmem:[#allocation2 + $0x4d0] sm:$0xff] %v1835_v58  ;;  %v2281_v58 = vld [vmem:[%s11223_s20 + $0x24] sm:$0xf] }
 0x298   : > { %1857 = vst [vmem:[#allocation2 + $0x4d8] sm:$0xff] %v1837_v60  ;;  %2149 = vrot.lane.b32.xlu1 %v2120_v51, %s14661_s14  ;;  %2147 = vrot.lane.b32.xlu0 %v12178_v36, %s14661_s14  ;;  %s11082_s14 = smov 18  }
 0x29a   : > { %v1814_v63 = vpop.permute.xlu1 %1813  ;;  %v1812_v55 = vpop.permute.xlu0 %1811  ;;  %2214 = vrot.lane.b32.xlu2 %v12124_v5, %s14664_s11 }
 0x29b   : > { %v1826_v59 = vrot.slane %v1814_v63, 4  ;;  %v1825_v2 = vrot.slane %v1812_v55, 4 }
 0x29c   : > { %v12295_v33 = vpop.permute.xlu2 %1896 }
 0x29d   : > { %v1842_v11 = vsel %vm318_vm0, %v1826_v59, %v1827_v62  ;;  %v1838_v28 = vsel %vm318_vm0, %v1824_v61, %v1825_v2  ;;  %v1840_v29 = vsel %vm318_vm0, %v1825_v2, %v1826_v59  ;;  %v1909_v41 = vrot.slane %v12295_v33, 4 }
 0x29e   : > { %v1843_v9 = vsel %vm14663_vm14, %v1814_v63, %v1842_v11  ;;  %v1839_v13 = vsel %vm14663_vm14, %v12241_v1, %v1838_v28  ;;  %v1841_v16 = vsel %vm14663_vm14, %v1812_v55, %v1840_v29 }
 0x29f   : > { %1860 = vst [vmem:[#allocation2 + $0x4f0] sm:$0xff] %v1843_v9 }
 0x2a0   : > { %1858 = vst [vmem:[#allocation2 + $0x4e0] sm:$0xff] %v1839_v13  ;;  %2218 = vrot.lane.b32.xlu1 %v12201_v47, %s14664_s11  ;;  %2216 = vrot.lane.b32.xlu0 %v12196_v44, %s14664_s11 }
 0x2a1   : > { %1859 = vst [vmem:[#allocation2 + $0x4e8] sm:$0xff] %v1841_v16 }
 0x2a2   : > { %v1883_v20 = vpop.permute.xlu1 %1882  ;;  %v1818_v17 = vpop.permute.xlu0 %1817  ;;  %2220 = vrot.lane.b32.xlu2 %v12143_v10, %s14664_s11 }
 0x2a3   : > { %v1902_v19 = vrot.slane %v1883_v20, 4  ;;  %v1828_v1 = vrot.slane %v1818_v17, 4 }
 0x2a4   : > { %v12311_v21 = vpop.permute.xlu2 %1965 }
 0x2a5   : > { %v1912_v23 = vsel %vm318_vm0, %v1902_v19, %v1903_v34  ;;  %v1844_v15 = vsel %vm318_vm0, %v1827_v62, %v1828_v1  ;;  %v1985_v62 = vrot.slane %v12311_v21, 4 }
 0x2a6   : > { %v1914_v22 = vsel %vm14666_vm15, %v1883_v20, %v1912_v23  ;;  %v1845_v26 = vsel %vm14663_vm14, %v12254_v32, %v1844_v15  ;;  %vm14667_vm14 = vcmask 236544  }
 0x2a7   : > { %1937 = vst [vmem:[#allocation2 + $0x500] sm:$0xff] %v1914_v22  ;;  %v2286_v22 = vld [vmem:[%s11223_s20 + $0x4c] sm:$0xf] }
 0x2a8   : > { %1861 = vst [vmem:[#allocation2 + $0x4f8] sm:$0xff] %v1845_v26  ;;  %2224 = vrot.lane.b32.xlu1 %v12157_v4, %s14664_s11  ;;  %2222 = vrot.lane.b32.xlu0 %v2198_v14, %s14664_s11 }
 0x2aa   : > { %v1889_v50 = vpop.permute.xlu1 %1888  ;;  %v1887_v40 = vpop.permute.xlu0 %1886  ;;  %2226 = vrot.lane.b32.xlu2 %v12164_v25, %s14664_s11 }
 0x2ab   : > { %v1905_v31 = vrot.slane %v1889_v50, 4  ;;  %v1904_v30 = vrot.slane %v1887_v40, 4 }
 0x2ac   : > { %v12324_v35 = vpop.permute.xlu2 %1971 }
 0x2ad   : > { %v1919_v32 = vsel %vm318_vm0, %v1905_v31, %v1906_v27  ;;  %v1915_v37 = vsel %vm318_vm0, %v1903_v34, %v1904_v30  ;;  %v1917_v43 = vsel %vm318_vm0, %v1904_v30, %v1905_v31  ;;  %v1988_v63 = vrot.slane %v12324_v35, 4 }
 0x2ae   : > { %v1920_v38 = vsel %vm14666_vm15, %v1889_v50, %v1919_v32  ;;  %v1916_v0 = vsel %vm14666_vm15, %v12270_v18, %v1915_v37  ;;  %v1918_v7 = vsel %vm14666_vm15, %v1887_v40, %v1917_v43 }
 0x2af   : > { %1940 = vst [vmem:[#allocation2 + $0x518] sm:$0xff] %v1920_v38 }
 0x2b0   : > { %1938 = vst [vmem:[#allocation2 + $0x508] sm:$0xff] %v1916_v0  ;;  %2230 = vrot.lane.b32.xlu1 %v12178_v36, %s14664_s11  ;;  %2228 = vrot.lane.b32.xlu0 %v12228_v12, %s14664_s11 }
 0x2b1   : > { %1939 = vst [vmem:[#allocation2 + $0x510] sm:$0xff] %v1918_v7 }
 0x2b2   : > { %v1895_v52 = vpop.permute.xlu1 %1894  ;;  %v1893_v3 = vpop.permute.xlu0 %1892  ;;  %2232 = vrot.lane.b32.xlu2 %v2203_v39, %s14664_s11  ;;  %s11083_s11 = smov 17   ;;  %v2364_v39 = vld [vmem:[%s11223_s20 + $0x24] sm:$0xf] }
 0x2b3   : > { %v1908_v24 = vrot.slane %v1895_v52, 4  ;;  %v1907_v18 = vrot.slane %v1893_v3, 4 }
 0x2b4   : > { %v12340_v42 = vpop.permute.xlu2 %1977 }
 0x2b5   : > { %v1923_v46 = vsel %vm318_vm0, %v1908_v24, %v1909_v41  ;;  %v1921_v54 = vsel %vm318_vm0, %v1907_v18, %v1908_v24  ;;  %v1991_v20 = vrot.slane %v12340_v42, 4 }
 0x2b6   : > { %v1924_v45 = vsel %vm14666_vm15, %v1895_v52, %v1923_v46  ;;  %v1922_v8 = vsel %vm14666_vm15, %v1893_v3, %v1921_v54 }
 0x2b7   : > { %1942 = vst [vmem:[#allocation2 + $0x528] sm:$0xff] %v1924_v45 }
 0x2b8   : > { %1941 = vst [vmem:[#allocation2 + $0x520] sm:$0xff] %v1922_v8  ;;  %2299 = vrot.lane.b32.xlu1 %v12196_v44, %s11082_s14  ;;  %2297 = vrot.lane.b32.xlu0 %v12124_v5, %s11082_s14 }
 0x2ba   : > { %v1901_v48 = vpop.permute.xlu1 %1900  ;;  %v1899_v6 = vpop.permute.xlu0 %1898  ;;  %2301 = vrot.lane.b32.xlu2 %v12201_v47, %s11082_s14 }
 0x2bb   : > { %v1911_v49 = vrot.slane %v1901_v48, 4  ;;  %v1910_v53 = vrot.slane %v1899_v6, 4 }
 0x2bc   : > { %v1984_v56 = vpop.permute.xlu2 %1983 }
 0x2bd   : > { %v1925_v57 = vsel %vm318_vm0, %v1909_v41, %v1910_v53  ;;  %v1927_v51 = vsel %vm318_vm0, %v1910_v53, %v1911_v49  ;;  %v1994_v50 = vrot.slane %v1984_v56, 4  ;;  %v2369_v56 = vld [vmem:[%s11223_s20 + $0x4c] sm:$0xf] }
 0x2be   : > { %v1926_v60 = vsel %vm14666_vm15, %v12295_v33, %v1925_v57  ;;  %v1928_v61 = vsel %vm14666_vm15, %v1899_v6, %v1927_v51  ;;  %vm14668_vm15 = vcmask 228352  }
 0x2bf   : > { %1943 = vst [vmem:[#allocation2 + $0x530] sm:$0xff] %v1926_v60 }
 0x2c0   : > { %1944 = vst [vmem:[#allocation2 + $0x538] sm:$0xff] %v1928_v61  ;;  %2305 = vrot.lane.b32.xlu1 %v2281_v58, %s11082_s14  ;;  %2303 = vrot.lane.b32.xlu0 %v12143_v10, %s11082_s14 }
 0x2c2   : > { %v1970_v55 = vpop.permute.xlu1 %1969  ;;  %v1968_v59 = vpop.permute.xlu0 %1967  ;;  %2307 = vrot.lane.b32.xlu2 %v12157_v4, %s11082_s14 }
 0x2c3   : > { %v1987_v2 = vrot.slane %v1970_v55, 4  ;;  %v1986_v33 = vrot.slane %v1968_v59, 4 }
 0x2c4   : > { %v12365_v11 = vpop.permute.xlu2 %2052 }
 0x2c5   : > { %v2000_v28 = vsel %vm318_vm0, %v1987_v2, %v1988_v63  ;;  %v1995_v29 = vsel %vm318_vm0, %v1985_v62, %v1986_v33  ;;  %v1998_v9 = vsel %vm318_vm0, %v1986_v33, %v1987_v2 }
 0x2c6   : > { %v2001_v13 = vsel %vm14667_vm14, %v1970_v55, %v2000_v28  ;;  %v1997_v16 = vsel %vm14667_vm14, %v12311_v21, %v1995_v29  ;;  %v1999_v34 = vsel %vm14667_vm14, %v1968_v59, %v1998_v9  ;;  %v10299_v28 = vld [vmem:[#allocation7 + $0xc] sm:$0xf0] }
 0x2c7   : > { %2022 = vst [vmem:[#allocation2 + $0x550] sm:$0xff] %v2001_v13 }
 0x2c8   : > { %2020 = vst [vmem:[#allocation2 + $0x540] sm:$0xff] %v1997_v16  ;;  %2311 = vrot.lane.b32.xlu1 %v12228_v12, %s11082_s14  ;;  %2309 = vrot.lane.b32.xlu0 %v12164_v25, %s11082_s14 }
 0x2c9   : > { %2021 = vst [vmem:[#allocation2 + $0x548] sm:$0xff] %v1999_v34 }
 0x2ca   : > { %v1976_v17 = vpop.permute.xlu1 %1975  ;;  %v1974_v19 = vpop.permute.xlu0 %1973  ;;  %2313 = vrot.lane.b32.xlu2 %v12178_v36, %s11082_s14 }
 0x2cb   : > { %v1990_v1 = vrot.slane %v1976_v17, 4  ;;  %v1989_v21 = vrot.slane %v1974_v19, 4 }
 0x2cc   : > { %v12381_v23 = vpop.permute.xlu2 %2058 }
 0x2cd   : > { %v2004_v15 = vsel %vm318_vm0, %v1990_v1, %v1991_v20  ;;  %v2002_v14 = vsel %vm318_vm0, %v1988_v63, %v1989_v21 }
 0x2ce   : > { %v2005_v26 = vsel %vm14667_vm14, %v1976_v17, %v2004_v15  ;;  %v2003_v27 = vsel %vm14667_vm14, %v12324_v35, %v2002_v14 }
 0x2cf   : > { %2024 = vst [vmem:[#allocation2 + $0x560] sm:$0xff] %v2005_v26 }
 0x2d0   : > { %2023 = vst [vmem:[#allocation2 + $0x558] sm:$0xff] %v2003_v27  ;;  %2380 = vrot.lane.b32.xlu1 %v12124_v5, %s11083_s11  ;;  %2315 = vrot.lane.b32.xlu0 %v2286_v22, %s11082_s14 }
 0x2d2   : > { %v1982_v40 = vpop.permute.xlu1 %1981  ;;  %v1980_v31 = vpop.permute.xlu0 %1979  ;;  %2382 = vrot.lane.b32.xlu2 %v12196_v44, %s11083_s11  ;;  %v2070_v44 = vrot.slane %v12365_v11, 4 }
 0x2d3   : > { %v1993_v30 = vrot.slane %v1982_v40, 4  ;;  %v1992_v32 = vrot.slane %v1980_v31, 4 }
 0x2d4   : > { %v12394_v37 = vpop.permute.xlu2 %2064 }
 0x2d5   : > { %v2010_v35 = vsel %vm318_vm0, %v1993_v30, %v1994_v50  ;;  %v2006_v43 = vsel %vm318_vm0, %v1991_v20, %v1992_v32  ;;  %v2008_v38 = vsel %vm318_vm0, %v1992_v32, %v1993_v30 }
 0x2d6   : > { %v2011_v5 = vsel %vm14667_vm14, %v1982_v40, %v2010_v35  ;;  %v2007_v0 = vsel %vm14667_vm14, %v12340_v42, %v2006_v43  ;;  %v2009_v7 = vsel %vm14667_vm14, %v1980_v31, %v2008_v38  ;;  %vm14670_vm14 = vcmask 220160  }
 0x2d7   : > { %2027 = vst [vmem:[#allocation2 + $0x578] sm:$0xff] %v2011_v5 }
 0x2d8   : > { %2025 = vst [vmem:[#allocation2 + $0x568] sm:$0xff] %v2007_v0  ;;  %2386 = vrot.lane.b32.xlu1 %v12143_v10, %s11083_s11  ;;  %2384 = vrot.lane.b32.xlu0 %v12201_v47, %s11083_s11 }
 0x2d9   : > { %2026 = vst [vmem:[#allocation2 + $0x570] sm:$0xff] %v2009_v7 }
 0x2da   : > { %v2051_v41 = vpop.permute.xlu1 %2050  ;;  %v2049_v52 = vpop.permute.xlu0 %2048  ;;  %2388 = vrot.lane.b32.xlu2 %v2364_v39, %s11083_s11 }
 0x2db   : > { %v2069_v3 = vrot.slane %v2051_v41, 4  ;;  %v2068_v24 = vrot.slane %v2049_v52, 4 }
 0x2dc   : > { %v12410_v18 = vpop.permute.xlu2 %2133 }
 0x2dd   : > { %v2081_v42 = vsel %vm318_vm0, %v2069_v3, %v2070_v44  ;;  %v2078_v10 = vsel %vm318_vm0, %v2068_v24, %v2069_v3  ;;  %v2152_v29 = vrot.slane %v12410_v18, 4 }
 0x2de   : > { %v2082_v46 = vsel %vm14668_vm15, %v2051_v41, %v2081_v42  ;;  %v2080_v47 = vsel %vm14668_vm15, %v2049_v52, %v2078_v10 }
 0x2df   : > { %2104 = vst [vmem:[#allocation2 + $0x588] sm:$0xff] %v2082_v46 }
 0x2e0   : > { %2103 = vst [vmem:[#allocation2 + $0x580] sm:$0xff] %v2080_v47  ;;  %2392 = vrot.lane.b32.xlu1 %v12164_v25, %s11083_s11  ;;  %2390 = vrot.lane.b32.xlu0 %v12157_v4, %s11083_s11  ;;  %v2073_v4 = vrot.slane %v12381_v23, 4 }
 0x2e2   : > { %v2057_v54 = vpop.permute.xlu1 %2056  ;;  %v2055_v45 = vpop.permute.xlu0 %2054  ;;  %2394 = vrot.lane.b32.xlu2 %v12228_v12, %s11083_s11  ;;  %v2076_v12 = vrot.slane %v12394_v37, 4 }
 0x2e3   : > { %v2072_v8 = vrot.slane %v2057_v54, 4  ;;  %v2071_v48 = vrot.slane %v2055_v45, 4 }
 0x2e4   : > { %v2140_v6 = vpop.permute.xlu2 %2139 }
 0x2e5   : > { %v2083_v49 = vsel %vm318_vm0, %v2070_v44, %v2071_v48  ;;  %v2085_v53 = vsel %vm318_vm0, %v2071_v48, %v2072_v8  ;;  %v2155_v15 = vrot.slane %v2140_v6, 4 }
 0x2e6   : > { %v2084_v57 = vsel %vm14668_vm15, %v12365_v11, %v2083_v49  ;;  %v2086_v25 = vsel %vm14668_vm15, %v2055_v45, %v2085_v53  ;;  %v8518_v11 = vld [vmem:[#allocation7] sm:$0xf] }
 0x2e7   : > { %2105 = vst [vmem:[#allocation2 + $0x590] sm:$0xff] %v2084_v57  ;;  %v12441_v9 = vor.u32 %v10299_v28, %v8518_v11  ;;  %v10477_v11 = vld [vmem:[#allocation2 + $0x584] sm:$0xf] }
 0x2e8   : > { %2106 = vst [vmem:[#allocation2 + $0x598] sm:$0xff] %v2086_v25  ;;  %2398 = vrot.lane.b32.xlu1 %v2369_v56, %s11083_s11  ;;  %2396 = vrot.lane.b32.xlu0 %v12178_v36, %s11083_s11 }
 0x2e9   : > { %3774 = vmatmul.bf16.vlgmr.msra.gmra.mxu0 %v12441_v9 }
 0x2ea   : > { %v2063_v51 = vpop.permute.xlu1 %2062  ;;  %v2061_v58 = vpop.permute.xlu0 %2060 }
 0x2eb   : > { %v2075_v60 = vrot.slane %v2063_v51, 4  ;;  %v2074_v61 = vrot.slane %v2061_v58, 4 }
 0x2ec   : > { %v2146_v62 = vpop.permute.xlu2 %2145 }
 0x2ed   : > { %v2091_v63 = vsel %vm318_vm0, %v2075_v60, %v2076_v12  ;;  %v2087_v55 = vsel %vm318_vm0, %v2073_v4, %v2074_v61  ;;  %v2089_v59 = vsel %vm318_vm0, %v2074_v61, %v2075_v60  ;;  %v2158_v43 = vrot.slane %v2146_v62, 4 }
 0x2ee   : > { %v2092_v2 = vsel %vm14668_vm15, %v2063_v51, %v2091_v63  ;;  %v2088_v36 = vsel %vm14668_vm15, %v12381_v23, %v2087_v55  ;;  %v2090_v33 = vsel %vm14668_vm15, %v2061_v58, %v2089_v59  ;;  %v9238_v59 = vld [vmem:[#allocation2 + $0x580] sm:$0xf] }
 0x2ef   : > { %2109 = vst [vmem:[#allocation2 + $0x5b0] sm:$0xff] %v2092_v2  ;;  %v9246_v2 = vld [vmem:[#allocation2 + $0x588] sm:$0xf] }
 0x2f0   : > { %2107 = vst [vmem:[#allocation2 + $0x5a0] sm:$0xff] %v2088_v36 }
 0x2f1   : > { %2108 = vst [vmem:[#allocation2 + $0x5a8] sm:$0xff] %v2090_v33 }
 0x2f2   : > { %v2132_v13 = vpop.permute.xlu1 %2131  ;;  %v2067_v16 = vpop.permute.xlu0 %2066 }
 0x2f3   : > { %v2151_v34 = vrot.slane %v2132_v13, 4  ;;  %v2077_v20 = vrot.slane %v2067_v16, 4  ;;  %v10474_v16 = vld [vmem:[#allocation2 + $0x564] sm:$0xf0] }
 0x2f4   : > { %v12444_v17 = vpop.permute.xlu2 %2214 }
 0x2f5   : > { %v2161_v19 = vsel %vm318_vm0, %v2151_v34, %v2152_v29  ;;  %v2093_v1 = vsel %vm318_vm0, %v2076_v12, %v2077_v20  ;;  %v2234_v51 = vrot.slane %v12444_v17, 4 }
 0x2f6   : > { %v2163_v21 = vsel %vm14670_vm14, %v2132_v13, %v2161_v19  ;;  %v2094_v23 = vsel %vm14668_vm15, %v12394_v37, %v2093_v1  ;;  %vm14669_vm15 = vcmask 154624   ;;  %v10473_v1 = vld [vmem:[#allocation2 + $0x55c] sm:$0xf0] }
 0x2f7   : > { %2186 = vst [vmem:[#allocation2 + $0x5c0] sm:$0xff] %v2163_v21  ;;  %v10481_v60 = vld [vmem:[#allocation2 + $0x59c] sm:$0xf0]  ;;  %v9240_v61 = vld [vmem:[#allocation2 + $0x5a0] sm:$0xf0] }
 0x2f8   : > { %2110 = vst [vmem:[#allocation2 + $0x5b8] sm:$0xff] %v2094_v23  ;;  %v10482_v12 = vld [vmem:[#allocation2 + $0x5a4] sm:$0xf0]  ;;  %v9243_v13 = vor.u32 %v10477_v11, %v9240_v61  ;;  %v9208_v21 = vld [vmem:[#allocation2 + $0x560] sm:$0xf0] }
 0x2f9   : > { %v9247_v28 = vor.u32 %v10482_v12, %v9246_v2  ;;  %v10449_v12 = vld [vmem:[#allocation2 + $0x49c] sm:$0xf0]  ;;  %v10442_v11 = vld [vmem:[#allocation2 + $0x464] sm:$0xf0] }
 0x2fa   : > { %v2138_v14 = vpop.permute.xlu1 %2137  ;;  %v2136_v22 = vpop.permute.xlu0 %2135 }
 0x2fb   : > { %v2154_v26 = vrot.slane %v2138_v14, 4  ;;  %v2153_v27 = vrot.slane %v2136_v22, 4 }
 0x2fc   : > { %v12454_v30 = vpop.permute.xlu2 %2220 }
 0x2fd   : > { %v2168_v50 = vsel %vm318_vm0, %v2154_v26, %v2155_v15  ;;  %v2164_v40 = vsel %vm318_vm0, %v2152_v29, %v2153_v27  ;;  %v2166_v31 = vsel %vm318_vm0, %v2153_v27, %v2154_v26  ;;  %v2237_v58 = vrot.slane %v12454_v30, 4  ;;  %v9206_v26 = vld [vmem:[#allocation2 + $0x540] sm:$0xf]  ;;  %v10469_v27 = vld [vmem:[#allocation2 + $0x544] sm:$0xf] }
 0x2fe   : > { %v2169_v32 = vsel %vm14670_vm14, %v2138_v14, %v2168_v50  ;;  %v2165_v37 = vsel %vm14670_vm14, %v12410_v18, %v2164_v40  ;;  %v2167_v35 = vsel %vm14670_vm14, %v2136_v22, %v2166_v31  ;;  %v9270_v54 = vld [vmem:[#allocation2 + $0x5c0] sm:$0xf]  ;;  %v10485_v48 = vld [vmem:[#allocation2 + $0x5c4] sm:$0xf]  ;;  %v9239_v29 = vor.u32 %v10481_v60, %v9238_v59  ;;  %v9214_v22 = vld [vmem:[#allocation2 + $0x548] sm:$0xf] }
 0x2ff   : > { %2189 = vst [vmem:[#allocation2 + $0x5d8] sm:$0xff] %v2169_v32  ;;  %v9215_v50 = vor.u32 %v10474_v16, %v9214_v22  ;;  %v9207_v40 = vor.u32 %v10473_v1, %v9206_v26  ;;  %v9211_v31 = vor.u32 %v10469_v27, %v9208_v21  ;;  %v10466_v32 = vld [vmem:[#allocation2 + $0x524] sm:$0xf0]  ;;  %v10445_v59 = vld [vmem:[#allocation2 + $0x484] sm:$0xf] }
 0x300   : > { %2187 = vst [vmem:[#allocation2 + $0x5c8] sm:$0xff] %v2165_v37  ;;  %v9118_v60 = vld [vmem:[#allocation2 + $0x488] sm:$0xf]  ;;  %v9080_v16 = vld [vmem:[#allocation2 + $0x460] sm:$0xf0] }
 0x301   : > { %2188 = vst [vmem:[#allocation2 + $0x5d0] sm:$0xff] %v2167_v35  ;;  %v10465_v35 = vld [vmem:[#allocation2 + $0x51c] sm:$0xf0]  ;;  %v9086_v21 = vld [vmem:[#allocation2 + $0x448] sm:$0xf] }
 0x302   : > { %v2144_v38 = vpop.permute.xlu1 %2143  ;;  %v2142_v5 = vpop.permute.xlu0 %2141  ;;  %v10434_v27 = vld [vmem:[#allocation2 + $0x424] sm:$0xf0] }
 0x303   : > { %v2157_v0 = vrot.slane %v2144_v38, 4  ;;  %v2156_v7 = vrot.slane %v2142_v5, 4 }
 0x304   : > { %v12464_v3 = vpop.permute.xlu2 %2226 }
 0x305   : > { %v2172_v39 = vsel %vm318_vm0, %v2157_v0, %v2158_v43  ;;  %v2170_v44 = vsel %vm318_vm0, %v2156_v7, %v2157_v0  ;;  %v2240_v37 = vrot.slane %v12464_v3, 4 }
 0x306   : > { %v2173_v41 = vsel %vm14670_vm14, %v2144_v38, %v2172_v39  ;;  %v2171_v52 = vsel %vm14670_vm14, %v2142_v5, %v2170_v44  ;;  %v9182_v5 = vld [vmem:[#allocation2 + $0x508] sm:$0xf]  ;;  %v9174_v39 = vld [vmem:[#allocation2 + $0x500] sm:$0xf]  ;;  %v10461_v44 = vld [vmem:[#allocation2 + $0x504] sm:$0xf] }
 0x307   : > { %2191 = vst [vmem:[#allocation2 + $0x5e8] sm:$0xff] %v2173_v41  ;;  %v9278_v6 = vld [vmem:[#allocation2 + $0x5c8] sm:$0xf]  ;;  %v9183_v41 = vor.u32 %v10466_v32, %v9182_v5 }
 0x308   : > { %2190 = vst [vmem:[#allocation2 + $0x5e0] sm:$0xff] %v2171_v52 }
 0x30a   : > { %v2150_v24 = vpop.permute.xlu1 %2149  ;;  %v2148_v18 = vpop.permute.xlu0 %2147 }
 0x30b   : > { %v2160_v42 = vrot.slane %v2150_v24, 4  ;;  %v2159_v10 = vrot.slane %v2148_v18, 4  ;;  %v9175_v24 = vor.u32 %v10465_v35, %v9174_v39  ;;  %v9054_v35 = vld [vmem:[#allocation2 + $0x408] sm:$0xf] }
 0x30c   : > { %v9055_v5 = vor.u32 %v10434_v27, %v9054_v35  ;;  %v1350_v27 = vld [vmem:[%s11223_s20 + $0x14] sm:$0xff] }
 0x30d   : > { %v2174_v46 = vsel %vm318_vm0, %v2158_v43, %v2159_v10  ;;  %v2176_v47 = vsel %vm318_vm0, %v2159_v10, %v2160_v42  ;;  %v9176_v43 = vld [vmem:[#allocation2 + $0x520] sm:$0xf0]  ;;  %v10458_v42 = vld [vmem:[#allocation2 + $0x4e4] sm:$0xf0]  ;;  %1358 = vst [vmem:[#allocation2 + $0x350] sm:$0xff] %v1350_v27 }
 0x30e   : > { %v2175_v45 = vsel %vm14670_vm14, %v2146_v62, %v2174_v46  ;;  %v2177_v8 = vsel %vm14670_vm14, %v2148_v18, %v2176_v47  ;;  %v10490_v49 = vld [vmem:[#allocation2 + $0x5e4] sm:$0xf0]  ;;  %v12472_v62 = vpop.permute.xlu2 %2232  ;;  %v9179_v18 = vor.u32 %v10461_v44, %v9176_v43  ;;  %v10457_v47 = vld [vmem:[#allocation2 + $0x4dc] sm:$0xf0]  ;;  %vm14673_vm14 = vcmask 138240  }
 0x30f   : > { %2192 = vst [vmem:[#allocation2 + $0x5f0] sm:$0xff] %v2175_v45  ;;  %v10489_v53 = vld [vmem:[#allocation2 + $0x5dc] sm:$0xf0]  ;;  %v9272_v56 = vld [vmem:[#allocation2 + $0x5e0] sm:$0xf0]  ;;  %v9279_v57 = vor.u32 %v10490_v49, %v9278_v6 }
 0x310   : > { %2193 = vst [vmem:[#allocation2 + $0x5f8] sm:$0xff] %v2177_v8  ;;  %v9271_v25 = vor.u32 %v10489_v53, %v9270_v54  ;;  %v9275_v4 = vor.u32 %v10485_v48, %v9272_v56  ;;  %v9144_v54 = vld [vmem:[#allocation2 + $0x4e0] sm:$0xf0]  ;;  %v9150_v48 = vld [vmem:[#allocation2 + $0x4c8] sm:$0xf] }
 0x311   : > { %3906 = vmatpush.bf16.msra.mxu0 %v9279_v57  ;;  %v9142_v6 = vld [vmem:[#allocation2 + $0x4c0] sm:$0xf]  ;;  %v10453_v49 = vld [vmem:[#allocation2 + $0x4c4] sm:$0xf]  ;;  %v9151_v53 = vor.u32 %v10458_v42, %v9150_v48 }
 0x312   : > { %3794 = vmatpush.bf16.msra.mxu2 %v9271_v25  ;;  %3850 = vmatpush.bf16.msrb.mxu1 %v9275_v4  ;;  %v2219_v63 = vpop.permute.xlu1 %2218  ;;  %v2217_v55 = vpop.permute.xlu0 %2216  ;;  %v9143_v56 = vor.u32 %v10457_v47, %v9142_v6  ;;  %v9147_v57 = vor.u32 %v10453_v49, %v9144_v54  ;;  %v10450_v25 = vld [vmem:[#allocation2 + $0x4a4] sm:$0xf0]  ;;  %v2243_v4 = vrot.slane %v12472_v62, 4 }
 0x313   : > { %v2236_v36 = vrot.slane %v2219_v63, 4  ;;  %v2235_v33 = vrot.slane %v2217_v55, 4  ;;  %v9119_v2 = vor.u32 %v10450_v25, %v9118_v60  ;;  %v10297_v25 = vld [vmem:[#allocation7 + $0x4] sm:$0xf] }
 0x315   : > { %v2249_v34 = vsel %vm318_vm0, %v2236_v36, %v2237_v58  ;;  %v2244_v20 = vsel %vm318_vm0, %v2234_v51, %v2235_v33  ;;  %v2247_v19 = vsel %vm318_vm0, %v2235_v33, %v2236_v36  ;;  %3907 = vmatpush.bf16.msra.mxu0 %v9247_v28  ;;  %v9112_v51 = vld [vmem:[#allocation2 + $0x4a0] sm:$0xf0] }
 0x316   : > { %v2250_v23 = vsel %vm14669_vm15, %v2219_v63, %v2249_v34  ;;  %v2246_v15 = vsel %vm14669_vm15, %v12444_v17, %v2244_v20  ;;  %v2248_v14 = vsel %vm14669_vm15, %v2217_v55, %v2247_v19  ;;  %3795 = vmatpush.bf16.msra.mxu2 %v9239_v29  ;;  %3851 = vmatpush.bf16.msrb.mxu1 %v9243_v13  ;;  %v12482_v52 = vpop.permute.xlu2 %2301  ;;  %v9110_v55 = vld [vmem:[#allocation2 + $0x480] sm:$0xf] }
 0x317   : > { %2271 = vst [vmem:[#allocation2 + $0x610] sm:$0xff] %v2250_v23  ;;  %v9111_v36 = vor.u32 %v10449_v12, %v9110_v55  ;;  %v9115_v33 = vor.u32 %v10445_v59, %v9112_v51  ;;  %v10441_v13 = vld [vmem:[#allocation2 + $0x45c] sm:$0xf0] }
 0x318   : > { %2269 = vst [vmem:[#allocation2 + $0x600] sm:$0xff] %v2246_v15  ;;  %v9078_v23 = vld [vmem:[#allocation2 + $0x440] sm:$0xf]  ;;  %v10437_v15 = vld [vmem:[#allocation2 + $0x444] sm:$0xf] }
 0x319   : > { %2270 = vst [vmem:[#allocation2 + $0x608] sm:$0xff] %v2248_v14  ;;  %3908 = vmatpush.bf16.msra.mxu0 %v9215_v50  ;;  %v9087_v14 = vor.u32 %v10442_v11, %v9086_v21  ;;  %v9079_v22 = vor.u32 %v10441_v13, %v9078_v23  ;;  %v9083_v26 = vor.u32 %v10437_v15, %v9080_v16  ;;  %v2319_v50 = vrot.slane %v12482_v52, 4  ;;  %v10300_v21 = vld [vmem:[#allocation7 + $0x14] sm:$0xf0]  ;;  %v1349_v23 = vld [vmem:[%s11223_s20 + $0xc] sm:$0xff] }
 0x31a   : > { %3796 = vmatpush.bf16.msra.mxu2 %v9207_v40  ;;  %3852 = vmatpush.bf16.msrb.mxu1 %v9211_v31  ;;  %v2225_v17 = vpop.permute.xlu1 %2224  ;;  %v2223_v38 = vpop.permute.xlu0 %2222  ;;  %v10433_v40 = vld [vmem:[#allocation2 + $0x41c] sm:$0xf0]  ;;  %v9048_v31 = vld [vmem:[#allocation2 + $0x420] sm:$0xf0]  ;;  %1357 = vst [vmem:[#allocation2 + $0x348] sm:$0xff] %v1349_v23 }
 0x31b   : > { %v2239_v0 = vrot.slane %v2225_v17, 4  ;;  %v2238_v7 = vrot.slane %v2223_v38, 4  ;;  %v10429_v38 = vld [vmem:[#allocation2 + $0x404] sm:$0xf]  ;;  %v9024_v23 = vld [vmem:[#allocation2 + $0x3e8] sm:$0xf0] }
 0x31d   : > { %v2253_v10 = vsel %vm318_vm0, %v2239_v0, %v2240_v37  ;;  %v2251_v46 = vsel %vm318_vm0, %v2237_v58, %v2238_v7  ;;  %3909 = vmatpush.bf16.msra.mxu0 %v9183_v41  ;;  %v9051_v7 = vor.u32 %v10429_v38, %v9048_v31 }
 0x31e   : > { %v2254_v45 = vsel %vm14669_vm15, %v2225_v17, %v2253_v10  ;;  %v2252_v8 = vsel %vm14669_vm15, %v12454_v30, %v2251_v46  ;;  %3797 = vmatpush.bf16.msra.mxu2 %v9175_v24  ;;  %3853 = vmatpush.bf16.msrb.mxu1 %v9179_v18  ;;  %v12493_v34 = vpop.permute.xlu2 %2307 }
 0x31f   : > { %2273 = vst [vmem:[#allocation2 + $0x620] sm:$0xff] %v2254_v45  ;;  %v2322_v6 = vrot.slane %v12493_v34, 4  ;;  %v9302_v27 = vld [vmem:[#allocation2 + $0x600] sm:$0xf] }
 0x320   : > { %2272 = vst [vmem:[#allocation2 + $0x618] sm:$0xff] %v2252_v8 }
 0x321   : > { %3910 = vmatpush.bf16.msra.mxu0 %v9151_v53 }
 0x322   : > { %3798 = vmatpush.bf16.msra.mxu2 %v9143_v56  ;;  %3854 = vmatpush.bf16.msrb.mxu1 %v9147_v57  ;;  %v2231_v58 = vpop.permute.xlu1 %2230  ;;  %v2229_v30 = vpop.permute.xlu0 %2228 }
 0x323   : > { %v2242_v61 = vrot.slane %v2231_v58, 4  ;;  %v2241_v63 = vrot.slane %v2229_v30, 4 }
 0x325   : > { %v2259_v28 = vsel %vm318_vm0, %v2242_v61, %v2243_v4  ;;  %v2255_v29 = vsel %vm318_vm0, %v2240_v37, %v2241_v63  ;;  %v2257_v62 = vsel %vm318_vm0, %v2241_v63, %v2242_v61  ;;  %3911 = vmatpush.bf16.msra.mxu0 %v9119_v2  ;;  %v9046_v37 = vld [vmem:[#allocation2 + $0x400] sm:$0xf]  ;;  %v8520_v4 = vld [vmem:[#allocation7 + $0x10] sm:$0xf0] }
 0x326   : > { %v2260_v20 = vsel %vm14669_vm15, %v2231_v58, %v2259_v28  ;;  %v2256_v19 = vsel %vm14669_vm15, %v12464_v3, %v2255_v29  ;;  %v2258_v1 = vsel %vm14669_vm15, %v2229_v30, %v2257_v62  ;;  %3799 = vmatpush.bf16.msra.mxu2 %v9111_v36  ;;  %3855 = vmatpush.bf16.msrb.mxu1 %v9115_v33  ;;  %vm14671_vm15 = vcmask 146432   ;;  %v2314_v18 = vpop.permute.xlu2 %2313 }
 0x327   : > { %2276 = vst [vmem:[#allocation2 + $0x638] sm:$0xff] %v2260_v20  ;;  %v9047_v0 = vor.u32 %v10433_v40, %v9046_v37  ;;  %v2325_v49 = vrot.slane %v2314_v18, 4  ;;  %v12510_v58 = vor.u32 %v10297_v25, %v8520_v4 }
 0x328   : > { %2274 = vst [vmem:[#allocation2 + $0x628] sm:$0xff] %v2256_v19 }
 0x329   : > { %2275 = vst [vmem:[#allocation2 + $0x630] sm:$0xff] %v2258_v1  ;;  %3912 = vmatpush.bf16.msra.mxu0 %v9087_v14  ;;  %3788 = vmatmul.bf16.vlgmr.msra.gmra.mxu1 %v12510_v58  ;;  %v8526_v1 = vld [vmem:[#allocation7 + $0x8] sm:$0xf] }
 0x32a   : > { %3800 = vmatpush.bf16.msra.mxu2 %v9079_v22  ;;  %3856 = vmatpush.bf16.msrb.mxu1 %v9083_v26  ;;  %v2300_v3 = vpop.permute.xlu1 %2299  ;;  %v2298_v32 = vpop.permute.xlu0 %2297  ;;  %v12526_v22 = vor.u32 %v10300_v21, %v8526_v1  ;;  %v1353_v26 = vld [vmem:[%s11223_s20 + $0x34] sm:$0xff] }
 0x32b   : > { %v2318_v43 = vrot.slane %v2300_v3, 4  ;;  %v2317_v17 = vrot.slane %v2298_v32, 4  ;;  %3844 = vmatmul.bf16.vlgmr.msrb.gmra.mxu0 %v12510_v58  ;;  %1361 = vst [vmem:[#allocation2 + $0x368] sm:$0xff] %v1353_v26  ;;  %v9304_v1 = vld [vmem:[#allocation2 + $0x620] sm:$0xf0] }
 0x32c   : > { %v9310_v21 = vld [vmem:[#allocation2 + $0x608] sm:$0xf]  ;;  %v8528_v26 = vld [vmem:[#allocation7 + $0x18] sm:$0xf0] }
 0x32d   : > { %v2330_v39 = vsel %vm318_vm0, %v2318_v43, %v2319_v50  ;;  %v2327_v44 = vsel %vm318_vm0, %v2317_v17, %v2318_v43  ;;  %3913 = vmatpush.bf16.msra.mxu0 %v9055_v5 }
 0x32e   : > { %v2331_v41 = vsel %vm14671_vm15, %v2300_v3, %v2330_v39  ;;  %v2329_v24 = vsel %vm14671_vm15, %v2298_v32, %v2327_v44  ;;  %3801 = vmatpush.bf16.msra.mxu2 %v9047_v0  ;;  %3857 = vmatpush.bf16.msrb.mxu1 %v9051_v7  ;;  %v2383_v53 = vpop.permute.xlu2 %2382 }
 0x32f   : > { %2353 = vst [vmem:[#allocation2 + $0x648] sm:$0xff] %v2331_v41  ;;  %v2401_v59 = vrot.slane %v2383_v53, 4 }
 0x330   : > { %2352 = vst [vmem:[#allocation2 + $0x640] sm:$0xff] %v2329_v24 }
 0x331   : > { %3802 = vmatmul.bf16.vlgmr.msra.gmra.mxu2 %v12526_v22 }
 0x332   : > { %v2306_v42 = vpop.permute.xlu1 %2305  ;;  %v2304_v10 = vpop.permute.xlu0 %2303 }
 0x333   : > { %v2321_v46 = vrot.slane %v2306_v42, 4  ;;  %v2320_v47 = vrot.slane %v2304_v10, 4 }
 0x335   : > { %v2332_v54 = vsel %vm318_vm0, %v2319_v50, %v2320_v47  ;;  %v2334_v45 = vsel %vm318_vm0, %v2320_v47, %v2321_v46  ;;  %v1354_v50 = vld [vmem:[%s11223_s20 + $0x3c] sm:$0xff] }
 0x336   : > { %v2333_v8 = vsel %vm14671_vm15, %v12482_v52, %v2332_v54  ;;  %v2335_v48 = vsel %vm14671_vm15, %v2304_v10, %v2334_v45  ;;  %v2389_v28 = vpop.permute.xlu2 %2388  ;;  %1362 = vst [vmem:[#allocation2 + $0x370] sm:$0xff] %v1354_v50  ;;  %v10493_v50 = vld [vmem:[#allocation2 + $0x604] sm:$0xf] }
 0x337   : > { %2354 = vst [vmem:[#allocation2 + $0x650] sm:$0xff] %v2333_v8 }
 0x338   : > { %2355 = vst [vmem:[#allocation2 + $0x658] sm:$0xff] %v2335_v48 }
 0x339   : > { %3858 = vmatmul.bf16.vlgmr.msrb.gmra.mxu1 %v12526_v22 }
 0x33a   : > { %v2312_v56 = vpop.permute.xlu1 %2311  ;;  %v2310_v57 = vpop.permute.xlu0 %2309 }
 0x33b   : > { %v2324_v12 = vrot.slane %v2312_v56, 4  ;;  %v2323_v51 = vrot.slane %v2310_v57, 4  ;;  %3914 = vmatmul.bf16.vlgmr.msra.gmra.mxu0 %v12526_v22 }
 0x33d   : > { %v2340_v30 = vsel %vm318_vm0, %v2324_v12, %v2325_v49  ;;  %v2336_v52 = vsel %vm318_vm0, %v2322_v6, %v2323_v51  ;;  %v2338_v60 = vsel %vm318_vm0, %v2323_v51, %v2324_v12 }
 0x33e   : > { %v2341_v61 = vsel %vm14671_vm15, %v2312_v56, %v2340_v30  ;;  %v2337_v63 = vsel %vm14671_vm15, %v12493_v34, %v2336_v52  ;;  %v2339_v55 = vsel %vm14671_vm15, %v2310_v57, %v2338_v60  ;;  %v2404_v34 = vrot.slane %v2389_v28, 4  ;;  %v2395_v43 = vpop.permute.xlu2 %2394 }
 0x33f   : > { %2358 = vst [vmem:[#allocation2 + $0x670] sm:$0xff] %v2341_v61  ;;  %v2407_v17 = vrot.slane %v2395_v43, 4 }
 0x340   : > { %2356 = vst [vmem:[#allocation2 + $0x660] sm:$0xff] %v2337_v63 }
 0x341   : > { %2357 = vst [vmem:[#allocation2 + $0x668] sm:$0xff] %v2339_v55 }
 0x342   : > { %v2381_v2 = vpop.permute.xlu1 %2380  ;;  %v2316_v36 = vpop.permute.xlu0 %2315 }
 0x343   : > { %v2400_v33 = vrot.slane %v2381_v2, 4  ;;  %v2326_v11 = vrot.slane %v2316_v36, 4  ;;  %v9334_v36 = vld [vmem:[#allocation2 + $0x640] sm:$0xf] }
 0x345   : > { %v2410_v29 = vsel %vm318_vm0, %v2400_v33, %v2401_v59  ;;  %v2342_v62 = vsel %vm318_vm0, %v2325_v49, %v2326_v11  ;;  %v10501_v33 = vld [vmem:[#allocation2 + $0x644] sm:$0xf] }
 0x346   : > { %v2412_v13 = vsel %vm14673_vm14, %v2381_v2, %v2410_v29  ;;  %v2343_v16 = vsel %vm14671_vm15, %v2314_v18, %v2342_v62  ;;  %v10502_v2 = vld [vmem:[#allocation2 + $0x64c] sm:$0xf]  ;;  %vm14672_vm15 = vcmask 392192  }
 0x347   : > { %2435 = vst [vmem:[#allocation2 + $0x680] sm:$0xff] %v2412_v13  ;;  %v10505_v63 = vld [vmem:[#allocation2 + $0x65c] sm:$0xf0]  ;;  %v9336_v55 = vld [vmem:[#allocation2 + $0x660] sm:$0xf0] }
 0x348   : > { %2359 = vst [vmem:[#allocation2 + $0x678] sm:$0xff] %v2343_v16  ;;  %v10506_v60 = vld [vmem:[#allocation2 + $0x664] sm:$0xf0]  ;;  %v9344_v61 = vld [vmem:[#allocation2 + $0x668] sm:$0xf0]  ;;  %v9335_v29 = vor.u32 %v10505_v63, %v9334_v36  ;;  %v9339_v62 = vor.u32 %v10501_v33, %v9336_v55 }
 0x349   : > { %v9347_v28 = vor.u32 %v10502_v2, %v9344_v61  ;;  %v10498_v13 = vld [vmem:[#allocation2 + $0x624] sm:$0xf0]  ;;  %v9312_v16 = vld [vmem:[#allocation2 + $0x628] sm:$0xf0]  ;;  %v8664_v63 = vld [vmem:[#allocation2 + $0x120] sm:$0xf0] }
 0x34a   : > { %v2387_v20 = vpop.permute.xlu1 %2386  ;;  %v2385_v19 = vpop.permute.xlu0 %2384  ;;  %v10402_v55 = vld [vmem:[#allocation2 + $0x324] sm:$0xf0]  ;;  %v10403_v2 = vld [vmem:[#allocation2 + $0x32c] sm:$0xf0]  ;;  %v10333_v36 = vld [vmem:[#allocation2 + $0x104] sm:$0xf] }
 0x34b   : > { %v2403_v15 = vrot.slane %v2387_v20, 4  ;;  %v2402_v14 = vrot.slane %v2385_v19, 4  ;;  %v8926_v33 = vld [vmem:[#allocation2 + $0x308] sm:$0xf] }
 0x34d   : > { %v2417_v40 = vsel %vm318_vm0, %v2403_v15, %v2404_v34  ;;  %v2413_v31 = vsel %vm318_vm0, %v2401_v59, %v2402_v14  ;;  %v2415_v3 = vsel %vm318_vm0, %v2402_v14, %v2403_v15  ;;  %v9342_v59 = vld [vmem:[#allocation2 + $0x648] sm:$0xf]  ;;  %v8760_v34 = vld [vmem:[#allocation2 + $0x1e0] sm:$0xf0]  ;;  %v10494_v15 = vld [vmem:[#allocation2 + $0x60c] sm:$0xf] }
 0x34e   : > { %v2418_v32 = vsel %vm14673_vm14, %v2387_v20, %v2417_v40  ;;  %v2414_v37 = vsel %vm14673_vm14, %v2383_v53, %v2413_v31  ;;  %v2416_v35 = vsel %vm14673_vm14, %v2385_v19, %v2415_v3  ;;  %v9366_v45 = vld [vmem:[#allocation2 + $0x680] sm:$0xf]  ;;  %v10509_v8 = vld [vmem:[#allocation2 + $0x684] sm:$0xf]  ;;  %v9343_v11 = vor.u32 %v10506_v60, %v9342_v59  ;;  %v10426_v20 = vld [vmem:[#allocation2 + $0x3e4] sm:$0xf0] }
 0x34f   : > { %2438 = vst [vmem:[#allocation2 + $0x698] sm:$0xff] %v2418_v32  ;;  %v10497_v19 = vld [vmem:[#allocation2 + $0x61c] sm:$0xf0]  ;;  %v10298_v14 = vld [vmem:[#allocation7 + $0xc] sm:$0xf]  ;;  %v9311_v40 = vor.u32 %v10498_v13, %v9310_v21  ;;  %v9315_v31 = vor.u32 %v10494_v15, %v9312_v16 }
 0x350   : > { %2436 = vst [vmem:[#allocation2 + $0x688] sm:$0xff] %v2414_v37  ;;  %v10427_v3 = vld [vmem:[#allocation2 + $0x3ec] sm:$0xf0]  ;;  %v9303_v32 = vor.u32 %v10497_v19, %v9302_v27  ;;  %v9307_v37 = vor.u32 %v10493_v50, %v9304_v1  ;;  %v8928_v59 = vld [vmem:[#allocation2 + $0x328] sm:$0xf0] }
 0x351   : > { %2437 = vst [vmem:[#allocation2 + $0x690] sm:$0xff] %v2416_v35  ;;  %v10357_v35 = vld [vmem:[#allocation2 + $0x1c4] sm:$0xf]  ;;  %v8896_v19 = vld [vmem:[#allocation2 + $0x2e8] sm:$0xf0] }
 0x352   : > { %v2393_v38 = vpop.permute.xlu1 %2392  ;;  %v2391_v5 = vpop.permute.xlu0 %2390  ;;  %v10395_v1 = vld [vmem:[#allocation2 + $0x2ec] sm:$0xf0]  ;;  %v10325_v21 = vld [vmem:[#allocation2 + $0xc4] sm:$0xf] }
 0x353   : > { %v2406_v0 = vrot.slane %v2393_v38, 4  ;;  %v2405_v7 = vrot.slane %v2391_v5, 4  ;;  %v8902_v27 = vld [vmem:[#allocation2 + $0x2d0] sm:$0xf] }
 0x355   : > { %v2421_v39 = vsel %vm318_vm0, %v2406_v0, %v2407_v17  ;;  %v2419_v44 = vsel %vm318_vm0, %v2405_v7, %v2406_v0  ;;  %v9030_v0 = vld [vmem:[#allocation2 + $0x3d0] sm:$0xf]  ;;  %v8728_v7 = vld [vmem:[#allocation2 + $0x1a0] sm:$0xf0] }
 0x356   : > { %v2422_v41 = vsel %vm14673_vm14, %v2393_v38, %v2421_v39  ;;  %v2420_v24 = vsel %vm14673_vm14, %v2391_v5, %v2419_v44  ;;  %v10422_v5 = vld [vmem:[#allocation2 + $0x3cc] sm:$0xf]  ;;  %v12548_v39 = vor.u32 %v10298_v14, %v8528_v26 }
 0x357   : > { %2440 = vst [vmem:[#allocation2 + $0x6a8] sm:$0xff] %v2422_v41  ;;  %v9374_v48 = vld [vmem:[#allocation2 + $0x688] sm:$0xf]  ;;  %v10510_v56 = vld [vmem:[#allocation2 + $0x68c] sm:$0xf]  ;;  %v9027_v44 = vor.u32 %v10422_v5, %v9024_v23  ;;  %v9031_v41 = vor.u32 %v10427_v3, %v9030_v0 }
 0x358   : > { %2439 = vst [vmem:[#allocation2 + $0x6a0] sm:$0xff] %v2420_v24  ;;  %v10349_v24 = vld [vmem:[#allocation2 + $0x184] sm:$0xf]  ;;  %v8894_v23 = vld [vmem:[#allocation2 + $0x2c8] sm:$0xf] }
 0x359   : > { %v10390_v26 = vld [vmem:[#allocation2 + $0x2cc] sm:$0xf]  ;;  %v10386_v3 = vld [vmem:[#allocation2 + $0x2a4] sm:$0xf0]  ;;  %v8870_v0 = vld [vmem:[#allocation2 + $0x290] sm:$0xf] }
 0x35a   : > { %v2399_v18 = vpop.permute.xlu1 %2398  ;;  %v2397_v42 = vpop.permute.xlu0 %2396  ;;  %v8899_v50 = vor.u32 %v10390_v26, %v8896_v19  ;;  %v10382_v5 = vld [vmem:[#allocation2 + $0x28c] sm:$0xf]  ;;  %v10483_v19 = vld [vmem:[#allocation2 + $0x5ac] sm:$0xf0] }
 0x35b   : > { %v2409_v10 = vrot.slane %v2399_v18, 4  ;;  %v2408_v46 = vrot.slane %v2397_v42, 4  ;;  %v8990_v18 = vld [vmem:[#allocation2 + $0x388] sm:$0xf]  ;;  %v9254_v26 = vld [vmem:[#allocation2 + $0x590] sm:$0xf] }
 0x35d   : > { %v2423_v47 = vsel %vm318_vm0, %v2407_v17, %v2408_v46  ;;  %v2425_v54 = vsel %vm318_vm0, %v2408_v46, %v2409_v10  ;;  %v8763_v17 = vor.u32 %v10357_v35, %v8760_v34  ;;  %v10414_v10 = vld [vmem:[#allocation2 + $0x38c] sm:$0xf]  ;;  %v8632_v34 = vld [vmem:[#allocation2 + $0xe0] sm:$0xf0] }
 0x35e   : > { %v2424_v6 = vsel %vm14673_vm14, %v2395_v43, %v2423_v47  ;;  %v2426_v49 = vsel %vm14673_vm14, %v2397_v42, %v2425_v54  ;;  %v10514_v53 = vld [vmem:[#allocation2 + $0x6a4] sm:$0xf0]  ;;  %v9376_v57 = vld [vmem:[#allocation2 + $0x6a8] sm:$0xf0]  ;;  %v8998_v47 = vld [vmem:[#allocation2 + $0x390] sm:$0xf]  ;;  %v8635_v15 = vor.u32 %v10325_v21, %v8632_v34 }
 0x35f   : > { %2441 = vst [vmem:[#allocation2 + $0x6b0] sm:$0xff] %v2424_v6  ;;  %v10513_v25 = vld [vmem:[#allocation2 + $0x69c] sm:$0xf0]  ;;  %v9368_v4 = vld [vmem:[#allocation2 + $0x6a0] sm:$0xf0]  ;;  %v9375_v12 = vor.u32 %v10514_v53, %v9374_v48  ;;  %v9379_v51 = vor.u32 %v10510_v56, %v9376_v57  ;;  %v8731_v6 = vor.u32 %v10349_v24, %v8728_v7 }
 0x360   : > { %2442 = vst [vmem:[#allocation2 + $0x6b8] sm:$0xff] %v2426_v49  ;;  %v9367_v30 = vor.u32 %v10513_v25, %v9366_v45  ;;  %v9371_v52 = vor.u32 %v10509_v8, %v9368_v4  ;;  %v9022_v43 = vld [vmem:[#allocation2 + $0x3c8] sm:$0xf]  ;;  %v8992_v46 = vld [vmem:[#allocation2 + $0x3a8] sm:$0xf0] }
 0x361   : > { %3925 = vmatpush.bf16.msra.mxu1 %v9375_v12  ;;  %3981 = vmatpush.bf16.msrb.mxu0 %v9379_v51  ;;  %v9023_v38 = vor.u32 %v10426_v20, %v9022_v43  ;;  %v10418_v42 = vld [vmem:[#allocation2 + $0x3a4] sm:$0xf0]  ;;  %v10419_v54 = vld [vmem:[#allocation2 + $0x3ac] sm:$0xf0]  ;;  %v10406_v48 = vld [vmem:[#allocation2 + $0x34c] sm:$0xf]  ;;  %v8995_v25 = vor.u32 %v10414_v10, %v8992_v46 }
 0x362   : > { %3813 = vmatpush.bf16.msra.mxu3 %v9367_v30  ;;  %3869 = vmatpush.bf16.msrb.mxu2 %v9371_v52  ;;  %v8958_v45 = vld [vmem:[#allocation2 + $0x348] sm:$0xf]  ;;  %v8991_v49 = vor.u32 %v10418_v42, %v8990_v18  ;;  %v8960_v53 = vld [vmem:[#allocation2 + $0x368] sm:$0xf0]  ;;  %v8966_v56 = vld [vmem:[#allocation2 + $0x350] sm:$0xf]  ;;  %v8999_v4 = vor.u32 %v10419_v54, %v8998_v47 }
 0x363   : > { %v10410_v8 = vld [vmem:[#allocation2 + $0x364] sm:$0xf0]  ;;  %v10411_v57 = vld [vmem:[#allocation2 + $0x36c] sm:$0xf0]  ;;  %v8696_v12 = vld [vmem:[#allocation2 + $0x160] sm:$0xf0]  ;;  %v8963_v52 = vor.u32 %v10406_v48, %v8960_v53 }
 0x364   : > { %v8959_v51 = vor.u32 %v10410_v8, %v8958_v45  ;;  %v10341_v30 = vld [vmem:[#allocation2 + $0x144] sm:$0xf]  ;;  %v8967_v60 = vor.u32 %v10411_v57, %v8966_v56  ;;  %v10394_v20 = vld [vmem:[#allocation2 + $0x2e4] sm:$0xf0]  ;;  %v8832_v18 = vld [vmem:[#allocation2 + $0x268] sm:$0xf0] }
 0x365   : > { %3926 = vmatpush.bf16.msra.mxu1 %v9343_v11  ;;  %3982 = vmatpush.bf16.msrb.mxu0 %v9347_v28  ;;  %v8699_v61 = vor.u32 %v10341_v30, %v8696_v12  ;;  %v8667_v11 = vor.u32 %v10333_v36, %v8664_v63  ;;  %v8927_v28 = vor.u32 %v10402_v55, %v8926_v33  ;;  %v10317_v35 = vld [vmem:[#allocation2 + $0x84] sm:$0xf]  ;;  %v8862_v43 = vld [vmem:[#allocation2 + $0x288] sm:$0xf]  ;;  %v10379_v42 = vld [vmem:[#allocation2 + $0x26c] sm:$0xf0] }
 0x366   : > { %3814 = vmatpush.bf16.msra.mxu3 %v9335_v29  ;;  %3870 = vmatpush.bf16.msrb.mxu2 %v9339_v62  ;;  %v10398_v29 = vld [vmem:[#allocation2 + $0x30c] sm:$0xf]  ;;  %v8934_v62 = vld [vmem:[#allocation2 + $0x310] sm:$0xf]  ;;  %v8895_v14 = vor.u32 %v10394_v20, %v8894_v23  ;;  %v10378_v24 = vld [vmem:[#allocation2 + $0x264] sm:$0xf0] }
 0x367   : > { %v8931_v13 = vor.u32 %v10398_v29, %v8928_v59  ;;  %v8935_v16 = vor.u32 %v10403_v2, %v8934_v62  ;;  %v10309_v10 = vld [vmem:[#allocation2 + $0x44] sm:$0xf]  ;;  %v8830_v46 = vld [vmem:[#allocation2 + $0x248] sm:$0xf]  ;;  %v10374_v45 = vld [vmem:[#allocation2 + $0x24c] sm:$0xf] }
 0x368   : > { %v8831_v54 = vor.u32 %v10378_v24, %v8830_v46  ;;  %v8838_v8 = vld [vmem:[#allocation2 + $0x250] sm:$0xf]  ;;  %v8835_v48 = vor.u32 %v10374_v45, %v8832_v18  ;;  %v8536_v53 = vld [vmem:[#allocation2 + $0x20] sm:$0xf0]  ;;  %v10370_v56 = vld [vmem:[#allocation2 + $0x224] sm:$0xf0] }
 0x369   : > { %3927 = vmatpush.bf16.msra.mxu1 %v9311_v40  ;;  %3983 = vmatpush.bf16.msrb.mxu0 %v9315_v31  ;;  %v8903_v40 = vor.u32 %v10395_v1, %v8902_v27  ;;  %v8600_v31 = vld [vmem:[#allocation2 + $0xa0] sm:$0xf0]  ;;  %v8800_v57 = vld [vmem:[#allocation2 + $0x228] sm:$0xf0]  ;;  %v8798_v12 = vld [vmem:[#allocation2 + $0x208] sm:$0xf] }
 0x36a   : > { %3815 = vmatpush.bf16.msra.mxu3 %v9303_v32  ;;  %3871 = vmatpush.bf16.msrb.mxu2 %v9307_v37  ;;  %v8864_v32 = vld [vmem:[#allocation2 + $0x2a8] sm:$0xf0]  ;;  %v10387_v37 = vld [vmem:[#allocation2 + $0x2ac] sm:$0xf0]  ;;  %v9288_v55 = vld [vmem:[#allocation2 + $0x5f0] sm:$0xf0] }
 0x36b   : > { %v8867_v7 = vor.u32 %v10382_v5, %v8864_v32  ;;  %v9280_v30 = vld [vmem:[#allocation2 + $0x5e8] sm:$0xf0]  ;;  %v10491_v63 = vld [vmem:[#allocation2 + $0x5ec] sm:$0xf0]  ;;  %v8766_v36 = vld [vmem:[#allocation2 + $0x1c8] sm:$0xf] }
 0x36c   : > { %9398 = vmatmul.msk.bf16.vlgmr.msra.gmra.mxu1 %vm14672_vm15, %v12548_v39  ;;  %9399 = vmatmul.msk.bf16.vlgmr.msrb.gmra.mxu0 %vm14672_vm15, %v12548_v39  ;;  %v10486_v33 = vld [vmem:[#allocation2 + $0x5cc] sm:$0xf]  ;;  %v9286_v29 = vld [vmem:[#allocation2 + $0x5d0] sm:$0xf]  ;;  %v10487_v62 = vld [vmem:[#allocation2 + $0x5d4] sm:$0xf] }
 0x36d   : > { %3948 = vmatpush.bf16.msrb.mxu1 %v9027_v44  ;;  %4004 = vmatpush.bf16.msra.mxu0 %v9031_v41  ;;  %v8871_v44 = vor.u32 %v10387_v37, %v8870_v0  ;;  %v8568_v41 = vld [vmem:[#allocation2 + $0x60] sm:$0xf0]  ;;  %v10354_v34 = vld [vmem:[#allocation2 + $0x1a4] sm:$0xf0]  ;;  %v9248_v20 = vld [vmem:[#allocation2 + $0x5a8] sm:$0xf0] }
 0x36e   : > { %3822 = vmatpush.bf16.msrb.mxu3 %v8763_v17  ;;  %3892 = vmatpush.bf16.msra.mxu2 %v9023_v38  ;;  %v8603_v17 = vor.u32 %v10317_v35, %v8600_v31  ;;  %v8863_v38 = vor.u32 %v10386_v3, %v8862_v43  ;;  %v8571_v47 = vor.u32 %v10309_v10, %v8568_v41  ;;  %v9256_v1 = vld [vmem:[#allocation2 + $0x5b0] sm:$0xf0]  ;;  %v8734_v21 = vld [vmem:[#allocation2 + $0x188] sm:$0xf]  ;;  %v10478_v23 = vld [vmem:[#allocation2 + $0x58c] sm:$0xf] }
 0x36f   : > { %9396 = vmatmul.msk.bf16.vlgmr.msra.gmra.mxu3 %vm14672_vm15, %v12548_v39  ;;  %9397 = vmatmul.msk.bf16.vlgmr.msrb.gmra.mxu2 %vm14672_vm15, %v12548_v39  ;;  %v10479_v27 = vld [vmem:[#allocation2 + $0x594] sm:$0xf]  ;;  %v10346_v31 = vld [vmem:[#allocation2 + $0x164] sm:$0xf0]  ;;  %v9216_v3 = vld [vmem:[#allocation2 + $0x568] sm:$0xf0] }
 0x370   : > { %v10475_v32 = vld [vmem:[#allocation2 + $0x56c] sm:$0xf0]  ;;  %v9224_v37 = vld [vmem:[#allocation2 + $0x570] sm:$0xf0]  ;;  %v8702_v35 = vld [vmem:[#allocation2 + $0x148] sm:$0xf] }
 0x371   : > { %3949 = vmatpush.bf16.msrb.mxu1 %v8995_v25  ;;  %4005 = vmatpush.bf16.msra.mxu0 %v8999_v4  ;;  %v10371_v25 = vld [vmem:[#allocation2 + $0x22c] sm:$0xf0]  ;;  %v10362_v4 = vld [vmem:[#allocation2 + $0x1e4] sm:$0xf0]  ;;  %v10470_v43 = vld [vmem:[#allocation2 + $0x54c] sm:$0xf] }
 0x372   : > { %3823 = vmatpush.bf16.msrb.mxu3 %v8731_v6  ;;  %3893 = vmatpush.bf16.msra.mxu2 %v8991_v49  ;;  %v8839_v6 = vor.u32 %v10379_v42, %v8838_v8  ;;  %v10301_v49 = vld [vmem:[#allocation2 + $0x4] sm:$0xf]  ;;  %v9222_v5 = vld [vmem:[#allocation2 + $0x550] sm:$0xf]  ;;  %v10471_v0 = vld [vmem:[#allocation2 + $0x554] sm:$0xf] }
 0x373   : > { %v10338_v41 = vld [vmem:[#allocation2 + $0x124] sm:$0xf0]  ;;  %v9184_v24 = vld [vmem:[#allocation2 + $0x528] sm:$0xf0]  ;;  %v10467_v18 = vld [vmem:[#allocation2 + $0x52c] sm:$0xf0] }
 0x374   : > { %v9192_v42 = vld [vmem:[#allocation2 + $0x530] sm:$0xf0]  ;;  %v8670_v10 = vld [vmem:[#allocation2 + $0x108] sm:$0xf]  ;;  %v10462_v46 = vld [vmem:[#allocation2 + $0x50c] sm:$0xf] }
 0x375   : > { %3950 = vmatpush.bf16.msrb.mxu1 %v8963_v52  ;;  %4006 = vmatpush.bf16.msra.mxu0 %v8967_v60  ;;  %v8539_v52 = vor.u32 %v10301_v49, %v8536_v53  ;;  %v8799_v60 = vor.u32 %v10370_v56, %v8798_v12  ;;  %v9190_v45 = vld [vmem:[#allocation2 + $0x510] sm:$0xf]  ;;  %v10463_v8 = vld [vmem:[#allocation2 + $0x514] sm:$0xf]  ;;  %v10330_v49 = vld [vmem:[#allocation2 + $0xe4] sm:$0xf0] }
 0x376   : > { %3824 = vmatpush.bf16.msrb.mxu3 %v8699_v61  ;;  %3894 = vmatpush.bf16.msra.mxu2 %v8959_v51  ;;  %v8806_v51 = vld [vmem:[#allocation2 + $0x210] sm:$0xf]  ;;  %v10366_v61 = vld [vmem:[#allocation2 + $0x20c] sm:$0xf] }
 0x377   : > { %v8803_v59 = vor.u32 %v10366_v61, %v8800_v57  ;;  %v8807_v2 = vor.u32 %v10371_v25, %v8806_v51  ;;  %v9152_v53 = vld [vmem:[#allocation2 + $0x4e8] sm:$0xf0]  ;;  %v10459_v56 = vld [vmem:[#allocation2 + $0x4ec] sm:$0xf0]  ;;  %v9160_v57 = vld [vmem:[#allocation2 + $0x4f0] sm:$0xf0] }
 0x378   : > { %v8638_v25 = vld [vmem:[#allocation2 + $0xc8] sm:$0xf] }
 0x379   : > { %3951 = vmatpush.bf16.msrb.mxu1 %v8931_v13  ;;  %4007 = vmatpush.bf16.msra.mxu0 %v8935_v16  ;;  %v9287_v13 = vor.u32 %v10491_v63, %v9286_v29  ;;  %v9291_v16 = vor.u32 %v10487_v62, %v9288_v55  ;;  %v8639_v12 = vor.u32 %v10330_v49, %v8638_v25  ;;  %v10322_v63 = vld [vmem:[#allocation2 + $0xa4] sm:$0xf0]  ;;  %v9120_v55 = vld [vmem:[#allocation2 + $0x4a8] sm:$0xf0]  ;;  %v9126_v29 = vld [vmem:[#allocation2 + $0x490] sm:$0xf] }
 0x37a   : > { %3825 = vmatpush.bf16.msrb.mxu3 %v8667_v11  ;;  %3895 = vmatpush.bf16.msra.mxu2 %v8927_v28  ;;  %v8767_v11 = vor.u32 %v10362_v4, %v8766_v36  ;;  %v9283_v28 = vor.u32 %v10486_v33, %v9280_v30  ;;  %v10454_v4 = vld [vmem:[#allocation2 + $0x4cc] sm:$0xf]  ;;  %v9158_v30 = vld [vmem:[#allocation2 + $0x4d0] sm:$0xf]  ;;  %v8606_v36 = vld [vmem:[#allocation2 + $0x88] sm:$0xf] }
 0x37b   : > { %v9155_v51 = vor.u32 %v10454_v4, %v9152_v53  ;;  %v10446_v33 = vld [vmem:[#allocation2 + $0x48c] sm:$0xf]  ;;  %v10447_v62 = vld [vmem:[#allocation2 + $0x494] sm:$0xf]  ;;  %v10507_v53 = vld [vmem:[#allocation2 + $0x66c] sm:$0xf0] }
 0x37c   : > { %v8736_v49 = vld [vmem:[#allocation2 + $0x1a8] sm:$0xf0]  ;;  %v9350_v4 = vld [vmem:[#allocation2 + $0x650] sm:$0xf] }
 0x37d   : > { %3952 = vmatpush.bf16.msrb.mxu1 %v8899_v50  ;;  %4008 = vmatpush.bf16.msra.mxu0 %v8903_v40  ;;  %v9255_v50 = vor.u32 %v10483_v19, %v9254_v26  ;;  %v9259_v40 = vor.u32 %v10479_v27, %v9256_v1  ;;  %v10443_v19 = vld [vmem:[#allocation2 + $0x46c] sm:$0xf0]  ;;  %v9096_v1 = vld [vmem:[#allocation2 + $0x470] sm:$0xf0]  ;;  %v10350_v25 = vld [vmem:[#allocation2 + $0x18c] sm:$0xf] }
 0x37e   : > { %3826 = vmatpush.bf16.msrb.mxu3 %v8635_v15  ;;  %3896 = vmatpush.bf16.msra.mxu2 %v8895_v14  ;;  %v8735_v15 = vor.u32 %v10354_v34, %v8734_v21  ;;  %v9251_v14 = vor.u32 %v10478_v23, %v9248_v20  ;;  %v10314_v34 = vld [vmem:[#allocation2 + $0x64] sm:$0xf0]  ;;  %v9088_v20 = vld [vmem:[#allocation2 + $0x468] sm:$0xf0]  ;;  %v9094_v26 = vld [vmem:[#allocation2 + $0x450] sm:$0xf] }
 0x37f   : > { %v8574_v21 = vld [vmem:[#allocation2 + $0x48] sm:$0xf]  ;;  %v10438_v23 = vld [vmem:[#allocation2 + $0x44c] sm:$0xf]  ;;  %v10439_v27 = vld [vmem:[#allocation2 + $0x454] sm:$0xf] }
 0x381   : > { %3953 = vmatpush.bf16.msrb.mxu1 %v8867_v7  ;;  %4009 = vmatpush.bf16.msra.mxu0 %v8871_v44  ;;  %v9223_v7 = vor.u32 %v10475_v32, %v9222_v5  ;;  %v9227_v44 = vor.u32 %v10471_v0, %v9224_v37  ;;  %v9056_v32 = vld [vmem:[#allocation2 + $0x428] sm:$0xf0]  ;;  %v10435_v37 = vld [vmem:[#allocation2 + $0x42c] sm:$0xf0] }
 0x382   : > { %3827 = vmatpush.bf16.msrb.mxu3 %v8603_v17  ;;  %3897 = vmatpush.bf16.msra.mxu2 %v8863_v38  ;;  %v8703_v17 = vor.u32 %v10346_v31, %v8702_v35  ;;  %v9219_v38 = vor.u32 %v10470_v43, %v9216_v3  ;;  %v8542_v31 = vld [vmem:[#allocation2 + $0x8] sm:$0xf]  ;;  %v9064_v35 = vld [vmem:[#allocation2 + $0x430] sm:$0xf0]  ;;  %v8768_v43 = vld [vmem:[#allocation2 + $0x1e8] sm:$0xf0] }
 0x383   : > { %v10306_v3 = vld [vmem:[#allocation2 + $0x24] sm:$0xf0]  ;;  %v10515_v5 = vld [vmem:[#allocation2 + $0x6ac] sm:$0xf0] }
 0x384   : > { %v8543_v0 = vor.u32 %v10306_v3, %v8542_v31  ;;  %v10334_v31 = vld [vmem:[#allocation2 + $0x10c] sm:$0xf]  ;;  %v8744_v3 = vld [vmem:[#allocation2 + $0x1b0] sm:$0xf0] }
 0x385   : > { %3954 = vmatpush.bf16.msrb.mxu1 %v8835_v48  ;;  %4010 = vmatpush.bf16.msra.mxu0 %v8839_v6  ;;  %v9191_v48 = vor.u32 %v10467_v18, %v9190_v45  ;;  %v9195_v6 = vor.u32 %v10463_v8, %v9192_v42  ;;  %v10511_v45 = vld [vmem:[#allocation2 + $0x694] sm:$0xf]  ;;  %v9390_v8 = vld [vmem:[#allocation2 + $0x698] sm:$0xf] }
 0x386   : > { %3828 = vmatpush.bf16.msrb.mxu3 %v8571_v47  ;;  %3898 = vmatpush.bf16.msra.mxu2 %v8831_v54  ;;  %v8671_v47 = vor.u32 %v10338_v41, %v8670_v10  ;;  %v9187_v54 = vor.u32 %v10462_v46, %v9184_v24  ;;  %v9384_v41 = vld [vmem:[#allocation2 + $0x6b0] sm:$0xf0]  ;;  %v10516_v24 = vld [vmem:[#allocation2 + $0x6b4] sm:$0xf0]  ;;  %v10358_v10 = vld [vmem:[#allocation2 + $0x1cc] sm:$0xf] }
 0x387   : > { %v9382_v46 = vld [vmem:[#allocation2 + $0x690] sm:$0xf] }
 0x389   : > { %3955 = vmatpush.bf16.msrb.mxu1 %v8803_v59  ;;  %4011 = vmatpush.bf16.msra.mxu0 %v8807_v2  ;;  %v10451_v59 = vld [vmem:[#allocation2 + $0x4ac] sm:$0xf0]  ;;  %v9128_v2 = vld [vmem:[#allocation2 + $0x4b0] sm:$0xf0] }
 0x38a   : > { %3829 = vmatpush.bf16.msrb.mxu3 %v8539_v52  ;;  %3899 = vmatpush.bf16.msra.mxu2 %v8799_v60  ;;  %v10455_v52 = vld [vmem:[#allocation2 + $0x4d4] sm:$0xf]  ;;  %v9159_v60 = vor.u32 %v10459_v56, %v9158_v30 }
 0x38b   : > { %v9163_v61 = vor.u32 %v10455_v52, %v9160_v57  ;;  %v9352_v56 = vld [vmem:[#allocation2 + $0x670] sm:$0xf0]  ;;  %v10508_v57 = vld [vmem:[#allocation2 + $0x674] sm:$0xf0] }
 0x38c   : > { %3956 = vmatmul.bf16.vlgmr.msrb.gmra.mxu1 %v12510_v58  ;;  %4012 = vmatmul.bf16.vlgmr.msra.gmra.mxu0 %v12510_v58  ;;  %v10503_v30 = vld [vmem:[#allocation2 + $0x654] sm:$0xf]  ;;  %v9358_v52 = vld [vmem:[#allocation2 + $0x658] sm:$0xf] }
 0x38d   : > { %4018 = vmatpush.bf16.msra.mxu1 %v9287_v13  ;;  %4074 = vmatpush.bf16.msrb.mxu0 %v9291_v16  ;;  %v9127_v13 = vor.u32 %v10451_v59, %v9126_v29  ;;  %v9131_v16 = vor.u32 %v10447_v62, %v9128_v2  ;;  %v10499_v59 = vld [vmem:[#allocation2 + $0x62c] sm:$0xf0]  ;;  %v8776_v2 = vld [vmem:[#allocation2 + $0x1f0] sm:$0xf0]  ;;  %v8672_v62 = vld [vmem:[#allocation2 + $0x128] sm:$0xf0] }
 0x38e   : > { %3878 = vmatpush.bf16.msra.mxu3 %v8767_v11  ;;  %3962 = vmatpush.bf16.msrb.mxu2 %v9283_v28  ;;  %v8607_v11 = vor.u32 %v10322_v63, %v8606_v36  ;;  %v9123_v28 = vor.u32 %v10446_v33, %v9120_v55  ;;  %v9359_v63 = vor.u32 %v10508_v57, %v9358_v52  ;;  %v10342_v55 = vld [vmem:[#allocation2 + $0x14c] sm:$0xf]  ;;  %v10364_v36 = vld [vmem:[#allocation2 + $0x1f4] sm:$0xf0]  ;;  %v9320_v33 = vld [vmem:[#allocation2 + $0x630] sm:$0xf0] }
 0x38f   : > { %3830 = vmatmul.bf16.vlgmr.msrb.gmra.mxu3 %v12441_v9  ;;  %3900 = vmatmul.bf16.vlgmr.msra.gmra.mxu2 %v12510_v58  ;;  %v9318_v29 = vld [vmem:[#allocation2 + $0x610] sm:$0xf] }
 0x391   : > { %4019 = vmatpush.bf16.msra.mxu1 %v9255_v50  ;;  %4075 = vmatpush.bf16.msrb.mxu0 %v9259_v40  ;;  %v9095_v50 = vor.u32 %v10443_v19, %v9094_v26  ;;  %v9099_v40 = vor.u32 %v10439_v27, %v9096_v1  ;;  %v10495_v19 = vld [vmem:[#allocation2 + $0x614] sm:$0xf]  ;;  %v9326_v1 = vld [vmem:[#allocation2 + $0x618] sm:$0xf] }
 0x392   : > { %3879 = vmatpush.bf16.msra.mxu3 %v8735_v15  ;;  %3963 = vmatpush.bf16.msrb.mxu2 %v9251_v14  ;;  %v8575_v15 = vor.u32 %v10314_v34, %v8574_v21  ;;  %v9091_v14 = vor.u32 %v10438_v23, %v9088_v20  ;;  %v9319_v20 = vor.u32 %v10499_v59, %v9318_v29  ;;  %v10332_v59 = vld [vmem:[#allocation2 + $0xf4] sm:$0xf0] }
 0x393   : > { %v9323_v21 = vor.u32 %v10495_v19, %v9320_v33  ;;  %v10327_v33 = vld [vmem:[#allocation2 + $0xd4] sm:$0xf] }
 0x394   : > { %v8616_v19 = vld [vmem:[#allocation2 + $0xb0] sm:$0xf0] }
 0x395   : > { %4020 = vmatpush.bf16.msra.mxu1 %v9223_v7  ;;  %4076 = vmatpush.bf16.msrb.mxu0 %v9227_v44  ;;  %v10431_v44 = vld [vmem:[#allocation2 + $0x414] sm:$0xf] }
 0x396   : > { %3880 = vmatpush.bf16.msra.mxu3 %v8703_v17  ;;  %3964 = vmatpush.bf16.msrb.mxu2 %v9219_v38  ;;  %v10430_v17 = vld [vmem:[#allocation2 + $0x40c] sm:$0xf]  ;;  %v9062_v38 = vld [vmem:[#allocation2 + $0x410] sm:$0xf]  ;;  %v9067_v42 = vor.u32 %v10431_v44, %v9064_v35  ;;  %v8752_v35 = vld [vmem:[#allocation2 + $0x1b8] sm:$0xf0] }
 0x397   : > { %v9059_v7 = vor.u32 %v10430_v17, %v9056_v32  ;;  %v9063_v18 = vor.u32 %v10435_v37, %v9062_v38  ;;  %v10356_v32 = vld [vmem:[#allocation2 + $0x1b4] sm:$0xf0]  ;;  %v8675_v37 = vor.u32 %v10334_v31, %v8672_v62  ;;  %v8640_v38 = vld [vmem:[#allocation2 + $0xe8] sm:$0xf0]  ;;  %v10320_v31 = vld [vmem:[#allocation2 + $0x9c] sm:$0xf] }
 0x398   : > { %v8750_v17 = vld [vmem:[#allocation2 + $0x198] sm:$0xf] }
 0x399   : > { %4021 = vmatpush.bf16.msra.mxu1 %v9191_v48  ;;  %4077 = vmatpush.bf16.msrb.mxu0 %v9195_v6  ;;  %v9387_v48 = vor.u32 %v10511_v45, %v9384_v41  ;;  %v9391_v6 = vor.u32 %v10516_v24, %v9390_v8  ;;  %v10326_v41 = vld [vmem:[#allocation2 + $0xcc] sm:$0xf]  ;;  %v8712_v24 = vld [vmem:[#allocation2 + $0x170] sm:$0xf0] }
 0x39a   : > { %3881 = vmatpush.bf16.msra.mxu3 %v8671_v47  ;;  %3965 = vmatpush.bf16.msrb.mxu2 %v9187_v54  ;;  %v8771_v47 = vor.u32 %v10358_v10, %v8768_v43  ;;  %v9383_v54 = vor.u32 %v10515_v5, %v9382_v46  ;;  %v10351_v43 = vld [vmem:[#allocation2 + $0x194] sm:$0xf]  ;;  %v8720_v10 = vld [vmem:[#allocation2 + $0x178] sm:$0xf0] }
 0x39b   : > { %v8747_v5 = vor.u32 %v10351_v43, %v8744_v3  ;;  %v10343_v46 = vld [vmem:[#allocation2 + $0x154] sm:$0xf]  ;;  %v10355_v3 = vld [vmem:[#allocation2 + $0x1ac] sm:$0xf0] }
 0x39c   : > { %v8715_v45 = vor.u32 %v10343_v46, %v8712_v24  ;;  %v8742_v43 = vld [vmem:[#allocation2 + $0x190] sm:$0xf] }
 0x39d   : > { %4022 = vmatpush.bf16.msra.mxu1 %v9159_v60  ;;  %4078 = vmatpush.bf16.msrb.mxu0 %v9163_v61  ;;  %v8704_v60 = vld [vmem:[#allocation2 + $0x168] sm:$0xf0]  ;;  %v9355_v61 = vor.u32 %v10503_v30, %v9352_v56  ;;  %v10340_v56 = vld [vmem:[#allocation2 + $0x134] sm:$0xf0]  ;;  %v10347_v24 = vld [vmem:[#allocation2 + $0x16c] sm:$0xf0] }
 0x39e   : > { %3882 = vmatpush.bf16.msra.mxu3 %v8639_v12  ;;  %3966 = vmatpush.bf16.msrb.mxu2 %v9155_v51  ;;  %v8739_v12 = vor.u32 %v10350_v25, %v8736_v49  ;;  %v9351_v51 = vor.u32 %v10507_v53, %v9350_v4  ;;  %v8707_v34 = vor.u32 %v10342_v55, %v8704_v60  ;;  %v10318_v49 = vld [vmem:[#allocation2 + $0x8c] sm:$0xf]  ;;  %v8680_v53 = vld [vmem:[#allocation2 + $0x130] sm:$0xf0]  ;;  %v8688_v25 = vld [vmem:[#allocation2 + $0x138] sm:$0xf0] }
 0x39f   : > { %v10335_v4 = vld [vmem:[#allocation2 + $0x114] sm:$0xf]  ;;  %v10336_v60 = vld [vmem:[#allocation2 + $0x11c] sm:$0xf]  ;;  %v8710_v46 = vld [vmem:[#allocation2 + $0x150] sm:$0xf] }
 0x3a0   : > { %v8683_v30 = vor.u32 %v10335_v4, %v8680_v53  ;;  %v8648_v55 = vld [vmem:[#allocation2 + $0xf0] sm:$0xf0] }
 0x3a1   : > { %4023 = vmatpush.bf16.msra.mxu1 %v9127_v13  ;;  %4079 = vmatpush.bf16.msrb.mxu0 %v9131_v16  ;;  %v1351_v13 = vld [vmem:[%s11223_s20 + $0x1c] sm:$0xff]  ;;  %v1355_v16 = vld [vmem:[%s11223_s20 + $0x44] sm:$0xff]  ;;  %v8651_v29 = vor.u32 %v10327_v33, %v8648_v55  ;;  %s14735_s20 = smov 127  }
 0x3a2   : > { %3883 = vmatpush.bf16.msra.mxu3 %v8607_v11  ;;  %3967 = vmatpush.bf16.msrb.mxu2 %v9123_v28  ;;  %v10500_v11 = vld [vmem:[#allocation2 + $0x634] sm:$0xf0]  ;;  %v8784_v28 = vld [vmem:[#allocation2 + $0x1f8] sm:$0xf0]  ;;  %1359 = vst [vmem:[#allocation2 + $0x358] sm:$0xff] %v1351_v13 }
 0x3a3   : > { %v9327_v23 = vor.u32 %v10500_v11, %v9326_v1  ;;  %1363 = vst [vmem:[#allocation2 + $0x378] sm:$0xff] %v1355_v16  ;;  %v8654_v11 = vld [vmem:[#allocation2 + $0xd8] sm:$0xf]  ;;  %v10328_v13 = vld [vmem:[#allocation2 + $0xdc] sm:$0xf] }
 0x3a4   : > { %v8655_v62 = vor.u32 %v10332_v59, %v8654_v11  ;;  %v10363_v16 = vld [vmem:[#allocation2 + $0x1ec] sm:$0xf0]  ;;  %v10324_v1 = vld [vmem:[#allocation2 + $0xb4] sm:$0xf0]  ;;  %v10416_v11 = vld [vmem:[#allocation2 + $0x39c] sm:$0xf] }
 0x3a5   : > { %4024 = vmatpush.bf16.msra.mxu1 %v9095_v50  ;;  %4080 = vmatpush.bf16.msrb.mxu0 %v9099_v40  ;;  %v10360_v50 = vld [vmem:[#allocation2 + $0x1dc] sm:$0xf]  ;;  %v10331_v55 = vld [vmem:[#allocation2 + $0xec] sm:$0xf0]  ;;  %v9006_v59 = vld [vmem:[#allocation2 + $0x398] sm:$0xf] }
 0x3a6   : > { %3884 = vmatpush.bf16.msra.mxu3 %v8575_v15  ;;  %3968 = vmatpush.bf16.msrb.mxu2 %v9091_v14  ;;  %v10359_v15 = vld [vmem:[#allocation2 + $0x1d4] sm:$0xf]  ;;  %v8782_v14 = vld [vmem:[#allocation2 + $0x1d8] sm:$0xf]  ;;  %v8787_v40 = vor.u32 %v10360_v50, %v8784_v28  ;;  %v8544_v28 = vld [vmem:[#allocation2 + $0x28] sm:$0xf0] }
 0x3a7   : > { %v8779_v26 = vor.u32 %v10359_v15, %v8776_v2  ;;  %v8783_v27 = vor.u32 %v10364_v36, %v8782_v14  ;;  %v8656_v36 = vld [vmem:[#allocation2 + $0xf8] sm:$0xf0] }
 0x3a8   : > { %v8624_v15 = vld [vmem:[#allocation2 + $0xb8] sm:$0xf0] }
 0x3a9   : > { %4025 = vmatpush.bf16.msra.mxu1 %v9063_v18  ;;  %4081 = vmatpush.bf16.msrb.mxu0 %v9067_v42  ;;  %v10348_v18 = vld [vmem:[#allocation2 + $0x174] sm:$0xf0]  ;;  %v8643_v42 = vor.u32 %v10326_v41, %v8640_v38  ;;  %v8743_v38 = vor.u32 %v10355_v3, %v8742_v43  ;;  %v10312_v41 = vld [vmem:[#allocation2 + $0x5c] sm:$0xf]  ;;  %v10307_v43 = vld [vmem:[#allocation2 + $0x2c] sm:$0xf0] }
 0x3aa   : > { %3885 = vmatpush.bf16.msra.mxu3 %v8543_v0  ;;  %3969 = vmatpush.bf16.msrb.mxu2 %v9059_v7  ;;  %v8751_v0 = vor.u32 %v10356_v32, %v8750_v17  ;;  %v10352_v7 = vld [vmem:[#allocation2 + $0x19c] sm:$0xf]  ;;  %v8627_v32 = vor.u32 %v10320_v31, %v8624_v15  ;;  %v8582_v31 = vld [vmem:[#allocation2 + $0x50] sm:$0xf]  ;;  %v10396_v3 = vld [vmem:[#allocation2 + $0x2f4] sm:$0xf0] }
 0x3ab   : > { %v8755_v44 = vor.u32 %v10352_v7, %v8752_v35  ;;  %v10316_v35 = vld [vmem:[#allocation2 + $0x74] sm:$0xf0]  ;;  %v8592_v17 = vld [vmem:[#allocation2 + $0x78] sm:$0xf0] }
 0x3ac   : > { %4026 = vmatmul.bf16.vlgmr.msra.gmra.mxu1 %v12526_v22  ;;  %4082 = vmatmul.bf16.vlgmr.msrb.gmra.mxu0 %v12526_v22  ;;  %v8944_v15 = vld [vmem:[#allocation2 + $0x338] sm:$0xf0] }
 0x3ad   : > { %4093 = vmatpush.bf16.msrb.mxu1 %v9387_v48  ;;  %4149 = vmatpush.bf16.msra.mxu0 %v9391_v6  ;;  %v10344_v48 = vld [vmem:[#allocation2 + $0x15c] sm:$0xf] }
 0x3ae   : > { %3934 = vmatpush.bf16.msrb.mxu3 %v8771_v47  ;;  %4037 = vmatpush.bf16.msra.mxu2 %v9383_v54  ;;  %v8718_v47 = vld [vmem:[#allocation2 + $0x158] sm:$0xf]  ;;  %v8608_v54 = vld [vmem:[#allocation2 + $0xa8] sm:$0xf0]  ;;  %v8723_v6 = vor.u32 %v10344_v48, %v8720_v10 }
 0x3af   : > { %3886 = vmatmul.bf16.vlgmr.msra.gmra.mxu3 %v12441_v9  ;;  %3970 = vmatmul.bf16.vlgmr.msrb.gmra.mxu2 %v12526_v22  ;;  %v8719_v8 = vor.u32 %v10348_v18, %v8718_v47  ;;  %v8611_v57 = vor.u32 %v10318_v49, %v8608_v54  ;;  %v8595_v18 = vor.u32 %v10312_v41, %v8592_v17  ;;  %v10308_v10 = vld [vmem:[#allocation2 + $0x34] sm:$0xf0]  ;;  %v8560_v47 = vld [vmem:[#allocation2 + $0x38] sm:$0xf0] }
 0x3b0   : > { %v10428_v54 = vld [vmem:[#allocation2 + $0x3f4] sm:$0xf0] }
 0x3b1   : > { %4094 = vmatpush.bf16.msrb.mxu1 %v9355_v61  ;;  %4150 = vmatpush.bf16.msra.mxu0 %v9359_v63  ;;  %v8691_v61 = vor.u32 %v10336_v60, %v8688_v25  ;;  %v10310_v63 = vld [vmem:[#allocation2 + $0x4c] sm:$0xf]  ;;  %v8558_v48 = vld [vmem:[#allocation2 + $0x18] sm:$0xf]  ;;  %v10339_v25 = vld [vmem:[#allocation2 + $0x12c] sm:$0xf0] }
 0x3b2   : > { %3935 = vmatpush.bf16.msrb.mxu3 %v8739_v12  ;;  %4038 = vmatpush.bf16.msra.mxu2 %v9351_v51  ;;  %v8686_v12 = vld [vmem:[#allocation2 + $0x118] sm:$0xf]  ;;  %v8576_v51 = vld [vmem:[#allocation2 + $0x68] sm:$0xf0]  ;;  %v8559_v53 = vor.u32 %v10308_v10, %v8558_v48 }
 0x3b3   : > { %v8687_v52 = vor.u32 %v10340_v56, %v8686_v12  ;;  %v8579_v2 = vor.u32 %v10310_v63, %v8576_v51  ;;  %v10304_v56 = vld [vmem:[#allocation2 + $0x1c] sm:$0xf]  ;;  %v10420_v60 = vld [vmem:[#allocation2 + $0x3b4] sm:$0xf0] }
 0x3b4   : > { %v8563_v4 = vor.u32 %v10304_v56, %v8560_v47  ;;  %v10424_v51 = vld [vmem:[#allocation2 + $0x3dc] sm:$0xf]  ;;  %v9007_v33 = vor.u32 %v10420_v60, %v9006_v59  ;;  %v8878_v10 = vld [vmem:[#allocation2 + $0x298] sm:$0xf]  ;;  %v3789_v47 = vpop.f32.mrf.mxu1  ;;  %v3803_v56 = vpop.f32.mrf.mxu2 }
 0x3b5   : > { %4095 = vmatpush.bf16.msrb.mxu1 %v9323_v21  ;;  %4151 = vmatpush.bf16.msra.mxu0 %v9327_v23  ;;  %v8774_v23 = vld [vmem:[#allocation2 + $0x1d0] sm:$0xf]  ;;  %v9008_v63 = vld [vmem:[#allocation2 + $0x3b8] sm:$0xf0] }
 0x3b6   : > { %3936 = vmatpush.bf16.msrb.mxu3 %v8707_v34  ;;  %4039 = vmatpush.bf16.msra.mxu2 %v9319_v20  ;;  %v8659_v34 = vor.u32 %v10328_v13, %v8656_v36  ;;  %v10302_v20 = vld [vmem:[#allocation2 + $0xc] sm:$0xf]  ;;  %v8775_v14 = vor.u32 %v10363_v16, %v8774_v23  ;;  %v10412_v36 = vld [vmem:[#allocation2 + $0x374] sm:$0xf0]  ;;  %v8646_v13 = vld [vmem:[#allocation2 + $0xd0] sm:$0xf] }
 0x3b7   : > { %v8547_v21 = vor.u32 %v10302_v20, %v8544_v28  ;;  %v10408_v28 = vld [vmem:[#allocation2 + $0x35c] sm:$0xf]  ;;  %v8647_v16 = vor.u32 %v10331_v55, %v8646_v13  ;;  %v10372_v55 = vld [vmem:[#allocation2 + $0x234] sm:$0xf0]  ;;  %v10399_v13 = vld [vmem:[#allocation2 + $0x314] sm:$0xf] }
 0x3b8   : > { %v10376_v60 = vld [vmem:[#allocation2 + $0x25c] sm:$0xf] }
 0x3b9   : > { %4102 = vmatpush.bf16.msra.mxu1 %v8783_v27  ;;  %4158 = vmatpush.bf16.msrb.mxu0 %v8787_v40  ;;  %v8622_v27 = vld [vmem:[#allocation2 + $0x98] sm:$0xf]  ;;  %v8816_v59 = vld [vmem:[#allocation2 + $0x238] sm:$0xf0] }
 0x3ba   : > { %4046 = vmatpush.bf16.msrb.mxu2 %v8779_v26  ;;  %3937 = vmatpush.bf16.msrb.mxu3 %v8675_v37  ;;  %v10319_v26 = vld [vmem:[#allocation2 + $0x94] sm:$0xf]  ;;  %v8623_v40 = vor.u32 %v10324_v1, %v8622_v27  ;;  %v8614_v1 = vld [vmem:[#allocation2 + $0x90] sm:$0xf] }
 0x3bb   : > { %v8619_v50 = vor.u32 %v10319_v26, %v8616_v19  ;;  %v8584_v37 = vld [vmem:[#allocation2 + $0x70] sm:$0xf0]  ;;  %v10323_v19 = vld [vmem:[#allocation2 + $0xac] sm:$0xf0] }
 0x3bc   : > { %9401 = vmatmul.msk.bf16.vlgmr.msrb.gmra.mxu1 %vm14672_vm15, %v12548_v39  ;;  %9402 = vmatmul.msk.bf16.vlgmr.msra.gmra.mxu0 %vm14672_vm15, %v12548_v39  ;;  %v8615_v23 = vor.u32 %v10323_v19, %v8614_v1  ;;  %v10315_v26 = vld [vmem:[#allocation2 + $0x6c] sm:$0xf0]  ;;  %v8904_v19 = vld [vmem:[#allocation2 + $0x2f0] sm:$0xf0] }
 0x3bd   : > { %4103 = vmatpush.bf16.msra.mxu1 %v8751_v0  ;;  %4159 = vmatpush.bf16.msrb.mxu0 %v8755_v44  ;;  %v8590_v0 = vld [vmem:[#allocation2 + $0x58] sm:$0xf] }
 0x3be   : > { %4047 = vmatpush.bf16.msrb.mxu2 %v8747_v5  ;;  %3938 = vmatpush.bf16.msrb.mxu3 %v8643_v42  ;;  %v10311_v5 = vld [vmem:[#allocation2 + $0x54] sm:$0xf]  ;;  %v8591_v44 = vor.u32 %v10316_v35, %v8590_v0  ;;  %v8910_v35 = vld [vmem:[#allocation2 + $0x2d8] sm:$0xf] }
 0x3bf   : > { %9400 = vmatmul.msk.bf16.vlgmr.msra.gmra.mxu2 %vm14672_vm15, %v12548_v39  ;;  %v8587_v7 = vor.u32 %v10311_v5, %v8584_v37  ;;  %v8552_v42 = vld [vmem:[#allocation2 + $0x30] sm:$0xf0]  ;;  %v8912_v37 = vld [vmem:[#allocation2 + $0x2f8] sm:$0xf0]  ;;  %v8911_v17 = vor.u32 %v10396_v3, %v8910_v35 }
 0x3c0   : > { %v9032_v5 = vld [vmem:[#allocation2 + $0x3f0] sm:$0xf0]  ;;  %v9200_v3 = vld [vmem:[#allocation2 + $0x538] sm:$0xf0] }
 0x3c1   : > { %4104 = vmatpush.bf16.msra.mxu1 %v8719_v8  ;;  %4160 = vmatpush.bf16.msrb.mxu0 %v8723_v6  ;;  %v10303_v8 = vld [vmem:[#allocation2 + $0x14] sm:$0xf]  ;;  %v9040_v6 = vld [vmem:[#allocation2 + $0x3f8] sm:$0xf0] }
 0x3c2   : > { %4048 = vmatpush.bf16.msrb.mxu2 %v8715_v45  ;;  %3939 = vmatpush.bf16.msrb.mxu3 %v8611_v57  ;;  %v8711_v45 = vor.u32 %v10347_v24, %v8710_v46  ;;  %v8555_v49 = vor.u32 %v10303_v8, %v8552_v42  ;;  %v9038_v57 = vld [vmem:[#allocation2 + $0x3d8] sm:$0xf]  ;;  %v10423_v24 = vld [vmem:[#allocation2 + $0x3d4] sm:$0xf]  ;;  %v3775_v46 = vpop.f32.mrf.mxu0 }
 0x3c3   : > { %v9039_v12 = vor.u32 %v10428_v54, %v9038_v57  ;;  %v9035_v42 = vor.u32 %v10423_v24, %v9032_v5  ;;  %v9000_v8 = vld [vmem:[#allocation2 + $0x3b0] sm:$0xf0]  ;;  %v3790_v48 = vadd.f32 %v3789_v47, %v3775_v46  ;;  %v10448_v47 = vld [vmem:[#allocation2 + $0x49c] sm:$0xf] }
 0x3c4   : > { %v10415_v57 = vld [vmem:[#allocation2 + $0x394] sm:$0xf] }
 0x3c5   : > { %4105 = vmatpush.bf16.msra.mxu1 %v8687_v52  ;;  %4161 = vmatpush.bf16.msrb.mxu0 %v8691_v61  ;;  %v8678_v52 = vld [vmem:[#allocation2 + $0x110] sm:$0xf]  ;;  %v8840_v35 = vld [vmem:[#allocation2 + $0x270] sm:$0xf0] }
 0x3c6   : > { %4049 = vmatpush.bf16.msrb.mxu2 %v8683_v30  ;;  %3940 = vmatpush.bf16.msrb.mxu3 %v8579_v2  ;;  %v9043_v30 = vor.u32 %v10424_v51, %v9040_v6  ;;  %v8679_v61 = vor.u32 %v10339_v25, %v8678_v52  ;;  %v8974_v2 = vld [vmem:[#allocation2 + $0x358] sm:$0xf]  ;;  %v10407_v25 = vld [vmem:[#allocation2 + $0x354] sm:$0xf]  ;;  %v9003_v51 = vor.u32 %v10415_v57, %v9000_v8  ;;  %v9104_v8 = vld [vmem:[#allocation2 + $0x478] sm:$0xf0] }
 0x3c7   : > { %v10367_v24 = vld [vmem:[#allocation2 + $0x214] sm:$0xf]  ;;  %v9072_v57 = vld [vmem:[#allocation2 + $0x438] sm:$0xf0] }
 0x3c9   : > { %4106 = vmatpush.bf16.msra.mxu1 %v8655_v62  ;;  %4162 = vmatpush.bf16.msrb.mxu0 %v8659_v34  ;;  %v9011_v62 = vor.u32 %v10416_v11, %v9008_v63  ;;  %v8975_v34 = vor.u32 %v10412_v36, %v8974_v2  ;;  %v9296_v2 = vld [vmem:[#allocation2 + $0x5f8] sm:$0xf0]  ;;  %v8814_v36 = vld [vmem:[#allocation2 + $0x218] sm:$0xf] }
 0x3ca   : > { %4050 = vmatpush.bf16.msrb.mxu2 %v8651_v29  ;;  %3941 = vmatpush.bf16.msrb.mxu3 %v8547_v21  ;;  %v8976_v29 = vld [vmem:[#allocation2 + $0x378] sm:$0xf0]  ;;  %v10404_v21 = vld [vmem:[#allocation2 + $0x334] sm:$0xf0] }
 0x3cb   : > { %v8979_v20 = vor.u32 %v10408_v28, %v8976_v29  ;;  %v10368_v11 = vld [vmem:[#allocation2 + $0x21c] sm:$0xf]  ;;  %v8936_v29 = vld [vmem:[#allocation2 + $0x330] sm:$0xf0] }
 0x3cc   : > { %v10488_v28 = vld [vmem:[#allocation2 + $0x5dc] sm:$0xf] }
 0x3cd   : > { %4107 = vmatpush.bf16.msra.mxu1 %v8623_v40  ;;  %4163 = vmatpush.bf16.msrb.mxu0 %v8627_v32  ;;  %v8583_v32 = vor.u32 %v10315_v26, %v8582_v31  ;;  %v8872_v26 = vld [vmem:[#allocation2 + $0x2b0] sm:$0xf0] }
 0x3ce   : > { %3990 = vmatpush.bf16.msra.mxu3 %v8775_v14  ;;  %4051 = vmatpush.bf16.msrb.mxu2 %v8619_v50  ;;  %v8942_v14 = vld [vmem:[#allocation2 + $0x318] sm:$0xf]  ;;  %v10400_v50 = vld [vmem:[#allocation2 + $0x31c] sm:$0xf]  ;;  %v10383_v31 = vld [vmem:[#allocation2 + $0x294] sm:$0xf] }
 0x3cf   : > { %3942 = vmatmul.bf16.vlgmr.msrb.gmra.mxu3 %v12441_v9  ;;  %v8943_v27 = vor.u32 %v10404_v21, %v8942_v14  ;;  %v8947_v40 = vor.u32 %v10400_v50, %v8944_v15  ;;  %v10391_v21 = vld [vmem:[#allocation2 + $0x2d4] sm:$0xf]  ;;  %v10472_v14 = vld [vmem:[#allocation2 + $0x55c] sm:$0xf] }
 0x3d0   : > { %v8907_v15 = vor.u32 %v10391_v21, %v8904_v19 }
 0x3d1   : > { %4108 = vmatpush.bf16.msra.mxu1 %v8591_v44  ;;  %4164 = vmatpush.bf16.msrb.mxu0 %v8595_v18  ;;  %v10388_v44 = vld [vmem:[#allocation2 + $0x2b4] sm:$0xf0]  ;;  %v8880_v18 = vld [vmem:[#allocation2 + $0x2b8] sm:$0xf0] }
 0x3d2   : > { %3991 = vmatpush.bf16.msra.mxu3 %v8743_v38  ;;  %4052 = vmatpush.bf16.msrb.mxu2 %v8587_v7  ;;  %v10392_v38 = vld [vmem:[#allocation2 + $0x2dc] sm:$0xf]  ;;  %v8550_v7 = vld [vmem:[#allocation2 + $0x10] sm:$0xf]  ;;  %v8879_v54 = vor.u32 %v10388_v44, %v8878_v10  ;;  %v9294_v10 = vld [vmem:[#allocation2 + $0x5d8] sm:$0xf] }
 0x3d3   : > { %v8915_v0 = vor.u32 %v10392_v38, %v8912_v37  ;;  %v8551_v41 = vor.u32 %v10307_v43, %v8550_v7  ;;  %v10464_v37 = vld [vmem:[#allocation2 + $0x51c] sm:$0xf]  ;;  %v8808_v7 = vld [vmem:[#allocation2 + $0x230] sm:$0xf0] }
 0x3d4   : > { %v9203_v43 = vor.u32 %v10464_v37, %v9200_v3  ;;  %v9168_v38 = vld [vmem:[#allocation2 + $0x4f8] sm:$0xf0] }
 0x3d5   : > { %4109 = vmatpush.bf16.msra.mxu1 %v8559_v53  ;;  %4165 = vmatpush.bf16.msrb.mxu0 %v8563_v4  ;;  %v8848_v53 = vld [vmem:[#allocation2 + $0x278] sm:$0xf0]  ;;  %v8968_v4 = vld [vmem:[#allocation2 + $0x370] sm:$0xf0] }
 0x3d6   : > { %3992 = vmatpush.bf16.msra.mxu3 %v8711_v45  ;;  %4053 = vmatpush.bf16.msrb.mxu2 %v8555_v49  ;;  %v10384_v45 = vld [vmem:[#allocation2 + $0x29c] sm:$0xf]  ;;  %v10380_v49 = vld [vmem:[#allocation2 + $0x274] sm:$0xf0]  ;;  %v8971_v63 = vor.u32 %v10407_v25, %v8968_v4  ;;  %v12584_v25 = vpop.f32.mrf.mxu0 }
 0x3d7   : > { %v8883_v6 = vor.u32 %v10384_v45, %v8880_v18  ;;  %v9136_v18 = vld [vmem:[#allocation2 + $0x4b8] sm:$0xf0]  ;;  %v10484_v45 = vld [vmem:[#allocation2 + $0x5b4] sm:$0xf0] }
 0x3d8   : > { %4110 = vmatmul.bf16.vlgmr.msra.gmra.mxu1 %v12441_v9  ;;  %4166 = vmatmul.bf16.vlgmr.msrb.gmra.mxu0 %v12441_v9  ;;  %v9230_v4 = vld [vmem:[#allocation2 + $0x558] sm:$0xf]  ;;  %v10504_v3 = vld [vmem:[#allocation2 + $0x65c] sm:$0xf] }
 0x3d9   : > { %4172 = vmatpush.bf16.msrb.mxu1 %v9043_v30  ;;  %4054 = vmatmul.bf16.vlgmr.msrb.gmra.mxu2 %v12441_v9  ;;  %v8846_v30 = vld [vmem:[#allocation2 + $0x258] sm:$0xf]  ;;  %v9328_v37 = vld [vmem:[#allocation2 + $0x638] sm:$0xf0] }
 0x3da   : > { %4116 = vmatpush.bf16.msra.mxu2 %v9039_v12  ;;  %3993 = vmatpush.bf16.msra.mxu3 %v8679_v61  ;;  %v3804_v12 = vadd.f32 %v3803_v56, %v3790_v48  ;;  %v8847_v52 = vor.u32 %v10380_v49, %v8846_v30  ;;  %v8851_v61 = vor.u32 %v10376_v60, %v8848_v53  ;;  %v9262_v48 = vld [vmem:[#allocation2 + $0x598] sm:$0xf]  ;;  %v10440_v49 = vld [vmem:[#allocation2 + $0x45c] sm:$0xf] }
 0x3db   : > { %v9107_v53 = vor.u32 %v10440_v49, %v9104_v8  ;;  %v10476_v56 = vld [vmem:[#allocation2 + $0x574] sm:$0xf0] }
 0x3dc   : > { %v10468_v60 = vld [vmem:[#allocation2 + $0x534] sm:$0xf0] }
 0x3dd   : > { %4173 = vmatpush.bf16.msrb.mxu1 %v9011_v62  ;;  %v8819_v62 = vor.u32 %v10368_v11, %v8816_v59  ;;  %v10460_v59 = vld [vmem:[#allocation2 + $0x4f4] sm:$0xf0] }
 0x3de   : > { %4117 = vmatpush.bf16.msra.mxu2 %v9007_v33  ;;  %3994 = vmatpush.bf16.msra.mxu3 %v8647_v16  ;;  %v8815_v33 = vor.u32 %v10372_v55, %v8814_v36  ;;  %v9264_v16 = vld [vmem:[#allocation2 + $0x5b8] sm:$0xf0]  ;;  %v10452_v11 = vld [vmem:[#allocation2 + $0x4b4] sm:$0xf0] }
 0x3e1   : > { %4174 = vmatpush.bf16.msrb.mxu1 %v8979_v20  ;;  %v10480_v20 = vld [vmem:[#allocation2 + $0x59c] sm:$0xf] }
 0x3e2   : > { %4118 = vmatpush.bf16.msra.mxu2 %v8975_v34  ;;  %3995 = vmatpush.bf16.msra.mxu3 %v8615_v23  ;;  %v8939_v34 = vor.u32 %v10399_v13, %v8936_v29  ;;  %v9267_v1 = vor.u32 %v10480_v20, %v9264_v16  ;;  %v9232_v23 = vld [vmem:[#allocation2 + $0x578] sm:$0xf0]  ;;  %v10444_v20 = vld [vmem:[#allocation2 + $0x474] sm:$0xf0] }
 0x3e3   : > { %v9235_v50 = vor.u32 %v10472_v14, %v9232_v23  ;;  %v10436_v23 = vld [vmem:[#allocation2 + $0x434] sm:$0xf0] }
 0x3e4   : > { %v9070_v14 = vld [vmem:[#allocation2 + $0x418] sm:$0xf] }
 0x3e5   : > { %4175 = vmatpush.bf16.msrb.mxu1 %v8947_v40 }
 0x3e6   : > { %4119 = vmatpush.bf16.msra.mxu2 %v8943_v27  ;;  %3996 = vmatpush.bf16.msra.mxu3 %v8583_v32  ;;  %v8875_v32 = vor.u32 %v10383_v31, %v8872_v26  ;;  %v9071_v26 = vor.u32 %v10436_v23, %v9070_v14  ;;  %v9360_v31 = vld [vmem:[#allocation2 + $0x678] sm:$0xf0] }
 0x3e9   : > { %4176 = vmatpush.bf16.msrb.mxu1 %v8915_v0  ;;  %v10456_v0 = vld [vmem:[#allocation2 + $0x4dc] sm:$0xf] }
 0x3ea   : > { %4120 = vmatpush.bf16.msra.mxu2 %v8911_v17  ;;  %3997 = vmatpush.bf16.msra.mxu3 %v8551_v41  ;;  %v10375_v17 = vld [vmem:[#allocation2 + $0x254] sm:$0xf]  ;;  %v9171_v44 = vor.u32 %v10456_v0, %v9168_v38  ;;  %v10492_v41 = vld [vmem:[#allocation2 + $0x5f4] sm:$0xf0] }
 0x3eb   : > { %v8843_v5 = vor.u32 %v10375_v17, %v8840_v35  ;;  %v9295_v46 = vor.u32 %v10492_v41, %v9294_v10  ;;  %v10496_v35 = vld [vmem:[#allocation2 + $0x61c] sm:$0xf] }
 0x3ed   : > { %4177 = vmatpush.bf16.msrb.mxu1 %v8883_v6  ;;  %3998 = vmatmul.bf16.vlgmr.msra.gmra.mxu3 %v12441_v9  ;;  %v9299_v9 = vor.u32 %v10488_v28, %v9296_v2  ;;  %v9263_v6 = vor.u32 %v10484_v45, %v9262_v48  ;;  %v9166_v2 = vld [vmem:[#allocation2 + $0x4d8] sm:$0xf] }
 0x3ee   : > { %4060 = vmatpush.bf16.msrb.mxu3 %v9035_v42  ;;  %4121 = vmatpush.bf16.msra.mxu2 %v8879_v54  ;;  %v8811_v42 = vor.u32 %v10367_v24, %v8808_v7  ;;  %v9139_v54 = vor.u32 %v10448_v47, %v9136_v18  ;;  %v9167_v36 = vor.u32 %v10460_v59, %v9166_v2 }
 0x3f1   : > { %4178 = vmatpush.bf16.msrb.mxu1 %v8851_v61  ;;  %v12588_v61 = vpop.f32.mrf.mxu1 }
 0x3f2   : > { %4061 = vmatpush.bf16.msrb.mxu3 %v9003_v51  ;;  %4122 = vmatpush.bf16.msra.mxu2 %v8847_v52  ;;  %v3817_v27 = vpop.f32.mrf.mxu3  ;;  %v10432_v51 = vld [vmem:[#allocation2 + $0x41c] sm:$0xf] }
 0x3f3   : > { %v12581_v40 = vadd.f32 %v3817_v27, %v3804_v12  ;;  %v9231_v12 = vor.u32 %v10476_v56, %v9230_v4  ;;  %v9075_v52 = vor.u32 %v10432_v51, %v9072_v57  ;;  %v10512_v27 = vld [vmem:[#allocation2 + $0x69c] sm:$0xf] }
 0x3f5   : > { %4179 = vmatpush.bf16.msrb.mxu1 %v8819_v62 }
 0x3f6   : > { %4062 = vmatpush.bf16.msrb.mxu3 %v8971_v63  ;;  %4123 = vmatpush.bf16.msra.mxu2 %v8815_v33  ;;  %v12590_v63 = vpop.f32.mrf.mxu2  ;;  %v3845_v33 = vpop.f32.mrf.mxu0 }
 0x3f8   : > { %4180 = vmatmul.bf16.vlgmr.msrb.gmra.mxu1 %v12510_v58 }
 0x3f9   : > { %4124 = vmatmul.bf16.vlgmr.msra.gmra.mxu2 %v12510_v58  ;;  %v3859_v29 = vpop.f32.mrf.mxu1 }
 0x3fa   : > { %4186 = vmatpush.bf16.msrb.mxu2 %v9299_v9  ;;  %4063 = vmatpush.bf16.msrb.mxu3 %v8939_v34  ;;  %v12586_v30 = vpop.f32.mrf.mxu3  ;;  %v9134_v9 = vld [vmem:[#allocation2 + $0x498] sm:$0xf] }
 0x3fb   : > { %v9135_v13 = vor.u32 %v10452_v11, %v9134_v9 }
 0x3fe   : > { %4187 = vmatpush.bf16.msrb.mxu2 %v9267_v1  ;;  %4064 = vmatpush.bf16.msrb.mxu3 %v8907_v15  ;;  %v3873_v16 = vpop.f32.mrf.mxu2  ;;  %v9102_v1 = vld [vmem:[#allocation2 + $0x458] sm:$0xf]  ;;  %v9392_v15 = vld [vmem:[#allocation2 + $0x6b8] sm:$0xf0] }
 0x3ff   : > { %v9103_v21 = vor.u32 %v10444_v20, %v9102_v1  ;;  %v12614_v1 = vld [vmem:[#allocation10] sm:$0xff] }
 0x401   : > { %v3861_v0 = vpop.f32.mrf.mxu1 }
 0x402   : > { %4188 = vmatpush.bf16.msrb.mxu2 %v9235_v50  ;;  %4065 = vmatpush.bf16.msrb.mxu3 %v8875_v32  ;;  %v9395_v50 = vor.u32 %v10512_v27, %v9392_v15  ;;  %v9363_v32 = vor.u32 %v10504_v3, %v9360_v31  ;;  %v12617_v15 = vperm.slane %v12614_v1, 1  ;;  %v3792_v31 = vadd.f32 %v12588_v61, %v12584_v25 }
 0x403   : > { %v12625_v3 = vperm.slane %v12614_v1, 2 }
 0x404   : > { %v3806_v61 = vadd.f32 %v12590_v63, %v3792_v31 }
 0x406   : > { %4189 = vmatpush.bf16.msrb.mxu2 %v9203_v43  ;;  %4066 = vmatpush.bf16.msrb.mxu3 %v8843_v5  ;;  %v9331_v43 = vor.u32 %v10496_v35, %v9328_v37  ;;  %v12596_v17 = vpop.f32.mrf.mxu2  ;;  %v3847_v5 = vpop.f32.mrf.mxu0 }
 0x409   : > { %v3929_v18 = vpop.f32.mrf.mxu1 }
 0x40a   : > { %4190 = vmatpush.bf16.msrb.mxu2 %v9171_v44  ;;  %4067 = vmatpush.bf16.msrb.mxu3 %v8811_v42 }
 0x40d   : > { %4068 = vmatmul.bf16.vlgmr.msrb.gmra.mxu3 %v12510_v58  ;;  %v9198_v58 = vld [vmem:[#allocation2 + $0x518] sm:$0xf] }
 0x40e   : > { %4130 = vmatpush.bf16.msra.mxu3 %v9295_v46  ;;  %4191 = vmatpush.bf16.msrb.mxu2 %v9139_v54  ;;  %v9199_v55 = vor.u32 %v10468_v60, %v9198_v58  ;;  %v3915_v41 = vpop.f32.mrf.mxu0 }
 0x411   : > { %v12602_v46 = vpop.f32.mrf.mxu1 }
 0x412   : > { %4131 = vmatpush.bf16.msra.mxu3 %v9263_v6  ;;  %4192 = vmatpush.bf16.msrb.mxu2 %v9107_v53  ;;  %v3831_v28 = vpop.f32.mrf.mxu3  ;;  %v3901_v7 = vpop.f32.mrf.mxu2 }
 0x413   : > { %v3846_v62 = vadd.f32 %v3845_v33, %v3831_v28 }
 0x415   : > { %v3860_v34 = vadd.f32 %v3859_v29, %v3846_v62 }
 0x416   : > { %4132 = vmatpush.bf16.msra.mxu3 %v9231_v12  ;;  %4193 = vmatpush.bf16.msrb.mxu2 %v9075_v52  ;;  %v3917_v10 = vpop.f32.mrf.mxu0 }
 0x417   : > { %v12593_v19 = vadd.f32 %v3873_v16, %v3860_v34 }
 0x419   : > { %4194 = vmatmul.bf16.vlgmr.msrb.gmra.mxu2 %v12526_v22  ;;  %v3957_v45 = vpop.f32.mrf.mxu1 }
 0x41a   : > { %4133 = vmatpush.bf16.msra.mxu3 %v9199_v55  ;;  %v3833_v38 = vpop.f32.mrf.mxu3  ;;  %v3903_v47 = vpop.f32.mrf.mxu2 }
 0x41b   : > { %v3848_v14 = vadd.f32 %v3847_v5, %v3833_v38  ;;  %v12632_v38 = vperm.slane %v12614_v1, 3 }
 0x41e   : > { %4134 = vmatpush.bf16.msra.mxu3 %v9167_v36  ;;  %v3985_v54 = vpop.f32.mrf.mxu0 }
 0x421   : > { %v3959_v49 = vpop.f32.mrf.mxu1 }
 0x422   : > { %4135 = vmatpush.bf16.msra.mxu3 %v9135_v13 }
 0x426   : > { %4136 = vmatpush.bf16.msra.mxu3 %v9103_v21  ;;  %v12604_v6 = vpop.f32.mrf.mxu0 }
 0x429   : > { %v4027_v4 = vpop.f32.mrf.mxu1 }
 0x42a   : > { %4137 = vmatpush.bf16.msra.mxu3 %v9071_v26 }
 0x42d   : > { %4138 = vmatmul.bf16.vlgmr.msra.gmra.mxu3 %v12526_v22 }
 0x42e   : > { %4205 = vmatpush.bf16.msrb.mxu3 %v9395_v50  ;;  %v4013_v57 = vpop.f32.mrf.mxu0  ;;  %v12620_v50 = vperm.slane %v12614_v1, 0 }
 0x430   : > { %v4231_v25 = vmul.f32 %v12620_v50, %v12581_v40 }
 0x431   : > { %v4029_v52 = vpop.f32.mrf.mxu1 }
 0x432   : > { %4206 = vmatpush.bf16.msrb.mxu3 %v9363_v32  ;;  %v3887_v44 = vpop.f32.mrf.mxu3  ;;  %v3971_v8 = vpop.f32.mrf.mxu2 }
 0x433   : > { %v3902_v24 = vadd.f32 %v3901_v7, %v3887_v44  ;;  %v3862_v7 = vadd.f32 %v3861_v0, %v3848_v14  ;;  %v12642_v0 = vperm.slane %v12614_v1, 4 }
 0x435   : > { %v3916_v22 = vadd.f32 %v3915_v41, %v3902_v24 }
 0x436   : > { %4207 = vmatpush.bf16.msrb.mxu3 %v9331_v43  ;;  %v4015_v51 = vpop.f32.mrf.mxu0  ;;  %v4232_v43 = vmul.f32 %v12617_v15, %v12593_v19 }
 0x437   : > { %v12600_v42 = vadd.f32 %v3929_v18, %v3916_v22 }
 0x439   : > { %v4097_v59 = vpop.f32.mrf.mxu1  ;;  %v4233_v18 = vmul.f32 %v12625_v3, %v12600_v42 }
 0x43a   : > { %v3889_v48 = vpop.f32.mrf.mxu3  ;;  %v3973_v56 = vpop.f32.mrf.mxu2 }
 0x43b   : > { %v3904_v32 = vadd.f32 %v3903_v47, %v3889_v48  ;;  %v12646_v48 = vadd.f32 %v12596_v17, %v3862_v7 }
 0x43d   : > { %9403 = vmatmul.msk.bf16.vlgmr.msrb.gmra.mxu3 %vm14672_vm15, %v12548_v39  ;;  %v3918_v47 = vadd.f32 %v3917_v10, %v3904_v32  ;;  %v12653_v10 = vperm.slane %v12614_v1, 5 }
 0x43e   : > { %v4083_v55 = vpop.f32.mrf.mxu0 }
 0x441   : > { %v12610_v11 = vpop.f32.mrf.mxu1 }
 0x442   : > { %v4041_v39 = vpop.f32.mrf.mxu2 }
 0x446   : > { %v12608_v33 = vpop.f32.mrf.mxu0 }
 0x44a   : > { %v12606_v58 = vpop.f32.mrf.mxu2 }
 0x44e   : > { %v4153_v62 = vpop.f32.mrf.mxu0 }
 0x452   : > { %v3943_v53 = vpop.f32.mrf.mxu3 }
 0x453   : > { %v3958_v34 = vadd.f32 %v3957_v45, %v3943_v53 }
 0x455   : > { %v4111_v9 = vpop.f32.mrf.mxu1  ;;  %v3972_v26 = vadd.f32 %v3971_v8, %v3958_v34  ;;  %v4268_v8 = vmul.f32 %v4232_v43, %v12593_v19 }
 0x456   : > { %v12612_v20 = vpop.f32.mrf.mxu0 }
 0x457   : > { %v12629_v44 = vadd.f32 %v3985_v54, %v3972_v26 }
 0x459   : > { %v4234_v63 = vmul.f32 %v12632_v38, %v12629_v44 }
 0x45a   : > { %v3945_v12 = vpop.f32.mrf.mxu3 }
 0x45b   : > { %v3960_v5 = vadd.f32 %v3959_v49, %v3945_v12  ;;  %v4267_v12 = vmul.f32 %v4231_v25, %v12581_v40 }
 0x45c   : > { %v4055_v2 = vpop.f32.mrf.mxu2 }
 0x45d   : > { %v4113_v23 = vpop.f32.mrf.mxu1 }
 0x45e   : > { %v4167_v53 = vpop.f32.mrf.mxu0 }
 0x464   : > { %v4057_v29 = vpop.f32.mrf.mxu2 }
 0x470   : > { %v3999_v60 = vpop.f32.mrf.mxu3 }
 0x471   : > { %v4014_v21 = vadd.f32 %v4013_v57, %v3999_v60  ;;  %v3974_v57 = vadd.f32 %v3973_v56, %v3960_v5  ;;  %v4247_v60 = vadd.f32 %v4232_v43, %v4231_v25 }
 0x473   : > { %v4028_v37 = vadd.f32 %v4027_v4, %v4014_v21  ;;  %v4248_v21 = vadd.f32 %v4247_v60, %v4233_v18 }
 0x475   : > { %v12639_v45 = vadd.f32 %v4041_v39, %v4028_v37  ;;  %v4181_v39 = vpop.f32.mrf.mxu1  ;;  %v4249_v37 = vadd.f32 %v4248_v21, %v4234_v63 }
 0x477   : > { %v4235_v56 = vmul.f32 %v12642_v0, %v12639_v45 }
 0x478   : > { %v4001_v36 = vpop.f32.mrf.mxu3 }
 0x479   : > { %v4016_v54 = vadd.f32 %v4015_v51, %v4001_v36  ;;  %v12657_v51 = vadd.f32 %v12586_v30, %v3806_v61  ;;  %v4182_v30 = vadd.f32 %v4181_v39, %v4167_v53  ;;  %v4271_v32 = vmul.f32 %v4235_v56, %v12639_v45  ;;  %v4169_v61 = vpop.f32.mrf.mxu0 }
 0x47a   : > { %v4250_v25 = vadd.f32 %v4249_v37, %v4235_v56 }
 0x47c   : > { %v4125_v16 = vpop.f32.mrf.mxu2 }
 0x47d   : > { %v4126_v22 = vadd.f32 %v4125_v16, %v4111_v9  ;;  %v12668_v16 = vperm.slane %v12614_v1, 6 }
 0x484   : > { %v4127_v24 = vpop.f32.mrf.mxu2 }
 0x485   : > { %v4128_v26 = vadd.f32 %v4127_v24, %v4113_v23 }
 0x490   : > { %v4069_v28 = vpop.f32.mrf.mxu3 }
 0x491   : > { %v4070_v27 = vadd.f32 %v4069_v28, %v4055_v2  ;;  %v12661_v2 = vadd.f32 %v12602_v46, %v3918_v47  ;;  %v4283_v28 = vadd.f32 %v4268_v8, %v4267_v12  ;;  %v12674_v46 = vadd.f32 %v12604_v6, %v3974_v57 }
 0x493   : > { %v4084_v41 = vadd.f32 %v4083_v55, %v4070_v27  ;;  %v4269_v55 = vmul.f32 %v4233_v18, %v12600_v42  ;;  %v4241_v31 = vmul.f32 %v12625_v3, %v12661_v2  ;;  %v12698_v18 = vperm.slane %v12614_v1, 7 }
 0x495   : > { %v12650_v4 = vadd.f32 %v4097_v59, %v4084_v41  ;;  %v4030_v59 = vadd.f32 %v4029_v52, %v4016_v54  ;;  %v4284_v27 = vadd.f32 %v4283_v28, %v4269_v55  ;;  %v4277_v47 = vmul.f32 %v4241_v31, %v12661_v2 }
 0x497   : > { %v4236_v34 = vmul.f32 %v12653_v10, %v12650_v4  ;;  %v12685_v6 = vadd.f32 %v12606_v58, %v4030_v59 }
 0x498   : > { %v4071_v13 = vpop.f32.mrf.mxu3 }
 0x499   : > { %v4072_v17 = vadd.f32 %v4071_v13, %v4057_v29  ;;  %v4240_v29 = vmul.f32 %v12617_v15, %v12646_v48  ;;  %v4270_v13 = vmul.f32 %v4234_v63, %v12629_v44  ;;  %v4272_v23 = vmul.f32 %v4236_v34, %v12650_v4 }
 0x49a   : > { %v4243_v8 = vmul.f32 %v12642_v0, %v12685_v6  ;;  %v4251_v63 = vadd.f32 %v4250_v25, %v4236_v34 }
 0x49b   : > { %v4086_v14 = vadd.f32 %v12608_v33, %v4072_v17  ;;  %v4276_v5 = vmul.f32 %v4240_v29, %v12646_v48  ;;  %v4285_v41 = vadd.f32 %v4284_v27, %v4270_v13  ;;  %v4242_v33 = vmul.f32 %v12632_v38, %v12674_v46 }
 0x49c   : > { %v4195_v52 = vpop.f32.mrf.mxu2 }
 0x49d   : > { %v4196_v43 = vadd.f32 %v4195_v52, %v4182_v30  ;;  %v12695_v58 = vadd.f32 %v12610_v11, %v4086_v14  ;;  %v4286_v54 = vadd.f32 %v4285_v41, %v4271_v32  ;;  %v4278_v60 = vmul.f32 %v4242_v33, %v12674_v46 }
 0x49f   : > { %v4287_v17 = vadd.f32 %v4286_v54, %v4272_v23  ;;  %v4244_v55 = vmul.f32 %v12653_v10, %v12695_v58 }
 0x4b0   : > { %v4139_v35 = vpop.f32.mrf.mxu3 }
 0x4b1   : > { %v4140_v49 = vadd.f32 %v4139_v35, %v4126_v22 }
 0x4b3   : > { %v12665_v9 = vadd.f32 %v4153_v62, %v4140_v49  ;;  %v4239_v62 = vmul.f32 %v12620_v50, %v12657_v51  ;;  %v4183_v49 = vpop.f32.mrf.mxu1 }
 0x4b4   : > { %v4184_v56 = vadd.f32 %v4183_v49, %v4169_v61 }
 0x4b5   : > { %v4237_v35 = vmul.f32 %v12668_v16, %v12665_v9  ;;  %v4275_v24 = vmul.f32 %v4239_v62, %v12657_v51  ;;  %v4256_v22 = vadd.f32 %v4240_v29, %v4239_v62  ;;  %v4197_v29 = vpop.f32.mrf.mxu2 }
 0x4b6   : > { %v4198_v27 = vadd.f32 %v4197_v29, %v4184_v56 }
 0x4b7   : > { %v4273_v57 = vmul.f32 %v4237_v35, %v12665_v9  ;;  %v4292_v12 = vadd.f32 %v4276_v5, %v4275_v24  ;;  %v4257_v1 = vadd.f32 %v4256_v22, %v4241_v31 }
 0x4b8   : > { %v4141_v36 = vpop.f32.mrf.mxu3 }
 0x4b9   : > { %v4142_v7 = vadd.f32 %v4141_v36, %v4128_v26  ;;  %v4252_v36 = vadd.f32 %v4251_v63, %v4237_v35  ;;  %v4293_v28 = vadd.f32 %v4292_v12, %v4277_v47  ;;  %v4258_v30 = vadd.f32 %v4257_v1, %v4242_v33 }
 0x4ba   : > { %v4288_v62 = vadd.f32 %v4287_v17, %v4273_v57  ;;  %v4280_v26 = vmul.f32 %v4244_v55, %v12695_v58 }
 0x4bb   : > { %v12705_v39 = vadd.f32 %v12612_v20, %v4142_v7  ;;  %v4279_v20 = vmul.f32 %v4243_v8, %v12685_v6  ;;  %v4294_v21 = vadd.f32 %v4293_v28, %v4278_v60  ;;  %v4259_v14 = vadd.f32 %v4258_v30, %v4243_v8 }
 0x4bc   : > { %v11084_v28 = vmov 0  }
 0x4bd   : > { %v4245_v13 = vmul.f32 %v12668_v16, %v12705_v39  ;;  %v4295_v37 = vadd.f32 %v4294_v21, %v4279_v20  ;;  %v4260_v35 = vadd.f32 %v4259_v14, %v4244_v55  ;;  %4393 = vst [vmem:[#allocation3] sm:$0xf] %v11084_v28 }
 0x4be   : > { %4394 = vst [vmem:[#allocation3 + $0x28] sm:$0xf] %v11084_v28 }
 0x4bf   : > { %v4296_v5 = vadd.f32 %v4295_v37, %v4280_v26  ;;  %v4261_v33 = vadd.f32 %v4260_v35, %v4245_v13  ;;  %4411 = vst [vmem:[#allocation3 + $0x24] sm:$0xf] %v11084_v28 }
 0x4c0   : > { %v4209_v53 = vpop.f32.mrf.mxu3  ;;  %4412 = vst [vmem:[#allocation3 + $0x4c] sm:$0xf] %v11084_v28 }
 0x4c1   : > { %v12707_v11 = vadd.f32 %v4209_v53, %v4196_v43  ;;  %v4281_v43 = vmul.f32 %v4245_v13, %v12705_v39 }
 0x4c3   : > { %v4238_v59 = vmul.f32 %v12698_v18, %v12707_v11  ;;  %v4297_v25 = vadd.f32 %v4296_v5, %v4281_v43 }
 0x4c5   : > { %v4274_v34 = vmul.f32 %v4238_v59, %v12707_v11  ;;  %v4253_v52 = vadd.f32 %v4252_v36, %v4238_v59 }
 0x4c7   : > { %4254 = vadd.xlane.f32.xlu2 %v4253_v52  ;;  %v4289_v31 = vadd.f32 %v4288_v62, %v4274_v34 }
 0x4c8   : > { %v4211_v32 = vpop.f32.mrf.mxu3 }
 0x4c9   : > { %v12720_v7 = vadd.f32 %v4211_v32, %v4198_v27  ;;  %4290 = vadd.xlane.f32.xlu1 %v4289_v31 }
 0x4cb   : > { %v4246_v41 = vmul.f32 %v12698_v18, %v12720_v7 }
 0x4cd   : > { %v4282_v23 = vmul.f32 %v4246_v41, %v12720_v7  ;;  %v4262_v24 = vadd.f32 %v4261_v33, %v4246_v41 }
 0x4cf   : > { %4263 = vadd.xlane.f32.xlu0 %v4262_v24  ;;  %v4298_v61 = vadd.f32 %v4297_v25, %v4282_v23 }
 0x4d1   : > { %4299 = vadd.xlane.f32.xlu2 %v4298_v61 }
 0x53a   : > { %v4255_v22 = vpop.xlane.xlu2 %4254 }
 0x53b   : > { %v4265_v47 = vmul.f32 0.001953125, %v4255_v22 }
 0x53c   : > { %v4291_v54 = vpop.xlane.xlu1 %4290 }
 0x53d   : > { %v4301_v8 = vmul.f32 0.001953125, %v4291_v54  ;;  %v4303_v49 = vmul.f32 %v4265_v47, %v4265_v47  ;;  %v4307_v13 = vsub.f32 %v12581_v40, %v4265_v47  ;;  %v4308_v34 = vsub.f32 %v12593_v19, %v4265_v47 }
 0x53e   : > { %v4309_v21 = vsub.f32 %v12600_v42, %v4265_v47  ;;  %v4310_v14 = vsub.f32 %v12629_v44, %v4265_v47  ;;  %v4311_v26 = vsub.f32 %v12639_v45, %v4265_v47  ;;  %v4312_v27 = vsub.f32 %v12650_v4, %v4265_v47 }
 0x53f   : > { %v4305_v53 = vsub.f32 %v4301_v8, %v4303_v49  ;;  %v4313_v31 = vsub.f32 %v12665_v9, %v4265_v47  ;;  %v4314_v32 = vsub.f32 %v12707_v11, %v4265_v47 }
 0x541   : > { %v4323_v63 = vadd.f32 1e-05, %v4305_v53 }
 0x542   : > { %v4264_v57 = vpop.xlane.xlu0 %4263 }
 0x543   : > { %10849 = vrsqrt.f32 %v4323_v63  ;;  %v12725_v12 = vmul.f32 0.001953125, %v4264_v57  ;;  %vm4331_vm14 = vweird.f32 %v4323_v63 }
 0x544   : > { %v4300_v1 = vpop.xlane.xlu2 %4299 }
 0x545   : > { %v4304_v60 = vmul.f32 %v12725_v12, %v12725_v12  ;;  %v4302_v17 = vmul.f32 0.001953125, %v4300_v1 }
 0x547   : > { %v4306_v56 = vsub.f32 %v4302_v17, %v4304_v60 }
 0x549   : > { %v10850_v55 = vpop.eup %10849  ;;  %v12729_v36 = vadd.f32 1e-05, %v4306_v56 }
 0x54a   : > { %v4326_v59 = vmul.f32 %v10850_v55, %v4323_v63  ;;  %vm4332_vm15 = vweird.f32 %v10850_v55 }
 0x54b   : > { %10851 = vrsqrt.f32 %v12729_v36  ;;  %vm4333_vm13 = vmor %vm4331_vm14, %vm4332_vm15  ;;  %vm4341_vm14 = vweird.f32 %v12729_v36 }
 0x54c   : > { %v4327_v30 = vmul.f32 %v10850_v55, %v4326_v59 }
 0x54e   : > { %v4328_v20 = vmul.f32 0.5, %v4327_v30  ;;  %v4315_v30 = vsub.f32 %v12657_v51, %v12725_v12  ;;  %v4320_v51 = vsub.f32 %v12695_v58, %v12725_v12 }
 0x550   : > { %v4329_v29 = vsub.f32 1.5, %v4328_v20 }
 0x551   : > { %v10852_v62 = vpop.eup %10851 }
 0x552   : > { %v4330_v52 = vmul.f32 %v10850_v55, %v4329_v29  ;;  %v4336_v40 = vmul.f32 %v10852_v62, %v12729_v36  ;;  %v4316_v29 = vsub.f32 %v12646_v48, %v12725_v12  ;;  %v4321_v36 = vsub.f32 %v12705_v39, %v12725_v12 }
 0x553   : > { %v4322_v48 = vsub.f32 %v12720_v7, %v12725_v12 }
 0x554   : > { %v4334_v37 = vsel %vm4333_vm13, %v10850_v55, %v4330_v52  ;;  %v4337_v17 = vmul.f32 %v10852_v62, %v4336_v40  ;;  %vm4342_vm13 = vweird.f32 %v10852_v62  ;;  %v4319_v52 = vsub.f32 %v12685_v6, %v12725_v12 }
 0x555   : > { %v4345_v19 = vmul.f32 %v4334_v37, %v4307_v13  ;;  %v4346_v35 = vmul.f32 %v4334_v37, %v4308_v34  ;;  %v4347_v43 = vmul.f32 %v4334_v37, %v4309_v21  ;;  %v4348_v5 = vmul.f32 %v4334_v37, %v4310_v14  ;;  %vm4343_vm15 = vmor %vm4341_vm14, %vm4342_vm13 }
 0x556   : > { %v4349_v41 = vmul.f32 %v4334_v37, %v4311_v26  ;;  %v4350_v42 = vmul.f32 %v4334_v37, %v4312_v27  ;;  %v4351_v33 = vmul.f32 %v4334_v37, %v4313_v31  ;;  %v4352_v44 = vmul.f32 %v4334_v37, %v4314_v32 }
 0x557   : > { %v4361_v23 = vmax.f32 %v4345_v19, 0.0  ;;  %v4362_v45 = vmax.f32 %v4346_v35, 0.0  ;;  %v4363_v24 = vmax.f32 %v4347_v43, 0.0  ;;  %v4364_v4 = vmax.f32 %v4348_v5, 0.0 }
 0x558   : > { %v4365_v25 = vmax.f32 %v4349_v41, 0.0  ;;  %v4366_v61 = vmax.f32 %v4350_v42, 0.0  ;;  %v4367_v9 = vmax.f32 %v4351_v33, 0.0  ;;  %v4368_v22 = vmax.f32 %v4352_v44, 0.0 }
 0x559   : > { %v4377_v11 = vmul.f32 %v4361_v23, %v12620_v50  ;;  %v4378_v47 = vmul.f32 %v4362_v45, %v12617_v15  ;;  %v4379_v54 = vmul.f32 %v4363_v24, %v12625_v3  ;;  %v4380_v8 = vmul.f32 %v4364_v4, %v12632_v38 }
 0x55a   : > { %v4381_v49 = vmul.f32 %v4365_v25, %v12642_v0  ;;  %v4382_v53 = vmul.f32 %v4366_v61, %v12653_v10  ;;  %v4383_v63 = vmul.f32 %v4367_v9, %v12668_v16  ;;  %v4384_v57 = vmul.f32 %v4368_v22, %v12698_v18 }
 0x55b   : > { %v4395_v1 = vpack.c.bf16 %v4378_v47, %v4377_v11  ;;  %v4396_v60 = vpack.c.bf16 %v4380_v8, %v4379_v54  ;;  %v4338_v59 = vmul.f32 0.5, %v4337_v17  ;;  %v4317_v13 = vsub.f32 %v12661_v2, %v12725_v12 }
 0x55c   : > { %v4397_v55 = vpack.c.bf16 %v4382_v53, %v4381_v49  ;;  %v4398_v56 = vpack.c.bf16 %v4384_v57, %v4383_v63  ;;  %v4318_v34 = vsub.f32 %v12674_v46, %v12725_v12 }
 0x55d   : > { %4403 = vst [vmem:[#allocation3 + $0x4] sm:$0xff] %v4395_v1  ;;  %v4339_v28 = vsub.f32 1.5, %v4338_v59 }
 0x55e   : > { %4404 = vst [vmem:[#allocation3 + $0xc] sm:$0xff] %v4396_v60 }
 0x55f   : > { %4405 = vst [vmem:[#allocation3 + $0x14] sm:$0xff] %v4397_v55  ;;  %v4340_v20 = vmul.f32 %v10852_v62, %v4339_v28 }
 0x560   : > { %4406 = vst [vmem:[#allocation3 + $0x1c] sm:$0xff] %v4398_v56 }
 0x561   : > { %5487 = vst [vmem:[#allocation2 + $0x340] sm:$0xff] %v4395_v1  ;;  %v4344_v21 = vsel %vm4343_vm15, %v10852_v62, %v4340_v20  ;;  %vm14760_vm15 = vcmask 228352  }
 0x562   : > { %5488 = vst [vmem:[#allocation2 + $0x348] sm:$0xff] %v4396_v60  ;;  %v4353_v2 = vmul.f32 %v4344_v21, %v4315_v30  ;;  %v4354_v14 = vmul.f32 %v4344_v21, %v4316_v29  ;;  %v4355_v26 = vmul.f32 %v4344_v21, %v4317_v13  ;;  %v4356_v46 = vmul.f32 %v4344_v21, %v4318_v34 }
 0x563   : > { %5489 = vst [vmem:[#allocation2 + $0x350] sm:$0xff] %v4397_v55  ;;  %v4357_v6 = vmul.f32 %v4344_v21, %v4319_v52  ;;  %v4358_v31 = vmul.f32 %v4344_v21, %v4320_v51  ;;  %v4359_v32 = vmul.f32 %v4344_v21, %v4321_v36  ;;  %v4360_v37 = vmul.f32 %v4344_v21, %v4322_v48 }
 0x564   : > { %5490 = vst [vmem:[#allocation2 + $0x358] sm:$0xff] %v4398_v56  ;;  %v12766_v27 = vld [vmem:[#allocation3] sm:$0xff]  ;;  %v4369_v58 = vmax.f32 %v4353_v2, 0.0  ;;  %v4370_v39 = vmax.f32 %v4354_v14, 0.0  ;;  %v4371_v7 = vmax.f32 %v4355_v26, 0.0  ;;  %v4372_v12 = vmax.f32 %v4356_v46, 0.0 }
 0x565   : > { %v12768_v40 = vld [vmem:[#allocation3 + $0x8] sm:$0xff]  ;;  %4433 = vrot.lane.b32.xlu2 %v12766_v27, %s11058_s21  ;;  %v4373_v19 = vmax.f32 %v4357_v6, 0.0  ;;  %v4374_v35 = vmax.f32 %v4358_v31, 0.0  ;;  %v4375_v43 = vmax.f32 %v4359_v32, 0.0  ;;  %v4376_v5 = vmax.f32 %v4360_v37, 0.0 }
 0x566   : > { %v12772_v62 = vld [vmem:[#allocation3 + $0x10] sm:$0xff]  ;;  %4435 = vrot.lane.b32.xlu0 %v12768_v40, %s11058_s21  ;;  %v4385_v41 = vmul.f32 %v4369_v58, %v12620_v50  ;;  %v4386_v42 = vmul.f32 %v4370_v39, %v12617_v15  ;;  %v4387_v33 = vmul.f32 %v4371_v7, %v12625_v3  ;;  %v4388_v44 = vmul.f32 %v4372_v12, %v12632_v38 }
 0x567   : > { %4437 = vrot.lane.b32.xlu1 %v12772_v62, %s11058_s21  ;;  %v4389_v23 = vmul.f32 %v4373_v19, %v12642_v0  ;;  %v4390_v45 = vmul.f32 %v4374_v35, %v12653_v10  ;;  %v4391_v24 = vmul.f32 %v4375_v43, %v12668_v16  ;;  %v4392_v4 = vmul.f32 %v4376_v5, %v12698_v18  ;;  %v4417_v11 = vld [vmem:[#allocation3 + $0x20] sm:$0xf]  ;;  %v12786_v47 = vld [vmem:[#allocation3 + $0x18] sm:$0xff] }
 0x568   : > { %v4399_v25 = vpack.c.bf16 %v4386_v42, %v4385_v41  ;;  %v4400_v61 = vpack.c.bf16 %v4388_v44, %v4387_v33  ;;  %v4499_v57 = vld [vmem:[#allocation3 + $0x20] sm:$0xf] }
 0x569   : > { %v4401_v9 = vpack.c.bf16 %v4390_v45, %v4389_v23  ;;  %v4402_v22 = vpack.c.bf16 %v4392_v4, %v4391_v24  ;;  %v4581_v60 = vld [vmem:[#allocation3 + $0x20] sm:$0xf] }
 0x56a   : > { %4407 = vst [vmem:[#allocation3 + $0x2c] sm:$0xff] %v4399_v25  ;;  %v4663_v55 = vld [vmem:[#allocation3 + $0x20] sm:$0xf] }
 0x56b   : > { %4408 = vst [vmem:[#allocation3 + $0x34] sm:$0xff] %v4400_v61  ;;  %v4745_v36 = vld [vmem:[#allocation3 + $0x20] sm:$0xf] }
 0x56c   : > { %4409 = vst [vmem:[#allocation3 + $0x3c] sm:$0xff] %v4401_v9 }
 0x56d   : > { %4441 = vrot.lane.b32.xlu2 %v4417_v11, %s11058_s21  ;;  %4410 = vst [vmem:[#allocation3 + $0x44] sm:$0xff] %v4402_v22 }
 0x56e   : > { %4439 = vrot.lane.b32.xlu0 %v12786_v47, %s11058_s21  ;;  %5491 = vst [vmem:[#allocation2 + $0x360] sm:$0xff] %v4399_v25 }
 0x56f   : > { %5492 = vst [vmem:[#allocation2 + $0x368] sm:$0xff] %v4400_v61 }
 0x570   : > { %5493 = vst [vmem:[#allocation2 + $0x370] sm:$0xff] %v4401_v9 }
 0x571   : > { %5494 = vst [vmem:[#allocation2 + $0x378] sm:$0xff] %v4402_v22  ;;  %v12791_v54 = vld [vmem:[#allocation3 + $0x28] sm:$0xff] }
 0x572   : > { %4443 = vrot.lane.b32.xlu1 %v12791_v54, %s11058_s21  ;;  %v12797_v49 = vld [vmem:[#allocation3 + $0x30] sm:$0xff] }
 0x573   : > { %v12795_v8 = vld [vmem:[#allocation3 + $0x38] sm:$0xff] }
 0x574   : > { %v12803_v53 = vld [vmem:[#allocation3 + $0x40] sm:$0xff]  ;;  %v4422_v63 = vld [vmem:[#allocation3 + $0x48] sm:$0xf] }
 0x575   : > { %4447 = vrot.lane.b32.xlu2 %v12795_v8, %s11058_s21  ;;  %v4504_v1 = vld [vmem:[#allocation3 + $0x48] sm:$0xf] }
 0x576   : > { %4445 = vrot.lane.b32.xlu0 %v12797_v49, %s11058_s21  ;;  %v4586_v17 = vld [vmem:[#allocation3 + $0x48] sm:$0xf] }
 0x577   : > { %v4668_v28 = vld [vmem:[#allocation3 + $0x48] sm:$0xf] }
 0x578   : > { %v4750_v7 = vld [vmem:[#allocation3 + $0x48] sm:$0xf] }
 0x57a   : > { %4449 = vrot.lane.b32.xlu1 %v12803_v53, %s11058_s21 }
 0x57d   : > { %4515 = vrot.lane.b32.xlu2 %v12766_v27, %s11059_s26 }
 0x57e   : > { %4451 = vrot.lane.b32.xlu0 %v4422_v63, %s11058_s21  ;;  %s14736_s21 = smov 119  }
 0x582   : > { %4517 = vrot.lane.b32.xlu1 %v12768_v40, %s11059_s26 }
 0x585   : > { %4521 = vrot.lane.b32.xlu2 %v12786_v47, %s11059_s26 }
 0x586   : > { %4519 = vrot.lane.b32.xlu0 %v12772_v62, %s11059_s26 }
 0x58a   : > { %4523 = vrot.lane.b32.xlu1 %v4499_v57, %s11059_s26  ;;  %v4827_v57 = vld [vmem:[#allocation3 + $0x20] sm:$0xf] }
 0x58d   : > { %4527 = vrot.lane.b32.xlu2 %v12797_v49, %s11059_s26 }
 0x58e   : > { %4525 = vrot.lane.b32.xlu0 %v12791_v54, %s11059_s26 }
 0x592   : > { %4529 = vrot.lane.b32.xlu1 %v12795_v8, %s11059_s26 }
 0x595   : > { %4533 = vrot.lane.b32.xlu2 %v4504_v1, %s11059_s26 }
 0x596   : > { %4531 = vrot.lane.b32.xlu0 %v12803_v53, %s11059_s26  ;;  %s14737_s26 = smov 27  }
 0x59a   : > { %4597 = vrot.lane.b32.xlu1 %v12766_v27, %s11060_s9 }
 0x59d   : > { %4601 = vrot.lane.b32.xlu2 %v12772_v62, %s11060_s9 }
 0x59e   : > { %4599 = vrot.lane.b32.xlu0 %v12768_v40, %s11060_s9 }
 0x5a2   : > { %4603 = vrot.lane.b32.xlu1 %v12786_v47, %s11060_s9 }
 0x5a5   : > { %4607 = vrot.lane.b32.xlu2 %v12791_v54, %s11060_s9 }
 0x5a6   : > { %4605 = vrot.lane.b32.xlu0 %v4581_v60, %s11060_s9 }
 0x5aa   : > { %4609 = vrot.lane.b32.xlu1 %v12797_v49, %s11060_s9 }
 0x5ad   : > { %4613 = vrot.lane.b32.xlu2 %v12803_v53, %s11060_s9 }
 0x5ae   : > { %4611 = vrot.lane.b32.xlu0 %v12795_v8, %s11060_s9 }
 0x5b2   : > { %4615 = vrot.lane.b32.xlu1 %v4586_v17, %s11060_s9  ;;  %s14738_s9 = smov 28  }
 0x5b5   : > { %4681 = vrot.lane.b32.xlu2 %v12768_v40, %s11061_s10 }
 0x5b6   : > { %4679 = vrot.lane.b32.xlu0 %v12766_v27, %s11061_s10 }
 0x5ba   : > { %4683 = vrot.lane.b32.xlu1 %v12772_v62, %s11061_s10 }
 0x5bd   : > { %4687 = vrot.lane.b32.xlu2 %v4663_v55, %s11061_s10 }
 0x5be   : > { %4685 = vrot.lane.b32.xlu0 %v12786_v47, %s11061_s10 }
 0x5bf   : > { %v4434_v56 = vpop.permute.xlu2 %4433 }
 0x5c0   : > { %v4453_v13 = vrot.slane %v4434_v56, 4 }
 0x5c2   : > { %4689 = vrot.lane.b32.xlu1 %v12791_v54, %s11061_s10 }
 0x5c5   : > { %4693 = vrot.lane.b32.xlu2 %v12795_v8, %s11061_s10 }
 0x5c6   : > { %4691 = vrot.lane.b32.xlu0 %v12797_v49, %s11061_s10 }
 0x5c7   : > { %v4442_v59 = vpop.permute.xlu2 %4441 }
 0x5c8   : > { %v4457_v6 = vrot.slane %v4442_v59, 4 }
 0x5ca   : > { %4695 = vrot.lane.b32.xlu1 %v12803_v53, %s11061_s10 }
 0x5cd   : > { %4761 = vrot.lane.b32.xlu2 %v12766_v27, %s11062_s12 }
 0x5ce   : > { %4697 = vrot.lane.b32.xlu0 %v4668_v28, %s11061_s10  ;;  %s14739_s10 = smov 29  }
 0x5cf   : > { %v4448_v30 = vpop.permute.xlu2 %4447 }
 0x5d0   : > { %v4460_v43 = vrot.slane %v4448_v30, 4 }
 0x5d2   : > { %4763 = vrot.lane.b32.xlu1 %v12768_v40, %s11062_s12 }
 0x5d5   : > { %4767 = vrot.lane.b32.xlu2 %v12786_v47, %s11062_s12 }
 0x5d6   : > { %4765 = vrot.lane.b32.xlu0 %v12772_v62, %s11062_s12 }
 0x5d7   : > { %v12870_v29 = vpop.permute.xlu2 %4515 }
 0x5d8   : > { %v4436_v20 = vpop.permute.xlu0 %4435  ;;  %v4535_v60 = vrot.slane %v12870_v29, 4 }
 0x5d9   : > { %v4438_v34 = vpop.permute.xlu1 %4437  ;;  %v4454_v52 = vrot.slane %v4436_v20, 4 }
 0x5da   : > { %v4455_v51 = vrot.slane %v4438_v34, 4  ;;  %4769 = vrot.lane.b32.xlu1 %v4745_v36, %s11062_s12 }
 0x5db   : > { %v4463_v48 = vsel %vm318_vm0, %v4453_v13, %v4454_v52 }
 0x5dc   : > { %v4464_v21 = vsel %vm320_vm1, %v4434_v56, %v4463_v48  ;;  %v4465_v2 = vsel %vm318_vm0, %v4454_v52, %v4455_v51 }
 0x5dd   : > { %v4466_v14 = vsel %vm320_vm1, %v4436_v20, %v4465_v2  ;;  %4487 = vst [vmem:[#allocation2] sm:$0xff] %v4464_v21  ;;  %4773 = vrot.lane.b32.xlu2 %v12797_v49, %s11062_s12 }
 0x5de   : > { %4488 = vst [vmem:[#allocation2 + $0x8] sm:$0xff] %v4466_v14  ;;  %4771 = vrot.lane.b32.xlu0 %v12791_v54, %s11062_s12 }
 0x5df   : > { %v12881_v46 = vpop.permute.xlu2 %4521 }
 0x5e0   : > { %v4440_v26 = vpop.permute.xlu0 %4439  ;;  %v4538_v59 = vrot.slane %v12881_v46, 4 }
 0x5e1   : > { %v4456_v31 = vrot.slane %v4440_v26, 4 }
 0x5e2   : > { %4775 = vrot.lane.b32.xlu1 %v12795_v8, %s11062_s12 }
 0x5e3   : > { %v4467_v32 = vsel %vm318_vm0, %v4455_v51, %v4456_v31  ;;  %v4469_v37 = vsel %vm318_vm0, %v4456_v31, %v4457_v6  ;;  %v4832_v31 = vld [vmem:[#allocation3 + $0x48] sm:$0xf] }
 0x5e4   : > { %v4468_v58 = vsel %vm320_vm1, %v4438_v34, %v4467_v32  ;;  %v4470_v39 = vsel %vm320_vm1, %v4440_v26, %v4469_v37  ;;  %v4444_v12 = vpop.permute.xlu1 %4443 }
 0x5e5   : > { %4489 = vst [vmem:[#allocation2 + $0x10] sm:$0xff] %v4468_v58  ;;  %4779 = vrot.lane.b32.xlu2 %v4750_v7, %s11062_s12  ;;  %v4458_v5 = vrot.slane %v4444_v12, 4 }
 0x5e6   : > { %4490 = vst [vmem:[#allocation2 + $0x18] sm:$0xff] %v4470_v39  ;;  %4777 = vrot.lane.b32.xlu0 %v12803_v53, %s11062_s12  ;;  %s14740_s12 = smov 37  }
 0x5e7   : > { %v12892_v35 = vpop.permute.xlu2 %4527 }
 0x5e8   : > { %v4446_v19 = vpop.permute.xlu0 %4445  ;;  %v4541_v2 = vrot.slane %v12892_v35, 4 }
 0x5e9   : > { %v4459_v41 = vrot.slane %v4446_v19, 4 }
 0x5ea   : > { %4843 = vrot.lane.b32.xlu1 %v12766_v27, %s11063_s13 }
 0x5eb   : > { %v4471_v42 = vsel %vm318_vm0, %v4458_v5, %v4459_v41  ;;  %v4473_v33 = vsel %vm318_vm0, %v4459_v41, %v4460_v43 }
 0x5ec   : > { %v4472_v44 = vsel %vm320_vm1, %v4444_v12, %v4471_v42  ;;  %v4474_v23 = vsel %vm320_vm1, %v4446_v19, %v4473_v33  ;;  %v4450_v45 = vpop.permute.xlu1 %4449 }
 0x5ed   : > { %4491 = vst [vmem:[#allocation2 + $0x20] sm:$0xff] %v4472_v44  ;;  %4847 = vrot.lane.b32.xlu2 %v12772_v62, %s11063_s13  ;;  %v4461_v24 = vrot.slane %v4450_v45, 4 }
 0x5ee   : > { %4492 = vst [vmem:[#allocation2 + $0x28] sm:$0xff] %v4474_v23  ;;  %4845 = vrot.lane.b32.xlu0 %v12768_v40, %s11063_s13  ;;  %v4909_v23 = vld [vmem:[#allocation3 + $0x20] sm:$0xf] }
 0x5ef   : > { %v4534_v25 = vpop.permute.xlu2 %4533  ;;  %v4475_v61 = vsel %vm318_vm0, %v4460_v43, %v4461_v24 }
 0x5f0   : > { %v4452_v4 = vpop.permute.xlu0 %4451  ;;  %v4476_v22 = vsel %vm320_vm1, %v4448_v30, %v4475_v61 }
 0x5f1   : > { %v4462_v9 = vrot.slane %v4452_v4, 4  ;;  %4493 = vst [vmem:[#allocation2 + $0x30] sm:$0xff] %v4476_v22 }
 0x5f2   : > { %4849 = vrot.lane.b32.xlu1 %v12786_v47, %s11063_s13 }
 0x5f3   : > { %v4477_v11 = vsel %vm318_vm0, %v4461_v24, %v4462_v9 }
 0x5f4   : > { %v4478_v63 = vsel %vm320_vm1, %v4450_v45, %v4477_v11  ;;  %v4518_v1 = vpop.permute.xlu1 %4517  ;;  %vm14743_vm1 = vcmask 7168  }
 0x5f5   : > { %4494 = vst [vmem:[#allocation2 + $0x38] sm:$0xff] %v4478_v63  ;;  %4853 = vrot.lane.b32.xlu2 %v12791_v54, %s11063_s13  ;;  %v4536_v17 = vrot.slane %v4518_v1, 4 }
 0x5f6   : > { %4851 = vrot.lane.b32.xlu0 %v4827_v57, %s11063_s13 }
 0x5f7   : > { %v12914_v56 = vpop.permute.xlu2 %4601  ;;  %v4545_v28 = vsel %vm318_vm0, %v4535_v60, %v4536_v17 }
 0x5f8   : > { %v4520_v55 = vpop.permute.xlu0 %4519  ;;  %v4546_v20 = vsel %vm403_vm2, %v12870_v29, %v4545_v28  ;;  %v4619_v4 = vrot.slane %v12914_v56, 4 }
 0x5f9   : > { %v4537_v30 = vrot.slane %v4520_v55, 4  ;;  %4569 = vst [vmem:[#allocation2 + $0x40] sm:$0xff] %v4546_v20 }
 0x5fa   : > { %4855 = vrot.lane.b32.xlu1 %v12797_v49, %s11063_s13 }
 0x5fb   : > { %v4547_v13 = vsel %vm318_vm0, %v4536_v17, %v4537_v30  ;;  %v4549_v34 = vsel %vm318_vm0, %v4537_v30, %v4538_v59 }
 0x5fc   : > { %v4548_v52 = vsel %vm403_vm2, %v4518_v1, %v4547_v13  ;;  %v4550_v51 = vsel %vm403_vm2, %v4520_v55, %v4549_v34  ;;  %v4524_v36 = vpop.permute.xlu1 %4523  ;;  %v4914_v13 = vld [vmem:[#allocation3 + $0x48] sm:$0xf] }
 0x5fd   : > { %4570 = vst [vmem:[#allocation2 + $0x48] sm:$0xff] %v4548_v52  ;;  %4859 = vrot.lane.b32.xlu2 %v12803_v53, %s11063_s13  ;;  %v4539_v29 = vrot.slane %v4524_v36, 4 }
 0x5fe   : > { %4571 = vst [vmem:[#allocation2 + $0x50] sm:$0xff] %v4550_v51  ;;  %4857 = vrot.lane.b32.xlu0 %v12795_v8, %s11063_s13 }
 0x5ff   : > { %v12930_v21 = vpop.permute.xlu2 %4607  ;;  %v4551_v14 = vsel %vm318_vm0, %v4538_v59, %v4539_v29 }
 0x600   : > { %v4526_v48 = vpop.permute.xlu0 %4525  ;;  %v4552_v6 = vsel %vm403_vm2, %v12881_v46, %v4551_v14  ;;  %v4544_v46 = vrot.slane %v4534_v25, 4  ;;  %v4622_v52 = vrot.slane %v12930_v21, 4 }
 0x601   : > { %v4540_v26 = vrot.slane %v4526_v48, 4  ;;  %4572 = vst [vmem:[#allocation2 + $0x58] sm:$0xff] %v4552_v6 }
 0x602   : > { %4861 = vrot.lane.b32.xlu1 %v4832_v31, %s11063_s13  ;;  %s14741_s13 = smov 38  }
 0x603   : > { %v4553_v32 = vsel %vm318_vm0, %v4540_v26, %v4541_v2 }
 0x604   : > { %v4554_v37 = vsel %vm403_vm2, %v4526_v48, %v4553_v32  ;;  %v4530_v58 = vpop.permute.xlu1 %4529 }
 0x605   : > { %4573 = vst [vmem:[#allocation2 + $0x60] sm:$0xff] %v4554_v37  ;;  %4927 = vrot.lane.b32.xlu2 %v12768_v40, %s11064_s24  ;;  %v4542_v39 = vrot.slane %v4530_v58, 4 }
 0x606   : > { %4925 = vrot.lane.b32.xlu0 %v12766_v27, %s11064_s24 }
 0x607   : > { %v12943_v12 = vpop.permute.xlu2 %4613  ;;  %v4555_v19 = vsel %vm318_vm0, %v4541_v2, %v4542_v39 }
 0x608   : > { %v4532_v7 = vpop.permute.xlu0 %4531  ;;  %v4556_v5 = vsel %vm403_vm2, %v12892_v35, %v4555_v19  ;;  %v4625_v29 = vrot.slane %v12943_v12, 4 }
 0x609   : > { %v4543_v43 = vrot.slane %v4532_v7, 4  ;;  %4574 = vst [vmem:[#allocation2 + $0x68] sm:$0xff] %v4556_v5  ;;  %v4991_v5 = vld [vmem:[#allocation3 + $0x20] sm:$0xf] }
 0x60a   : > { %4929 = vrot.lane.b32.xlu1 %v12772_v62, %s11064_s24 }
 0x60b   : > { %v4557_v41 = vsel %vm318_vm0, %v4542_v39, %v4543_v43  ;;  %v4559_v42 = vsel %vm318_vm0, %v4543_v43, %v4544_v46 }
 0x60c   : > { %v4558_v33 = vsel %vm403_vm2, %v4530_v58, %v4557_v41  ;;  %v4560_v44 = vsel %vm403_vm2, %v4532_v7, %v4559_v42  ;;  %v4598_v45 = vpop.permute.xlu1 %4597  ;;  %vm14744_vm2 = vmmov %vm14743_vm1 }
 0x60d   : > { %4575 = vst [vmem:[#allocation2 + $0x70] sm:$0xff] %v4558_v33  ;;  %4933 = vrot.lane.b32.xlu2 %v4909_v23, %s11064_s24  ;;  %v4617_v25 = vrot.slane %v4598_v45, 4 }
 0x60e   : > { %4576 = vst [vmem:[#allocation2 + $0x78] sm:$0xff] %v4560_v44  ;;  %4931 = vrot.lane.b32.xlu0 %v12786_v47, %s11064_s24 }
 0x60f   : > { %v12957_v24 = vpop.permute.xlu2 %4681 }
 0x610   : > { %v4600_v35 = vpop.permute.xlu0 %4599  ;;  %v4700_v7 = vrot.slane %v12957_v24, 4 }
 0x611   : > { %v4618_v61 = vrot.slane %v4600_v35, 4 }
 0x612   : > { %4935 = vrot.lane.b32.xlu1 %v12791_v54, %s11064_s24 }
 0x613   : > { %v4627_v9 = vsel %vm318_vm0, %v4617_v25, %v4618_v61  ;;  %v4629_v22 = vsel %vm318_vm0, %v4618_v61, %v4619_v4 }
 0x614   : > { %v4628_v11 = vsel %vm486_vm3, %v4598_v45, %v4627_v9  ;;  %v4630_v63 = vsel %vm486_vm3, %v4600_v35, %v4629_v22  ;;  %v4604_v57 = vpop.permute.xlu1 %4603 }
 0x615   : > { %4651 = vst [vmem:[#allocation2 + $0x80] sm:$0xff] %v4628_v11  ;;  %4939 = vrot.lane.b32.xlu2 %v12795_v8, %s11064_s24  ;;  %v4620_v1 = vrot.slane %v4604_v57, 4 }
 0x616   : > { %4652 = vst [vmem:[#allocation2 + $0x88] sm:$0xff] %v4630_v63  ;;  %4937 = vrot.lane.b32.xlu0 %v12797_v49, %s11064_s24  ;;  %v4996_v63 = vld [vmem:[#allocation3 + $0x48] sm:$0xf] }
 0x617   : > { %v4688_v17 = vpop.permute.xlu2 %4687  ;;  %v4631_v55 = vsel %vm318_vm0, %v4619_v4, %v4620_v1 }
 0x618   : > { %v4606_v60 = vpop.permute.xlu0 %4605  ;;  %v4632_v28 = vsel %vm486_vm3, %v12914_v56, %v4631_v55 }
 0x619   : > { %v4621_v59 = vrot.slane %v4606_v60, 4  ;;  %4653 = vst [vmem:[#allocation2 + $0x90] sm:$0xff] %v4632_v28 }
 0x61a   : > { %4941 = vrot.lane.b32.xlu1 %v12803_v53, %s11064_s24 }
 0x61b   : > { %v4633_v30 = vsel %vm318_vm0, %v4620_v1, %v4621_v59 }
 0x61c   : > { %v4634_v20 = vsel %vm486_vm3, %v4604_v57, %v4633_v30  ;;  %v4610_v34 = vpop.permute.xlu1 %4609 }
 0x61d   : > { %4654 = vst [vmem:[#allocation2 + $0x98] sm:$0xff] %v4634_v20  ;;  %5007 = vrot.lane.b32.xlu2 %v12766_v27, %s11065_s25  ;;  %v4623_v51 = vrot.slane %v4610_v34, 4 }
 0x61e   : > { %4943 = vrot.lane.b32.xlu0 %v4914_v13, %s11064_s24  ;;  %s14742_s24 = smov 39  }
 0x61f   : > { %v12981_v36 = vpop.permute.xlu2 %4693  ;;  %v4635_v48 = vsel %vm318_vm0, %v4622_v52, %v4623_v51 }
 0x620   : > { %v4612_v56 = vpop.permute.xlu0 %4611  ;;  %v4636_v14 = vsel %vm486_vm3, %v12930_v21, %v4635_v48  ;;  %v4706_v60 = vrot.slane %v12981_v36, 4 }
 0x621   : > { %v4624_v2 = vrot.slane %v4612_v56, 4  ;;  %4655 = vst [vmem:[#allocation2 + $0xa0] sm:$0xff] %v4636_v14 }
 0x622   : > { %5009 = vrot.lane.b32.xlu1 %v12768_v40, %s11065_s25 }
 0x623   : > { %v4637_v26 = vsel %vm318_vm0, %v4623_v51, %v4624_v2  ;;  %v4639_v6 = vsel %vm318_vm0, %v4624_v2, %v4625_v29 }
 0x624   : > { %v4638_v31 = vsel %vm486_vm3, %v4610_v34, %v4637_v26  ;;  %v4640_v32 = vsel %vm486_vm3, %v4612_v56, %v4639_v6  ;;  %v4616_v37 = vpop.permute.xlu1 %4615  ;;  %v5073_v26 = vld [vmem:[#allocation3 + $0x20] sm:$0xf] }
 0x625   : > { %4656 = vst [vmem:[#allocation2 + $0xa8] sm:$0xff] %v4638_v31  ;;  %5013 = vrot.lane.b32.xlu2 %v12786_v47, %s11065_s25  ;;  %v4626_v21 = vrot.slane %v4616_v37, 4 }
 0x626   : > { %4657 = vst [vmem:[#allocation2 + $0xb0] sm:$0xff] %v4640_v32  ;;  %5011 = vrot.lane.b32.xlu0 %v12772_v62, %s11065_s25 }
 0x627   : > { %v12997_v39 = vpop.permute.xlu2 %4761  ;;  %v4641_v46 = vsel %vm318_vm0, %v4625_v29, %v4626_v21 }
 0x628   : > { %v4680_v58 = vpop.permute.xlu0 %4679  ;;  %v4642_v43 = vsel %vm486_vm3, %v12943_v12, %v4641_v46  ;;  %v4703_v12 = vrot.slane %v4688_v17, 4  ;;  %v4781_v31 = vrot.slane %v12997_v39, 4  ;;  %vm14745_vm3 = vmmov %vm14743_vm1 }
 0x629   : > { %v4699_v19 = vrot.slane %v4680_v58, 4  ;;  %4658 = vst [vmem:[#allocation2 + $0xb8] sm:$0xff] %v4642_v43 }
 0x62a   : > { %5015 = vrot.lane.b32.xlu1 %v4991_v5, %s11065_s25 }
 0x62b   : > { %v4709_v41 = vsel %vm318_vm0, %v4699_v19, %v4700_v7 }
 0x62c   : > { %v4710_v42 = vsel %vm569_vm4, %v4680_v58, %v4709_v41  ;;  %v4684_v33 = vpop.permute.xlu1 %4683 }
 0x62d   : > { %4733 = vst [vmem:[#allocation2 + $0xc0] sm:$0xff] %v4710_v42  ;;  %5019 = vrot.lane.b32.xlu2 %v12797_v49, %s11065_s25  ;;  %v4701_v44 = vrot.slane %v4684_v33, 4 }
 0x62e   : > { %5017 = vrot.lane.b32.xlu0 %v12791_v54, %s11065_s25 }
 0x62f   : > { %v13010_v45 = vpop.permute.xlu2 %4767  ;;  %v4711_v35 = vsel %vm318_vm0, %v4700_v7, %v4701_v44 }
 0x630   : > { %v4686_v23 = vpop.permute.xlu0 %4685  ;;  %v4712_v25 = vsel %vm569_vm4, %v12957_v24, %v4711_v35  ;;  %v4784_v21 = vrot.slane %v13010_v45, 4 }
 0x631   : > { %v4702_v4 = vrot.slane %v4686_v23, 4  ;;  %4734 = vst [vmem:[#allocation2 + $0xc8] sm:$0xff] %v4712_v25  ;;  %v5078_v25 = vld [vmem:[#allocation3 + $0x48] sm:$0xf] }
 0x632   : > { %5021 = vrot.lane.b32.xlu1 %v12795_v8, %s11065_s25 }
 0x633   : > { %v4713_v61 = vsel %vm318_vm0, %v4701_v44, %v4702_v4  ;;  %v4715_v9 = vsel %vm318_vm0, %v4702_v4, %v4703_v12 }
 0x634   : > { %v4714_v22 = vsel %vm569_vm4, %v4684_v33, %v4713_v61  ;;  %v4716_v11 = vsel %vm569_vm4, %v4686_v23, %v4715_v9  ;;  %v4690_v57 = vpop.permute.xlu1 %4689 }
 0x635   : > { %4735 = vst [vmem:[#allocation2 + $0xd0] sm:$0xff] %v4714_v22  ;;  %5025 = vrot.lane.b32.xlu2 %v4996_v63, %s11065_s25  ;;  %v4704_v17 = vrot.slane %v4690_v57, 4 }
 0x636   : > { %4736 = vst [vmem:[#allocation2 + $0xd8] sm:$0xff] %v4716_v11  ;;  %5023 = vrot.lane.b32.xlu0 %v12803_v53, %s11065_s25  ;;  %s14747_s25 = smov 117  }
 0x637   : > { %v13024_v1 = vpop.permute.xlu2 %4773 }
 0x638   : > { %v4692_v24 = vpop.permute.xlu0 %4691  ;;  %v4787_v23 = vrot.slane %v13024_v1, 4 }
 0x639   : > { %v4705_v55 = vrot.slane %v4692_v24, 4 }
 0x63a   : > { %5089 = vrot.lane.b32.xlu1 %v12766_v27, %s11066_s5 }
 0x63b   : > { %v4717_v59 = vsel %vm318_vm0, %v4704_v17, %v4705_v55  ;;  %v4719_v28 = vsel %vm318_vm0, %v4705_v55, %v4706_v60 }
 0x63c   : > { %v4718_v30 = vsel %vm569_vm4, %v4690_v57, %v4717_v59  ;;  %v4720_v20 = vsel %vm569_vm4, %v4692_v24, %v4719_v28  ;;  %v4696_v13 = vpop.permute.xlu1 %4695 }
 0x63d   : > { %4737 = vst [vmem:[#allocation2 + $0xe0] sm:$0xff] %v4718_v30  ;;  %5093 = vrot.lane.b32.xlu2 %v12772_v62, %s11066_s5  ;;  %v4707_v34 = vrot.slane %v4696_v13, 4 }
 0x63e   : > { %4738 = vst [vmem:[#allocation2 + $0xe8] sm:$0xff] %v4720_v20  ;;  %5091 = vrot.lane.b32.xlu0 %v12768_v40, %s11066_s5  ;;  %v5155_v20 = vld [vmem:[#allocation3 + $0x20] sm:$0xf] }
 0x63f   : > { %v4780_v51 = vpop.permute.xlu2 %4779  ;;  %v4721_v56 = vsel %vm318_vm0, %v4706_v60, %v4707_v34 }
 0x640   : > { %v4698_v52 = vpop.permute.xlu0 %4697  ;;  %v4722_v48 = vsel %vm569_vm4, %v12981_v36, %v4721_v56 }
 0x641   : > { %v4708_v29 = vrot.slane %v4698_v52, 4  ;;  %4739 = vst [vmem:[#allocation2 + $0xf0] sm:$0xff] %v4722_v48 }
 0x642   : > { %5095 = vrot.lane.b32.xlu1 %v12786_v47, %s11066_s5 }
 0x643   : > { %v4723_v2 = vsel %vm318_vm0, %v4707_v34, %v4708_v29 }
 0x644   : > { %v4724_v14 = vsel %vm569_vm4, %v4696_v13, %v4723_v2  ;;  %v4764_v6 = vpop.permute.xlu1 %4763  ;;  %vm14746_vm4 = vmmov %vm14743_vm1 }
 0x645   : > { %4740 = vst [vmem:[#allocation2 + $0xf8] sm:$0xff] %v4724_v14  ;;  %5099 = vrot.lane.b32.xlu2 %v12791_v54, %s11066_s5  ;;  %v4782_v32 = vrot.slane %v4764_v6, 4 }
 0x646   : > { %5097 = vrot.lane.b32.xlu0 %v5073_v26, %s11066_s5 }
 0x647   : > { %v13048_v37 = vpop.permute.xlu2 %4847  ;;  %v4791_v58 = vsel %vm318_vm0, %v4781_v31, %v4782_v32 }
 0x648   : > { %v4766_v36 = vpop.permute.xlu0 %4765  ;;  %v4792_v46 = vsel %vm652_vm5, %v12997_v39, %v4791_v58  ;;  %v4865_v52 = vrot.slane %v13048_v37, 4 }
 0x649   : > { %v4783_v7 = vrot.slane %v4766_v36, 4  ;;  %4815 = vst [vmem:[#allocation2 + $0x100] sm:$0xff] %v4792_v46 }
 0x64a   : > { %5101 = vrot.lane.b32.xlu1 %v12797_v49, %s11066_s5 }
 0x64b   : > { %v4793_v19 = vsel %vm318_vm0, %v4782_v32, %v4783_v7  ;;  %v4795_v43 = vsel %vm318_vm0, %v4783_v7, %v4784_v21 }
 0x64c   : > { %v4794_v5 = vsel %vm652_vm5, %v4764_v6, %v4793_v19  ;;  %v4796_v41 = vsel %vm652_vm5, %v4766_v36, %v4795_v43  ;;  %v4770_v42 = vpop.permute.xlu1 %4769  ;;  %v5160_v19 = vld [vmem:[#allocation3 + $0x48] sm:$0xf] }
 0x64d   : > { %4816 = vst [vmem:[#allocation2 + $0x108] sm:$0xff] %v4794_v5  ;;  %5105 = vrot.lane.b32.xlu2 %v12803_v53, %s11066_s5  ;;  %v4785_v39 = vrot.slane %v4770_v42, 4 }
 0x64e   : > { %4817 = vst [vmem:[#allocation2 + $0x110] sm:$0xff] %v4796_v41  ;;  %5103 = vrot.lane.b32.xlu0 %v12795_v8, %s11066_s5 }
 0x64f   : > { %v13064_v44 = vpop.permute.xlu2 %4853  ;;  %v4797_v12 = vsel %vm318_vm0, %v4784_v21, %v4785_v39 }
 0x650   : > { %v4772_v33 = vpop.permute.xlu0 %4771  ;;  %v4798_v4 = vsel %vm652_vm5, %v13010_v45, %v4797_v12  ;;  %v4790_v45 = vrot.slane %v4780_v51, 4  ;;  %v4868_v5 = vrot.slane %v13064_v44, 4 }
 0x651   : > { %v4786_v35 = vrot.slane %v4772_v33, 4  ;;  %4818 = vst [vmem:[#allocation2 + $0x118] sm:$0xff] %v4798_v4 }
 0x652   : > { %5107 = vrot.lane.b32.xlu1 %v5078_v25, %s11066_s5  ;;  %s14753_s5 = smov 19  }
 0x653   : > { %v4799_v61 = vsel %vm318_vm0, %v4786_v35, %v4787_v23 }
 0x654   : > { %v4800_v9 = vsel %vm652_vm5, %v4772_v33, %v4799_v61  ;;  %v4776_v22 = vpop.permute.xlu1 %4775 }
 0x655   : > { %4819 = vst [vmem:[#allocation2 + $0x120] sm:$0xff] %v4800_v9  ;;  %5173 = vrot.lane.b32.xlu2 %v12768_v40, %s11067_s29  ;;  %v4788_v11 = vrot.slane %v4776_v22, 4 }
 0x656   : > { %5171 = vrot.lane.b32.xlu0 %v12766_v27, %s11067_s29 }
 0x657   : > { %v13077_v57 = vpop.permute.xlu2 %4859  ;;  %v4801_v24 = vsel %vm318_vm0, %v4787_v23, %v4788_v11 }
 0x658   : > { %v4778_v63 = vpop.permute.xlu0 %4777  ;;  %v4802_v17 = vsel %vm652_vm5, %v13024_v1, %v4801_v24  ;;  %v4871_v39 = vrot.slane %v13077_v57, 4  ;;  %v5237_v24 = vld [vmem:[#allocation3 + $0x20] sm:$0xf] }
 0x659   : > { %v4789_v60 = vrot.slane %v4778_v63, 4  ;;  %4820 = vst [vmem:[#allocation2 + $0x128] sm:$0xff] %v4802_v17 }
 0x65a   : > { %5175 = vrot.lane.b32.xlu1 %v12772_v62, %s11067_s29 }
 0x65b   : > { %v4803_v55 = vsel %vm318_vm0, %v4788_v11, %v4789_v60  ;;  %v4805_v59 = vsel %vm318_vm0, %v4789_v60, %v4790_v45 }
 0x65c   : > { %v4804_v28 = vsel %vm652_vm5, %v4776_v22, %v4803_v55  ;;  %v4806_v30 = vsel %vm652_vm5, %v4778_v63, %v4805_v59  ;;  %v4844_v13 = vpop.permute.xlu1 %4843  ;;  %vm14748_vm5 = vmmov %vm14743_vm1 }
 0x65d   : > { %4821 = vst [vmem:[#allocation2 + $0x130] sm:$0xff] %v4804_v28  ;;  %5179 = vrot.lane.b32.xlu2 %v5155_v20, %s11067_s29  ;;  %v4863_v51 = vrot.slane %v4844_v13, 4 }
 0x65e   : > { %4822 = vst [vmem:[#allocation2 + $0x138] sm:$0xff] %v4806_v30  ;;  %5177 = vrot.lane.b32.xlu0 %v12786_v47, %s11067_s29 }
 0x65f   : > { %v13091_v34 = vpop.permute.xlu2 %4927 }
 0x660   : > { %v4846_v1 = vpop.permute.xlu0 %4845  ;;  %v4946_v11 = vrot.slane %v13091_v34, 4 }
 0x661   : > { %v4864_v56 = vrot.slane %v4846_v1, 4 }
 0x662   : > { %5181 = vrot.lane.b32.xlu1 %v12791_v54, %s11067_s29 }
 0x663   : > { %v4873_v29 = vsel %vm318_vm0, %v4863_v51, %v4864_v56  ;;  %v4875_v48 = vsel %vm318_vm0, %v4864_v56, %v4865_v52 }
 0x664   : > { %v4874_v2 = vsel %vm735_vm6, %v4844_v13, %v4873_v29  ;;  %v4876_v14 = vsel %vm735_vm6, %v4846_v1, %v4875_v48  ;;  %v4850_v26 = vpop.permute.xlu1 %4849 }
 0x665   : > { %4897 = vst [vmem:[#allocation2 + $0x140] sm:$0xff] %v4874_v2  ;;  %5185 = vrot.lane.b32.xlu2 %v12795_v8, %s11067_s29  ;;  %v4866_v6 = vrot.slane %v4850_v26, 4  ;;  %v13161_v2 = vld [vmem:[#allocation3] sm:$0xff] }
 0x666   : > { %4898 = vst [vmem:[#allocation2 + $0x148] sm:$0xff] %v4876_v14  ;;  %5183 = vrot.lane.b32.xlu0 %v12797_v49, %s11067_s29 }
 0x667   : > { %v4934_v32 = vpop.permute.xlu2 %4933  ;;  %v4877_v36 = vsel %vm318_vm0, %v4865_v52, %v4866_v6  ;;  %v5242_v52 = vld [vmem:[#allocation3 + $0x48] sm:$0xf] }
 0x668   : > { %v4852_v31 = vpop.permute.xlu0 %4851  ;;  %v4878_v58 = vsel %vm735_vm6, %v13048_v37, %v4877_v36 }
 0x669   : > { %v4867_v21 = vrot.slane %v4852_v31, 4  ;;  %4899 = vst [vmem:[#allocation2 + $0x150] sm:$0xff] %v4878_v58  ;;  %v13169_v31 = vld [vmem:[#allocation3 + $0x10] sm:$0xff] }
 0x66a   : > { %5187 = vrot.lane.b32.xlu1 %v12803_v53, %s11067_s29 }
 0x66b   : > { %v4879_v7 = vsel %vm318_vm0, %v4866_v6, %v4867_v21 }
 0x66c   : > { %v4880_v46 = vsel %vm735_vm6, %v4850_v26, %v4879_v7  ;;  %v4856_v43 = vpop.permute.xlu1 %4855 }
 0x66d   : > { %4900 = vst [vmem:[#allocation2 + $0x158] sm:$0xff] %v4880_v46  ;;  %5253 = vrot.lane.b32.xlu2 %v12766_v27, %s11068_s7  ;;  %v4869_v41 = vrot.slane %v4856_v43, 4 }
 0x66e   : > { %5189 = vrot.lane.b32.xlu0 %v5160_v19, %s11067_s29  ;;  %s14757_s29 = smov 118  }
 0x66f   : > { %v13115_v42 = vpop.permute.xlu2 %4939  ;;  %v4881_v33 = vsel %vm318_vm0, %v4868_v5, %v4869_v41  ;;  %v13179_v5 = vld [vmem:[#allocation3 + $0x18] sm:$0xff] }
 0x670   : > { %v4858_v37 = vpop.permute.xlu0 %4857  ;;  %v4882_v12 = vsel %vm735_vm6, %v13064_v44, %v4881_v33  ;;  %v4952_v29 = vrot.slane %v13115_v42, 4  ;;  %v5319_v33 = vld [vmem:[#allocation3 + $0x20] sm:$0xf] }
 0x671   : > { %v4870_v23 = vrot.slane %v4858_v37, 4  ;;  %4901 = vst [vmem:[#allocation2 + $0x160] sm:$0xff] %v4882_v12 }
 0x672   : > { %5255 = vrot.lane.b32.xlu1 %v12768_v40, %s11068_s7 }
 0x673   : > { %v4883_v35 = vsel %vm318_vm0, %v4869_v41, %v4870_v23  ;;  %v4885_v27 = vsel %vm318_vm0, %v4870_v23, %v4871_v39 }
 0x674   : > { %v4884_v4 = vsel %vm735_vm6, %v4856_v43, %v4883_v35  ;;  %v4886_v25 = vsel %vm735_vm6, %v4858_v37, %v4885_v27  ;;  %v4862_v61 = vpop.permute.xlu1 %4861 }
 0x675   : > { %4902 = vst [vmem:[#allocation2 + $0x168] sm:$0xff] %v4884_v4  ;;  %5259 = vrot.lane.b32.xlu2 %v12786_v47, %s11068_s7  ;;  %v4872_v44 = vrot.slane %v4862_v61, 4 }
 0x676   : > { %4903 = vst [vmem:[#allocation2 + $0x170] sm:$0xff] %v4886_v25  ;;  %5257 = vrot.lane.b32.xlu0 %v12772_v62, %s11068_s7 }
 0x677   : > { %v13131_v22 = vpop.permute.xlu2 %5007  ;;  %v4887_v40 = vsel %vm318_vm0, %v4871_v39, %v4872_v44  ;;  %v13185_v39 = vld [vmem:[#allocation3 + $0x28] sm:$0xff] }
 0x678   : > { %v4926_v9 = vpop.permute.xlu0 %4925  ;;  %v4888_v45 = vsel %vm735_vm6, %v13077_v57, %v4887_v40  ;;  %v4949_v57 = vrot.slane %v4934_v32, 4  ;;  %v5316_v32 = vld [vmem:[#allocation3 + $0x8] sm:$0xff]  ;;  %vm14749_vm6 = vmmov %vm14743_vm1 }
 0x679   : > { %v4945_v63 = vrot.slane %v4926_v9, 4  ;;  %4904 = vst [vmem:[#allocation2 + $0x178] sm:$0xff] %v4888_v45 }
 0x67a   : > { %5261 = vrot.lane.b32.xlu1 %v5237_v24, %s11068_s7  ;;  %v13205_v24 = vld [vmem:[#allocation3 + $0x40] sm:$0xff] }
 0x67b   : > { %v4955_v60 = vsel %vm318_vm0, %v4945_v63, %v4946_v11 }
 0x67c   : > { %v4956_v62 = vsel %vm818_vm7, %v4926_v9, %v4955_v60  ;;  %v4930_v47 = vpop.permute.xlu1 %4929  ;;  %v13197_v9 = vld [vmem:[#allocation3 + $0x30] sm:$0xff]  ;;  %v13207_v60 = vld [vmem:[#allocation3 + $0x38] sm:$0xff] }
 0x67d   : > { %4979 = vst [vmem:[#allocation2 + $0x180] sm:$0xff] %v4956_v62  ;;  %5265 = vrot.lane.b32.xlu2 %v12797_v49, %s11068_s7  ;;  %v4947_v17 = vrot.slane %v4930_v47, 4 }
 0x67e   : > { %5263 = vrot.lane.b32.xlu0 %v12791_v54, %s11068_s7 }
 0x67f   : > { %v13144_v59 = vpop.permute.xlu2 %5013  ;;  %v4957_v28 = vsel %vm318_vm0, %v4946_v11, %v4947_v17 }
 0x680   : > { %v4932_v55 = vpop.permute.xlu0 %4931  ;;  %v4958_v20 = vsel %vm818_vm7, %v13091_v34, %v4957_v28  ;;  %v5030_v4 = vrot.slane %v13144_v59, 4 }
 0x681   : > { %v4948_v30 = vrot.slane %v4932_v55, 4  ;;  %4980 = vst [vmem:[#allocation2 + $0x188] sm:$0xff] %v4958_v20  ;;  %v5324_v20 = vld [vmem:[#allocation3 + $0x48] sm:$0xf] }
 0x682   : > { %5267 = vrot.lane.b32.xlu1 %v12795_v8, %s11068_s7 }
 0x683   : > { %v4959_v13 = vsel %vm318_vm0, %v4947_v17, %v4948_v30  ;;  %v4961_v1 = vsel %vm318_vm0, %v4948_v30, %v4949_v57 }
 0x684   : > { %v4960_v54 = vsel %vm818_vm7, %v4930_v47, %v4959_v13  ;;  %v4962_v49 = vsel %vm818_vm7, %v4932_v55, %v4961_v1  ;;  %v4936_v51 = vpop.permute.xlu1 %4935 }
 0x685   : > { %4981 = vst [vmem:[#allocation2 + $0x190] sm:$0xff] %v4960_v54  ;;  %5271 = vrot.lane.b32.xlu2 %v5242_v52, %s11068_s7  ;;  %v4950_v48 = vrot.slane %v4936_v51, 4 }
 0x686   : > { %4982 = vst [vmem:[#allocation2 + $0x198] sm:$0xff] %v4962_v49  ;;  %5269 = vrot.lane.b32.xlu0 %v12803_v53, %s11068_s7  ;;  %s8515_s7 = sshll.u32 %s11219_s8, 6 }
 0x687   : > { %v13158_v56 = vpop.permute.xlu2 %5019 }
 0x688   : > { %v4938_v34 = vpop.permute.xlu0 %4937  ;;  %v5033_v55 = vrot.slane %v13158_v56, 4 }
 0x689   : > { %v4951_v8 = vrot.slane %v4938_v34, 4 }
 0x68a   : > { %5335 = vrot.lane.b32.xlu1 %v13161_v2, %s11069_s30 }
 0x68b   : > { %v4963_v14 = vsel %vm318_vm0, %v4950_v48, %v4951_v8  ;;  %v4965_v26 = vsel %vm318_vm0, %v4951_v8, %v4952_v29 }
 0x68c   : > { %v4964_v6 = vsel %vm818_vm7, %v4936_v51, %v4963_v14  ;;  %v4966_v53 = vsel %vm818_vm7, %v4938_v34, %v4965_v26  ;;  %v4942_v36 = vpop.permute.xlu1 %4941 }
 0x68d   : > { %4983 = vst [vmem:[#allocation2 + $0x1a0] sm:$0xff] %v4964_v6  ;;  %5339 = vrot.lane.b32.xlu2 %v13169_v31, %s11069_s30  ;;  %v4953_v21 = vrot.slane %v4942_v36, 4 }
 0x68e   : > { %4984 = vst [vmem:[#allocation2 + $0x1a8] sm:$0xff] %v4966_v53  ;;  %5337 = vrot.lane.b32.xlu0 %v5316_v32, %s11069_s30 }
 0x68f   : > { %v13174_v7 = vpop.permute.xlu2 %5025  ;;  %v4967_v46 = vsel %vm318_vm0, %v4952_v29, %v4953_v21 }
 0x690   : > { %v4944_v58 = vpop.permute.xlu0 %4943  ;;  %v4968_v43 = vsel %vm818_vm7, %v13115_v42, %v4967_v46  ;;  %v5027_v42 = vrot.slane %v13131_v22, 4 }
 0x691   : > { %v4954_v19 = vrot.slane %v4944_v58, 4  ;;  %4985 = vst [vmem:[#allocation2 + $0x1b0] sm:$0xff] %v4968_v43 }
 0x692   : > { %5341 = vrot.lane.b32.xlu1 %v13179_v5, %s11069_s30 }
 0x693   : > { %v4969_v41 = vsel %vm318_vm0, %v4953_v21, %v4954_v19 }
 0x694   : > { %v4970_v37 = vsel %vm818_vm7, %v4942_v36, %v4969_v41  ;;  %v5010_v23 = vpop.permute.xlu1 %5009  ;;  %vm14750_vm7 = vmmov %vm14743_vm1 }
 0x695   : > { %4986 = vst [vmem:[#allocation2 + $0x1b8] sm:$0xff] %v4970_v37  ;;  %5345 = vrot.lane.b32.xlu2 %v13185_v39, %s11069_s30  ;;  %v5028_v12 = vrot.slane %v5010_v23, 4  ;;  %v10565_v37 = vld [vmem:[#allocation2 + $0x15c] sm:$0xf0] }
 0x696   : > { %5343 = vrot.lane.b32.xlu0 %v5319_v33, %s11069_s30 }
 0x697   : > { %v13191_v27 = vpop.permute.xlu2 %5093  ;;  %v5037_v25 = vsel %vm318_vm0, %v5027_v42, %v5028_v12 }
 0x698   : > { %v5012_v35 = vpop.permute.xlu0 %5011  ;;  %v5038_v44 = vsel %vm901_vm8, %v13131_v22, %v5037_v25  ;;  %v5111_v46 = vrot.slane %v13191_v27, 4  ;;  %v10557_v25 = vld [vmem:[#allocation2 + $0x11c] sm:$0xf0] }
 0x699   : > { %v5029_v61 = vrot.slane %v5012_v35, 4  ;;  %5061 = vst [vmem:[#allocation2 + $0x1c0] sm:$0xff] %v5038_v44 }
 0x69a   : > { %5347 = vrot.lane.b32.xlu1 %v13197_v9, %s11069_s30 }
 0x69b   : > { %v5039_v11 = vsel %vm318_vm0, %v5028_v12, %v5029_v61  ;;  %v5041_v40 = vsel %vm318_vm0, %v5029_v61, %v5030_v4  ;;  %v9582_v12 = vld [vmem:[#allocation2 + $0x140] sm:$0xf] }
 0x69c   : > { %v5040_v63 = vsel %vm901_vm8, %v5010_v23, %v5039_v11  ;;  %v5042_v45 = vsel %vm901_vm8, %v5012_v35, %v5041_v40  ;;  %v5016_v22 = vpop.permute.xlu1 %5015  ;;  %v9583_v35 = vor.u32 %v10565_v37, %v9582_v12  ;;  %v9550_v11 = vld [vmem:[#allocation2 + $0x100] sm:$0xf] }
 0x69d   : > { %5062 = vst [vmem:[#allocation2 + $0x1c8] sm:$0xff] %v5040_v63  ;;  %5351 = vrot.lane.b32.xlu2 %v13205_v24, %s11069_s30  ;;  %v5031_v62 = vrot.slane %v5016_v22, 4 }
 0x69e   : > { %5063 = vst [vmem:[#allocation2 + $0x1d0] sm:$0xff] %v5042_v45  ;;  %5349 = vrot.lane.b32.xlu0 %v13207_v60, %s11069_s30  ;;  %v9551_v45 = vor.u32 %v10557_v25, %v9550_v11 }
 0x69f   : > { %v13213_v17 = vpop.permute.xlu2 %5099  ;;  %v5043_v57 = vsel %vm318_vm0, %v5030_v4, %v5031_v62  ;;  %v10549_v62 = vld [vmem:[#allocation2 + $0xdc] sm:$0xf0] }
 0x6a0   : > { %v5018_v47 = vpop.permute.xlu0 %5017  ;;  %v5044_v30 = vsel %vm901_vm8, %v13144_v59, %v5043_v57  ;;  %v5036_v59 = vrot.slane %v13174_v7, 4  ;;  %v9646_v6 = vld [vmem:[#allocation2 + $0x1c0] sm:$0xf]  ;;  %v5406_v57 = vld [vmem:[#allocation3 + $0x48] sm:$0xf] }
 0x6a1   : > { %v5032_v28 = vrot.slane %v5018_v47, 4  ;;  %5064 = vst [vmem:[#allocation2 + $0x1d8] sm:$0xff] %v5044_v30  ;;  %v9614_v7 = vld [vmem:[#allocation2 + $0x180] sm:$0xf] }
 0x6a2   : > { %5353 = vrot.lane.b32.xlu1 %v5324_v20, %s11069_s30  ;;  %v5114_v20 = vrot.slane %v13213_v17, 4  ;;  %s10737_s30 = sshll.u32 %s11131_s19, 6 }
 0x6a3   : > { %v5045_v13 = vsel %vm318_vm0, %v5032_v28, %v5033_v55 }
 0x6a4   : > { %v5046_v1 = vsel %vm901_vm8, %v5018_v47, %v5045_v13  ;;  %v5022_v54 = vpop.permute.xlu1 %5021  ;;  %v9518_v47 = vld [vmem:[#allocation2 + $0xc0] sm:$0xf] }
 0x6a5   : > { %5065 = vst [vmem:[#allocation2 + $0x1e0] sm:$0xff] %v5046_v1  ;;  %5419 = vrot.lane.b32.xlu2 %v5316_v32, %s11070_s6  ;;  %v5034_v49 = vrot.slane %v5022_v54, 4  ;;  %v5401_v32 = vld [vmem:[#allocation3 + $0x20] sm:$0xf]  ;;  %v9519_v28 = vor.u32 %v10549_v62, %v9518_v47 }
 0x6a6   : > { %5417 = vrot.lane.b32.xlu0 %v13161_v2, %s11070_s6 }
 0x6a7   : > { %v13225_v51 = vpop.permute.xlu2 %5105  ;;  %v5047_v34 = vsel %vm318_vm0, %v5033_v55, %v5034_v49  ;;  %v13262_v55 = vld [vmem:[#allocation3 + $0x4] sm:$0xff] }
 0x6a8   : > { %v5024_v52 = vpop.permute.xlu0 %5023  ;;  %v5048_v48 = vsel %vm901_vm8, %v13158_v56, %v5047_v34  ;;  %v10573_v56 = vld [vmem:[#allocation2 + $0x19c] sm:$0xf0] }
 0x6a9   : > { %v5035_v29 = vrot.slane %v5024_v52, 4  ;;  %5066 = vst [vmem:[#allocation2 + $0x1e8] sm:$0xff] %v5048_v48  ;;  %v9615_v41 = vor.u32 %v10573_v56, %v9614_v7  ;;  %v10533_v48 = vld [vmem:[#allocation2 + $0x5c] sm:$0xf0] }
 0x6aa   : > { %5421 = vrot.lane.b32.xlu1 %v13169_v31, %s11070_s6 }
 0x6ab   : > { %v5049_v8 = vsel %vm318_vm0, %v5034_v49, %v5035_v29  ;;  %v5051_v14 = vsel %vm318_vm0, %v5035_v29, %v5036_v59  ;;  %v5117_v49 = vrot.slane %v13225_v51, 4 }
 0x6ac   : > { %v5050_v2 = vsel %vm901_vm8, %v5022_v54, %v5049_v8  ;;  %v5052_v26 = vsel %vm901_vm8, %v5024_v52, %v5051_v14  ;;  %v10581_v53 = vld [vmem:[#allocation2 + $0x1dc] sm:$0xf0]  ;;  %v5090_v21 = vpop.permute.xlu1 %5089  ;;  %vm14751_vm8 = vmmov %vm14743_vm1 }
 0x6ad   : > { %5067 = vst [vmem:[#allocation2 + $0x1f0] sm:$0xff] %v5050_v2  ;;  %v9647_v36 = vor.u32 %v10581_v53, %v9646_v6  ;;  %5425 = vrot.lane.b32.xlu2 %v5401_v32, %s11070_s6  ;;  %v5109_v19 = vrot.slane %v5090_v21, 4  ;;  %v9486_v54 = vld [vmem:[#allocation2 + $0x80] sm:$0xf]  ;;  %v13280_v53 = vld [vmem:[#allocation3 + $0x2c] sm:$0xff] }
 0x6ae   : > { %5068 = vst [vmem:[#allocation2 + $0x1f8] sm:$0xff] %v5052_v26  ;;  %5423 = vrot.lane.b32.xlu0 %v13179_v5, %s11070_s6  ;;  %v9454_v6 = vld [vmem:[#allocation2 + $0x40] sm:$0xf]  ;;  %v13282_v32 = vld [vmem:[#allocation3 + $0xc] sm:$0xff] }
 0x6af   : > { %7883 = vmatpush.bf16.msra.mxu3 %v9647_v36  ;;  %v13240_v31 = vpop.permute.xlu2 %5173 }
 0x6b0   : > { %v5092_v58 = vpop.permute.xlu0 %5091 }
 0x6b1   : > { %v5110_v43 = vrot.slane %v5092_v58, 4 }
 0x6b2   : > { %5427 = vrot.lane.b32.xlu1 %v13185_v39, %s11070_s6 }
 0x6b3   : > { %v5119_v33 = vsel %vm318_vm0, %v5109_v19, %v5110_v43  ;;  %v5121_v23 = vsel %vm318_vm0, %v5110_v43, %v5111_v46  ;;  %7884 = vmatpush.bf16.msra.mxu3 %v9615_v41  ;;  %v5192_v19 = vrot.slane %v13240_v31, 4 }
 0x6b4   : > { %v5120_v5 = vsel %vm984_vm9, %v5090_v21, %v5119_v33  ;;  %v5122_v42 = vsel %vm984_vm9, %v5092_v58, %v5121_v23  ;;  %v5096_v4 = vpop.permute.xlu1 %5095  ;;  %v10525_v21 = vld [vmem:[#allocation2 + $0x1c] sm:$0xf0]  ;;  %v13294_v23 = vld [vmem:[#allocation3 + $0x34] sm:$0xff] }
 0x6b5   : > { %5143 = vst [vmem:[#allocation2 + $0x200] sm:$0xff] %v5120_v5  ;;  %5431 = vrot.lane.b32.xlu2 %v13207_v60, %s11070_s6  ;;  %v5112_v61 = vrot.slane %v5096_v4, 4 }
 0x6b6   : > { %5144 = vst [vmem:[#allocation2 + $0x208] sm:$0xff] %v5122_v42  ;;  %5429 = vrot.lane.b32.xlu0 %v13197_v9, %s11070_s6 }
 0x6b7   : > { %7885 = vmatpush.bf16.msra.mxu3 %v9583_v35  ;;  %v13253_v39 = vpop.permute.xlu2 %5179  ;;  %v5123_v40 = vsel %vm318_vm0, %v5111_v46, %v5112_v61  ;;  %v9422_v46 = vld [vmem:[#allocation2] sm:$0xf] }
 0x6b8   : > { %v5098_v44 = vpop.permute.xlu0 %5097  ;;  %v5124_v22 = vsel %vm984_vm9, %v13191_v27, %v5123_v40  ;;  %v10541_v27 = vld [vmem:[#allocation2 + $0x9c] sm:$0xf0]  ;;  %v9423_v37 = vor.u32 %v10525_v21, %v9422_v46  ;;  %v5195_v25 = vrot.slane %v13253_v39, 4 }
 0x6b9   : > { %v5113_v63 = vrot.slane %v5098_v44, 4  ;;  %5145 = vst [vmem:[#allocation2 + $0x210] sm:$0xff] %v5124_v22  ;;  %v9487_v34 = vor.u32 %v10541_v27, %v9486_v54 }
 0x6ba   : > { %5433 = vrot.lane.b32.xlu1 %v13205_v24, %s11070_s6 }
 0x6bb   : > { %v5125_v60 = vsel %vm318_vm0, %v5112_v61, %v5113_v63  ;;  %7886 = vmatpush.bf16.msra.mxu3 %v9551_v45 }
 0x6bc   : > { %v5126_v9 = vsel %vm984_vm9, %v5096_v4, %v5125_v60  ;;  %v5102_v30 = vpop.permute.xlu1 %5101 }
 0x6bd   : > { %5146 = vst [vmem:[#allocation2 + $0x218] sm:$0xff] %v5126_v9  ;;  %5515 = vrot.lane.b32.xlu2 %v13262_v55, %s14735_s20  ;;  %v5115_v13 = vrot.slane %v5102_v30, 4 }
 0x6be   : > { %5435 = vrot.lane.b32.xlu0 %v5406_v57, %s11070_s6 }
 0x6bf   : > { %7887 = vmatpush.bf16.msra.mxu3 %v9519_v28  ;;  %v13268_v1 = vpop.permute.xlu2 %5185  ;;  %v5127_v52 = vsel %vm318_vm0, %v5114_v20, %v5115_v13 }
 0x6c0   : > { %v5104_v24 = vpop.permute.xlu0 %5103  ;;  %v5128_v29 = vsel %vm984_vm9, %v13213_v17, %v5127_v52  ;;  %v9455_v17 = vor.u32 %v10533_v48, %v9454_v6  ;;  %v5198_v60 = vrot.slane %v13268_v1, 4 }
 0x6c1   : > { %v5116_v59 = vrot.slane %v5104_v24, 4  ;;  %5147 = vst [vmem:[#allocation2 + $0x220] sm:$0xff] %v5128_v29 }
 0x6c2   : > { %5597 = vrot.lane.b32.xlu1 %v13262_v55, %s14736_s21 }
 0x6c3   : > { %v5129_v8 = vsel %vm318_vm0, %v5115_v13, %v5116_v59  ;;  %v5131_v14 = vsel %vm318_vm0, %v5116_v59, %v5117_v49  ;;  %7888 = vmatpush.bf16.msra.mxu3 %v9487_v34 }
 0x6c4   : > { %v5130_v2 = vsel %vm984_vm9, %v5102_v30, %v5129_v8  ;;  %v5132_v26 = vsel %vm984_vm9, %v5104_v24, %v5131_v14  ;;  %v5108_v36 = vpop.permute.xlu1 %5107 }
 0x6c5   : > { %5148 = vst [vmem:[#allocation2 + $0x228] sm:$0xff] %v5130_v2  ;;  %5607 = vrot.lane.b32.xlu2 %v13280_v53, %s14736_s21  ;;  %v5118_v56 = vrot.slane %v5108_v36, 4 }
 0x6c6   : > { %5149 = vst [vmem:[#allocation2 + $0x230] sm:$0xff] %v5132_v26  ;;  %5599 = vrot.lane.b32.xlu0 %v13282_v32, %s14736_s21 }
 0x6c7   : > { %7889 = vmatpush.bf16.msra.mxu3 %v9455_v17  ;;  %v13288_v7 = vpop.permute.xlu2 %5253  ;;  %v5133_v43 = vsel %vm318_vm0, %v5117_v49, %v5118_v56 }
 0x6c8   : > { %v5172_v58 = vpop.permute.xlu0 %5171  ;;  %v5134_v33 = vsel %vm984_vm9, %v13225_v51, %v5133_v43  ;;  %v5273_v8 = vrot.slane %v13288_v7, 4  ;;  %vm14752_vm9 = vcmask 1039360  }
 0x6c9   : > { %v5191_v41 = vrot.slane %v5172_v58, 4  ;;  %5150 = vst [vmem:[#allocation2 + $0x238] sm:$0xff] %v5134_v33  ;;  %vm14759_vm14 = vmmov %vm14752_vm9 }
 0x6ca   : > { %5609 = vrot.lane.b32.xlu1 %v13294_v23, %s14736_s21 }
 0x6cb   : > { %v5201_v5 = vsel %vm318_vm0, %v5191_v41, %v5192_v19  ;;  %7890 = vmatpush.bf16.msra.mxu3 %v9423_v37 }
 0x6cc   : > { %v5202_v42 = vsel %vm1067_vm10, %v5172_v58, %v5201_v5  ;;  %v5176_v12 = vpop.permute.xlu1 %5175 }
 0x6cd   : > { %5225 = vst [vmem:[#allocation2 + $0x240] sm:$0xff] %v5202_v42  ;;  %6255 = vrot.lane.b32.xlu2 %v13282_v32, %s14737_s26  ;;  %v5193_v51 = vrot.slane %v5176_v12, 4 }
 0x6ce   : > { %6253 = vrot.lane.b32.xlu0 %v13262_v55, %s14737_s26 }
 0x6cf   : > { %v13304_v4 = vpop.permute.xlu2 %5259  ;;  %v5203_v61 = vsel %vm318_vm0, %v5192_v19, %v5193_v51 }
 0x6d0   : > { %v5178_v35 = vpop.permute.xlu0 %5177  ;;  %v5204_v11 = vsel %vm1067_vm10, %v13240_v31, %v5203_v61  ;;  %v5276_v26 = vrot.slane %v13304_v4, 4 }
 0x6d1   : > { %v5194_v44 = vrot.slane %v5178_v35, 4  ;;  %5226 = vst [vmem:[#allocation2 + $0x248] sm:$0xff] %v5204_v11 }
 0x6d2   : > { %6263 = vrot.lane.b32.xlu1 %v13280_v53, %s14737_s26 }
 0x6d3   : > { %v5205_v40 = vsel %vm318_vm0, %v5193_v51, %v5194_v44  ;;  %v5207_v63 = vsel %vm318_vm0, %v5194_v44, %v5195_v25 }
 0x6d4   : > { %v5206_v45 = vsel %vm1067_vm10, %v5176_v12, %v5205_v40  ;;  %v5208_v22 = vsel %vm1067_vm10, %v5178_v35, %v5207_v63  ;;  %v5182_v39 = vpop.permute.xlu1 %5181 }
 0x6d5   : > { %5227 = vst [vmem:[#allocation2 + $0x250] sm:$0xff] %v5206_v45  ;;  %5517 = vrot.lane.b32.xlu2 %v13282_v32, %s14735_s20  ;;  %v5196_v9 = vrot.slane %v5182_v39, 4 }
 0x6d6   : > { %5228 = vst [vmem:[#allocation2 + $0x258] sm:$0xff] %v5208_v22  ;;  %6265 = vrot.lane.b32.xlu0 %v13294_v23, %s14737_s26 }
 0x6d7   : > { %v13320_v62 = vpop.permute.xlu2 %5265 }
 0x6d8   : > { %v5184_v31 = vpop.permute.xlu0 %5183  ;;  %v5279_v37 = vrot.slane %v13320_v62, 4 }
 0x6d9   : > { %v5197_v47 = vrot.slane %v5184_v31, 4 }
 0x6da   : > { %5525 = vrot.lane.b32.xlu1 %v13280_v53, %s14735_s20 }
 0x6db   : > { %v5209_v57 = vsel %vm318_vm0, %v5196_v9, %v5197_v47  ;;  %v5211_v28 = vsel %vm318_vm0, %v5197_v47, %v5198_v60 }
 0x6dc   : > { %v5210_v30 = vsel %vm1067_vm10, %v5182_v39, %v5209_v57  ;;  %v5212_v27 = vsel %vm1067_vm10, %v5184_v31, %v5211_v28  ;;  %v5188_v20 = vpop.permute.xlu1 %5187 }
 0x6dd   : > { %5229 = vst [vmem:[#allocation2 + $0x260] sm:$0xff] %v5210_v30  ;;  %6171 = vrot.lane.b32.xlu2 %v13262_v55, %s14738_s9  ;;  %v5199_v13 = vrot.slane %v5188_v20, 4 }
 0x6de   : > { %5230 = vst [vmem:[#allocation2 + $0x268] sm:$0xff] %v5212_v27  ;;  %5527 = vrot.lane.b32.xlu0 %v13294_v23, %s14735_s20 }
 0x6df   : > { %v5272_v54 = vpop.permute.xlu2 %5271  ;;  %v5213_v49 = vsel %vm318_vm0, %v5198_v60, %v5199_v13 }
 0x6e0   : > { %v5190_v24 = vpop.permute.xlu0 %5189  ;;  %v5214_v59 = vsel %vm1067_vm10, %v13268_v1, %v5213_v49 }
 0x6e1   : > { %v5200_v52 = vrot.slane %v5190_v24, 4  ;;  %5231 = vst [vmem:[#allocation2 + $0x270] sm:$0xff] %v5214_v59 }
 0x6e2   : > { %6173 = vrot.lane.b32.xlu1 %v13282_v32, %s14738_s9 }
 0x6e3   : > { %v5215_v34 = vsel %vm318_vm0, %v5199_v13, %v5200_v52 }
 0x6e4   : > { %v5216_v29 = vsel %vm1067_vm10, %v5188_v20, %v5215_v34  ;;  %v5256_v48 = vpop.permute.xlu1 %5255  ;;  %vm14754_vm10 = vcmask 973824  }
 0x6e5   : > { %5232 = vst [vmem:[#allocation2 + $0x278] sm:$0xff] %v5216_v29  ;;  %6183 = vrot.lane.b32.xlu2 %v13294_v23, %s14738_s9  ;;  %v5274_v14 = vrot.slane %v5256_v48, 4 }
 0x6e6   : > { %6181 = vrot.lane.b32.xlu0 %v13280_v53, %s14738_s9 }
 0x6e7   : > { %v13345_v2 = vpop.permute.xlu2 %5339  ;;  %v5283_v6 = vsel %vm318_vm0, %v5273_v8, %v5274_v14 }
 0x6e8   : > { %v5258_v1 = vpop.permute.xlu0 %5257  ;;  %v5284_v36 = vsel %vm1150_vm11, %v13288_v7, %v5283_v6  ;;  %v5357_v47 = vrot.slane %v13345_v2, 4 }
 0x6e9   : > { %v5275_v17 = vrot.slane %v5258_v1, 4  ;;  %5307 = vst [vmem:[#allocation2 + $0x280] sm:$0xff] %v5284_v36 }
 0x6ea   : > { %6089 = vrot.lane.b32.xlu1 %v13262_v55, %s14739_s10 }
 0x6eb   : > { %v5285_v21 = vsel %vm318_vm0, %v5274_v14, %v5275_v17  ;;  %v5287_v56 = vsel %vm318_vm0, %v5275_v17, %v5276_v26 }
 0x6ec   : > { %v5286_v58 = vsel %vm1150_vm11, %v5256_v48, %v5285_v21  ;;  %v5288_v46 = vsel %vm1150_vm11, %v5258_v1, %v5287_v56  ;;  %v5262_v19 = vpop.permute.xlu1 %5261 }
 0x6ed   : > { %5308 = vst [vmem:[#allocation2 + $0x288] sm:$0xff] %v5286_v58  ;;  %6099 = vrot.lane.b32.xlu2 %v13280_v53, %s14739_s10  ;;  %v5277_v7 = vrot.slane %v5262_v19, 4 }
 0x6ee   : > { %5309 = vst [vmem:[#allocation2 + $0x290] sm:$0xff] %v5288_v46  ;;  %6091 = vrot.lane.b32.xlu0 %v13282_v32, %s14739_s10 }
 0x6ef   : > { %v13361_v41 = vpop.permute.xlu2 %5345  ;;  %v5289_v33 = vsel %vm318_vm0, %v5276_v26, %v5277_v7 }
 0x6f0   : > { %v5264_v43 = vpop.permute.xlu0 %5263  ;;  %v5290_v42 = vsel %vm1150_vm11, %v13304_v4, %v5289_v33  ;;  %v5282_v4 = vrot.slane %v5272_v54, 4  ;;  %v5360_v1 = vrot.slane %v13361_v41, 4 }
 0x6f1   : > { %v5278_v5 = vrot.slane %v5264_v43, 4  ;;  %5310 = vst [vmem:[#allocation2 + $0x298] sm:$0xff] %v5290_v42 }
 0x6f2   : > { %6101 = vrot.lane.b32.xlu1 %v13294_v23, %s14739_s10 }
 0x6f3   : > { %v5291_v12 = vsel %vm318_vm0, %v5278_v5, %v5279_v37 }
 0x6f4   : > { %v5292_v51 = vsel %vm1150_vm11, %v5264_v43, %v5291_v12  ;;  %v5268_v35 = vpop.permute.xlu1 %5267 }
 0x6f5   : > { %5311 = vst [vmem:[#allocation2 + $0x2a0] sm:$0xff] %v5292_v51  ;;  %6009 = vrot.lane.b32.xlu2 %v13282_v32, %s14740_s12  ;;  %v5280_v25 = vrot.slane %v5268_v35, 4 }
 0x6f6   : > { %6007 = vrot.lane.b32.xlu0 %v13262_v55, %s14740_s12 }
 0x6f7   : > { %v13375_v44 = vpop.permute.xlu2 %5351  ;;  %v5293_v11 = vsel %vm318_vm0, %v5279_v37, %v5280_v25 }
 0x6f8   : > { %v5270_v61 = vpop.permute.xlu0 %5269  ;;  %v5294_v63 = vsel %vm1150_vm11, %v13320_v62, %v5293_v11  ;;  %v5363_v17 = vrot.slane %v13375_v44, 4 }
 0x6f9   : > { %v5281_v40 = vrot.slane %v5270_v61, 4  ;;  %5312 = vst [vmem:[#allocation2 + $0x2a8] sm:$0xff] %v5294_v63 }
 0x6fa   : > { %6017 = vrot.lane.b32.xlu1 %v13280_v53, %s14740_s12 }
 0x6fb   : > { %v5295_v45 = vsel %vm318_vm0, %v5280_v25, %v5281_v40  ;;  %v5297_v22 = vsel %vm318_vm0, %v5281_v40, %v5282_v4 }
 0x6fc   : > { %v5296_v39 = vsel %vm1150_vm11, %v5268_v35, %v5295_v45  ;;  %v5298_v31 = vsel %vm1150_vm11, %v5270_v61, %v5297_v22  ;;  %v5336_v60 = vpop.permute.xlu1 %5335  ;;  %vm14755_vm11 = vmmov %vm14754_vm10 }
 0x6fd   : > { %5313 = vst [vmem:[#allocation2 + $0x2b0] sm:$0xff] %v5296_v39  ;;  %5925 = vrot.lane.b32.xlu2 %v13262_v55, %s14741_s13  ;;  %v5355_v57 = vrot.slane %v5336_v60, 4 }
 0x6fe   : > { %5314 = vst [vmem:[#allocation2 + $0x2b8] sm:$0xff] %v5298_v31  ;;  %6019 = vrot.lane.b32.xlu0 %v13294_v23, %s14740_s12 }
 0x6ff   : > { %v13390_v9 = vpop.permute.xlu2 %5419 }
 0x700   : > { %v5338_v62 = vpop.permute.xlu0 %5337  ;;  %v5438_v5 = vrot.slane %v13390_v9, 4 }
 0x701   : > { %v5356_v28 = vrot.slane %v5338_v62, 4 }
 0x702   : > { %5927 = vrot.lane.b32.xlu1 %v13282_v32, %s14741_s13 }
 0x703   : > { %v5365_v30 = vsel %vm318_vm0, %v5355_v57, %v5356_v28  ;;  %v5367_v27 = vsel %vm318_vm0, %v5356_v28, %v5357_v47 }
 0x704   : > { %v5366_v20 = vsel %vm1233_vm12, %v5336_v60, %v5365_v30  ;;  %v5368_v13 = vsel %vm1233_vm12, %v5338_v62, %v5367_v27  ;;  %v5342_v24 = vpop.permute.xlu1 %5341 }
 0x705   : > { %5389 = vst [vmem:[#allocation2 + $0x2c0] sm:$0xff] %v5366_v20  ;;  %5937 = vrot.lane.b32.xlu2 %v13294_v23, %s14741_s13  ;;  %v5358_v54 = vrot.slane %v5342_v24, 4 }
 0x706   : > { %5390 = vst [vmem:[#allocation2 + $0x2c8] sm:$0xff] %v5368_v13  ;;  %5935 = vrot.lane.b32.xlu0 %v13280_v53, %s14741_s13 }
 0x707   : > { %v5426_v52 = vpop.permute.xlu2 %5425  ;;  %v5369_v59 = vsel %vm318_vm0, %v5357_v47, %v5358_v54 }
 0x708   : > { %v5344_v49 = vpop.permute.xlu0 %5343  ;;  %v5370_v29 = vsel %vm1233_vm12, %v13345_v2, %v5369_v59 }
 0x709   : > { %v5359_v34 = vrot.slane %v5344_v49, 4  ;;  %5391 = vst [vmem:[#allocation2 + $0x2d0] sm:$0xff] %v5370_v29 }
 0x70a   : > { %6499 = vrot.lane.b32.xlu1 %v13262_v55, %s11083_s11 }
 0x70b   : > { %v5371_v48 = vsel %vm318_vm0, %v5358_v54, %v5359_v34 }
 0x70c   : > { %v5372_v8 = vsel %vm1233_vm12, %v5342_v24, %v5371_v48  ;;  %v5348_v14 = vpop.permute.xlu1 %5347 }
 0x70d   : > { %5392 = vst [vmem:[#allocation2 + $0x2d8] sm:$0xff] %v5372_v8  ;;  %6509 = vrot.lane.b32.xlu2 %v13280_v53, %s11083_s11  ;;  %v5361_v26 = vrot.slane %v5348_v14, 4 }
 0x70e   : > { %6501 = vrot.lane.b32.xlu0 %v13282_v32, %s11083_s11 }
 0x70f   : > { %v13415_v6 = vpop.permute.xlu2 %5431  ;;  %v5373_v36 = vsel %vm318_vm0, %v5360_v1, %v5361_v26 }
 0x710   : > { %v5350_v2 = vpop.permute.xlu0 %5349  ;;  %v5374_v56 = vsel %vm1233_vm12, %v13361_v41, %v5373_v36  ;;  %v5444_v28 = vrot.slane %v13415_v6, 4 }
 0x711   : > { %v5362_v21 = vrot.slane %v5350_v2, 4  ;;  %5393 = vst [vmem:[#allocation2 + $0x2e0] sm:$0xff] %v5374_v56 }
 0x712   : > { %6511 = vrot.lane.b32.xlu1 %v13294_v23, %s11083_s11 }
 0x713   : > { %v5375_v58 = vsel %vm318_vm0, %v5361_v26, %v5362_v21  ;;  %v5377_v46 = vsel %vm318_vm0, %v5362_v21, %v5363_v17 }
 0x714   : > { %v5376_v19 = vsel %vm1233_vm12, %v5348_v14, %v5375_v58  ;;  %v5378_v7 = vsel %vm1233_vm12, %v5350_v2, %v5377_v46  ;;  %v5354_v43 = vpop.permute.xlu1 %5353 }
 0x715   : > { %5394 = vst [vmem:[#allocation2 + $0x2e8] sm:$0xff] %v5376_v19  ;;  %5845 = vrot.lane.b32.xlu2 %v13282_v32, %s14742_s24  ;;  %v5364_v41 = vrot.slane %v5354_v43, 4  ;;  %v13500_v43 = vld [vmem:[#allocation3 + $0x14] sm:$0xff] }
 0x716   : > { %5395 = vst [vmem:[#allocation2 + $0x2f0] sm:$0xff] %v5378_v7  ;;  %5843 = vrot.lane.b32.xlu0 %v13262_v55, %s14742_s24 }
 0x717   : > { %v5516_v33 = vpop.permute.xlu2 %5515  ;;  %v5379_v42 = vsel %vm318_vm0, %v5363_v17, %v5364_v41 }
 0x718   : > { %v5418_v37 = vpop.permute.xlu0 %5417  ;;  %v5380_v51 = vsel %vm1233_vm12, %v13375_v44, %v5379_v42  ;;  %v5441_v44 = vrot.slane %v5426_v52, 4  ;;  %v5535_v29 = vrot.slane %v5516_v33, 4  ;;  %vm14756_vm12 = vcmask 220160  }
 0x719   : > { %v5437_v12 = vrot.slane %v5418_v37, 4  ;;  %5396 = vst [vmem:[#allocation2 + $0x2f8] sm:$0xff] %v5380_v51  ;;  %vm14758_vm13 = vmmov %vm14756_vm12 }
 0x71a   : > { %5853 = vrot.lane.b32.xlu1 %v13280_v53, %s14742_s24 }
 0x71b   : > { %v5447_v35 = vsel %vm318_vm0, %v5437_v12, %v5438_v5 }
 0x71c   : > { %v5448_v25 = vsel %vm14743_vm1, %v5418_v37, %v5447_v35  ;;  %v5422_v61 = vpop.permute.xlu1 %5421  ;;  %vm14761_vm1 = vmmov %vm14760_vm15 }
 0x71d   : > { %5471 = vst [vmem:[#allocation2 + $0x300] sm:$0xff] %v5448_v25  ;;  %6417 = vrot.lane.b32.xlu2 %v13262_v55, %s11082_s14  ;;  %v5439_v4 = vrot.slane %v5422_v61, 4 }
 0x71e   : > { %5855 = vrot.lane.b32.xlu0 %v13294_v23, %s14742_s24 }
 0x71f   : > { %v13443_v40 = vpop.permute.xlu2 %5607  ;;  %v5449_v63 = vsel %vm318_vm0, %v5438_v5, %v5439_v4 }
 0x720   : > { %v5424_v11 = vpop.permute.xlu0 %5423  ;;  %v5450_v22 = vsel %vm14744_vm2, %v13390_v9, %v5449_v63  ;;  %v5622_v37 = vrot.slane %v13443_v40, 4  ;;  %vm14762_vm2 = vcmask 236544  }
 0x721   : > { %v5440_v45 = vrot.slane %v5424_v11, 4  ;;  %5472 = vst [vmem:[#allocation2 + $0x308] sm:$0xff] %v5450_v22 }
 0x722   : > { %6419 = vrot.lane.b32.xlu1 %v13282_v32, %s11082_s14 }
 0x723   : > { %v5451_v39 = vsel %vm318_vm0, %v5439_v4, %v5440_v45  ;;  %v5453_v31 = vsel %vm318_vm0, %v5440_v45, %v5441_v44 }
 0x724   : > { %v5452_v60 = vsel %vm14745_vm3, %v5422_v61, %v5451_v39  ;;  %v5454_v62 = vsel %vm14746_vm4, %v5424_v11, %v5453_v31  ;;  %v5428_v47 = vpop.permute.xlu1 %5427  ;;  %v13518_v61 = vld [vmem:[#allocation3 + $0x3c] sm:$0xff]  ;;  %vm14763_vm3 = vmmov %vm14762_vm2  ;;  %vm14764_vm4 = vcmask 302080  }
 0x725   : > { %5473 = vst [vmem:[#allocation2 + $0x310] sm:$0xff] %v5452_v60  ;;  %6429 = vrot.lane.b32.xlu2 %v13294_v23, %s11082_s14  ;;  %v5442_v30 = vrot.slane %v5428_v47, 4 }
 0x726   : > { %5474 = vst [vmem:[#allocation2 + $0x318] sm:$0xff] %v5454_v62  ;;  %6427 = vrot.lane.b32.xlu0 %v13280_v53, %s11082_s14 }
 0x727   : > { %v13458_v57 = vpop.permute.xlu2 %6255 }
 0x728   : > { %v5430_v9 = vpop.permute.xlu0 %5429  ;;  %v6274_v12 = vrot.slane %v13458_v57, 4 }
 0x729   : > { %v5443_v27 = vrot.slane %v5430_v9, 4 }
 0x72a   : > { %5761 = vrot.lane.b32.xlu1 %v13262_v55, %s14747_s25 }
 0x72b   : > { %v5455_v20 = vsel %vm318_vm0, %v5442_v30, %v5443_v27  ;;  %v5457_v13 = vsel %vm318_vm0, %v5443_v27, %v5444_v28 }
 0x72c   : > { %v5456_v24 = vsel %vm14748_vm5, %v5428_v47, %v5455_v20  ;;  %v5458_v54 = vsel %vm14749_vm6, %v5430_v9, %v5457_v13  ;;  %v5434_v49 = vpop.permute.xlu1 %5433  ;;  %vm14765_vm5 = vmmov %vm14764_vm4  ;;  %vm14766_vm6 = vcmask 310272  }
 0x72d   : > { %5475 = vst [vmem:[#allocation2 + $0x320] sm:$0xff] %v5456_v24  ;;  %5771 = vrot.lane.b32.xlu2 %v13280_v53, %s14747_s25  ;;  %v5445_v52 = vrot.slane %v5434_v49, 4 }
 0x72e   : > { %5476 = vst [vmem:[#allocation2 + $0x328] sm:$0xff] %v5458_v54  ;;  %5763 = vrot.lane.b32.xlu0 %v13282_v32, %s14747_s25 }
 0x72f   : > { %v13471_v34 = vpop.permute.xlu2 %5517  ;;  %v5459_v48 = vsel %vm318_vm0, %v5444_v28, %v5445_v52 }
 0x730   : > { %v5436_v59 = vpop.permute.xlu0 %5435  ;;  %v5536_v14 = vrot.slane %v13471_v34, 4  ;;  %v5460_v1 = vsel %vm14750_vm7, %v13415_v6, %v5459_v48  ;;  %vm14767_vm7 = vmmov %vm14766_vm6 }
 0x731   : > { %v5446_v8 = vrot.slane %v5436_v59, 4  ;;  %5477 = vst [vmem:[#allocation2 + $0x330] sm:$0xff] %v5460_v1 }
 0x732   : > { %v5545_v2 = vsel %vm318_vm0, %v5535_v29, %v5536_v14  ;;  %5773 = vrot.lane.b32.xlu1 %v13294_v23, %s14747_s25 }
 0x733   : > { %v5461_v26 = vsel %vm318_vm0, %v5445_v52, %v5446_v8  ;;  %v5546_v36 = vsel %vm14752_vm9, %v5516_v33, %v5545_v2 }
 0x734   : > { %v5462_v17 = vsel %vm14751_vm8, %v5434_v49, %v5461_v26  ;;  %v5598_v21 = vpop.permute.xlu1 %5597  ;;  %5569 = vst [vmem:[#allocation2 + $0x380] sm:$0xff] %v5546_v36  ;;  %vm14768_vm8 = vcmask 138240  }
 0x735   : > { %5478 = vst [vmem:[#allocation2 + $0x338] sm:$0xff] %v5462_v17  ;;  %6337 = vrot.lane.b32.xlu2 %v13282_v32, %s14753_s5  ;;  %v5617_v58 = vrot.slane %v5598_v21, 4  ;;  %vm14769_vm9 = vmmov %vm14768_vm8 }
 0x736   : > { %6335 = vrot.lane.b32.xlu0 %v13262_v55, %s14753_s5 }
 0x737   : > { %v13491_v56 = vpop.permute.xlu2 %6171 }
 0x738   : > { %v13489_v6 = vpop.permute.xlu0 %5599  ;;  %v6191_v59 = vrot.slane %v13491_v56, 4 }
 0x739   : > { %v5618_v46 = vrot.slane %v13489_v6, 4 }
 0x73a   : > { %6345 = vrot.lane.b32.xlu1 %v13280_v53, %s14753_s5 }
 0x73b   : > { %v5627_v19 = vsel %vm318_vm0, %v5617_v58, %v5618_v46 }
 0x73c   : > { %v5628_v7 = vsel %vm14754_vm10, %v5598_v21, %v5627_v19  ;;  %v13502_v41 = vpop.permute.xlu1 %5609  ;;  %v9870_v21 = vld [vmem:[#allocation2 + $0x380] sm:$0xf]  ;;  %vm14770_vm10 = vcmask 318464  }
 0x73d   : > { %5651 = vst [vmem:[#allocation2 + $0x3c0] sm:$0xff] %v5628_v7  ;;  %5601 = vrot.lane.b32.xlu2 %v13500_v43, %s14736_s21  ;;  %v5623_v33 = vrot.slane %v13502_v41, 4  ;;  %v10633_v7 = vld [vmem:[#allocation2 + $0x384] sm:$0xf] }
 0x73e   : > { %6347 = vrot.lane.b32.xlu0 %v13294_v23, %s14753_s5 }
 0x73f   : > { %v13510_v42 = vpop.permute.xlu2 %6183  ;;  %v5635_v51 = vsel %vm318_vm0, %v5622_v37, %v5623_v33 }
 0x740   : > { %v6254_v5 = vpop.permute.xlu0 %6253  ;;  %v5636_v25 = vsel %vm14755_vm11, %v13443_v40, %v5635_v51  ;;  %v6197_v1 = vrot.slane %v13510_v42, 4  ;;  %vm14771_vm11 = vmmov %vm14770_vm10 }
 0x741   : > { %v6273_v35 = vrot.slane %v6254_v5, 4  ;;  %5655 = vst [vmem:[#allocation2 + $0x3e0] sm:$0xff] %v5636_v25  ;;  %v9840_v25 = vld [vmem:[#allocation2 + $0x360] sm:$0xf0] }
 0x742   : > { %5611 = vrot.lane.b32.xlu1 %v13518_v61, %s14736_s21 }
 0x743   : > { %v6283_v4 = vsel %vm318_vm0, %v6273_v35, %v6274_v12 }
 0x744   : > { %v6284_v11 = vsel %vm14756_vm12, %v6254_v5, %v6283_v4  ;;  %v6264_v44 = vpop.permute.xlu1 %6263  ;;  %v9902_v40 = vld [vmem:[#allocation2 + $0x3c0] sm:$0xf]  ;;  %v10641_v63 = vld [vmem:[#allocation2 + $0x3c4] sm:$0xf]  ;;  %vm14772_vm12 = vcmask 146432  }
 0x745   : > { %6307 = vst [vmem:[#allocation2 + $0x5c0] sm:$0xff] %v6284_v11  ;;  %5681 = vrot.lane.b32.xlu2 %v13282_v32, %s14757_s29  ;;  %v6278_v39 = vrot.slane %v6264_v44, 4 }
 0x746   : > { %5679 = vrot.lane.b32.xlu0 %v13262_v55, %s14757_s29 }
 0x747   : > { %v13532_v22 = vpop.permute.xlu2 %6099 }
 0x748   : > { %v13530_v45 = vpop.permute.xlu0 %6265  ;;  %v10645_v60 = vld [vmem:[#allocation2 + $0x3dc] sm:$0xf0]  ;;  %v9904_v62 = vld [vmem:[#allocation2 + $0x3e0] sm:$0xf0] }
 0x749   : > { %v6279_v31 = vrot.slane %v13530_v45, 4  ;;  %v9903_v47 = vor.u32 %v10645_v60, %v9902_v40  ;;  %v9907_v9 = vor.u32 %v10641_v63, %v9904_v62  ;;  %v10625_v40 = vld [vmem:[#allocation2 + $0x344] sm:$0xf] }
 0x74a   : > { %5689 = vrot.lane.b32.xlu1 %v13280_v53, %s14757_s29  ;;  %v9843_v62 = vor.u32 %v10625_v40, %v9840_v25  ;;  %v10605_v25 = vld [vmem:[#allocation2 + $0x29c] sm:$0xf0]  ;;  %v9744_v40 = vld [vmem:[#allocation2 + $0x2a0] sm:$0xf0] }
 0x74b   : > { %v6291_v55 = vsel %vm318_vm0, %v6278_v39, %v6279_v31  ;;  %7896 = vmatpush.bf16.msra.mxu0 %v9903_v47  ;;  %7948 = vmatpush.bf16.msrb.mxu3 %v9907_v9  ;;  %v10621_v47 = vld [vmem:[#allocation2 + $0x31c] sm:$0xf0] }
 0x74c   : > { %v6292_v32 = vsel %vm14758_vm13, %v6264_v44, %v6291_v55  ;;  %v5526_v28 = vpop.permute.xlu1 %5525  ;;  %v9838_v44 = vld [vmem:[#allocation2 + $0x340] sm:$0xf]  ;;  %v9808_v55 = vld [vmem:[#allocation2 + $0x320] sm:$0xf0]  ;;  %vm14773_vm13 = vmmov %vm14772_vm12 }
 0x74d   : > { %6311 = vst [vmem:[#allocation2 + $0x5e0] sm:$0xff] %v6292_v32  ;;  %6257 = vrot.lane.b32.xlu2 %v13500_v43, %s14737_s26  ;;  %v5540_v20 = vrot.slane %v5526_v28, 4 }
 0x74e   : > { %5691 = vrot.lane.b32.xlu0 %v13294_v23, %s14757_s29  ;;  %v10158_v23 = vld [vmem:[#allocation2 + $0x5c0] sm:$0xf] }
 0x74f   : > { %v13547_v27 = vpop.permute.xlu2 %6009 }
 0x750   : > { %v13545_v30 = vpop.permute.xlu0 %5527 }
 0x751   : > { %v5541_v13 = vrot.slane %v13545_v30, 4 }
 0x752   : > { %6267 = vrot.lane.b32.xlu1 %v13518_v61, %s14737_s26 }
 0x753   : > { %v5553_v53 = vsel %vm318_vm0, %v5540_v20, %v5541_v13 }
 0x754   : > { %v5554_v24 = vsel %vm14759_vm14, %v5526_v28, %v5553_v53  ;;  %v10709_v54 = vld [vmem:[#allocation2 + $0x5dc] sm:$0xf0]  ;;  %v13556_v52 = vpop.permute.xlu1 %6173  ;;  %vm14774_vm14 = vcmask 973824  }
 0x755   : > { %5573 = vst [vmem:[#allocation2 + $0x3a0] sm:$0xff] %v5554_v24  ;;  %v10159_v49 = vor.u32 %v10709_v54, %v10158_v23  ;;  %5529 = vrot.lane.b32.xlu2 %v13518_v61, %s14735_s20  ;;  %v6192_v29 = vrot.slane %v13556_v52, 4  ;;  %v9806_v28 = vld [vmem:[#allocation2 + $0x300] sm:$0xf]  ;;  %v10617_v54 = vld [vmem:[#allocation2 + $0x304] sm:$0xf] }
 0x756   : > { %5519 = vrot.lane.b32.xlu0 %v13500_v43, %s14735_s20  ;;  %v9807_v24 = vor.u32 %v10621_v47, %v9806_v28  ;;  %v10601_v47 = vld [vmem:[#allocation2 + $0x284] sm:$0xf] }
 0x757   : > { %7909 = vmatpush.bf16.msra.mxu1 %v10159_v49  ;;  %v13564_v8 = vpop.permute.xlu2 %5925  ;;  %v6201_v26 = vsel %vm318_vm0, %v6191_v59, %v6192_v29  ;;  %v9811_v59 = vor.u32 %v10617_v54, %v9808_v55  ;;  %v10597_v55 = vld [vmem:[#allocation2 + $0x25c] sm:$0xf0] }
 0x758   : > { %v6182_v48 = vpop.permute.xlu0 %6181  ;;  %v6202_v17 = vsel %vm14760_vm15, %v13491_v56, %v6201_v26  ;;  %v10629_v56 = vld [vmem:[#allocation2 + $0x35c] sm:$0xf0]  ;;  %v6114_v26 = vrot.slane %v13532_v22, 4  ;;  %vm14775_vm15 = vcmask 957440  }
 0x759   : > { %v6196_v2 = vrot.slane %v6182_v48, 4  ;;  %6225 = vst [vmem:[#allocation2 + $0x580] sm:$0xff] %v6202_v17  ;;  %v9839_v60 = vor.u32 %v10629_v56, %v9838_v44  ;;  %v9776_v17 = vld [vmem:[#allocation2 + $0x2e0] sm:$0xf0] }
 0x75a   : > { %6175 = vrot.lane.b32.xlu1 %v13500_v43, %s14738_s9 }
 0x75b   : > { %v6209_v36 = vsel %vm318_vm0, %v6196_v2, %v6197_v1 }
 0x75c   : > { %v6210_v58 = vsel %vm14761_vm1, %v6182_v48, %v6209_v36  ;;  %v10637_v19 = vld [vmem:[#allocation2 + $0x39c] sm:$0xf0]  ;;  %v9872_v37 = vld [vmem:[#allocation2 + $0x3a0] sm:$0xf0]  ;;  %v6090_v35 = vpop.permute.xlu1 %6089  ;;  %vm14776_vm1 = vmmov %vm14775_vm15 }
 0x75d   : > { %6229 = vst [vmem:[#allocation2 + $0x5a0] sm:$0xff] %v6210_v58  ;;  %v9871_v5 = vor.u32 %v10637_v19, %v9870_v21  ;;  %v9875_v51 = vor.u32 %v10633_v7, %v9872_v37  ;;  %6093 = vrot.lane.b32.xlu2 %v13500_v43, %s14739_s10  ;;  %v6109_v63 = vrot.slane %v6090_v35, 4  ;;  %v10613_v48 = vld [vmem:[#allocation2 + $0x2dc] sm:$0xf0]  ;;  %v14695_v19 = vrot.slane %v13547_v27, 4 }
 0x75e   : > { %6185 = vrot.lane.b32.xlu0 %v13518_v61, %s14738_s9  ;;  %v9774_v58 = vld [vmem:[#allocation2 + $0x2c0] sm:$0xf] }
 0x75f   : > { %7897 = vmatpush.bf16.msra.mxu0 %v9871_v5  ;;  %7949 = vmatpush.bf16.msrb.mxu3 %v9875_v51  ;;  %v13584_v11 = vpop.permute.xlu2 %5937  ;;  %v9775_v5 = vor.u32 %v10613_v48, %v9774_v58  ;;  %v10609_v51 = vld [vmem:[#allocation2 + $0x2c4] sm:$0xf] }
 0x760   : > { %v13582_v4 = vpop.permute.xlu0 %6091  ;;  %v10126_v20 = vld [vmem:[#allocation2 + $0x580] sm:$0xf]  ;;  %v9779_v56 = vor.u32 %v10609_v51, %v9776_v17  ;;  %v10593_v48 = vld [vmem:[#allocation2 + $0x244] sm:$0xf] }
 0x761   : > { %v6110_v39 = vrot.slane %v13582_v4, 4 }
 0x762   : > { %6103 = vrot.lane.b32.xlu1 %v13518_v61, %s14739_s10 }
 0x763   : > { %v6119_v9 = vsel %vm318_vm0, %v6109_v63, %v6110_v39  ;;  %7898 = vmatpush.bf16.msra.mxu0 %v9839_v60  ;;  %7950 = vmatpush.bf16.msrb.mxu3 %v9843_v62  ;;  %v9742_v60 = vld [vmem:[#allocation2 + $0x280] sm:$0xf] }
 0x764   : > { %v6120_v32 = vsel %vm14762_vm2, %v6090_v35, %v6119_v9  ;;  %v10701_v53 = vld [vmem:[#allocation2 + $0x59c] sm:$0xf0]  ;;  %v13593_v49 = vpop.permute.xlu1 %6101  ;;  %v9743_v62 = vor.u32 %v10605_v25, %v9742_v60  ;;  %v9747_v9 = vor.u32 %v10601_v47, %v9744_v40  ;;  %v10585_v25 = vld [vmem:[#allocation2 + $0x204] sm:$0xf]  ;;  %vm14777_vm2 = vcmask 154624  }
 0x765   : > { %6143 = vst [vmem:[#allocation2 + $0x540] sm:$0xff] %v6120_v32  ;;  %v10127_v23 = vor.u32 %v10701_v53, %v10126_v20  ;;  %6021 = vrot.lane.b32.xlu2 %v13518_v61, %s14740_s12  ;;  %v6115_v2 = vrot.slane %v13593_v49, 4  ;;  %v9712_v32 = vld [vmem:[#allocation2 + $0x260] sm:$0xf0] }
 0x766   : > { %6011 = vrot.lane.b32.xlu0 %v13500_v43, %s14740_s12  ;;  %v9715_v17 = vor.u32 %v10593_v48, %v9712_v32  ;;  %v14683_v32 = vrot.slane %v13584_v11, 4 }
 0x767   : > { %7899 = vmatpush.bf16.msra.mxu0 %v9807_v24  ;;  %7910 = vmatpush.bf16.msra.mxu1 %v10127_v23  ;;  %v13601_v21 = vpop.permute.xlu2 %6509  ;;  %v6127_v7 = vsel %vm318_vm0, %v6114_v26, %v6115_v2  ;;  %v9710_v24 = vld [vmem:[#allocation2 + $0x240] sm:$0xf] }
 0x768   : > { %7951 = vmatpush.bf16.msrb.mxu3 %v9811_v59  ;;  %v6008_v36 = vpop.permute.xlu0 %6007  ;;  %v6128_v35 = vsel %vm14763_vm3, %v13532_v22, %v6127_v7  ;;  %v9711_v59 = vor.u32 %v10597_v55, %v9710_v24  ;;  %vm14778_vm3 = vcmask 220160  }
 0x769   : > { %v6027_v37 = vrot.slane %v6008_v36, 4  ;;  %6147 = vst [vmem:[#allocation2 + $0x560] sm:$0xff] %v6128_v35  ;;  %v9678_v35 = vld [vmem:[#allocation2 + $0x200] sm:$0xf] }
 0x76a   : > { %5929 = vrot.lane.b32.xlu1 %v13500_v43, %s14741_s13 }
 0x76b   : > { %v6037_v44 = vsel %vm318_vm0, %v6027_v37, %v14695_v19  ;;  %7900 = vmatpush.bf16.msra.mxu0 %v9775_v5  ;;  %v9680_v37 = vld [vmem:[#allocation2 + $0x220] sm:$0xf0] }
 0x76c   : > { %v6038_v63 = vsel %vm14764_vm4, %v6008_v36, %v6037_v44  ;;  %7952 = vmatpush.bf16.msrb.mxu3 %v9779_v56  ;;  %v6018_v22 = vpop.permute.xlu1 %6017  ;;  %v10094_v28 = vld [vmem:[#allocation2 + $0x540] sm:$0xf]  ;;  %v10160_v5 = vld [vmem:[#allocation2 + $0x5e0] sm:$0xf0]  ;;  %vm14779_vm4 = vmmov %vm14777_vm2 }
 0x76d   : > { %6061 = vst [vmem:[#allocation2 + $0x500] sm:$0xff] %v6038_v63  ;;  %5847 = vrot.lane.b32.xlu2 %v13500_v43, %s14742_s24  ;;  %v6032_v23 = vrot.slane %v6018_v22, 4  ;;  %v10589_v36 = vld [vmem:[#allocation2 + $0x21c] sm:$0xf0]  ;;  %v10705_v44 = vld [vmem:[#allocation2 + $0x5c4] sm:$0xf]  ;;  %v9683_v63 = vor.u32 %v10585_v25, %v9680_v37 }
 0x76e   : > { %5939 = vrot.lane.b32.xlu0 %v13518_v61, %s14741_s13  ;;  %v9679_v56 = vor.u32 %v10589_v36, %v9678_v35  ;;  %v10163_v60 = vor.u32 %v10705_v44, %v10160_v5  ;;  %v10545_v19 = vld [vmem:[#allocation2 + $0xc4] sm:$0xf] }
 0x76f   : > { %7901 = vmatpush.bf16.msra.mxu0 %v9743_v62  ;;  %v13621_v53 = vpop.permute.xlu2 %5845  ;;  %v5945_v62 = vrot.slane %v13564_v8, 4 }
 0x770   : > { %7953 = vmatpush.bf16.msrb.mxu3 %v9747_v9  ;;  %v13619_v20 = vpop.permute.xlu0 %6019  ;;  %v10693_v26 = vld [vmem:[#allocation2 + $0x55c] sm:$0xf0]  ;;  %v10096_v36 = vld [vmem:[#allocation2 + $0x560] sm:$0xf0] }
 0x771   : > { %v6033_v54 = vrot.slane %v13619_v20, 4  ;;  %v10095_v58 = vor.u32 %v10693_v26, %v10094_v28 }
 0x772   : > { %5857 = vrot.lane.b32.xlu1 %v13518_v61, %s14742_s24 }
 0x773   : > { %v6045_v7 = vsel %vm318_vm0, %v6032_v23, %v6033_v54  ;;  %7902 = vmatpush.bf16.msra.mxu0 %v9711_v59  ;;  %7911 = vmatpush.bf16.msra.mxu1 %v10095_v58  ;;  %v10697_v23 = vld [vmem:[#allocation2 + $0x584] sm:$0xf] }
 0x774   : > { %v6046_v51 = vsel %vm14765_vm5, %v6018_v22, %v6045_v7  ;;  %7954 = vmatpush.bf16.msrb.mxu3 %v9715_v17  ;;  %v13630_v40 = vpop.permute.xlu1 %5927  ;;  %v10128_v22 = vld [vmem:[#allocation2 + $0x5a0] sm:$0xf0]  ;;  %v10062_v7 = vld [vmem:[#allocation2 + $0x500] sm:$0xf]  ;;  %vm14780_vm5 = vcmask 1039360  }
 0x775   : > { %6065 = vst [vmem:[#allocation2 + $0x520] sm:$0xff] %v6046_v51  ;;  %6513 = vrot.lane.b32.xlu2 %v13518_v61, %s11083_s11  ;;  %v14692_v47 = vrot.slane %v13630_v40, 4  ;;  %v10131_v48 = vor.u32 %v10697_v23, %v10128_v22  ;;  %v10689_v17 = vld [vmem:[#allocation2 + $0x544] sm:$0xf] }
 0x776   : > { %6503 = vrot.lane.b32.xlu0 %v13500_v43, %s11083_s11 }
 0x777   : > { %7903 = vmatpush.bf16.msra.mxu0 %v9679_v56  ;;  %v13638_v55 = vpop.permute.xlu2 %6417  ;;  %v5955_v28 = vsel %vm318_vm0, %v5945_v62, %v14692_v47 }
 0x778   : > { %7955 = vmatpush.bf16.msrb.mxu3 %v9683_v63  ;;  %v5936_v9 = vpop.permute.xlu0 %5935  ;;  %v5956_v59 = vsel %vm14766_vm6, %v13564_v8, %v5955_v28  ;;  %v10099_v8 = vor.u32 %v10689_v17, %v10096_v36  ;;  %v6524_v36 = vrot.slane %v13601_v21, 4  ;;  %vm14781_vm6 = vmmov %vm14774_vm14 }
 0x779   : > { %v5950_v24 = vrot.slane %v5936_v9, 4  ;;  %5979 = vst [vmem:[#allocation2 + $0x4c0] sm:$0xff] %v5956_v59 }
 0x77a   : > { %5765 = vrot.lane.b32.xlu1 %v13500_v43, %s14747_s25 }
 0x77b   : > { %7961 = vmatpush.bf16.msrb.mxu0 %v10163_v60  ;;  %v5963_v26 = vsel %vm318_vm0, %v5950_v24, %v14683_v32  ;;  %v10681_v60 = vld [vmem:[#allocation2 + $0x504] sm:$0xf] }
 0x77c   : > { %v5964_v58 = vsel %vm14767_vm7, %v5936_v9, %v5963_v26  ;;  %v10685_v37 = vld [vmem:[#allocation2 + $0x51c] sm:$0xf0]  ;;  %v6500_v51 = vpop.permute.xlu1 %6499  ;;  %v10064_v35 = vld [vmem:[#allocation2 + $0x520] sm:$0xf0]  ;;  %vm14782_vm7 = vcmask 965632  }
 0x77d   : > { %5983 = vst [vmem:[#allocation2 + $0x4e0] sm:$0xff] %v5964_v58  ;;  %v10063_v5 = vor.u32 %v10685_v37, %v10062_v7  ;;  %6421 = vrot.lane.b32.xlu2 %v13500_v43, %s11082_s14  ;;  %v6519_v44 = vrot.slane %v6500_v51, 4  ;;  %v10067_v62 = vor.u32 %v10681_v60, %v10064_v35 }
 0x77e   : > { %5775 = vrot.lane.b32.xlu0 %v13518_v61, %s14747_s25 }
 0x77f   : > { %7962 = vmatpush.bf16.msrb.mxu0 %v10131_v48  ;;  %7912 = vmatpush.bf16.msra.mxu1 %v10063_v5  ;;  %v13658_v25 = vpop.permute.xlu2 %6429  ;;  %v5864_v5 = vrot.slane %v13621_v53, 4 }
 0x780   : > { %v13656_v56 = vpop.permute.xlu0 %6501  ;;  %v10030_v9 = vld [vmem:[#allocation2 + $0x4c0] sm:$0xf]  ;;  %v10673_v23 = vld [vmem:[#allocation2 + $0x4c4] sm:$0xf] }
 0x781   : > { %v14676_v63 = vrot.slane %v13656_v56, 4 }
 0x782   : > { %6431 = vrot.lane.b32.xlu1 %v13518_v61, %s11082_s14 }
 0x783   : > { %7963 = vmatpush.bf16.msrb.mxu0 %v10099_v8  ;;  %v6529_v22 = vsel %vm318_vm0, %v6519_v44, %v14676_v63 }
 0x784   : > { %v6530_v28 = vsel %vm14768_vm8, %v6500_v51, %v6529_v22  ;;  %v10677_v24 = vld [vmem:[#allocation2 + $0x4dc] sm:$0xf0]  ;;  %v10032_v59 = vld [vmem:[#allocation2 + $0x4e0] sm:$0xf0]  ;;  %v13667_v17 = vpop.permute.xlu1 %6511  ;;  %vm14783_vm8 = vcmask 236544  }
 0x785   : > { %6553 = vst [vmem:[#allocation2 + $0x680] sm:$0xff] %v6530_v28  ;;  %v10031_v48 = vor.u32 %v10677_v24, %v10030_v9  ;;  %v10035_v26 = vor.u32 %v10673_v23, %v10032_v59  ;;  %5693 = vrot.lane.b32.xlu2 %v13518_v61, %s14757_s29  ;;  %v6525_v58 = vrot.slane %v13667_v17, 4  ;;  %v13700_v59 = vld [vmem:[#allocation3 + $0x44] sm:$0xff] }
 0x786   : > { %5683 = vrot.lane.b32.xlu0 %v13500_v43, %s14757_s29 }
 0x787   : > { %7964 = vmatpush.bf16.msrb.mxu0 %v10067_v62  ;;  %7913 = vmatpush.bf16.msra.mxu1 %v10031_v48  ;;  %v13675_v37 = vpop.permute.xlu2 %5771  ;;  %v6537_v51 = vsel %vm318_vm0, %v6524_v36, %v6525_v58  ;;  %v13689_v62 = vld [vmem:[#allocation3 + $0x1c] sm:$0xff] }
 0x788   : > { %v5844_v7 = vpop.permute.xlu0 %5843  ;;  %v6538_v35 = vsel %vm14769_vm9, %v13601_v21, %v6537_v51  ;;  %vm14784_vm9 = vmmov %vm14782_vm7 }
 0x789   : > { %v5863_v8 = vrot.slane %v5844_v7, 4  ;;  %6557 = vst [vmem:[#allocation2 + $0x6a0] sm:$0xff] %v6538_v35 }
 0x78a   : > { %6339 = vrot.lane.b32.xlu1 %v13500_v43, %s14753_s5 }
 0x78b   : > { %7965 = vmatpush.bf16.msrb.mxu0 %v10035_v26  ;;  %v5873_v44 = vsel %vm318_vm0, %v5863_v8, %v5864_v5 }
 0x78c   : > { %v5874_v60 = vsel %vm14770_vm10, %v5844_v7, %v5873_v44  ;;  %v5854_v22 = vpop.permute.xlu1 %5853  ;;  %v10254_v21 = vld [vmem:[#allocation2 + $0x680] sm:$0xf]  ;;  %v6437_v7 = vrot.slane %v13638_v55, 4  ;;  %v14675_v44 = vrot.slane %v13658_v25, 4  ;;  %vm14785_vm10 = vcmask 302080  }
 0x78d   : > { %5897 = vst [vmem:[#allocation2 + $0x480] sm:$0xff] %v5874_v60  ;;  %5603 = vrot.lane.b32.xlu2 %v13689_v62, %s14736_s21  ;;  %v5868_v24 = vrot.slane %v5854_v22, 4 }
 0x78e   : > { %6349 = vrot.lane.b32.xlu0 %v13518_v61, %s14753_s5 }
 0x78f   : > { %v13697_v28 = vpop.permute.xlu2 %6337 }
 0x790   : > { %v13695_v9 = vpop.permute.xlu0 %5855  ;;  %v10733_v23 = vld [vmem:[#allocation2 + $0x69c] sm:$0xf0] }
 0x791   : > { %v14682_v43 = vrot.slane %v13695_v9, 4  ;;  %v10255_v48 = vor.u32 %v10733_v23, %v10254_v21 }
 0x792   : > { %5613 = vrot.lane.b32.xlu1 %v13700_v59, %s14736_s21 }
 0x793   : > { %v5881_v26 = vsel %vm318_vm0, %v5868_v24, %v14682_v43  ;;  %7927 = vmatpush.bf16.msra.mxu2 %v10255_v48 }
 0x794   : > { %v5882_v61 = vsel %vm14771_vm11, %v5854_v22, %v5881_v26  ;;  %v13708_v36 = vpop.permute.xlu1 %6419  ;;  %v9998_v26 = vld [vmem:[#allocation2 + $0x480] sm:$0xf]  ;;  %vm14786_vm11 = vcmask 392192  }
 0x795   : > { %5901 = vst [vmem:[#allocation2 + $0x4a0] sm:$0xff] %v5882_v61  ;;  %6269 = vrot.lane.b32.xlu2 %v13700_v59, %s14737_s26  ;;  %v14693_v51 = vrot.slane %v13708_v36, 4 }
 0x796   : > { %6259 = vrot.lane.b32.xlu0 %v13689_v62, %s14737_s26 }
 0x797   : > { %v13716_v35 = vpop.permute.xlu2 %5601  ;;  %v6447_v60 = vsel %vm318_vm0, %v6437_v7, %v14693_v51  ;;  %v10520_v51 = vld [vmem:[#allocation9 + $0x14] sm:$0xf0] }
 0x798   : > { %v6428_v8 = vpop.permute.xlu0 %6427  ;;  %v14681_v21 = vrot.slane %v13716_v35, 4  ;;  %v6448_v24 = vsel %vm14772_vm12, %v13638_v55, %v6447_v60  ;;  %v10665_v60 = vld [vmem:[#allocation2 + $0x484] sm:$0xf]  ;;  %vm14787_vm12 = vmmov %vm14778_vm3 }
 0x799   : > { %v6442_v22 = vrot.slane %v6428_v8, 4  ;;  %6471 = vst [vmem:[#allocation2 + $0x640] sm:$0xff] %v6448_v24 }
 0x79a   : > { %v5629_v48 = vsel %vm318_vm0, %v5618_v46, %v14681_v21  ;;  %5521 = vrot.lane.b32.xlu1 %v13689_v62, %s14735_s20 }
 0x79b   : > { %v6455_v23 = vsel %vm318_vm0, %v6442_v22, %v14675_v44  ;;  %v5630_v55 = vsel %vm14774_vm14, %v13489_v6, %v5629_v48  ;;  %vm14789_vm14 = vcmask 318464  }
 0x79c   : > { %v6456_v61 = vsel %vm14773_vm13, %v6428_v8, %v6455_v23  ;;  %v10669_v7 = vld [vmem:[#allocation2 + $0x49c] sm:$0xf0]  ;;  %v10000_v24 = vld [vmem:[#allocation2 + $0x4a0] sm:$0xf0]  ;;  %v5762_v63 = vpop.permute.xlu1 %5761  ;;  %5652 = vst [vmem:[#allocation2 + $0x3c8] sm:$0xff] %v5630_v55  ;;  %vm14788_vm13 = vmmov %vm14780_vm5 }
 0x79d   : > { %6475 = vst [vmem:[#allocation2 + $0x660] sm:$0xff] %v6456_v61  ;;  %v9999_v22 = vor.u32 %v10669_v7, %v9998_v26  ;;  %v10003_v44 = vor.u32 %v10665_v60, %v10000_v24  ;;  %6177 = vrot.lane.b32.xlu2 %v13689_v62, %s14738_s9  ;;  %v5781_v6 = vrot.slane %v5762_v63, 4  ;;  %v5786_v60 = vrot.slane %v13675_v37, 4 }
 0x79e   : > { %5531 = vrot.lane.b32.xlu0 %v13700_v59, %s14735_s20 }
 0x79f   : > { %7914 = vmatpush.bf16.msra.mxu1 %v9999_v22  ;;  %7966 = vmatpush.bf16.msrb.mxu0 %v10003_v44  ;;  %v13744_v8 = vpop.permute.xlu2 %5681 }
 0x7a0   : > { %v13742_v46 = vpop.permute.xlu0 %5763  ;;  %v10222_v61 = vld [vmem:[#allocation2 + $0x640] sm:$0xf] }
 0x7a1   : > { %v14677_v23 = vrot.slane %v13742_v46, 4 }
 0x7a2   : > { %6187 = vrot.lane.b32.xlu1 %v13700_v59, %s14738_s9 }
 0x7a3   : > { %v5791_v48 = vsel %vm318_vm0, %v5781_v6, %v14677_v23 }
 0x7a4   : > { %v5792_v26 = vsel %vm14775_vm15, %v5762_v63, %v5791_v48  ;;  %v10725_v55 = vld [vmem:[#allocation2 + $0x65c] sm:$0xf0]  ;;  %v13753_v7 = vpop.permute.xlu1 %5773  ;;  %v14680_v63 = vrot.slane %v13697_v28, 4  ;;  %vm14790_vm15 = vcmask 228352  }
 0x7a5   : > { %5815 = vst [vmem:[#allocation2 + $0x440] sm:$0xff] %v5792_v26  ;;  %v10223_v44 = vor.u32 %v10725_v55, %v10222_v61  ;;  %6105 = vrot.lane.b32.xlu2 %v13700_v59, %s14739_s10  ;;  %v14678_v24 = vrot.slane %v13753_v7, 4 }
 0x7a6   : > { %6095 = vrot.lane.b32.xlu0 %v13689_v62, %s14739_s10 }
 0x7a7   : > { %7928 = vmatpush.bf16.msra.mxu2 %v10223_v44  ;;  %v13761_v6 = vpop.permute.xlu2 %6257  ;;  %v5799_v48 = vsel %vm318_vm0, %v5786_v60, %v14678_v24 }
 0x7a8   : > { %v6336_v22 = vpop.permute.xlu0 %6335  ;;  %v14679_v61 = vrot.slane %v13761_v6, 4  ;;  %v5800_v55 = vsel %vm14776_vm1, %v13675_v37, %v5799_v48  ;;  %vm14791_vm1 = vmmov %vm14790_vm15 }
 0x7a9   : > { %v6355_v26 = vrot.slane %v6336_v22, 4  ;;  %5819 = vst [vmem:[#allocation2 + $0x460] sm:$0xff] %v5800_v55 }
 0x7aa   : > { %v6285_v23 = vsel %vm318_vm0, %v6274_v12, %v14679_v61  ;;  %6013 = vrot.lane.b32.xlu1 %v13689_v62, %s14740_s12 }
 0x7ab   : > { %v6365_v44 = vsel %vm318_vm0, %v6355_v26, %v14680_v63  ;;  %v6286_v24 = vsel %vm14778_vm3, %v13458_v57, %v6285_v23  ;;  %vm14793_vm3 = vmmov %vm14783_vm8 }
 0x7ac   : > { %v6366_v60 = vsel %vm14777_vm2, %v6336_v22, %v6365_v44  ;;  %v6346_v37 = vpop.permute.xlu1 %6345  ;;  %6308 = vst [vmem:[#allocation2 + $0x5c8] sm:$0xff] %v6286_v24  ;;  %v9966_v48 = vld [vmem:[#allocation2 + $0x440] sm:$0xf]  ;;  %v10657_v26 = vld [vmem:[#allocation2 + $0x444] sm:$0xf]  ;;  %vm14792_vm2 = vcmask 138240  }
 0x7ad   : > { %6389 = vst [vmem:[#allocation2 + $0x600] sm:$0xff] %v6366_v60  ;;  %5931 = vrot.lane.b32.xlu2 %v13689_v62, %s14741_s13  ;;  %v6360_v61 = vrot.slane %v6346_v37, 4 }
 0x7ae   : > { %6023 = vrot.lane.b32.xlu0 %v13700_v59, %s14740_s12 }
 0x7af   : > { %v13789_v55 = vpop.permute.xlu2 %5529 }
 0x7b0   : > { %v13787_v12 = vpop.permute.xlu0 %6347  ;;  %v14684_v57 = vrot.slane %v13789_v55, 4  ;;  %v10661_v23 = vld [vmem:[#allocation2 + $0x45c] sm:$0xf0]  ;;  %v9968_v44 = vld [vmem:[#allocation2 + $0x460] sm:$0xf0] }
 0x7b1   : > { %v14687_v22 = vrot.slane %v13787_v12, 4  ;;  %v9967_v24 = vor.u32 %v10661_v23, %v9966_v48  ;;  %v9971_v60 = vor.u32 %v10657_v26, %v9968_v44  ;;  %v9406_v48 = vld [vmem:[#allocation9] sm:$0xf]  ;;  %v10519_v26 = vld [vmem:[#allocation9 + $0xc] sm:$0xf0] }
 0x7b2   : > { %v5555_v21 = vsel %vm318_vm0, %v5541_v13, %v14684_v57  ;;  %5941 = vrot.lane.b32.xlu1 %v13700_v59, %s14741_s13  ;;  %v13812_v13 = vor.u32 %v10519_v26, %v9406_v48  ;;  %v9648_v48 = vld [vmem:[#allocation2 + $0x1e0] sm:$0xf0] }
 0x7b3   : > { %v6373_v63 = vsel %vm318_vm0, %v6360_v61, %v14687_v22  ;;  %v5556_v32 = vsel %vm14780_vm5, %v13545_v30, %v5555_v21  ;;  %7915 = vmatpush.bf16.msra.mxu1 %v9967_v24  ;;  %7967 = vmatpush.bf16.msrb.mxu0 %v9971_v60  ;;  %vm14797_vm5 = vcmask 146432  }
 0x7b4   : > { %v6374_v43 = vsel %vm14779_vm4, %v6346_v37, %v6373_v63  ;;  %v13806_v61 = vpop.permute.xlu1 %5611  ;;  %5574 = vst [vmem:[#allocation2 + $0x3a8] sm:$0xff] %v5556_v32  ;;  %7891 = vmatmul.bf16.vlgmr.msra.gmra.mxu3 %v13812_v13  ;;  %v10190_v26 = vld [vmem:[#allocation2 + $0x600] sm:$0xf]  ;;  %vm14796_vm4 = vmmov %vm14785_vm10 }
 0x7b5   : > { %6393 = vst [vmem:[#allocation2 + $0x620] sm:$0xff] %v6374_v43  ;;  %6515 = vrot.lane.b32.xlu2 %v13700_v59, %s11083_s11  ;;  %v14686_v63 = vrot.slane %v13806_v61, 4  ;;  %v14689_v43 = vrot.slane %v13744_v8, 4 }
 0x7b6   : > { %6505 = vrot.lane.b32.xlu0 %v13689_v62, %s11083_s11 }
 0x7b7   : > { %v13815_v30 = vpop.permute.xlu2 %6093  ;;  %v5637_v32 = vsel %vm318_vm0, %v5623_v33, %v14686_v63 }
 0x7b8   : > { %v5680_v37 = vpop.permute.xlu0 %5679  ;;  %v14685_v23 = vrot.slane %v13815_v30, 4  ;;  %v5638_v44 = vsel %vm14781_vm6, %v13502_v41, %v5637_v32  ;;  %vm14799_vm6 = vcmask 310272  }
 0x7b9   : > { %v5699_v21 = vrot.slane %v5680_v37, 4  ;;  %5656 = vst [vmem:[#allocation2 + $0x3e8] sm:$0xff] %v5638_v44 }
 0x7ba   : > { %v6121_v60 = vsel %vm318_vm0, %v6110_v39, %v14685_v23  ;;  %5849 = vrot.lane.b32.xlu1 %v13689_v62, %s14742_s24  ;;  %v9616_v23 = vld [vmem:[#allocation2 + $0x1a0] sm:$0xf0] }
 0x7bb   : > { %v5709_v24 = vsel %vm318_vm0, %v5699_v21, %v14689_v43  ;;  %v6122_v41 = vsel %vm14783_vm8, %v13582_v4, %v6121_v60  ;;  %v10577_v21 = vld [vmem:[#allocation2 + $0x1c4] sm:$0xf]  ;;  %vm14803_vm8 = vmmov %vm14799_vm6 }
 0x7bc   : > { %v5710_v33 = vsel %vm14782_vm7, %v5680_v37, %v5709_v24  ;;  %v10717_v32 = vld [vmem:[#allocation2 + $0x61c] sm:$0xf0]  ;;  %v5690_v57 = vpop.permute.xlu1 %5689  ;;  %6144 = vst [vmem:[#allocation2 + $0x548] sm:$0xff] %v6122_v41  ;;  %v9651_v39 = vor.u32 %v10577_v21, %v9648_v48  ;;  %v10569_v41 = vld [vmem:[#allocation2 + $0x184] sm:$0xf]  ;;  %vm14802_vm7 = vmmov %vm14786_vm11 }
 0x7bd   : > { %5733 = vst [vmem:[#allocation2 + $0x400] sm:$0xff] %v5710_v33  ;;  %v10191_v44 = vor.u32 %v10717_v32, %v10190_v26  ;;  %6423 = vrot.lane.b32.xlu2 %v13689_v62, %s11082_s14  ;;  %v5704_v24 = vrot.slane %v5690_v57, 4  ;;  %v9619_v26 = vor.u32 %v10569_v41, %v9616_v23  ;;  %v10518_v21 = vld [vmem:[#allocation9 + $0xc] sm:$0xf]  ;;  %v9416_v41 = vld [vmem:[#allocation9 + $0x18] sm:$0xf0] }
 0x7be   : > { %5859 = vrot.lane.b32.xlu0 %v13700_v59, %s14742_s24  ;;  %v13863_v63 = vor.u32 %v10518_v21, %v9416_v41  ;;  %v10729_v41 = vld [vmem:[#allocation2 + $0x684] sm:$0xf] }
 0x7bf   : > { %7929 = vmatpush.bf16.msra.mxu2 %v10191_v44  ;;  %v13846_v4 = vpop.permute.xlu2 %6021  ;;  %v9584_v44 = vld [vmem:[#allocation2 + $0x160] sm:$0xf0] }
 0x7c0   : > { %v13844_v37 = vpop.permute.xlu0 %5691  ;;  %v14688_v33 = vrot.slane %v13846_v4, 4  ;;  %v10256_v43 = vld [vmem:[#allocation2 + $0x6a0] sm:$0xf0] }
 0x7c1   : > { %v14690_v60 = vrot.slane %v13844_v37, 4 }
 0x7c2   : > { %v6047_v48 = vsel %vm318_vm0, %v6033_v54, %v14688_v33  ;;  %6433 = vrot.lane.b32.xlu1 %v13700_v59, %s11082_s14  ;;  %10284 = vmatmul.msk.bf16.vlgmr.msra.gmra.mxu2 %vm14786_vm11, %v13863_v63  ;;  %vm14808_vm11 = vmmov %vm14792_vm2 }
 0x7c3   : > { %7935 = vmatpush.bf16.msrb.mxu2 %v9651_v39  ;;  %v5717_v32 = vsel %vm318_vm0, %v5704_v24, %v14690_v60  ;;  %v6048_v23 = vsel %vm14785_vm10, %v13619_v20, %v6047_v48  ;;  %v10561_v24 = vld [vmem:[#allocation2 + $0x144] sm:$0xf]  ;;  %v9414_v60 = vld [vmem:[#allocation9 + $0x8] sm:$0xf]  ;;  %vm14805_vm10 = vmmov %vm14789_vm14 }
 0x7c4   : > { %v5718_v39 = vsel %vm14784_vm9, %v5690_v57, %v5717_v32  ;;  %v13865_v22 = vpop.permute.xlu1 %6267  ;;  %6066 = vst [vmem:[#allocation2 + $0x528] sm:$0xff] %v6048_v23  ;;  %v9587_v54 = vor.u32 %v10561_v24, %v9584_v44  ;;  %v9552_v32 = vld [vmem:[#allocation2 + $0x120] sm:$0xf0]  ;;  %v9934_v47 = vld [vmem:[#allocation2 + $0x400] sm:$0xf] }
 0x7c5   : > { %5737 = vst [vmem:[#allocation2 + $0x420] sm:$0xff] %v5718_v39  ;;  %5777 = vrot.lane.b32.xlu2 %v13700_v59, %s14747_s25  ;;  %v14691_v57 = vrot.slane %v13865_v22, 4  ;;  %v10553_v39 = vld [vmem:[#allocation2 + $0x104] sm:$0xf] }
 0x7c6   : > { %5767 = vrot.lane.b32.xlu0 %v13689_v62, %s14747_s25  ;;  %v9520_v23 = vld [vmem:[#allocation2 + $0xe0] sm:$0xf0]  ;;  %v9555_v33 = vor.u32 %v10553_v39, %v9552_v32 }
 0x7c7   : > { %7936 = vmatpush.bf16.msrb.mxu2 %v9619_v26  ;;  %v13876_v26 = vpop.permute.xlu2 %5847  ;;  %v6293_v48 = vsel %vm318_vm0, %v6279_v31, %v14691_v57 }
 0x7c8   : > { %v13874_v20 = vpop.permute.xlu0 %5519  ;;  %v14696_v44 = vrot.slane %v13876_v26, 4  ;;  %v6294_v24 = vsel %vm14787_vm12, %v13530_v45, %v6293_v48  ;;  %vm14809_vm12 = vcmask 973824  }
 0x7c9   : > { %v14694_v21 = vrot.slane %v13874_v20, 4  ;;  %6312 = vst [vmem:[#allocation2 + $0x5e8] sm:$0xff] %v6294_v24 }
 0x7ca   : > { %v5875_v57 = vsel %vm318_vm0, %v5864_v5, %v14696_v44  ;;  %6341 = vrot.lane.b32.xlu1 %v13689_v62, %s14753_s5  ;;  %v13908_v44 = vor.u32 %v10520_v51, %v9414_v60  ;;  %v5586_v51 = vld [vmem:[#allocation3 + $0x4c] sm:$0xf] }
 0x7cb   : > { %7937 = vmatpush.bf16.msrb.mxu2 %v9587_v54  ;;  %v5581_v54 = vld [vmem:[#allocation3 + $0x24] sm:$0xf]  ;;  %v5547_v31 = vsel %vm318_vm0, %v5536_v14, %v14694_v21  ;;  %v5876_v32 = vsel %vm14789_vm14, %v13621_v53, %v5875_v57 }
 0x7cc   : > { %v5548_v45 = vsel %vm14788_vm13, %v13471_v34, %v5547_v31  ;;  %v10653_v48 = vld [vmem:[#allocation2 + $0x41c] sm:$0xf0]  ;;  %v10649_v14 = vld [vmem:[#allocation2 + $0x404] sm:$0xf]  ;;  %v13903_v5 = vpop.permute.xlu1 %6175  ;;  %5898 = vst [vmem:[#allocation2 + $0x488] sm:$0xff] %v5876_v32  ;;  %v9523_v34 = vor.u32 %v10545_v19, %v9520_v23  ;;  %v10259_v31 = vor.u32 %v10729_v41, %v10256_v43  ;;  %vm14811_vm13 = vcmask 957440  }
 0x7cd   : > { %v9936_v39 = vld [vmem:[#allocation2 + $0x420] sm:$0xf0]  ;;  %5570 = vst [vmem:[#allocation2 + $0x388] sm:$0xff] %v5548_v45  ;;  %v9935_v24 = vor.u32 %v10653_v48, %v9934_v47  ;;  %5605 = vrot.lane.b32.xlu2 %v5581_v54, %s14736_s21  ;;  %v6193_v53 = vrot.slane %v13903_v5, 4  ;;  %v10166_v41 = vld [vmem:[#allocation2 + $0x5c8] sm:$0xf]  ;;  %vm14814_vm14 = vmmov %vm14811_vm13 }
 0x7ce   : > { %v9939_v21 = vor.u32 %v10649_v14, %v9936_v39  ;;  %6351 = vrot.lane.b32.xlu0 %v13700_v59, %s14753_s5  ;;  %v10224_v45 = vld [vmem:[#allocation2 + $0x660] sm:$0xf0] }
 0x7cf   : > { %7938 = vmatpush.bf16.msrb.mxu2 %v9555_v33  ;;  %7916 = vmatpush.bf16.msra.mxu1 %v9935_v24  ;;  %v9488_v33 = vld [vmem:[#allocation2 + $0xa0] sm:$0xf0]  ;;  %v13913_v57 = vpop.permute.xlu2 %6513  ;;  %v6203_v19 = vsel %vm318_vm0, %v6192_v29, %v6193_v53 }
 0x7d0   : > { %7968 = vmatpush.bf16.msrb.mxu0 %v9939_v21  ;;  %v13911_v47 = vpop.permute.xlu0 %6185  ;;  %v14706_v60 = vrot.slane %v13913_v57, 4  ;;  %v10537_v21 = vld [vmem:[#allocation2 + $0x84] sm:$0xf]  ;;  %v6204_v23 = vsel %vm14790_vm15, %v13556_v52, %v6203_v19  ;;  %v10710_v54 = vld [vmem:[#allocation2 + $0x5e4] sm:$0xf0]  ;;  %vm14815_vm15 = vcmask 220160  }
 0x7d1   : > { %v14703_v43 = vrot.slane %v13911_v47, 4  ;;  %v9491_v32 = vor.u32 %v10537_v21, %v9488_v33  ;;  %v10721_v48 = vld [vmem:[#allocation2 + $0x644] sm:$0xf]  ;;  %6226 = vst [vmem:[#allocation2 + $0x588] sm:$0xff] %v6204_v23  ;;  %v10167_v14 = vor.u32 %v10710_v54, %v10166_v41  ;;  %v10582_v19 = vld [vmem:[#allocation2 + $0x1e4] sm:$0xf0] }
 0x7d2   : > { %7917 = vmatmul.bf16.vlgmr.msra.gmra.mxu1 %v13908_v44  ;;  %v6539_v52 = vsel %vm318_vm0, %v6525_v58, %v14706_v60  ;;  %v10227_v39 = vor.u32 %v10721_v48, %v10224_v45  ;;  %v9456_v24 = vld [vmem:[#allocation2 + $0x60] sm:$0xf0]  ;;  %5615 = vrot.lane.b32.xlu1 %v5586_v51, %s14736_s21  ;;  %v9654_v51 = vld [vmem:[#allocation2 + $0x1c8] sm:$0xf] }
 0x7d3   : > { %7939 = vmatpush.bf16.msrb.mxu2 %v9523_v34  ;;  %7979 = vmatpush.bf16.msrb.mxu1 %v10259_v31  ;;  %v6211_v29 = vsel %vm318_vm0, %v6197_v1, %v14703_v43  ;;  %v6540_v31 = vsel %vm14792_vm2, %v13667_v17, %v6539_v52  ;;  %v10192_v33 = vld [vmem:[#allocation2 + $0x620] sm:$0xf0]  ;;  %v10534_v43 = vld [vmem:[#allocation2 + $0x64] sm:$0xf0]  ;;  %vm14819_vm2 = vmmov %vm14784_vm9 }
 0x7d4   : > { %v6212_v34 = vsel %vm14791_vm1, %v13510_v42, %v6211_v29  ;;  %8013 = vmatpush.bf16.msra.mxu3 %v10167_v14  ;;  %v10529_v1 = vld [vmem:[#allocation2 + $0x44] sm:$0xf]  ;;  %v13940_v21 = vpop.permute.xlu1 %6103  ;;  %6558 = vst [vmem:[#allocation2 + $0x6a8] sm:$0xff] %v6540_v31  ;;  %v10646_v14 = vld [vmem:[#allocation2 + $0x3e4] sm:$0xf0]  ;;  %vm14817_vm1 = vmmov %vm14797_vm5 }
 0x7d5   : > { %6230 = vst [vmem:[#allocation2 + $0x5a8] sm:$0xff] %v6212_v34  ;;  %5695 = vrot.lane.b32.xlu2 %v13700_v59, %s14757_s29  ;;  %v9459_v42 = vor.u32 %v10529_v1, %v9456_v24  ;;  %v10713_v58 = vld [vmem:[#allocation2 + $0x604] sm:$0xf]  ;;  %v14709_v17 = vrot.slane %v13940_v21, 4  ;;  %v9622_v31 = vld [vmem:[#allocation2 + $0x188] sm:$0xf] }
 0x7d6   : > { %5685 = vrot.lane.b32.xlu0 %v13689_v62, %s14757_s29  ;;  %v10195_v45 = vor.u32 %v10713_v58, %v10192_v33  ;;  %v9424_v23 = vld [vmem:[#allocation2 + $0x20] sm:$0xf0]  ;;  %v9910_v33 = vld [vmem:[#allocation2 + $0x3c8] sm:$0xf]  ;;  %v6242_v1 = vld [vmem:[#allocation3 + $0x4c] sm:$0xf] }
 0x7d7   : > { %7940 = vmatpush.bf16.msrb.mxu2 %v9491_v32  ;;  %7980 = vmatpush.bf16.msrb.mxu1 %v10227_v39  ;;  %v13949_v54 = vpop.permute.xlu2 %6421  ;;  %v9655_v32 = vor.u32 %v10582_v19, %v9654_v51  ;;  %v10521_v48 = vld [vmem:[#allocation2 + $0x4] sm:$0xf]  ;;  %v6129_v62 = vsel %vm318_vm0, %v6115_v2, %v14709_v17  ;;  %v10574_v39 = vld [vmem:[#allocation2 + $0x1a4] sm:$0xf0]  ;;  %v14794_v2 = vrot.slane %v13547_v27, 4 }
 0x7d8   : > { %v13947_v41 = vpop.permute.xlu0 %6011  ;;  %v6237_v59 = vld [vmem:[#allocation3 + $0x24] sm:$0xf]  ;;  %v14698_v52 = vrot.slane %v13949_v54, 4  ;;  %v6130_v24 = vsel %vm14793_vm3, %v13593_v49, %v6129_v62  ;;  %v9427_v34 = vor.u32 %v10521_v48, %v9424_v23  ;;  %v9878_v51 = vld [vmem:[#allocation2 + $0x388] sm:$0xf]  ;;  %v9623_v48 = vor.u32 %v10574_v39, %v9622_v31 }
 0x7d9   : > { %v14697_v29 = vrot.slane %v13947_v41, 4  ;;  %6148 = vst [vmem:[#allocation2 + $0x568] sm:$0xff] %v6130_v24  ;;  %v5499_v49 = vld [vmem:[#allocation3 + $0x24] sm:$0xf]  ;;  %v10134_v62 = vld [vmem:[#allocation2 + $0x588] sm:$0xf] }
 0x7da   : > { %6261 = vrot.lane.b32.xlu1 %v6237_v59, %s14737_s26  ;;  %v9590_v39 = vld [vmem:[#allocation2 + $0x148] sm:$0xf]  ;;  %vm14820_vm3 = vcmask 228352  }
 0x7db   : > { %7941 = vmatpush.bf16.msrb.mxu2 %v9459_v42  ;;  %7981 = vmatpush.bf16.msrb.mxu1 %v10195_v45  ;;  %v6039_v19 = vsel %vm318_vm0, %v14794_v2, %v14697_v29  ;;  %v14795_v42 = vrot.slane %v13708_v36, 4  ;;  %v9911_v45 = vor.u32 %v10646_v14, %v9910_v33  ;;  %v10517_v2 = vld [vmem:[#allocation9 + $0x4] sm:$0xf]  ;;  %v9408_v14 = vld [vmem:[#allocation9 + $0x10] sm:$0xf0] }
 0x7dc   : > { %v6040_v23 = vsel %vm14796_vm4, %v13547_v27, %v6039_v19  ;;  %v10702_v24 = vld [vmem:[#allocation2 + $0x5a4] sm:$0xf0]  ;;  %v13975_v33 = vpop.permute.xlu1 %5929  ;;  %v13978_v59 = vor.u32 %v10517_v2, %v9408_v14  ;;  %vm14822_vm4 = vcmask 154624  }
 0x7dd   : > { %v6449_v58 = vsel %vm318_vm0, %v14795_v42, %v14698_v52  ;;  %6062 = vst [vmem:[#allocation2 + $0x508] sm:$0xff] %v6040_v23  ;;  %v10135_v29 = vor.u32 %v10702_v24, %v10134_v62  ;;  %v10566_v42 = vld [vmem:[#allocation2 + $0x164] sm:$0xf0]  ;;  %5523 = vrot.lane.b32.xlu2 %v5499_v49, %s14735_s20 }
 0x7de   : > { %6271 = vrot.lane.b32.xlu0 %v6242_v1, %s14737_s26  ;;  %v10638_v27 = vld [vmem:[#allocation2 + $0x3a4] sm:$0xf0]  ;;  %7904 = vmatmul.bf16.vlgmr.msra.gmra.mxu0 %v13978_v59  ;;  %v14798_v1 = vrot.slane %v13630_v40, 4  ;;  %s8389_s26 = scalar_lea.sflag [#allocation6], %s11219_s8 }
 0x7df   : > { %7987 = vmatpush.bf16.msra.mxu1 %v9655_v32  ;;  %v6450_v32 = vsel %vm14797_vm5, %v13708_v36, %v6449_v58  ;;  %7942 = vmatpush.bf16.msrb.mxu2 %v9427_v34  ;;  %v14707_v36 = vrot.slane %v13975_v33, 4  ;;  %v9879_v34 = vor.u32 %v10638_v27, %v9878_v51  ;;  %v10630_v31 = vld [vmem:[#allocation2 + $0x364] sm:$0xf0]  ;;  %v13984_v58 = vpop.permute.xlu2 %5693  ;;  %v14800_v27 = vrot.slane %v13584_v11, 4  ;;  %vm14825_vm5 = vmmov %vm14822_vm4 }
 0x7e0   : > { %6472 = vst [vmem:[#allocation2 + $0x648] sm:$0xff] %v6450_v32  ;;  %8014 = vmatpush.bf16.msra.mxu3 %v10135_v29  ;;  %v13982_v19 = vpop.permute.xlu0 %5939  ;;  %v9846_v23 = vld [vmem:[#allocation2 + $0x348] sm:$0xf]  ;;  %v5504_v29 = vld [vmem:[#allocation3 + $0x4c] sm:$0xf]  ;;  %v14700_v32 = vrot.slane %v13984_v58, 4 }
 0x7e1   : > { %v5957_v49 = vsel %vm318_vm0, %v14798_v1, %v14707_v36  ;;  %v14699_v51 = vrot.slane %v13982_v19, 4  ;;  %7956 = vmatmul.bf16.vlgmr.msrb.gmra.mxu3 %v13978_v59  ;;  %v10102_v24 = vld [vmem:[#allocation2 + $0x548] sm:$0xf]  ;;  %v9847_v14 = vor.u32 %v10630_v31, %v9846_v23 }
 0x7e2   : > { %7943 = vmatmul.bf16.vlgmr.msrb.gmra.mxu2 %v13812_v13  ;;  %v5958_v62 = vsel %vm14799_vm6, %v13630_v40, %v5957_v49  ;;  %v10694_v2 = vld [vmem:[#allocation2 + $0x564] sm:$0xf0]  ;;  %v6155_v40 = vld [vmem:[#allocation3 + $0x24] sm:$0xf]  ;;  %10285 = vmatmul.msk.bf16.vlgmr.msrb.gmra.mxu1 %vm14802_vm7, %v13863_v63  ;;  %vm14826_vm6 = vcmask 236544   ;;  %vm14828_vm7 = vmmov %vm14809_vm12 }
 0x7e3   : > { %8000 = vmatpush.bf16.msra.mxu2 %v9911_v45  ;;  %7988 = vmatpush.bf16.msra.mxu1 %v9623_v48  ;;  %v9591_v45 = vor.u32 %v10566_v42, %v9590_v39  ;;  %v10558_v48 = vld [vmem:[#allocation2 + $0x124] sm:$0xf0]  ;;  %5980 = vst [vmem:[#allocation2 + $0x4c8] sm:$0xff] %v5958_v62  ;;  %v5965_v39 = vsel %vm318_vm0, %v14800_v27, %v14699_v51  ;;  %v6160_v62 = vld [vmem:[#allocation3 + $0x4c] sm:$0xf] }
 0x7e4   : > { %v9558_v42 = vld [vmem:[#allocation2 + $0x108] sm:$0xf]  ;;  %v10103_v52 = vor.u32 %v10694_v2, %v10102_v24  ;;  %5533 = vrot.lane.b32.xlu1 %v5504_v29, %s14735_s20  ;;  %v5966_v31 = vsel %vm14803_vm8, %v13584_v11, %v5965_v39  ;;  %vm14831_vm8 = vmmov %vm14815_vm15  ;;  %s265_s20 = scalar_lea.vmem [#allocation12], %s8515_s7 }
 0x7e5   : > { %v9559_v49 = vor.u32 %v10558_v48, %v9558_v42  ;;  %v10070_v27 = vld [vmem:[#allocation2 + $0x508] sm:$0xf]  ;;  %5984 = vst [vmem:[#allocation2 + $0x4e8] sm:$0xff] %v5966_v31  ;;  %6189 = vrot.lane.b32.xlu2 %v6160_v62, %s14738_s9  ;;  %s8402_s19 = sshll.u32 %s265_s20, 4  ;;  %s8403_s19 = int_to_ptr.vmem [resolvable:$true] %s8402_s19 }
 0x7e6   : > { %v10686_v51 = vld [vmem:[#allocation2 + $0x524] sm:$0xf0]  ;;  %8015 = vmatpush.bf16.msra.mxu3 %v10103_v52  ;;  %6179 = vrot.lane.b32.xlu0 %v6155_v40, %s14738_s9  ;;  %v6073_v40 = vld [vmem:[#allocation3 + $0x24] sm:$0xf] }
 0x7e7   : > { %8001 = vmatpush.bf16.msra.mxu2 %v9879_v34  ;;  %7989 = vmatpush.bf16.msra.mxu1 %v9591_v45  ;;  %v14801_v34 = vrot.slane %v13844_v37, 4  ;;  %v10622_v45 = vld [vmem:[#allocation2 + $0x324] sm:$0xf0]  ;;  %v10071_v24 = vor.u32 %v10686_v51, %v10070_v27  ;;  %v14022_v39 = vpop.permute.xlu2 %5603 }
 0x7e8   : > { %v10550_v2 = vld [vmem:[#allocation2 + $0xe4] sm:$0xf0]  ;;  %v14020_v42 = vpop.permute.xlu0 %6503 }
 0x7e9   : > { %v5719_v1 = vsel %vm318_vm0, %v14801_v34, %v14700_v32  ;;  %v14015_v34 = vpop.permute.xlu1 %5857  ;;  %v9814_v29 = vld [vmem:[#allocation2 + $0x308] sm:$0xf]  ;;  %v14702_v31 = vrot.slane %v14020_v42, 4 }
 0x7ea   : > { %v5720_v23 = vsel %vm14784_vm9, %v13844_v37, %v5719_v1  ;;  %v14701_v11 = vrot.slane %v14015_v34, 4  ;;  %v9526_v37 = vld [vmem:[#allocation2 + $0xc8] sm:$0xf]  ;;  %v9815_v48 = vor.u32 %v10622_v45, %v9814_v29  ;;  %8016 = vmatpush.bf16.msra.mxu3 %v10071_v24  ;;  %v14807_v24 = vrot.slane %v13716_v35, 4 }
 0x7eb   : > { %8002 = vmatpush.bf16.msra.mxu2 %v9847_v14  ;;  %5738 = vst [vmem:[#allocation2 + $0x428] sm:$0xff] %v5720_v23  ;;  %7990 = vmatpush.bf16.msra.mxu1 %v9559_v49  ;;  %v9527_v52 = vor.u32 %v10550_v2, %v9526_v37  ;;  %v10614_v51 = vld [vmem:[#allocation2 + $0x2e4] sm:$0xf0]  ;;  %v14804_v14 = vrot.slane %v13695_v9, 4  ;;  %v14705_v23 = vrot.slane %v14022_v39, 4  ;;  %v14806_v2 = vrot.slane %v13656_v56, 4 }
 0x7ec   : > { %v10542_v45 = vld [vmem:[#allocation2 + $0xa4] sm:$0xf0]  ;;  %6097 = vrot.lane.b32.xlu1 %v6073_v40, %s14739_s10  ;;  %vm14832_vm9 = vcmask 310272  }
 0x7ed   : > { %v5883_v1 = vsel %vm318_vm0, %v14804_v14, %v14701_v11  ;;  %v9494_v62 = vld [vmem:[#allocation2 + $0x88] sm:$0xf]  ;;  %v6531_v29 = vsel %vm318_vm0, %v14806_v2, %v14702_v31  ;;  %v5631_v37 = vsel %vm318_vm0, %v14807_v24, %v14705_v23  ;;  %v6078_v14 = vld [vmem:[#allocation3 + $0x4c] sm:$0xf] }
 0x7ee   : > { %v5884_v49 = vsel %vm14805_vm10, %v13695_v9, %v5883_v1  ;;  %v9782_v27 = vld [vmem:[#allocation2 + $0x2c8] sm:$0xf]  ;;  %v6532_v9 = vsel %vm14808_vm11, %v13656_v56, %v6531_v29  ;;  %v9495_v1 = vor.u32 %v10542_v45, %v9494_v62  ;;  %6107 = vrot.lane.b32.xlu0 %v6078_v14, %s14739_s10  ;;  %7969 = vmatmul.bf16.vlgmr.msrb.gmra.mxu0 %v13908_v44  ;;  %v5996_v14 = vld [vmem:[#allocation3 + $0x4c] sm:$0xf]  ;;  %vm14834_vm10 = vcmask 1039360  }
 0x7ef   : > { %8003 = vmatpush.bf16.msra.mxu2 %v9815_v48  ;;  %7991 = vmatpush.bf16.msra.mxu1 %v9527_v52  ;;  %5902 = vst [vmem:[#allocation2 + $0x4a8] sm:$0xff] %v5884_v49  ;;  %v9783_v48 = vor.u32 %v10614_v51, %v9782_v27  ;;  %v10606_v32 = vld [vmem:[#allocation2 + $0x2a4] sm:$0xf0]  ;;  %v5632_v52 = vsel %vm14809_vm12, %v13716_v35, %v5631_v37  ;;  %v5991_v49 = vld [vmem:[#allocation3 + $0x24] sm:$0xf]  ;;  %v14055_v62 = vpop.permute.xlu2 %6269  ;;  %v14810_v37 = vrot.slane %v13742_v46, 4  ;;  %vm14838_vm12 = vmmov %vm14834_vm10 }
 0x7f0   : > { %v10038_v2 = vld [vmem:[#allocation2 + $0x4c8] sm:$0xf]  ;;  %6554 = vst [vmem:[#allocation2 + $0x688] sm:$0xff] %v6532_v9  ;;  %6015 = vrot.lane.b32.xlu2 %v5991_v49, %s14740_s12  ;;  %v14053_v45 = vpop.permute.xlu0 %5775  ;;  %vm14837_vm11 = vcmask 392192  }
 0x7f1   : > { %v10678_v11 = vld [vmem:[#allocation2 + $0x4e4] sm:$0xf0]  ;;  %v14048_v24 = vpop.permute.xlu1 %5765  ;;  %5653 = vst [vmem:[#allocation2 + $0x3d0] sm:$0xff] %v5632_v52 }
 0x7f2   : > { %v10039_v31 = vor.u32 %v10678_v11, %v10038_v2  ;;  %v9750_v51 = vld [vmem:[#allocation2 + $0x288] sm:$0xf]  ;;  %v14704_v56 = vrot.slane %v14048_v24, 4  ;;  %v9912_v2 = vld [vmem:[#allocation2 + $0x3e8] sm:$0xf0] }
 0x7f3   : > { %8004 = vmatpush.bf16.msra.mxu2 %v9783_v48  ;;  %7992 = vmatpush.bf16.msra.mxu1 %v9495_v1  ;;  %v9462_v35 = vld [vmem:[#allocation2 + $0x48] sm:$0xf]  ;;  %v9751_v40 = vor.u32 %v10606_v32, %v9750_v51  ;;  %v14711_v32 = vrot.slane %v14055_v62, 4 }
 0x7f4   : > { %8017 = vmatpush.bf16.msra.mxu3 %v10039_v31  ;;  %v9463_v11 = vor.u32 %v10534_v43, %v9462_v35  ;;  %v10526_v27 = vld [vmem:[#allocation2 + $0x24] sm:$0xf0]  ;;  %v5793_v48 = vsel %vm318_vm0, %v14810_v37, %v14704_v56  ;;  %v14708_v31 = vrot.slane %v14053_v45, 4  ;;  %v14812_v35 = vrot.slane %v13753_v7, 4  ;;  %6025 = vrot.lane.b32.xlu1 %v5996_v14, %s14740_s12  ;;  %v10634_v14 = vld [vmem:[#allocation2 + $0x38c] sm:$0xf] }
 0x7f5   : > { %v10598_v29 = vld [vmem:[#allocation2 + $0x264] sm:$0xf0]  ;;  %v5794_v43 = vsel %vm14811_vm13, %v13742_v46, %v5793_v48  ;;  %v10642_v48 = vld [vmem:[#allocation2 + $0x3cc] sm:$0xf]  ;;  %vm14839_vm13 = vcmask 138240  }
 0x7f6   : > { %v9430_v9 = vld [vmem:[#allocation2 + $0x8] sm:$0xf]  ;;  %5816 = vst [vmem:[#allocation2 + $0x448] sm:$0xff] %v5794_v43  ;;  %v5801_v37 = vsel %vm318_vm0, %v14812_v35, %v14708_v31  ;;  %v5914_v35 = vld [vmem:[#allocation3 + $0x4c] sm:$0xf] }
 0x7f7   : > { %8005 = vmatpush.bf16.msra.mxu2 %v9751_v40  ;;  %v9718_v52 = vld [vmem:[#allocation2 + $0x248] sm:$0xf]  ;;  %7993 = vmatpush.bf16.msra.mxu1 %v9463_v11  ;;  %v14813_v40 = vrot.slane %v13865_v22, 4  ;;  %v5909_v11 = vld [vmem:[#allocation3 + $0x24] sm:$0xf]  ;;  %v5802_v43 = vsel %vm14814_vm14, %v13753_v7, %v5801_v37  ;;  %v9431_v36 = vor.u32 %v10526_v27, %v9430_v9  ;;  %vm14841_vm14 = vmmov %vm14820_vm3 }
 0x7f8   : > { %v10006_v1 = vld [vmem:[#allocation2 + $0x488] sm:$0xf]  ;;  %v9719_v46 = vor.u32 %v10598_v29, %v9718_v52  ;;  %5820 = vst [vmem:[#allocation2 + $0x468] sm:$0xff] %v5802_v43  ;;  %v10168_v29 = vld [vmem:[#allocation2 + $0x5e8] sm:$0xf0]  ;;  %5933 = vrot.lane.b32.xlu0 %v5909_v11, %s14741_s13  ;;  %5943 = vrot.lane.b32.xlu2 %v5914_v35, %s14741_s13  ;;  %v14818_v35 = vrot.slane %v13744_v8, 4 }
 0x7f9   : > { %v10670_v49 = vld [vmem:[#allocation2 + $0x4a4] sm:$0xf0]  ;;  %v6295_v56 = vsel %vm318_vm0, %v14813_v40, %v14711_v32  ;;  %v9915_v40 = vor.u32 %v10642_v48, %v9912_v2  ;;  %v14082_v52 = vpop.permute.xlu1 %6431  ;;  %v10706_v27 = vld [vmem:[#allocation2 + $0x5cc] sm:$0xf] }
 0x7fa   : > { %v10590_v51 = vld [vmem:[#allocation2 + $0x224] sm:$0xf0]  ;;  %v10007_v23 = vor.u32 %v10670_v49, %v10006_v1  ;;  %v6296_v60 = vsel %vm14815_vm15, %v13865_v22, %v6295_v56  ;;  %v14719_v22 = vrot.slane %v14082_v52, 4  ;;  %v10171_v9 = vor.u32 %v10706_v27, %v10168_v29  ;;  %v5827_v49 = vld [vmem:[#allocation3 + $0x24] sm:$0xf]  ;;  %vm14844_vm15 = vmmov %vm14837_vm11 }
 0x7fb   : > { %v10262_v31 = vld [vmem:[#allocation2 + $0x688] sm:$0xf]  ;;  %8006 = vmatpush.bf16.msra.mxu2 %v9719_v46  ;;  %6313 = vst [vmem:[#allocation2 + $0x5f0] sm:$0xff] %v6296_v60  ;;  %7994 = vmatpush.bf16.msra.mxu1 %v9431_v36  ;;  %v14816_v60 = vrot.slane %v13658_v25, 4  ;;  %v10136_v46 = vld [vmem:[#allocation2 + $0x5a8] sm:$0xf0] }
 0x7fc   : > { %v10734_v17 = vld [vmem:[#allocation2 + $0x6a4] sm:$0xf0]  ;;  %8018 = vmatpush.bf16.msra.mxu3 %v10007_v23  ;;  %v14087_v23 = vpop.permute.xlu0 %5683  ;;  %v10626_v48 = vld [vmem:[#allocation2 + $0x34c] sm:$0xf]  ;;  %5851 = vrot.lane.b32.xlu1 %v5827_v49, %s14742_s24 }
 0x7fd   : > { %v10263_v1 = vor.u32 %v10734_v17, %v10262_v31  ;;  %v9686_v7 = vld [vmem:[#allocation2 + $0x208] sm:$0xf]  ;;  %v14089_v17 = vpop.permute.xlu2 %6177  ;;  %v9880_v31 = vld [vmem:[#allocation2 + $0x3a8] sm:$0xf0]  ;;  %v6457_v36 = vsel %vm318_vm0, %v14816_v60, %v14719_v22  ;;  %v14712_v2 = vrot.slane %v14087_v23, 4 }
 0x7fe   : > { %v9687_v56 = vor.u32 %v10590_v51, %v9686_v7  ;;  %v14710_v37 = vrot.slane %v14089_v17, 4  ;;  %v9883_v51 = vor.u32 %v10634_v14, %v9880_v31  ;;  %7995 = vmatmul.bf16.vlgmr.msra.gmra.mxu1 %v13812_v13  ;;  %v6458_v11 = vsel %vm14817_vm1, %v13658_v25, %v6457_v36  ;;  %v9848_v43 = vld [vmem:[#allocation2 + $0x368] sm:$0xf0]  ;;  %v9974_v31 = vld [vmem:[#allocation2 + $0x448] sm:$0xf]  ;;  %vm14845_vm1 = vmmov %vm14826_vm6 }
 0x7ff   : > { %8052 = vmatpush.bf16.msrb.mxu1 %v9915_v40  ;;  %8031 = vmatpush.bf16.msra.mxu0 %v10263_v1  ;;  %6476 = vst [vmem:[#allocation2 + $0x668] sm:$0xff] %v6458_v11  ;;  %v5711_v40 = vsel %vm318_vm0, %v14818_v35, %v14712_v2  ;;  %v5832_v29 = vld [vmem:[#allocation3 + $0x4c] sm:$0xf]  ;;  %v9851_v60 = vor.u32 %v10626_v48, %v9848_v43 }
 0x800   : > { %8007 = vmatpush.bf16.msra.mxu2 %v9687_v56  ;;  %v6205_v1 = vsel %vm318_vm0, %v6193_v53, %v14710_v37  ;;  %v10698_v7 = vld [vmem:[#allocation2 + $0x58c] sm:$0xf]  ;;  %v5712_v25 = vsel %vm14819_vm2, %v13744_v8, %v5711_v40  ;;  %v6483_v56 = vld [vmem:[#allocation3 + $0x24] sm:$0xf]  ;;  %5861 = vrot.lane.b32.xlu0 %v5832_v29, %s14742_s24  ;;  %v14821_v40 = vrot.slane %v13697_v28, 4  ;;  %vm14846_vm2 = vcmask 146432  }
 0x801   : > { %v6206_v14 = vsel %vm14820_vm3, %v13903_v5, %v6205_v1  ;;  %v10139_v27 = vor.u32 %v10698_v7, %v10136_v46  ;;  %5734 = vst [vmem:[#allocation2 + $0x408] sm:$0xff] %v5712_v25  ;;  %v10104_v36 = vld [vmem:[#allocation2 + $0x568] sm:$0xf0]  ;;  %6507 = vrot.lane.b32.xlu2 %v6483_v56, %s11083_s11  ;;  %vm14848_vm3 = vcmask 302080   ;;  %s10995_s24 = scalar_lea.hbm %s14637_s4, 128 }
 0x802   : > { %6227 = vst [vmem:[#allocation2 + $0x590] sm:$0xff] %v6206_v14  ;;  %v9816_v8 = vld [vmem:[#allocation2 + $0x328] sm:$0xf0] }
 0x803   : > { %8053 = vmatpush.bf16.msrb.mxu1 %v9883_v51  ;;  %8008 = vmatmul.bf16.vlgmr.msra.gmra.mxu2 %v13978_v59  ;;  %v14117_v51 = vpop.permute.xlu1 %6339  ;;  %v10690_v5 = vld [vmem:[#allocation2 + $0x54c] sm:$0xf] }
 0x804   : > { %8065 = vmatpush.bf16.msrb.mxu2 %v10171_v9  ;;  %v10662_v9 = vld [vmem:[#allocation2 + $0x464] sm:$0xf0]  ;;  %v14717_v49 = vrot.slane %v14117_v51, 4  ;;  %v14122_v46 = vpop.permute.xlu0 %6349  ;;  %v10618_v48 = vld [vmem:[#allocation2 + $0x30c] sm:$0xf]  ;;  %v10107_v43 = vor.u32 %v10690_v5, %v10104_v36  ;;  %v14823_v5 = vrot.slane %v13787_v12, 4 }
 0x805   : > { %v9975_v53 = vor.u32 %v10662_v9, %v9974_v31  ;;  %v14124_v11 = vpop.permute.xlu2 %6105  ;;  %v9784_v35 = vld [vmem:[#allocation2 + $0x2e8] sm:$0xf0]  ;;  %v14716_v7 = vrot.slane %v14122_v46, 4  ;;  %v9819_v14 = vor.u32 %v10618_v48, %v9816_v8  ;;  %v10230_v31 = vld [vmem:[#allocation2 + $0x648] sm:$0xf]  ;;  %v14824_v8 = vrot.slane %v13940_v21, 4 }
 0x806   : > { %v6367_v1 = vsel %vm318_vm0, %v14821_v40, %v14717_v49  ;;  %v6488_v29 = vld [vmem:[#allocation3 + $0x4c] sm:$0xf]  ;;  %v14713_v25 = vrot.slane %v14124_v11, 4  ;;  %v10726_v9 = vld [vmem:[#allocation2 + $0x664] sm:$0xf0] }
 0x807   : > { %8054 = vmatpush.bf16.msrb.mxu1 %v9851_v60  ;;  %8019 = vmatpush.bf16.msra.mxu3 %v9975_v53  ;;  %v10682_v56 = vld [vmem:[#allocation2 + $0x50c] sm:$0xf]  ;;  %v10231_v36 = vor.u32 %v10726_v9, %v10230_v31  ;;  %v6375_v40 = vsel %vm318_vm0, %v14823_v5, %v14716_v7  ;;  %v10654_v5 = vld [vmem:[#allocation2 + $0x424] sm:$0xf0] }
 0x808   : > { %8066 = vmatpush.bf16.msrb.mxu2 %v10139_v27  ;;  %v6368_v27 = vsel %vm14822_vm4, %v13697_v28, %v6367_v1  ;;  %v10610_v60 = vld [vmem:[#allocation2 + $0x2cc] sm:$0xf]  ;;  %v6131_v48 = vsel %vm318_vm0, %v14824_v8, %v14713_v25  ;;  %v5745_v28 = vld [vmem:[#allocation3 + $0x24] sm:$0xf]  ;;  %6517 = vrot.lane.b32.xlu1 %v6488_v29, %s11083_s11  ;;  %v9942_v9 = vld [vmem:[#allocation2 + $0x408] sm:$0xf] }
 0x809   : > { %v10072_v53 = vld [vmem:[#allocation2 + $0x528] sm:$0xf0]  ;;  %6390 = vst [vmem:[#allocation2 + $0x608] sm:$0xff] %v6368_v27  ;;  %v6132_v27 = vsel %vm14826_vm6, %v13940_v21, %v6131_v48  ;;  %8032 = vmatpush.bf16.msra.mxu0 %v10231_v36  ;;  %v9787_v32 = vor.u32 %v10610_v60, %v9784_v35  ;;  %v9943_v2 = vor.u32 %v10654_v5, %v9942_v9  ;;  %vm14851_vm4 = vmmov %vm14848_vm3 }
 0x80a   : > { %v5750_v1 = vld [vmem:[#allocation3 + $0x4c] sm:$0xf]  ;;  %v10075_v31 = vor.u32 %v10682_v56, %v10072_v53  ;;  %6149 = vst [vmem:[#allocation2 + $0x570] sm:$0xff] %v6132_v27  ;;  %5769 = vrot.lane.b32.xlu0 %v5745_v28, %s14747_s25  ;;  %v14827_v28 = vrot.slane %v13806_v61, 4  ;;  %vm14854_vm6 = vmmov %vm14832_vm9 }
 0x80b   : > { %8055 = vmatpush.bf16.msrb.mxu1 %v9819_v14  ;;  %v10730_v37 = vld [vmem:[#allocation2 + $0x68c] sm:$0xf]  ;;  %v14150_v14 = vpop.permute.xlu1 %5613  ;;  %5779 = vrot.lane.b32.xlu2 %v5750_v1, %s14747_s25 }
 0x80c   : > { %8067 = vmatpush.bf16.msrb.mxu2 %v10107_v43  ;;  %v6376_v43 = vsel %vm14825_vm5, %v13787_v12, %v6375_v40  ;;  %v10040_v8 = vld [vmem:[#allocation2 + $0x4e8] sm:$0xf0]  ;;  %v14715_v40 = vrot.slane %v14150_v14, 4  ;;  %8020 = vmatpush.bf16.msra.mxu3 %v9943_v2  ;;  %v14155_v53 = vpop.permute.xlu0 %6259  ;;  %vm14852_vm5 = vcmask 957440  }
 0x80d   : > { %6394 = vst [vmem:[#allocation2 + $0x628] sm:$0xff] %v6376_v43  ;;  %v10264_v29 = vld [vmem:[#allocation2 + $0x6a8] sm:$0xf0]  ;;  %v14157_v35 = vpop.permute.xlu2 %5931 }
 0x80e   : > { %v9752_v12 = vld [vmem:[#allocation2 + $0x2a8] sm:$0xf0]  ;;  %v10267_v21 = vor.u32 %v10730_v37, %v10264_v29  ;;  %v5639_v27 = vsel %vm318_vm0, %v14827_v28, %v14715_v40  ;;  %v14718_v2 = vrot.slane %v14157_v35, 4  ;;  %v14829_v28 = vrot.slane %v13761_v6, 4 }
 0x80f   : > { %8056 = vmatpush.bf16.msrb.mxu1 %v9787_v32  ;;  %v10674_v56 = vld [vmem:[#allocation2 + $0x4cc] sm:$0xf]  ;;  %v14714_v32 = vrot.slane %v14155_v53, 4  ;;  %v5640_v9 = vsel %vm14828_vm7, %v13806_v61, %v5639_v27  ;;  %8021 = vmatmul.bf16.vlgmr.msra.gmra.mxu3 %v13908_v44  ;;  %vm14857_vm7 = vmmov %vm14839_vm13 }
 0x810   : > { %8068 = vmatpush.bf16.msrb.mxu2 %v10075_v31  ;;  %v10602_v60 = vld [vmem:[#allocation2 + $0x28c] sm:$0xf]  ;;  %v10043_v36 = vor.u32 %v10674_v56, %v10040_v8  ;;  %v6401_v31 = vld [vmem:[#allocation3 + $0x24] sm:$0xf]  ;;  %8083 = vmatpush.bf16.msrb.mxu3 %v10267_v21  ;;  %5657 = vst [vmem:[#allocation2 + $0x3f0] sm:$0xff] %v5640_v9 }
 0x811   : > { %v10232_v48 = vld [vmem:[#allocation2 + $0x668] sm:$0xf0]  ;;  %v9755_v37 = vor.u32 %v10602_v60, %v9752_v12  ;;  %v6287_v21 = vsel %vm318_vm0, %v14829_v28, %v14714_v32  ;;  %v14830_v12 = vrot.slane %v13975_v33, 4  ;;  %v10198_v27 = vld [vmem:[#allocation2 + $0x608] sm:$0xf]  ;;  %6425 = vrot.lane.b32.xlu1 %v6401_v31, %s11082_s14 }
 0x812   : > { %v9720_v43 = vld [vmem:[#allocation2 + $0x268] sm:$0xf0]  ;;  %v6288_v9 = vsel %vm14831_vm8, %v13761_v6, %v6287_v21  ;;  %vm14858_vm8 = vcmask 973824  }
 0x813   : > { %v10008_v1 = vld [vmem:[#allocation2 + $0x4a8] sm:$0xf0]  ;;  %v5959_v60 = vsel %vm318_vm0, %v14830_v12, %v14718_v2  ;;  %8057 = vmatpush.bf16.msrb.mxu1 %v9755_v37  ;;  %6309 = vst [vmem:[#allocation2 + $0x5d0] sm:$0xff] %v6288_v9  ;;  %v10583_v12 = vld [vmem:[#allocation2 + $0x1ec] sm:$0xf0]  ;;  %v14184_v22 = vpop.permute.xlu1 %5521 }
 0x814   : > { %8069 = vmatpush.bf16.msrb.mxu2 %v10043_v36  ;;  %v10722_v5 = vld [vmem:[#allocation2 + $0x64c] sm:$0xf]  ;;  %v5663_v36 = vld [vmem:[#allocation3 + $0x24] sm:$0xf]  ;;  %v5960_v28 = vsel %vm14832_vm9, %v13975_v33, %v5959_v60  ;;  %v10718_v40 = vld [vmem:[#allocation2 + $0x624] sm:$0xf0] }
 0x815   : > { %v6406_v8 = vld [vmem:[#allocation3 + $0x4c] sm:$0xf]  ;;  %v10235_v61 = vor.u32 %v10722_v5, %v10232_v48  ;;  %v10199_v48 = vor.u32 %v10718_v40, %v10198_v27  ;;  %5981 = vst [vmem:[#allocation2 + $0x4d0] sm:$0xff] %v5960_v28  ;;  %v5538_v33 = vrot.slane %v14184_v22, 4  ;;  %5687 = vrot.lane.b32.xlu2 %v5663_v36, %s14757_s29  ;;  %v10575_v9 = vld [vmem:[#allocation2 + $0x1ac] sm:$0xf0] }
 0x816   : > { %v10594_v29 = vld [vmem:[#allocation2 + $0x24c] sm:$0xf]  ;;  %6435 = vrot.lane.b32.xlu0 %v6406_v8, %s11082_s14  ;;  %vm14860_vm9 = vcmask 318464   ;;  %s8400_s14 = scalar_lea.hbm %s14637_s4, %s10737_s30 }
 0x817   : > { %v10666_v56 = vld [vmem:[#allocation2 + $0x48c] sm:$0xf]  ;;  %8084 = vmatpush.bf16.msrb.mxu3 %v10235_v61  ;;  %v9723_v37 = vor.u32 %v10594_v29, %v9720_v43  ;;  %8033 = vmatpush.bf16.msra.mxu0 %v10199_v48  ;;  %s8404_s21 = sshll.u32 %s8400_s14, 4  ;;  %s8405_s21 = int_to_ptr.hbm [resolvable:$true] %s8404_s21 }
 0x818   : > { %v9656_v25 = vld [vmem:[#allocation2 + $0x1e8] sm:$0xf0]  ;;  %v10011_v32 = vor.u32 %v10666_v56, %v10008_v1  ;;  %v9662_v56 = vld [vmem:[#allocation2 + $0x1d0] sm:$0xf]  ;;  %s10989_s9 = sshra.s32 %s8405_s21, 4  ;;  %s10990_s9 = int_to_ptr.hbm [resolvable:$true] %s10989_s9 }
 0x819   : > { %v10714_v7 = vld [vmem:[#allocation2 + $0x60c] sm:$0xf]  ;;  %8058 = vmatpush.bf16.msrb.mxu1 %v9723_v37  ;;  %v9663_v40 = vor.u32 %v10583_v12, %v9662_v56  ;;  %v9630_v37 = vld [vmem:[#allocation2 + $0x190] sm:$0xf]  ;;  %v6319_v56 = vld [vmem:[#allocation3 + $0x24] sm:$0xf]  ;;  %p10996_p11 = scmp.lt.s32.totalorder %s10990_s9, %s14637_s4 }
 0x81a   : > { %v10200_v49 = vld [vmem:[#allocation2 + $0x628] sm:$0xf0]  ;;  %8070 = vmatpush.bf16.msrb.mxu2 %v10011_v32  ;;  %v14833_v32 = vrot.slane %v13874_v20, 4  ;;  %10286 = vmatmul.msk.bf16.vlgmr.msra.gmra.mxu0 %vm14837_vm11, %v13863_v63  ;;  %vm14864_vm11 = vcmask 965632   ;;  %s10991_s10 = scalar_lea.hbm %s10990_s9, 64 }
 0x81b   : > { %v10203_v5 = vor.u32 %v10714_v7, %v10200_v49  ;;  %v9976_v2 = vld [vmem:[#allocation2 + $0x468] sm:$0xf0]  ;;  %v14189_v49 = vpop.permute.xlu0 %5531  ;;  %v14191_v7 = vpop.permute.xlu2 %6515  ;;  %p10992_p1 = scmp.ne.s32.totalorder %s10990_s9, %s10991_s10  ;;  %p10997_p9 = scmp.lt.s32.totalorder %s10995_s24, %s10991_s10 }
 0x81c   : > { %v10578_v6 = vld [vmem:[#allocation2 + $0x1cc] sm:$0xf]  ;;  %v5549_v60 = vsel %vm318_vm0, %v14833_v32, %v5538_v33  ;;  %v14721_v36 = vrot.slane %v14191_v7, 4 }
 0x81d   : > { %v9688_v31 = vld [vmem:[#allocation2 + $0x228] sm:$0xf0]  ;;  %v9659_v1 = vor.u32 %v10578_v6, %v9656_v25  ;;  %v14725_v25 = vrot.slane %v14189_v49, 4  ;;  %8085 = vmatpush.bf16.msrb.mxu3 %v10203_v5  ;;  %v5550_v28 = vsel %vm14834_vm10, %v13874_v20, %v5549_v60  ;;  %v14835_v6 = vrot.slane %v13789_v55, 4  ;;  %v10174_v60 = vld [vmem:[#allocation2 + $0x5d0] sm:$0xf]  ;;  %vm14863_vm10 = vmmov %vm14860_vm9  ;;  %p10993_p4 = pnand %p10992_p1, %p11193_p7  ;;  %p10998_p2 = por %p10997_p9, %p10996_p11 }
 0x81e   : > { %v10658_v43 = vld [vmem:[#allocation2 + $0x44c] sm:$0xf]  ;;  %5571 = vst [vmem:[#allocation2 + $0x390] sm:$0xff] %v5550_v28  ;;  %v10711_v28 = vld [vmem:[#allocation2 + $0x5ec] sm:$0xf0]  ;;  %6343 = vrot.lane.b32.xlu0 %v6319_v56, %s14753_s5 }
 0x81f   : > { %v10586_v29 = vld [vmem:[#allocation2 + $0x20c] sm:$0xf]  ;;  %v9979_v21 = vor.u32 %v10658_v43, %v9976_v2  ;;  %8039 = vmatpush.bf16.msrb.mxu0 %v9659_v1  ;;  %v5557_v5 = vsel %vm318_vm0, %v14835_v6, %v14725_v25  ;;  %v14219_v6 = vpop.permute.xlu1 %6187  ;;  %p10994_p8 = pneg %p10993_p4 }
 0x820   : > { %v9624_v8 = vld [vmem:[#allocation2 + $0x1a8] sm:$0xf0]  ;;  %v9691_v27 = vor.u32 %v10586_v29, %v9688_v31  ;;  %v14836_v31 = vrot.slane %v13913_v57, 4  ;;  %10287 = vmatmul.msk.bf16.vlgmr.msrb.gmra.mxu3 %vm14844_vm15, %v13863_v63  ;;  %vm14871_vm15 = vcmask 154624  }
 0x821   : > { %v5668_v61 = vld [vmem:[#allocation3 + $0x4c] sm:$0xf]  ;;  %8091 = vmatpush.bf16.msra.mxu3 %v9663_v40  ;;  %8071 = vmatpush.bf16.msrb.mxu2 %v9979_v21  ;;  %v5558_v40 = vsel %vm14838_vm12, %v13789_v55, %v5557_v5  ;;  %v9631_v21 = vor.u32 %v10575_v9, %v9630_v37  ;;  %v6199_v55 = vrot.slane %v14219_v6, 4  ;;  %v9598_v9 = vld [vmem:[#allocation2 + $0x150] sm:$0xf]  ;;  %vm14866_vm12 = vmmov %vm14846_vm2  ;;  %p10999_p10 = pnand %p10998_p2, %p10994_p8 }
 0x822   : > { %v10570_v2 = vld [vmem:[#allocation2 + $0x18c] sm:$0xf]  ;;  %v6541_v1 = vsel %vm318_vm0, %v14836_v31, %v14721_v36  ;;  %8059 = vmatpush.bf16.msrb.mxu1 %v9691_v27  ;;  %5697 = vrot.lane.b32.xlu1 %v5668_v61, %s14757_s29  ;;  %5575 = vst [vmem:[#allocation2 + $0x3b0] sm:$0xff] %v5558_v40  ;;  %v10175_v27 = vor.u32 %v10711_v28, %v10174_v60  ;;  %v14843_v60 = vrot.slane %v13949_v54, 4  ;;  %v10535_v36 = vld [vmem:[#allocation2 + $0x6c] sm:$0xf0] }
 0x823   : > { %v10650_v48 = vld [vmem:[#allocation2 + $0x40c] sm:$0xf]  ;;  %v9627_v20 = vor.u32 %v10570_v2, %v9624_v8  ;;  %v6542_v29 = vsel %vm14839_vm13, %v13913_v57, %v6541_v1  ;;  %v10567_v2 = vld [vmem:[#allocation2 + $0x16c] sm:$0xf0]  ;;  %v14224_v37 = vpop.permute.xlu0 %6095  ;;  %v14840_v1 = vrot.slane %v13911_v47, 4  ;;  %vm14868_vm13 = vmmov %vm14852_vm5 }
 0x824   : > { %v9592_v12 = vld [vmem:[#allocation2 + $0x168] sm:$0xf0]  ;;  %6559 = vst [vmem:[#allocation2 + $0x6b0] sm:$0xff] %v6542_v29  ;;  %v9599_v5 = vor.u32 %v10567_v2, %v9598_v9  ;;  %v14724_v56 = vrot.slane %v14224_v37, 4  ;;  %v10551_v9 = vld [vmem:[#allocation2 + $0xec] sm:$0xf0] }
 0x825   : > { %v9944_v43 = vld [vmem:[#allocation2 + $0x428] sm:$0xf0]  ;;  %8040 = vmatpush.bf16.msrb.mxu0 %v9627_v20  ;;  %8092 = vmatpush.bf16.msra.mxu3 %v9631_v21  ;;  %v6213_v20 = vsel %vm318_vm0, %v14840_v1, %v6199_v55  ;;  %v14842_v21 = vrot.slane %v13815_v30, 4 }
 0x826   : > { %v6324_v32 = vld [vmem:[#allocation3 + $0x4c] sm:$0xf]  ;;  %v9947_v8 = vor.u32 %v10650_v48, %v9944_v43  ;;  %8117 = vmatpush.bf16.msra.mxu1 %v10175_v27  ;;  %v14226_v48 = vpop.permute.xlu2 %6423  ;;  %v6214_v40 = vsel %vm14841_vm14, %v13911_v47, %v6213_v20  ;;  %v9566_v27 = vld [vmem:[#allocation2 + $0x110] sm:$0xf]  ;;  %vm14869_vm14 = vcmask 1039360  }
 0x827   : > { %v10562_v61 = vld [vmem:[#allocation2 + $0x14c] sm:$0xf]  ;;  %6353 = vrot.lane.b32.xlu2 %v6324_v32, %s14753_s5  ;;  %v14720_v43 = vrot.slane %v14226_v48, 4  ;;  %8060 = vmatmul.bf16.vlgmr.msrb.gmra.mxu1 %v13978_v59  ;;  %6231 = vst [vmem:[#allocation2 + $0x5b0] sm:$0xff] %v6214_v40  ;;  %v6123_v32 = vsel %vm318_vm0, %v14842_v21, %v14724_v56  ;;  %v9534_v40 = vld [vmem:[#allocation2 + $0xd0] sm:$0xf] }
 0x828   : > { %8072 = vmatpush.bf16.msrb.mxu2 %v9947_v8  ;;  %v9595_v57 = vor.u32 %v10562_v61, %v9592_v12  ;;  %v9560_v31 = vld [vmem:[#allocation2 + $0x128] sm:$0xf0]  ;;  %v10559_v12 = vld [vmem:[#allocation2 + $0x12c] sm:$0xf0]  ;;  %v6124_v47 = vsel %vm14845_vm1, %v13815_v30, %v6123_v32  ;;  %v9535_v21 = vor.u32 %v10551_v9, %v9534_v40  ;;  %v14849_v9 = vrot.slane %v13846_v4, 4  ;;  %vm14873_vm1 = vmmov %vm14871_vm15 }
 0x829   : > { %8093 = vmatpush.bf16.msra.mxu3 %v9599_v5  ;;  %v10554_v29 = vld [vmem:[#allocation2 + $0x10c] sm:$0xf]  ;;  %v6451_v28 = vsel %vm318_vm0, %v14843_v60, %v14720_v43  ;;  %v9567_v61 = vor.u32 %v10559_v12, %v9566_v27  ;;  %6145 = vst [vmem:[#allocation2 + $0x550] sm:$0xff] %v6124_v47  ;;  %v14255_v5 = vpop.permute.xlu1 %6013  ;;  %v14847_v12 = vrot.slane %v13947_v41, 4  ;;  %v10142_v47 = vld [vmem:[#allocation2 + $0x590] sm:$0xf] }
 0x82a   : > { %8041 = vmatpush.bf16.msrb.mxu0 %v9595_v57  ;;  %v9563_v8 = vor.u32 %v10554_v29, %v9560_v31  ;;  %v6452_v2 = vsel %vm14846_vm2, %v13949_v54, %v6451_v28  ;;  %v9528_v57 = vld [vmem:[#allocation2 + $0xe8] sm:$0xf0]  ;;  %v6030_v1 = vrot.slane %v14255_v5, 4  ;;  %vm14874_vm2 = vcmask 228352  }
 0x82b   : > { %8073 = vmatmul.bf16.vlgmr.msrb.gmra.mxu2 %v13908_v44  ;;  %6473 = vst [vmem:[#allocation2 + $0x650] sm:$0xff] %v6452_v2  ;;  %v10546_v31 = vld [vmem:[#allocation2 + $0xcc] sm:$0xf]  ;;  %v14258_v29 = vpop.permute.xlu0 %6023 }
 0x82c   : > { %v9531_v20 = vor.u32 %v10546_v31, %v9528_v57  ;;  %v9496_v54 = vld [vmem:[#allocation2 + $0xa8] sm:$0xf0]  ;;  %v6041_v32 = vsel %vm318_vm0, %v14847_v12, %v6030_v1  ;;  %v14722_v60 = vrot.slane %v14258_v29, 4 }
 0x82d   : > { %8094 = vmatpush.bf16.msra.mxu3 %v9567_v61  ;;  %v6042_v27 = vsel %vm14848_vm3, %v13947_v41, %v6041_v32  ;;  %v10538_v61 = vld [vmem:[#allocation2 + $0x8c] sm:$0xf]  ;;  %v9502_v41 = vld [vmem:[#allocation2 + $0x90] sm:$0xf]  ;;  %vm14876_vm3 = vmmov %vm14858_vm8 }
 0x82e   : > { %8042 = vmatpush.bf16.msrb.mxu0 %v9563_v8  ;;  %v14260_v30 = vpop.permute.xlu2 %5777  ;;  %v10543_v8 = vld [vmem:[#allocation2 + $0xac] sm:$0xf0]  ;;  %6063 = vst [vmem:[#allocation2 + $0x510] sm:$0xff] %v6042_v27  ;;  %v6049_v31 = vsel %vm318_vm0, %v14849_v9, %v14722_v60  ;;  %v9499_v12 = vor.u32 %v10538_v61, %v9496_v54  ;;  %v9464_v43 = vld [vmem:[#allocation2 + $0x68] sm:$0xf0] }
 0x82f   : > { %v14723_v28 = vrot.slane %v14260_v30, 4  ;;  %v10703_v2 = vld [vmem:[#allocation2 + $0x5ac] sm:$0xf0]  ;;  %v9503_v27 = vor.u32 %v10543_v8, %v9502_v41  ;;  %v10530_v54 = vld [vmem:[#allocation2 + $0x4c] sm:$0xf] }
 0x830   : > { %v10143_v57 = vor.u32 %v10703_v2, %v10142_v47  ;;  %v10110_v47 = vld [vmem:[#allocation2 + $0x550] sm:$0xf] }
 0x831   : > { %8095 = vmatpush.bf16.msra.mxu3 %v9535_v21  ;;  %v6050_v21 = vsel %vm14851_vm4, %v13846_v4, %v6049_v31  ;;  %v10695_v2 = vld [vmem:[#allocation2 + $0x56c] sm:$0xf0]  ;;  %v14285_v60 = vpop.permute.xlu1 %5941  ;;  %v9467_v4 = vor.u32 %v10530_v54, %v9464_v43  ;;  %vm14878_vm4 = vmmov %vm14864_vm11 }
 0x832   : > { %8043 = vmatpush.bf16.msrb.mxu0 %v9531_v20  ;;  %v14850_v20 = vrot.slane %v14053_v45, 4  ;;  %8118 = vmatpush.bf16.msra.mxu1 %v10143_v57  ;;  %6067 = vst [vmem:[#allocation2 + $0x530] sm:$0xff] %v6050_v21  ;;  %v10111_v9 = vor.u32 %v10695_v2, %v10110_v47  ;;  %v14727_v61 = vrot.slane %v14285_v60, 4  ;;  %v9470_v31 = vld [vmem:[#allocation2 + $0x50] sm:$0xf]  ;;  %v14853_v57 = vrot.slane %v13982_v19, 4 }
 0x833   : > { %v9471_v8 = vor.u32 %v10535_v36, %v9470_v31  ;;  %v10522_v47 = vld [vmem:[#allocation2 + $0xc] sm:$0xf]  ;;  %v9920_v36 = vld [vmem:[#allocation2 + $0x3f0] sm:$0xf0]  ;;  %v14855_v2 = vrot.slane %v14020_v42, 4 }
 0x834   : > { %v5803_v40 = vsel %vm318_vm0, %v14850_v20, %v14723_v28  ;;  %v14288_v20 = vpop.permute.xlu0 %6505  ;;  %v10643_v28 = vld [vmem:[#allocation2 + $0x3d4] sm:$0xf] }
 0x835   : > { %v5804_v32 = vsel %vm14852_vm5, %v14053_v45, %v5803_v40  ;;  %8096 = vmatpush.bf16.msra.mxu3 %v9503_v27  ;;  %v9432_v40 = vld [vmem:[#allocation2 + $0x28] sm:$0xf0]  ;;  %v14726_v41 = vrot.slane %v14288_v20, 4  ;;  %v10647_v27 = vld [vmem:[#allocation2 + $0x3ec] sm:$0xf0]  ;;  %vm14879_vm5 = vcmask 302080  }
 0x836   : > { %8044 = vmatpush.bf16.msrb.mxu0 %v9499_v12  ;;  %5821 = vst [vmem:[#allocation2 + $0x470] sm:$0xff] %v5804_v32  ;;  %v5606_v45 = vpop.permute.xlu2 %5605  ;;  %v5967_v12 = vsel %vm318_vm0, %v14853_v57, %v14727_v61  ;;  %8119 = vmatpush.bf16.msra.mxu1 %v10111_v9  ;;  %v10527_v32 = vld [vmem:[#allocation2 + $0x2c] sm:$0xf0]  ;;  %v14856_v9 = vrot.slane %v14022_v39, 4  ;;  %v9435_v31 = vor.u32 %v10522_v47, %v9432_v40  ;;  %v9888_v40 = vld [vmem:[#allocation2 + $0x3b0] sm:$0xf0] }
 0x837   : > { %v5621_v21 = vrot.slane %v5606_v45, 4  ;;  %v5968_v43 = vsel %vm14854_vm6, %v13982_v19, %v5967_v12  ;;  %v6533_v54 = vsel %vm318_vm0, %v14855_v2, %v14726_v41  ;;  %v9438_v45 = vld [vmem:[#allocation2 + $0x10] sm:$0xf]  ;;  %v9923_v2 = vor.u32 %v10643_v28, %v9920_v36 }
 0x838   : > { %5985 = vst [vmem:[#allocation2 + $0x4f0] sm:$0xff] %v5968_v43  ;;  %v9918_v57 = vld [vmem:[#allocation2 + $0x3d0] sm:$0xf]  ;;  %v6534_v19 = vsel %vm14857_vm7, %v14020_v42, %v6533_v54  ;;  %v9439_v12 = vor.u32 %v10527_v32, %v9438_v45  ;;  %v9856_v45 = vld [vmem:[#allocation2 + $0x370] sm:$0xf0]  ;;  %vm14881_vm6 = vcmask 220160  }
 0x839   : > { %8097 = vmatpush.bf16.msra.mxu3 %v9471_v8  ;;  %v9919_v43 = vor.u32 %v10647_v27, %v9918_v57  ;;  %v10078_v56 = vld [vmem:[#allocation2 + $0x510] sm:$0xf]  ;;  %6555 = vst [vmem:[#allocation2 + $0x690] sm:$0xff] %v6534_v19  ;;  %v14861_v57 = vrot.slane %v14015_v34, 4  ;;  %vm14882_vm7 = vcmask 392192  }
 0x83a   : > { %8045 = vmatpush.bf16.msrb.mxu0 %v9467_v4  ;;  %v5633_v4 = vsel %vm318_vm0, %v14856_v9, %v5621_v21  ;;  %v10687_v25 = vld [vmem:[#allocation2 + $0x52c] sm:$0xf0]  ;;  %v14310_v21 = vpop.permute.xlu1 %5849 }
 0x83b   : > { %v5634_v8 = vsel %vm14858_vm8, %v14022_v39, %v5633_v4  ;;  %v10079_v41 = vor.u32 %v10687_v25, %v10078_v56  ;;  %v10639_v61 = vld [vmem:[#allocation2 + $0x3ac] sm:$0xf0]  ;;  %v5866_v42 = vrot.slane %v14310_v21, 4  ;;  %v10635_v25 = vld [vmem:[#allocation2 + $0x394] sm:$0xf]  ;;  %v14859_v56 = vrot.slane %v13876_v26, 4  ;;  %vm14884_vm8 = vmmov %vm14881_vm6 }
 0x83c   : > { %5654 = vst [vmem:[#allocation2 + $0x3d8] sm:$0xff] %v5634_v8  ;;  %v9886_v39 = vld [vmem:[#allocation2 + $0x390] sm:$0xf]  ;;  %v14314_v32 = vpop.permute.xlu0 %5859  ;;  %v14862_v8 = vrot.slane %v13984_v58, 4 }
 0x83d   : > { %8098 = vmatpush.bf16.msra.mxu3 %v9439_v12  ;;  %8120 = vmatpush.bf16.msra.mxu1 %v10079_v41  ;;  %v9887_v28 = vor.u32 %v10639_v61, %v9886_v39  ;;  %v5877_v47 = vsel %vm318_vm0, %v14859_v56, %v5866_v42  ;;  %v14728_v36 = vrot.slane %v14314_v32, 4  ;;  %v9891_v41 = vor.u32 %v10635_v25, %v9888_v40  ;;  %v10631_v9 = vld [vmem:[#allocation2 + $0x36c] sm:$0xf0] }
 0x83e   : > { %8046 = vmatpush.bf16.msrb.mxu0 %v9435_v31  ;;  %v14316_v27 = vpop.permute.xlu2 %5695  ;;  %v5878_v4 = vsel %vm14860_vm9, %v13876_v26, %v5877_v47  ;;  %v10046_v61 = vld [vmem:[#allocation2 + $0x4d0] sm:$0xf]  ;;  %vm14886_vm9 = vcmask 310272  }
 0x83f   : > { %v5707_v54 = vrot.slane %v14316_v27, 4  ;;  %v10679_v31 = vld [vmem:[#allocation2 + $0x4ec] sm:$0xf0]  ;;  %5899 = vst [vmem:[#allocation2 + $0x490] sm:$0xff] %v5878_v4  ;;  %v5885_v19 = vsel %vm318_vm0, %v14861_v57, %v14728_v36 }
 0x840   : > { %8099 = vmatmul.bf16.vlgmr.msra.gmra.mxu3 %v13812_v13  ;;  %v9854_v26 = vld [vmem:[#allocation2 + $0x350] sm:$0xf] }
 0x841   : > { %8156 = vmatpush.bf16.msrb.mxu3 %v9923_v2  ;;  %8047 = vmatmul.bf16.vlgmr.msrb.gmra.mxu0 %v13812_v13  ;;  %v5721_v12 = vsel %vm318_vm0, %v14862_v8, %v5707_v54  ;;  %v5886_v2 = vsel %vm14863_vm10, %v14015_v34, %v5885_v19  ;;  %v9855_v39 = vor.u32 %v10631_v9, %v9854_v26  ;;  %v10270_v25 = vld [vmem:[#allocation2 + $0x690] sm:$0xf]  ;;  %vm14888_vm10 = vmmov %vm14869_vm14 }
 0x842   : > { %8104 = vmatpush.bf16.msra.mxu0 %v9919_v43  ;;  %v10047_v43 = vor.u32 %v10679_v31, %v10046_v61  ;;  %v5722_v40 = vsel %vm14864_vm11, %v13984_v58, %v5721_v12  ;;  %v10735_v56 = vld [vmem:[#allocation2 + $0x6ac] sm:$0xf0]  ;;  %5903 = vst [vmem:[#allocation2 + $0x4b0] sm:$0xff] %v5886_v2  ;;  %v14342_v36 = vpop.permute.xlu1 %6433  ;;  %v10619_v31 = vld [vmem:[#allocation2 + $0x314] sm:$0xf]  ;;  %vm14890_vm11 = vmmov %vm14874_vm2 }
 0x843   : > { %v10271_v4 = vor.u32 %v10735_v56, %v10270_v25  ;;  %v10623_v57 = vld [vmem:[#allocation2 + $0x32c] sm:$0xf0]  ;;  %5739 = vst [vmem:[#allocation2 + $0x430] sm:$0xff] %v5722_v40  ;;  %v6445_v61 = vrot.slane %v14342_v36, 4 }
 0x844   : > { %8121 = vmatpush.bf16.msra.mxu1 %v10047_v43  ;;  %v9822_v34 = vld [vmem:[#allocation2 + $0x310] sm:$0xf]  ;;  %v14345_v58 = vpop.permute.xlu0 %5767 }
 0x845   : > { %8157 = vmatpush.bf16.msrb.mxu3 %v9891_v41  ;;  %v9824_v41 = vld [vmem:[#allocation2 + $0x330] sm:$0xf0]  ;;  %8135 = vmatpush.bf16.msra.mxu2 %v10271_v4  ;;  %v9823_v9 = vor.u32 %v10623_v57, %v9822_v34  ;;  %v5784_v8 = vrot.slane %v14345_v58, 4  ;;  %v10615_v26 = vld [vmem:[#allocation2 + $0x2ec] sm:$0xf0] }
 0x846   : > { %8105 = vmatpush.bf16.msra.mxu0 %v9887_v28  ;;  %v10627_v28 = vld [vmem:[#allocation2 + $0x354] sm:$0xf]  ;;  %v5524_v12 = vpop.permute.xlu2 %5523  ;;  %v9827_v43 = vor.u32 %v10619_v31, %v9824_v41  ;;  %v9790_v56 = vld [vmem:[#allocation2 + $0x2d0] sm:$0xf] }
 0x847   : > { %v9859_v47 = vor.u32 %v10627_v28, %v9856_v45  ;;  %v14865_v45 = vrot.slane %v14082_v52, 4  ;;  %v5539_v40 = vrot.slane %v5524_v12, 4  ;;  %v14867_v28 = vrot.slane %v14048_v24, 4  ;;  %v10611_v57 = vld [vmem:[#allocation2 + $0x2d4] sm:$0xf] }
 0x848   : > { %v10014_v41 = vld [vmem:[#allocation2 + $0x490] sm:$0xf] }
 0x849   : > { %8158 = vmatpush.bf16.msrb.mxu3 %v9859_v47  ;;  %v6459_v19 = vsel %vm318_vm0, %v14865_v45, %v6445_v61  ;;  %v5795_v25 = vsel %vm318_vm0, %v14867_v28, %v5784_v8  ;;  %v5551_v4 = vsel %vm318_vm0, %v5538_v33, %v5539_v40  ;;  %v10671_v34 = vld [vmem:[#allocation2 + $0x4ac] sm:$0xf0]  ;;  %v10603_v40 = vld [vmem:[#allocation2 + $0x294] sm:$0xf] }
 0x84a   : > { %8106 = vmatpush.bf16.msra.mxu0 %v9855_v39  ;;  %v6460_v2 = vsel %vm14866_vm12, %v14082_v52, %v6459_v19  ;;  %v9792_v39 = vld [vmem:[#allocation2 + $0x2f0] sm:$0xf0]  ;;  %v5796_v47 = vsel %vm14868_vm13, %v14048_v24, %v5795_v25  ;;  %v9791_v52 = vor.u32 %v10615_v26, %v9790_v56  ;;  %v10015_v45 = vor.u32 %v10671_v34, %v10014_v41  ;;  %v10607_v19 = vld [vmem:[#allocation2 + $0x2ac] sm:$0xf0]  ;;  %v14367_v12 = vpop.permute.xlu1 %6341 }
 0x84b   : > { %6477 = vst [vmem:[#allocation2 + $0x670] sm:$0xff] %v6460_v2  ;;  %v9795_v31 = vor.u32 %v10611_v57, %v9792_v39  ;;  %v9760_v24 = vld [vmem:[#allocation2 + $0x2b0] sm:$0xf0]  ;;  %v9758_v33 = vld [vmem:[#allocation2 + $0x290] sm:$0xf]  ;;  %vm14892_vm12 = vcmask 138240  }
 0x84c   : > { %5817 = vst [vmem:[#allocation2 + $0x450] sm:$0xff] %v5796_v47  ;;  %8122 = vmatpush.bf16.msra.mxu1 %v10015_v45  ;;  %v14370_v26 = vpop.permute.xlu0 %6351  ;;  %v9759_v2 = vor.u32 %v10607_v19, %v9758_v33  ;;  %v9763_v56 = vor.u32 %v10603_v40, %v9760_v24  ;;  %v10599_v47 = vld [vmem:[#allocation2 + $0x26c] sm:$0xf0]  ;;  %v10595_v40 = vld [vmem:[#allocation2 + $0x254] sm:$0xf]  ;;  %vm14894_vm13 = vcmask 236544  }
 0x84d   : > { %8159 = vmatpush.bf16.msrb.mxu3 %v9827_v43  ;;  %v6358_v43 = vrot.slane %v14367_v12, 4  ;;  %v6363_v28 = vrot.slane %v14370_v26, 4  ;;  %v10238_v57 = vld [vmem:[#allocation2 + $0x650] sm:$0xf] }
 0x84e   : > { %8107 = vmatpush.bf16.msra.mxu0 %v9823_v9  ;;  %v5552_v9 = vsel %vm14869_vm14, %v14184_v22, %v5551_v4  ;;  %v14870_v22 = vrot.slane %v14117_v51, 4  ;;  %v6190_v25 = vpop.permute.xlu2 %6189  ;;  %v9728_v4 = vld [vmem:[#allocation2 + $0x270] sm:$0xf0]  ;;  %v9726_v19 = vld [vmem:[#allocation2 + $0x250] sm:$0xf]  ;;  %vm14896_vm14 = vmmov %vm14894_vm13 }
 0x84f   : > { %5572 = vst [vmem:[#allocation2 + $0x398] sm:$0xff] %v5552_v9  ;;  %v6200_v34 = vrot.slane %v6190_v25, 4  ;;  %v9727_v33 = vor.u32 %v10599_v47, %v9726_v19  ;;  %v9731_v25 = vor.u32 %v10595_v40, %v9728_v4  ;;  %v14875_v19 = vrot.slane %v14150_v14, 4 }
 0x850   : > { %v6369_v39 = vsel %vm318_vm0, %v14870_v22, %v6358_v43  ;;  %v10663_v22 = vld [vmem:[#allocation2 + $0x46c] sm:$0xf0] }
 0x851   : > { %8160 = vmatpush.bf16.msrb.mxu3 %v9795_v31  ;;  %v14872_v31 = vrot.slane %v14122_v46, 4 }
 0x852   : > { %8108 = vmatpush.bf16.msra.mxu0 %v9791_v52  ;;  %v6370_v52 = vsel %vm14871_vm15, %v14117_v51, %v6369_v39  ;;  %v10727_v41 = vld [vmem:[#allocation2 + $0x66c] sm:$0xf0]  ;;  %v6215_v51 = vsel %vm318_vm0, %v6199_v55, %v6200_v34  ;;  %vm14898_vm15 = vcmask 957440  }
 0x853   : > { %6391 = vst [vmem:[#allocation2 + $0x610] sm:$0xff] %v6370_v52  ;;  %v10239_v9 = vor.u32 %v10727_v41, %v10238_v57  ;;  %v6377_v45 = vsel %vm318_vm0, %v14872_v31, %v6363_v28  ;;  %v6216_v39 = vsel %vm14874_vm2, %v14219_v6, %v6215_v51  ;;  %v5616_v57 = vpop.permute.xlu1 %5615  ;;  %v10707_v41 = vld [vmem:[#allocation2 + $0x5d4] sm:$0xf]  ;;  %v9694_v55 = vld [vmem:[#allocation2 + $0x210] sm:$0xf]  ;;  %vm14901_vm2 = vmmov %vm14882_vm7 }
 0x854   : > { %v6378_v24 = vsel %vm14873_vm1, %v14122_v46, %v6377_v45  ;;  %6232 = vst [vmem:[#allocation2 + $0x5b8] sm:$0xff] %v6216_v39  ;;  %v9696_v46 = vld [vmem:[#allocation2 + $0x230] sm:$0xf0]  ;;  %v5626_v31 = vrot.slane %v5616_v57, 4  ;;  %v14392_v47 = vpop.permute.xlu0 %5685  ;;  %v14877_v39 = vrot.slane %v14087_v23, 4  ;;  %vm14900_vm1 = vmmov %vm14879_vm5 }
 0x855   : > { %8161 = vmatpush.bf16.msrb.mxu3 %v9763_v56  ;;  %8136 = vmatpush.bf16.msra.mxu2 %v10239_v9  ;;  %6395 = vst [vmem:[#allocation2 + $0x630] sm:$0xff] %v6378_v24  ;;  %v10591_v56 = vld [vmem:[#allocation2 + $0x22c] sm:$0xf0]  ;;  %v10587_v9 = vld [vmem:[#allocation2 + $0x214] sm:$0xf]  ;;  %v5702_v4 = vrot.slane %v14392_v47, 4 }
 0x856   : > { %8109 = vmatpush.bf16.msra.mxu0 %v9759_v2  ;;  %v9982_v2 = vld [vmem:[#allocation2 + $0x450] sm:$0xf]  ;;  %v9695_v34 = vor.u32 %v10591_v56, %v9694_v55  ;;  %v10176_v45 = vld [vmem:[#allocation2 + $0x5f0] sm:$0xf0]  ;;  %v5641_v6 = vsel %vm318_vm0, %v14875_v19, %v5626_v31  ;;  %v6016_v24 = vpop.permute.xlu2 %6015  ;;  %v9699_v51 = vor.u32 %v10587_v9, %v9696_v46 }
 0x857   : > { %v9983_v52 = vor.u32 %v10663_v22, %v9982_v2  ;;  %v5642_v40 = vsel %vm14876_vm3, %v14150_v14, %v5641_v6  ;;  %v6031_v2 = vrot.slane %v6016_v24, 4  ;;  %v10144_v22 = vld [vmem:[#allocation2 + $0x5b0] sm:$0xf0]  ;;  %vm14903_vm3 = vmmov %vm14886_vm9 }
 0x858   : > { %5658 = vst [vmem:[#allocation2 + $0x3f8] sm:$0xff] %v5642_v40  ;;  %v10699_v57 = vld [vmem:[#allocation2 + $0x594] sm:$0xf] }
 0x859   : > { %8162 = vmatpush.bf16.msrb.mxu3 %v9731_v25  ;;  %8123 = vmatpush.bf16.msra.mxu1 %v9983_v52  ;;  %v5713_v25 = vsel %vm318_vm0, %v14877_v39, %v5702_v4  ;;  %v9664_v52 = vld [vmem:[#allocation2 + $0x1f0] sm:$0xf0]  ;;  %v6043_v14 = vsel %vm318_vm0, %v6030_v1, %v6031_v2  ;;  %v10147_v55 = vor.u32 %v10699_v57, %v10144_v22  ;;  %v14883_v57 = vrot.slane %v14055_v62, 4 }
 0x85a   : > { %8110 = vmatpush.bf16.msra.mxu0 %v9727_v33  ;;  %v10179_v33 = vor.u32 %v10707_v41, %v10176_v45  ;;  %v5714_v56 = vsel %vm14878_vm4, %v14087_v23, %v5713_v25  ;;  %v10206_v46 = vld [vmem:[#allocation2 + $0x610] sm:$0xf]  ;;  %v6044_v31 = vsel %vm14879_vm5, %v14255_v5, %v6043_v14  ;;  %v10579_v9 = vld [vmem:[#allocation2 + $0x1d4] sm:$0xf]  ;;  %v14880_v5 = vrot.slane %v14155_v53, 4 }
 0x85b   : > { %5735 = vst [vmem:[#allocation2 + $0x410] sm:$0xff] %v5714_v56  ;;  %v6262_v45 = vpop.permute.xlu1 %6261  ;;  %v9667_v19 = vor.u32 %v10579_v9, %v9664_v52  ;;  %v10691_v23 = vld [vmem:[#allocation2 + $0x554] sm:$0xf]  ;;  %vm14904_vm5 = vcmask 318464  }
 0x85c   : > { %v10719_v41 = vld [vmem:[#allocation2 + $0x62c] sm:$0xf0]  ;;  %6064 = vst [vmem:[#allocation2 + $0x518] sm:$0xff] %v6044_v31  ;;  %v6277_v6 = vrot.slane %v6262_v45, 4  ;;  %v9632_v1 = vld [vmem:[#allocation2 + $0x1b0] sm:$0xf0]  ;;  %v6272_v24 = vpop.permute.xlu0 %6271 }
 0x85d   : > { %8163 = vmatpush.bf16.msrb.mxu3 %v9699_v51  ;;  %v10112_v51 = vld [vmem:[#allocation2 + $0x570] sm:$0xf0]  ;;  %v6282_v40 = vrot.slane %v6272_v24, 4 }
 0x85e   : > { %8111 = vmatpush.bf16.msra.mxu0 %v9695_v34  ;;  %v10207_v34 = vor.u32 %v10719_v41, %v10206_v46  ;;  %v5944_v2 = vpop.permute.xlu2 %5943  ;;  %v10115_v22 = vor.u32 %v10691_v23, %v10112_v51  ;;  %v10571_v39 = vld [vmem:[#allocation2 + $0x194] sm:$0xf] }
 0x85f   : > { %v5954_v52 = vrot.slane %v5944_v2, 4  ;;  %v9635_v56 = vor.u32 %v10571_v39, %v9632_v1  ;;  %v10080_v14 = vld [vmem:[#allocation2 + $0x530] sm:$0xf0]  ;;  %v6297_v46 = vsel %vm318_vm0, %v14883_v57, %v6282_v40 }
 0x860   : > { %8164 = vmatmul.bf16.vlgmr.msrb.gmra.mxu3 %v13978_v59  ;;  %8137 = vmatpush.bf16.msra.mxu2 %v10207_v34  ;;  %v9600_v41 = vld [vmem:[#allocation2 + $0x170] sm:$0xf0]  ;;  %v14885_v34 = vrot.slane %v14285_v60, 4 }
 0x861   : > { %8112 = vmatmul.bf16.vlgmr.msra.gmra.mxu0 %v13978_v59  ;;  %v10731_v31 = vld [vmem:[#allocation2 + $0x694] sm:$0xf] }
 0x862   : > { %8169 = vmatpush.bf16.msrb.mxu0 %v10179_v33  ;;  %v6289_v33 = vsel %vm318_vm0, %v14880_v5, %v6277_v6  ;;  %v10683_v9 = vld [vmem:[#allocation2 + $0x514] sm:$0xf]  ;;  %v9950_v45 = vld [vmem:[#allocation2 + $0x410] sm:$0xf] }
 0x863   : > { %v6290_v25 = vsel %vm14881_vm6, %v14155_v53, %v6289_v33  ;;  %10288 = vmatmul.msk.bf16.vlgmr.msra.gmra.mxu2 %vm14882_vm7, %v13863_v63  ;;  %v5969_v53 = vsel %vm318_vm0, %v14885_v34, %v5954_v52  ;;  %v10083_v6 = vor.u32 %v10683_v9, %v10080_v14  ;;  %v10563_v24 = vld [vmem:[#allocation2 + $0x154] sm:$0xf]  ;;  %v5534_v5 = vpop.permute.xlu1 %5533  ;;  %vm14906_vm6 = vmmov %vm14904_vm5  ;;  %vm14907_vm7 = vcmask 154624  }
 0x864   : > { %8143 = vmatpush.bf16.msrb.mxu2 %v9667_v19  ;;  %6310 = vst [vmem:[#allocation2 + $0x5d8] sm:$0xff] %v6290_v25  ;;  %v10655_v19 = vld [vmem:[#allocation2 + $0x42c] sm:$0xf0]  ;;  %v5970_v23 = vsel %vm14886_vm9, %v14285_v60, %v5969_v53  ;;  %v10272_v51 = vld [vmem:[#allocation2 + $0x6b0] sm:$0xf0]  ;;  %v9603_v33 = vor.u32 %v10563_v24, %v9600_v41  ;;  %v5544_v2 = vrot.slane %v5534_v5, 4  ;;  %v6180_v25 = vpop.permute.xlu0 %6179  ;;  %v14442_v5 = vpop.f32.mrf.mxu2  ;;  %vm14910_vm9 = vmmov %vm14898_vm15 }
 0x865   : > { %v9951_v1 = vor.u32 %v10655_v19, %v9950_v45  ;;  %5986 = vst [vmem:[#allocation2 + $0x4f8] sm:$0xff] %v5970_v23  ;;  %v10048_v40 = vld [vmem:[#allocation2 + $0x4f0] sm:$0xf0]  ;;  %v14887_v60 = vrot.slane %v14189_v49, 4  ;;  %v6195_v14 = vrot.slane %v6180_v25, 4  ;;  %v14889_v23 = vrot.slane %v14089_v17, 4 }
 0x866   : > { %8170 = vmatpush.bf16.msrb.mxu0 %v10147_v55  ;;  %v6298_v55 = vsel %vm14884_vm8, %v14055_v62, %v6297_v46  ;;  %v10275_v62 = vor.u32 %v10731_v31, %v10272_v51  ;;  %v10240_v39 = vld [vmem:[#allocation2 + $0x670] sm:$0xf0]  ;;  %v6508_v57 = vpop.permute.xlu2 %6507  ;;  %v10584_v24 = vld [vmem:[#allocation2 + $0x1f4] sm:$0xf0]  ;;  %v14440_v51 = vpop.f32.mrf.mxu1  ;;  %vm14909_vm8 = vmmov %vm14892_vm12 }
 0x867   : > { %6314 = vst [vmem:[#allocation2 + $0x5f8] sm:$0xff] %v6298_v55  ;;  %8124 = vmatpush.bf16.msra.mxu1 %v9951_v1  ;;  %v10675_v52 = vld [vmem:[#allocation2 + $0x4d4] sm:$0xf]  ;;  %v6523_v34 = vrot.slane %v6508_v57, 4 }
 0x868   : > { %8144 = vmatpush.bf16.msrb.mxu2 %v9635_v56  ;;  %v5559_v56 = vsel %vm318_vm0, %v14887_v60, %v5544_v2  ;;  %v10051_v46 = vor.u32 %v10675_v52, %v10048_v40  ;;  %v10555_v55 = vld [vmem:[#allocation2 + $0x114] sm:$0xf] }
 0x869   : > { %v10723_v41 = vld [vmem:[#allocation2 + $0x654] sm:$0xf]  ;;  %v5560_v31 = vsel %vm14888_vm10, %v14189_v49, %v5559_v56  ;;  %vm14912_vm10 = vcmask 146432  }
 0x86a   : > { %8171 = vmatpush.bf16.msrb.mxu0 %v10115_v22  ;;  %v9568_v22 = vld [vmem:[#allocation2 + $0x130] sm:$0xf0]  ;;  %8125 = vmatmul.bf16.vlgmr.msra.gmra.mxu1 %v13908_v44  ;;  %v10243_v9 = vor.u32 %v10723_v41, %v10240_v39  ;;  %5576 = vst [vmem:[#allocation2 + $0x3b8] sm:$0xff] %v5560_v31 }
 0x86b   : > { %8187 = vmatpush.bf16.msrb.mxu1 %v10275_v62  ;;  %v9571_v53 = vor.u32 %v10555_v55, %v9568_v22  ;;  %v10016_v45 = vld [vmem:[#allocation2 + $0x4b0] sm:$0xf0]  ;;  %v10182_v2 = vld [vmem:[#allocation2 + $0x5d8] sm:$0xf] }
 0x86c   : > { %8145 = vmatpush.bf16.msrb.mxu2 %v9603_v33  ;;  %v9536_v19 = vld [vmem:[#allocation2 + $0xf0] sm:$0xf0]  ;;  %v14891_v33 = vrot.slane %v14288_v20, 4 }
 0x86d   : > { %v10208_v1 = vld [vmem:[#allocation2 + $0x630] sm:$0xf0] }
 0x86e   : > { %8172 = vmatpush.bf16.msrb.mxu0 %v10083_v6  ;;  %v6207_v6 = vsel %vm318_vm0, %v14889_v23, %v6195_v14  ;;  %v6535_v62 = vsel %vm318_vm0, %v14891_v33, %v6523_v34  ;;  %v10667_v40 = vld [vmem:[#allocation2 + $0x494] sm:$0xf]  ;;  %v10712_v22 = vld [vmem:[#allocation2 + $0x5f4] sm:$0xf0]  ;;  %v6098_v14 = vpop.permute.xlu1 %6097 }
 0x86f   : > { %v6208_v49 = vsel %vm14890_vm11, %v14089_v17, %v6207_v6  ;;  %8188 = vmatpush.bf16.msrb.mxu1 %v10243_v9  ;;  %v6536_v39 = vsel %vm14892_vm12, %v14288_v20, %v6535_v62  ;;  %v10019_v25 = vor.u32 %v10667_v40, %v10016_v45  ;;  %v10183_v52 = vor.u32 %v10712_v22, %v10182_v2  ;;  %v10547_v60 = vld [vmem:[#allocation2 + $0xd4] sm:$0xf]  ;;  %v10576_v20 = vld [vmem:[#allocation2 + $0x1b4] sm:$0xf0]  ;;  %vm14913_vm11 = vmmov %vm14912_vm10 }
 0x870   : > { %8146 = vmatpush.bf16.msrb.mxu2 %v9571_v53  ;;  %6228 = vst [vmem:[#allocation2 + $0x598] sm:$0xff] %v6208_v49  ;;  %v10715_v56 = vld [vmem:[#allocation2 + $0x614] sm:$0xf]  ;;  %v9539_v17 = vor.u32 %v10547_v60, %v9536_v19  ;;  %v6113_v41 = vrot.slane %v6098_v14, 4  ;;  %v6108_v53 = vpop.permute.xlu0 %6107  ;;  %v14893_v45 = vrot.slane %v14224_v37, 4  ;;  %v5780_v49 = vpop.permute.xlu2 %5779  ;;  %v14895_v22 = vrot.slane %v14124_v11, 4  ;;  %vm14914_vm12 = vmmov %vm14878_vm4 }
 0x871   : > { %6556 = vst [vmem:[#allocation2 + $0x698] sm:$0xff] %v6536_v39  ;;  %v10211_v57 = vor.u32 %v10715_v56, %v10208_v1  ;;  %v10659_v55 = vld [vmem:[#allocation2 + $0x454] sm:$0xf]  ;;  %8221 = vmatpush.bf16.msra.mxu3 %v10183_v52  ;;  %v6118_v6 = vrot.slane %v6108_v53, 4  ;;  %v5790_v62 = vrot.slane %v5780_v49, 4  ;;  %v7892_v56 = vpop.f32.mrf.mxu3  ;;  %v7905_v14 = vpop.f32.mrf.mxu0 }
 0x872   : > { %8173 = vmatpush.bf16.msrb.mxu0 %v10051_v46  ;;  %v9670_v46 = vld [vmem:[#allocation2 + $0x1d8] sm:$0xf]  ;;  %v9504_v34 = vld [vmem:[#allocation2 + $0xb0] sm:$0xf0]  ;;  %v6125_v23 = vsel %vm318_vm0, %v14893_v45, %v6113_v41  ;;  %v7933_v53 = vpop.f32.mrf.mxu2 }
 0x873   : > { %v9671_v31 = vor.u32 %v10584_v24, %v9670_v46  ;;  %8189 = vmatpush.bf16.msrb.mxu1 %v10211_v57  ;;  %v9984_v9 = vld [vmem:[#allocation2 + $0x470] sm:$0xf0]  ;;  %v6126_v33 = vsel %vm14894_vm13, %v14224_v37, %v6125_v23  ;;  %v9638_v40 = vld [vmem:[#allocation2 + $0x198] sm:$0xf]  ;;  %v6133_v39 = vsel %vm318_vm0, %v14895_v22, %v6118_v6  ;;  %v14897_v37 = vrot.slane %v14260_v30, 4  ;;  %vm14915_vm13 = vmmov %vm14907_vm7 }
 0x874   : > { %8147 = vmatpush.bf16.msrb.mxu2 %v9539_v17  ;;  %v9987_v19 = vor.u32 %v10659_v55, %v9984_v9  ;;  %v10539_v1 = vld [vmem:[#allocation2 + $0x94] sm:$0xf]  ;;  %6146 = vst [vmem:[#allocation2 + $0x558] sm:$0xff] %v6126_v33  ;;  %v10568_v60 = vld [vmem:[#allocation2 + $0x174] sm:$0xf0]  ;;  %v6134_v17 = vsel %vm14896_vm14, %v14124_v11, %v6133_v39 }
 0x875   : > { %v9507_v24 = vor.u32 %v10539_v1, %v9504_v34  ;;  %v10651_v2 = vld [vmem:[#allocation2 + $0x414] sm:$0xf]  ;;  %v5805_v57 = vsel %vm318_vm0, %v14897_v37, %v5790_v62  ;;  %v10704_v41 = vld [vmem:[#allocation2 + $0x5b4] sm:$0xf0]  ;;  %v7920_v34 = vpop.f32.mrf.mxu1  ;;  %6150 = vst [vmem:[#allocation2 + $0x578] sm:$0xff] %v6134_v17 }
 0x876   : > { %8174 = vmatpush.bf16.msrb.mxu0 %v10019_v25  ;;  %v9639_v25 = vor.u32 %v10576_v20, %v9638_v40  ;;  %v9472_v52 = vld [vmem:[#allocation2 + $0x70] sm:$0xf0]  ;;  %v5806_v9 = vsel %vm14898_vm15, %v14260_v30, %v5805_v57  ;;  %v6026_v11 = vpop.permute.xlu1 %6025  ;;  %v9606_v49 = vld [vmem:[#allocation2 + $0x158] sm:$0xf] }
 0x877   : > { %8195 = vmatpush.bf16.msra.mxu1 %v9671_v31  ;;  %v9952_v46 = vld [vmem:[#allocation2 + $0x430] sm:$0xf0]  ;;  %v10150_v55 = vld [vmem:[#allocation2 + $0x598] sm:$0xf]  ;;  %v7906_v31 = vadd.f32 %v7905_v14, %v7892_v56  ;;  %5822 = vst [vmem:[#allocation2 + $0x478] sm:$0xff] %v5806_v9  ;;  %v6036_v1 = vrot.slane %v6026_v11, 4  ;;  %v9607_v33 = vor.u32 %v10568_v60, %v9606_v49 }
 0x878   : > { %8148 = vmatpush.bf16.msrb.mxu2 %v9507_v24  ;;  %v9955_v20 = vor.u32 %v10651_v2, %v9952_v46  ;;  %v10151_v45 = vor.u32 %v10704_v41, %v10150_v55  ;;  %v10531_v23 = vld [vmem:[#allocation2 + $0x54] sm:$0xf]  ;;  %v5934_v24 = vpop.permute.xlu0 %5933  ;;  %v10560_v40 = vld [vmem:[#allocation2 + $0x134] sm:$0xf0]  ;;  %v14899_v2 = vrot.slane %v14258_v29, 4 }
 0x879   : > { %v9475_v6 = vor.u32 %v10531_v23, %v9472_v52  ;;  %v9440_v62 = vld [vmem:[#allocation2 + $0x30] sm:$0xf0]  ;;  %v10648_v22 = vld [vmem:[#allocation2 + $0x3f4] sm:$0xf0]  ;;  %v5688_v52 = vpop.permute.xlu2 %5687  ;;  %v7907_v34 = vpop.f32.mrf.mxu0 }
 0x87a   : > { %8175 = vmatpush.bf16.msrb.mxu0 %v9987_v19  ;;  %v7919_v19 = vadd.f32 %v14440_v51, %v7906_v31  ;;  %8222 = vmatpush.bf16.msra.mxu3 %v10151_v45  ;;  %v6051_v39 = vsel %vm318_vm0, %v14899_v2, %v6036_v1  ;;  %v10523_v51 = vld [vmem:[#allocation2 + $0x14] sm:$0xf]  ;;  %v5703_v60 = vrot.slane %v5688_v52, 4  ;;  %v9574_v17 = vld [vmem:[#allocation2 + $0x118] sm:$0xf]  ;;  %v7894_v31 = vpop.f32.mrf.mxu3  ;;  %v7944_v23 = vpop.f32.mrf.mxu2 }
 0x87b   : > { %8196 = vmatpush.bf16.msra.mxu1 %v9639_v25  ;;  %v5949_v25 = vrot.slane %v5934_v24, 4  ;;  %v6052_v56 = vsel %vm14900_vm1, %v14258_v29, %v6051_v39  ;;  %v9443_v14 = vor.u32 %v10523_v51, %v9440_v62  ;;  %v9926_v37 = vld [vmem:[#allocation2 + $0x3d8] sm:$0xf]  ;;  %v9575_v46 = vor.u32 %v10560_v40, %v9574_v17 }
 0x87c   : > { %8149 = vmatpush.bf16.msrb.mxu2 %v9475_v6  ;;  %v14468_v30 = vadd.f32 %v14442_v5, %v7919_v19  ;;  %10289 = vmatmul.msk.bf16.vlgmr.msrb.gmra.mxu1 %vm14901_vm2, %v13863_v63  ;;  %6068 = vst [vmem:[#allocation2 + $0x538] sm:$0xff] %v6052_v56  ;;  %v14902_v5 = vrot.slane %v14157_v35, 4  ;;  %v9927_v55 = vor.u32 %v10648_v22, %v9926_v37  ;;  %v10552_v41 = vld [vmem:[#allocation2 + $0xf4] sm:$0xf0] }
 0x87d   : > { %v5715_v53 = vsel %vm318_vm0, %v5702_v4, %v5703_v60  ;;  %v10118_v9 = vld [vmem:[#allocation2 + $0x558] sm:$0xf]  ;;  %v7983_v11 = vpop.f32.mrf.mxu1 }
 0x87e   : > { %8176 = vmatpush.bf16.msrb.mxu0 %v9955_v20  ;;  %v5961_v57 = vsel %vm318_vm0, %v14902_v5, %v5949_v25  ;;  %v10696_v20 = vld [vmem:[#allocation2 + $0x574] sm:$0xf0]  ;;  %v5716_v6 = vsel %vm14878_vm4, %v14392_v47, %v5715_v53  ;;  %v5852_v19 = vpop.permute.xlu1 %5851 }
 0x87f   : > { %8197 = vmatpush.bf16.msra.mxu1 %v9607_v33  ;;  %v5962_v29 = vsel %vm14903_vm3, %v14157_v35, %v5961_v57  ;;  %v10640_v45 = vld [vmem:[#allocation2 + $0x3b4] sm:$0xf0]  ;;  %v10119_v49 = vor.u32 %v10696_v20, %v10118_v9  ;;  %5736 = vst [vmem:[#allocation2 + $0x418] sm:$0xff] %v5716_v6  ;;  %v5867_v33 = vrot.slane %v5852_v19, 4 }
 0x880   : > { %8150 = vmatpush.bf16.msrb.mxu2 %v9443_v14  ;;  %5982 = vst [vmem:[#allocation2 + $0x4d8] sm:$0xff] %v5962_v29  ;;  %v9542_v35 = vld [vmem:[#allocation2 + $0xd8] sm:$0xf]  ;;  %v5862_v24 = vpop.permute.xlu0 %5861  ;;  %v14905_v14 = vrot.slane %v14314_v32, 4 }
 0x881   : > { %8177 = vmatmul.bf16.vlgmr.msrb.gmra.mxu0 %v13908_v44  ;;  %v9894_v1 = vld [vmem:[#allocation2 + $0x398] sm:$0xf]  ;;  %8223 = vmatpush.bf16.msra.mxu3 %v10119_v49  ;;  %v9543_v4 = vor.u32 %v10552_v41, %v9542_v35  ;;  %v5879_v22 = vsel %vm318_vm0, %v5866_v42, %v5867_v33  ;;  %v5872_v47 = vrot.slane %v5862_v24, 4  ;;  %v6354_v2 = vpop.permute.xlu2 %6353 }
 0x882   : > { %v9895_v62 = vor.u32 %v10640_v45, %v9894_v1  ;;  %v10544_v40 = vld [vmem:[#allocation2 + $0xb4] sm:$0xf0]  ;;  %v5880_v52 = vsel %vm14904_vm5, %v14310_v21, %v5879_v22  ;;  %v6364_v51 = vrot.slane %v6354_v2, 4  ;;  %v7957_v57 = vpop.f32.mrf.mxu3  ;;  %v7946_v9 = vpop.f32.mrf.mxu2  ;;  %v9928_v2 = vld [vmem:[#allocation2 + $0x3f8] sm:$0xf0] }
 0x883   : > { %8198 = vmatpush.bf16.msra.mxu1 %v9575_v46  ;;  %8151 = vmatmul.bf16.vlgmr.msrb.gmra.mxu2 %v13812_v13  ;;  %v9510_v39 = vld [vmem:[#allocation2 + $0x98] sm:$0xf]  ;;  %5900 = vst [vmem:[#allocation2 + $0x498] sm:$0xff] %v5880_v52  ;;  %v5887_v17 = vsel %vm318_vm0, %v14905_v14, %v5872_v47  ;;  %v7970_v46 = vpop.f32.mrf.mxu0  ;;  %v7958_v53 = vadd.f32 %v7957_v57, %v7944_v23 }
 0x884   : > { %8208 = vmatpush.bf16.msra.mxu2 %v9927_v55  ;;  %v10632_v25 = vld [vmem:[#allocation2 + $0x374] sm:$0xf0]  ;;  %v9511_v5 = vor.u32 %v10544_v40, %v9510_v39  ;;  %v5888_v55 = vsel %vm14906_vm6, %v14314_v32, %v5887_v17  ;;  %v6379_v21 = vsel %vm318_vm0, %v6363_v28, %v6364_v51  ;;  %v14908_v40 = vrot.slane %v14191_v7, 4 }
 0x885   : > { %v10086_v56 = vld [vmem:[#allocation2 + $0x518] sm:$0xf]  ;;  %v7985_v20 = vpop.f32.mrf.mxu1  ;;  %5904 = vst [vmem:[#allocation2 + $0x4b8] sm:$0xff] %v5888_v55  ;;  %v6380_v45 = vsel %vm14907_vm7, %v14370_v26, %v6379_v21  ;;  %v7971_v28 = vadd.f32 %v7970_v46, %v7958_v53  ;;  %v9896_v21 = vld [vmem:[#allocation2 + $0x3b8] sm:$0xf0] }
 0x886   : > { %v10688_v60 = vld [vmem:[#allocation2 + $0x534] sm:$0xf0]  ;;  %v6518_v32 = vpop.permute.xlu1 %6517  ;;  %6396 = vst [vmem:[#allocation2 + $0x638] sm:$0xff] %v6380_v45  ;;  %v14911_v45 = vrot.slane %v14226_v48, 4 }
 0x887   : > { %8199 = vmatpush.bf16.msra.mxu1 %v9543_v4  ;;  %v10087_v37 = vor.u32 %v10688_v60, %v10086_v56  ;;  %v9862_v42 = vld [vmem:[#allocation2 + $0x358] sm:$0xf]  ;;  %v6528_v35 = vrot.slane %v6518_v32, 4  ;;  %v14504_v24 = vadd.f32 %v7983_v11, %v7971_v28  ;;  %v10644_v56 = vld [vmem:[#allocation2 + $0x3dc] sm:$0xf] }
 0x888   : > { %8209 = vmatpush.bf16.msra.mxu2 %v9895_v62  ;;  %v9863_v41 = vor.u32 %v10632_v25, %v9862_v42  ;;  %v10054_v31 = vld [vmem:[#allocation2 + $0x4d8] sm:$0xf]  ;;  %v5770_v4 = vpop.permute.xlu0 %5769 }
 0x889   : > { %v10680_v34 = vld [vmem:[#allocation2 + $0x4f4] sm:$0xf0]  ;;  %8224 = vmatpush.bf16.msra.mxu3 %v10087_v37  ;;  %v6543_v26 = vsel %vm318_vm0, %v14908_v40, %v6528_v35  ;;  %v5785_v22 = vrot.slane %v5770_v4, 4 }
 0x88a   : > { %v10536_v29 = vld [vmem:[#allocation2 + $0x74] sm:$0xf0]  ;;  %v10055_v6 = vor.u32 %v10680_v34, %v10054_v31  ;;  %v6544_v39 = vsel %vm14909_vm8, %v14191_v7, %v6543_v26  ;;  %v7959_v60 = vpop.f32.mrf.mxu3  ;;  %v10636_v34 = vld [vmem:[#allocation2 + $0x39c] sm:$0xf] }
 0x88b   : > { %8200 = vmatpush.bf16.msra.mxu1 %v9511_v5  ;;  %v10624_v49 = vld [vmem:[#allocation2 + $0x334] sm:$0xf0]  ;;  %6560 = vst [vmem:[#allocation2 + $0x6b8] sm:$0xff] %v6544_v39  ;;  %v5797_v11 = vsel %vm318_vm0, %v5784_v8, %v5785_v22  ;;  %v7972_v14 = vpop.f32.mrf.mxu0  ;;  %v9931_v5 = vor.u32 %v10644_v56, %v9928_v2  ;;  %v9899_v9 = vor.u32 %v10636_v34, %v9896_v21  ;;  %v10620_v60 = vld [vmem:[#allocation2 + $0x31c] sm:$0xf] }
 0x88c   : > { %8210 = vmatpush.bf16.msra.mxu2 %v9863_v41  ;;  %v9478_v19 = vld [vmem:[#allocation2 + $0x58] sm:$0xf]  ;;  %v5798_v17 = vsel %vm14910_vm9, %v14345_v58, %v5797_v11  ;;  %v9832_v11 = vld [vmem:[#allocation2 + $0x338] sm:$0xf0] }
 0x88d   : > { %v9479_v1 = vor.u32 %v10536_v29, %v9478_v19  ;;  %v9830_v33 = vld [vmem:[#allocation2 + $0x318] sm:$0xf]  ;;  %8225 = vmatpush.bf16.msra.mxu3 %v10055_v6  ;;  %v7996_v7 = vpop.f32.mrf.mxu1  ;;  %5818 = vst [vmem:[#allocation2 + $0x458] sm:$0xff] %v5798_v17  ;;  %v8009_v29 = vpop.f32.mrf.mxu2  ;;  %v9864_v19 = vld [vmem:[#allocation2 + $0x378] sm:$0xf0] }
 0x88e   : > { %v9831_v23 = vor.u32 %v10624_v49, %v9830_v33  ;;  %v10528_v62 = vld [vmem:[#allocation2 + $0x34] sm:$0xf0]  ;;  %v6426_v41 = vpop.permute.xlu1 %6425  ;;  %v14516_v20 = vadd.f32 %v8009_v29, %v7996_v7  ;;  %v10700_v21 = vld [vmem:[#allocation2 + $0x59c] sm:$0xf] }
 0x88f   : > { %8201 = vmatpush.bf16.msra.mxu1 %v9479_v1  ;;  %v10616_v47 = vld [vmem:[#allocation2 + $0x2f4] sm:$0xf0]  ;;  %v6441_v8 = vrot.slane %v6426_v41, 4  ;;  %v10152_v34 = vld [vmem:[#allocation2 + $0x5b8] sm:$0xf0] }
 0x890   : > { %8211 = vmatpush.bf16.msra.mxu2 %v9831_v23  ;;  %v9446_v25 = vld [vmem:[#allocation2 + $0x18] sm:$0xf]  ;;  %v6436_v53 = vpop.permute.xlu0 %6435 }
 0x891   : > { %v9447_v52 = vor.u32 %v10528_v62, %v9446_v25  ;;  %v9798_v51 = vld [vmem:[#allocation2 + $0x2d8] sm:$0xf]  ;;  %v6453_v6 = vsel %vm318_vm0, %v14911_v45, %v6441_v8  ;;  %v6446_v49 = vrot.slane %v6436_v53, 4  ;;  %v10628_v62 = vld [vmem:[#allocation2 + $0x35c] sm:$0xf] }
 0x892   : > { %v9799_v37 = vor.u32 %v10616_v47, %v9798_v51  ;;  %v10022_v42 = vld [vmem:[#allocation2 + $0x498] sm:$0xf]  ;;  %v6454_v28 = vsel %vm14912_vm10, %v14226_v48, %v6453_v6  ;;  %v9867_v22 = vor.u32 %v10628_v62, %v9864_v19  ;;  %v10184_v51 = vld [vmem:[#allocation2 + $0x5f8] sm:$0xf0]  ;;  %v8022_v6 = vpop.f32.mrf.mxu3 }
 0x893   : > { %v10672_v57 = vld [vmem:[#allocation2 + $0x4b4] sm:$0xf0]  ;;  %8202 = vmatpush.bf16.msra.mxu1 %v9447_v52  ;;  %6474 = vst [vmem:[#allocation2 + $0x658] sm:$0xff] %v6454_v28  ;;  %v6461_v4 = vsel %vm318_vm0, %v6445_v61, %v6446_v49  ;;  %v10612_v8 = vld [vmem:[#allocation2 + $0x2dc] sm:$0xf]  ;;  %v8023_v49 = vadd.f32 %v8022_v6, %v14516_v20 }
 0x894   : > { %v10023_v46 = vor.u32 %v10672_v57, %v10022_v42  ;;  %v10608_v55 = vld [vmem:[#allocation2 + $0x2b4] sm:$0xf0]  ;;  %8212 = vmatpush.bf16.msra.mxu2 %v9799_v37  ;;  %v6462_v40 = vsel %vm14913_vm11, %v14342_v36, %v6461_v4  ;;  %v9835_v37 = vor.u32 %v10620_v60, %v9832_v11  ;;  %v10120_v45 = vld [vmem:[#allocation2 + $0x578] sm:$0xf0] }
 0x895   : > { %v9766_v31 = vld [vmem:[#allocation2 + $0x298] sm:$0xf]  ;;  %v7998_v48 = vpop.f32.mrf.mxu1  ;;  %6478 = vst [vmem:[#allocation2 + $0x678] sm:$0xff] %v6462_v40  ;;  %v8011_v14 = vpop.f32.mrf.mxu2  ;;  %v10280_v28 = vld [vmem:[#allocation2 + $0x6b8] sm:$0xf0] }
 0x896   : > { %8226 = vmatpush.bf16.msra.mxu3 %v10023_v46  ;;  %v9767_v58 = vor.u32 %v10608_v55, %v9766_v31  ;;  %8203 = vmatmul.bf16.vlgmr.msra.gmra.mxu1 %v13812_v13  ;;  %v10600_v32 = vld [vmem:[#allocation2 + $0x274] sm:$0xf0]  ;;  %v5698_v52 = vpop.permute.xlu1 %5697  ;;  %v9800_v46 = vld [vmem:[#allocation2 + $0x2f8] sm:$0xf0] }
 0x897   : > { %8260 = vmatpush.bf16.msrb.mxu1 %v9931_v5  ;;  %v10278_v35 = vld [vmem:[#allocation2 + $0x698] sm:$0xf]  ;;  %v5708_v61 = vrot.slane %v5698_v52, 4  ;;  %v10708_v5 = vld [vmem:[#allocation2 + $0x5dc] sm:$0xf]  ;;  %v8035_v19 = vpop.f32.mrf.mxu0 }
 0x898   : > { %v10736_v1 = vld [vmem:[#allocation2 + $0x6b4] sm:$0xf0]  ;;  %8213 = vmatpush.bf16.msra.mxu2 %v9767_v58  ;;  %v6344_v36 = vpop.permute.xlu0 %6343  ;;  %v10187_v7 = vor.u32 %v10708_v5, %v10184_v51  ;;  %v10155_v58 = vor.u32 %v10700_v21, %v10152_v34  ;;  %v10088_v62 = vld [vmem:[#allocation2 + $0x538] sm:$0xf0] }
 0x899   : > { %v10279_v33 = vor.u32 %v10736_v1, %v10278_v35  ;;  %v9734_v23 = vld [vmem:[#allocation2 + $0x258] sm:$0xf]  ;;  %v5723_v42 = vsel %vm318_vm0, %v5707_v54, %v5708_v61  ;;  %v6359_v57 = vrot.slane %v6344_v36, 4  ;;  %v9803_v54 = vor.u32 %v10612_v8, %v9800_v46  ;;  %v9736_v1 = vld [vmem:[#allocation2 + $0x278] sm:$0xf0] }
 0x89a   : > { %v9735_v26 = vor.u32 %v10600_v32, %v9734_v23  ;;  %v9990_v47 = vld [vmem:[#allocation2 + $0x458] sm:$0xf]  ;;  %v5724_v55 = vsel %vm14914_vm12, %v14316_v27, %v5723_v42  ;;  %v10684_v20 = vld [vmem:[#allocation2 + $0x51c] sm:$0xf]  ;;  %v8024_v36 = vpop.f32.mrf.mxu3 }
 0x89b   : > { %8261 = vmatpush.bf16.msrb.mxu1 %v9899_v9  ;;  %v10664_v2 = vld [vmem:[#allocation2 + $0x474] sm:$0xf0]  ;;  %8239 = vmatpush.bf16.msra.mxu0 %v10279_v33  ;;  %5740 = vst [vmem:[#allocation2 + $0x438] sm:$0xff] %v5724_v55  ;;  %v6371_v41 = vsel %vm318_vm0, %v6358_v43, %v6359_v57  ;;  %v9768_v9 = vld [vmem:[#allocation2 + $0x2b8] sm:$0xf0]  ;;  %v14541_v33 = vadd.f32 %v8035_v19, %v8023_v49  ;;  %vm14916_vm0 = vmmov %vm14901_vm2 }
 0x89c   : > { %v9991_v39 = vor.u32 %v10664_v2, %v9990_v47  ;;  %v10592_v25 = vld [vmem:[#allocation2 + $0x234] sm:$0xf0]  ;;  %8214 = vmatpush.bf16.msra.mxu2 %v9735_v26  ;;  %v6372_v31 = vsel %vm14915_vm13, %v14367_v12, %v6371_v41  ;;  %v10604_v43 = vld [vmem:[#allocation2 + $0x29c] sm:$0xf]  ;;  %v10091_v52 = vor.u32 %v10684_v20, %v10088_v62  ;;  %vm14917_vm14 = vmmov %vm14916_vm0 }
 0x89d   : > { %v9702_v56 = vld [vmem:[#allocation2 + $0x218] sm:$0xf]  ;;  %6392 = vst [vmem:[#allocation2 + $0x618] sm:$0xff] %v6372_v31  ;;  %v9771_v32 = vor.u32 %v10604_v43, %v9768_v9  ;;  %v10692_v12 = vld [vmem:[#allocation2 + $0x55c] sm:$0xf] }
 0x89e   : > { %8227 = vmatpush.bf16.msra.mxu3 %v9991_v39  ;;  %v9703_v17 = vor.u32 %v10592_v25, %v9702_v56  ;;  %v10246_v29 = vld [vmem:[#allocation2 + $0x658] sm:$0xf]  ;;  %v10123_v35 = vor.u32 %v10692_v12, %v10120_v45  ;;  %v10732_v26 = vld [vmem:[#allocation2 + $0x69c] sm:$0xf] }
 0x89f   : > { %8262 = vmatpush.bf16.msrb.mxu1 %v9867_v22  ;;  %v10728_v53 = vld [vmem:[#allocation2 + $0x674] sm:$0xf0]  ;;  %v10596_v22 = vld [vmem:[#allocation2 + $0x25c] sm:$0xf]  ;;  %v10283_v2 = vor.u32 %v10732_v26, %v10280_v28  ;;  %v8037_v55 = vpop.f32.mrf.mxu0 }
 0x8a0   : > { %8215 = vmatpush.bf16.msra.mxu2 %v9703_v17  ;;  %v10247_v27 = vor.u32 %v10728_v53, %v10246_v29  ;;  %v9958_v4 = vld [vmem:[#allocation2 + $0x418] sm:$0xf]  ;;  %v9672_v47 = vld [vmem:[#allocation2 + $0x1f8] sm:$0xf0]  ;;  %v9739_v48 = vor.u32 %v10596_v22, %v9736_v1 }
 0x8a1   : > { %v10720_v25 = vld [vmem:[#allocation2 + $0x634] sm:$0xf0]  ;;  %v10248_v11 = vld [vmem:[#allocation2 + $0x678] sm:$0xf0] }
 0x8a2   : > { %8240 = vmatpush.bf16.msra.mxu0 %v10247_v27  ;;  %v10656_v23 = vld [vmem:[#allocation2 + $0x434] sm:$0xf0]  ;;  %v10580_v61 = vld [vmem:[#allocation2 + $0x1dc] sm:$0xf] }
 0x8a3   : > { %8263 = vmatpush.bf16.msrb.mxu1 %v9835_v37  ;;  %8216 = vmatmul.bf16.vlgmr.msra.gmra.mxu2 %v13978_v59  ;;  %v9959_v40 = vor.u32 %v10656_v23, %v9958_v4  ;;  %v9675_v56 = vor.u32 %v10580_v61, %v9672_v47  ;;  %v9704_v60 = vld [vmem:[#allocation2 + $0x238] sm:$0xf0]  ;;  %v8087_v49 = vpop.f32.mrf.mxu3 }
 0x8a4   : > { %8273 = vmatpush.bf16.msrb.mxu2 %v10187_v7  ;;  %v10214_v39 = vld [vmem:[#allocation2 + $0x618] sm:$0xf]  ;;  %v10676_v14 = vld [vmem:[#allocation2 + $0x4dc] sm:$0xf]  ;;  %v14543_v17 = vpop.f32.mrf.mxu1 }
 0x8a5   : > { %8228 = vmatpush.bf16.msra.mxu3 %v9959_v40  ;;  %v10215_v51 = vor.u32 %v10720_v25, %v10214_v39  ;;  %v10724_v37 = vld [vmem:[#allocation2 + $0x65c] sm:$0xf] }
 0x8a6   : > { %v10716_v5 = vld [vmem:[#allocation2 + $0x61c] sm:$0xf]  ;;  %v10251_v57 = vor.u32 %v10724_v37, %v10248_v11 }
 0x8a7   : > { %8264 = vmatpush.bf16.msrb.mxu1 %v9803_v54  ;;  %8241 = vmatpush.bf16.msra.mxu0 %v10215_v51  ;;  %v9640_v42 = vld [vmem:[#allocation2 + $0x1b8] sm:$0xf0] }
 0x8a8   : > { %8274 = vmatpush.bf16.msrb.mxu2 %v10155_v58  ;;  %8229 = vmatmul.bf16.vlgmr.msra.gmra.mxu3 %v13908_v44  ;;  %v10588_v7 = vld [vmem:[#allocation2 + $0x21c] sm:$0xf] }
 0x8a9   : > { %8291 = vmatpush.bf16.msrb.mxu3 %v10283_v2  ;;  %v10056_v46 = vld [vmem:[#allocation2 + $0x4f8] sm:$0xf0]  ;;  %v9707_v41 = vor.u32 %v10588_v7, %v9704_v60 }
 0x8aa   : > { %v10216_v21 = vld [vmem:[#allocation2 + $0x638] sm:$0xf0]  ;;  %v10059_v8 = vor.u32 %v10676_v14, %v10056_v46  ;;  %10290 = vmatmul.msk.bf16.vlgmr.msra.gmra.mxu0 %vm14916_vm0, %v13863_v63 }
 0x8ab   : > { %8265 = vmatpush.bf16.msrb.mxu1 %v9771_v32  ;;  %8247 = vmatpush.bf16.msrb.mxu0 %v9675_v56  ;;  %v10572_v31 = vld [vmem:[#allocation2 + $0x19c] sm:$0xf]  ;;  %v10219_v54 = vor.u32 %v10716_v5, %v10216_v21  ;;  %v8089_v2 = vpop.f32.mrf.mxu3 }
 0x8ac   : > { %8275 = vmatpush.bf16.msrb.mxu2 %v10123_v35  ;;  %v9643_v34 = vor.u32 %v10572_v31, %v9640_v42  ;;  %v10024_v29 = vld [vmem:[#allocation2 + $0x4b8] sm:$0xf0]  ;;  %v8063_v32 = vpop.f32.mrf.mxu1  ;;  %v8301_v2 = vmul.f32 %v14541_v33, %v12625_v3 }
 0x8ad   : > { %8292 = vmatpush.bf16.msrb.mxu3 %v10251_v57  ;;  %v9608_v53 = vld [vmem:[#allocation2 + $0x178] sm:$0xf0] }
 0x8ae   : > { %v10668_v58 = vld [vmem:[#allocation2 + $0x49c] sm:$0xf]  ;;  %v8074_v45 = vpop.f32.mrf.mxu2 }
 0x8af   : > { %8266 = vmatpush.bf16.msrb.mxu1 %v9739_v48  ;;  %8248 = vmatpush.bf16.msrb.mxu0 %v9643_v34  ;;  %v10027_v27 = vor.u32 %v10668_v58, %v10024_v29  ;;  %v10564_v9 = vld [vmem:[#allocation2 + $0x15c] sm:$0xf] }
 0x8b0   : > { %8276 = vmatpush.bf16.msrb.mxu2 %v10091_v52  ;;  %v9611_v6 = vor.u32 %v10564_v9, %v9608_v53  ;;  %v10660_v43 = vld [vmem:[#allocation2 + $0x45c] sm:$0xf] }
 0x8b1   : > { %8293 = vmatpush.bf16.msrb.mxu3 %v10219_v54  ;;  %v9576_v12 = vld [vmem:[#allocation2 + $0x138] sm:$0xf0] }
 0x8b2   : > { %v9992_v19 = vld [vmem:[#allocation2 + $0x478] sm:$0xf0] }
 0x8b3   : > { %8267 = vmatpush.bf16.msrb.mxu1 %v9707_v41  ;;  %8249 = vmatpush.bf16.msrb.mxu0 %v9611_v6  ;;  %v9995_v28 = vor.u32 %v10660_v43, %v9992_v19  ;;  %v10556_v35 = vld [vmem:[#allocation2 + $0x11c] sm:$0xf] }
 0x8b4   : > { %8277 = vmatpush.bf16.msrb.mxu2 %v10059_v8  ;;  %v9579_v1 = vor.u32 %v10556_v35, %v9576_v12  ;;  %v9960_v4 = vld [vmem:[#allocation2 + $0x438] sm:$0xf0] }
 0x8b5   : > { %v9544_v23 = vld [vmem:[#allocation2 + $0xf8] sm:$0xf0] }
 0x8b6   : > { %8268 = vmatmul.bf16.vlgmr.msrb.gmra.mxu1 %v13978_v59  ;;  %v10652_v62 = vld [vmem:[#allocation2 + $0x41c] sm:$0xf]  ;;  %v8076_v22 = vpop.f32.mrf.mxu2 }
 0x8b7   : > { %8250 = vmatpush.bf16.msrb.mxu0 %v9579_v1  ;;  %v9963_v40 = vor.u32 %v10652_v62, %v9960_v4  ;;  %v10548_v26 = vld [vmem:[#allocation2 + $0xdc] sm:$0xf]  ;;  %v8300_v62 = vmul.f32 %v14504_v24, %v12617_v15 }
 0x8b8   : > { %8278 = vmatpush.bf16.msrb.mxu2 %v10027_v27  ;;  %v9547_v47 = vor.u32 %v10548_v26, %v9544_v23  ;;  %v9512_v59 = vld [vmem:[#allocation2 + $0xb8] sm:$0xf0]  ;;  %10291 = vmatmul.msk.bf16.vlgmr.msrb.gmra.mxu3 %vm14917_vm14, %v13863_v63  ;;  %v8299_v23 = vmul.f32 %v14468_v30, %v12620_v50 }
 0x8b9   : > { %v10540_v48 = vld [vmem:[#allocation2 + $0x9c] sm:$0xf] }
 0x8ba   : > { %v9515_v20 = vor.u32 %v10540_v48, %v9512_v59  ;;  %v9480_v39 = vld [vmem:[#allocation2 + $0x78] sm:$0xf0]  ;;  %v8317_v22 = vmul.f32 %v8299_v23, %v14468_v30 }
 0x8bb   : > { %8251 = vmatpush.bf16.msrb.mxu0 %v9547_v47  ;;  %v10532_v11 = vld [vmem:[#allocation2 + $0x5c] sm:$0xf]  ;;  %v8318_v47 = vmul.f32 %v8300_v62, %v14504_v24 }
 0x8bc   : > { %8279 = vmatpush.bf16.msrb.mxu2 %v9995_v28  ;;  %v9483_v51 = vor.u32 %v10532_v11, %v9480_v39  ;;  %v9448_v61 = vld [vmem:[#allocation2 + $0x38] sm:$0xf0] }
 0x8bd   : > { %v10524_v60 = vld [vmem:[#allocation2 + $0x1c] sm:$0xf]  ;;  %v8325_v11 = vadd.f32 %v8318_v47, %v8317_v22 }
 0x8be   : > { %v8048_v25 = vpop.f32.mrf.mxu0  ;;  %v9451_v36 = vor.u32 %v10524_v60, %v9448_v61 }
 0x8bf   : > { %8252 = vmatpush.bf16.msrb.mxu0 %v9515_v20  ;;  %v8062_v52 = vadd.f32 %v14543_v17, %v8048_v25  ;;  %v8307_v20 = vadd.f32 %v8300_v62, %v8299_v23  ;;  %v8319_v25 = vmul.f32 %v8301_v2, %v14541_v33 }
 0x8c0   : > { %8280 = vmatpush.bf16.msrb.mxu2 %v9963_v40 }
 0x8c1   : > { %v8075_v56 = vadd.f32 %v8074_v45, %v8062_v52  ;;  %v8308_v61 = vadd.f32 %v8307_v20, %v8301_v2 }
 0x8c3   : > { %8281 = vmatmul.bf16.vlgmr.msrb.gmra.mxu2 %v13908_v44  ;;  %8253 = vmatpush.bf16.msrb.mxu0 %v9483_v51  ;;  %v14553_v14 = vadd.f32 %v8087_v49, %v8075_v56  ;;  %v8100_v63 = vpop.f32.mrf.mxu3 }
 0x8c5   : > { %v8302_v39 = vmul.f32 %v14553_v14, %v12632_v38 }
 0x8c6   : > { %v8050_v37 = vpop.f32.mrf.mxu0 }
 0x8c7   : > { %8254 = vmatpush.bf16.msrb.mxu0 %v9451_v36  ;;  %v8320_v56 = vmul.f32 %v8302_v39, %v14553_v14 }
 0x8ca   : > { %8255 = vmatmul.bf16.vlgmr.msrb.gmra.mxu0 %v13812_v13 }
 0x8cb   : > { %v8102_v44 = vpop.f32.mrf.mxu3 }
 0x8cc   : > { %v8309_v44 = vadd.f32 %v8308_v61, %v8302_v39 }
 0x8de   : > { %v8113_v5 = vpop.f32.mrf.mxu0 }
 0x8df   : > { %v8114_v42 = vadd.f32 %v8113_v5, %v8100_v63  ;;  %v8326_v63 = vadd.f32 %v8325_v11, %v8319_v25 }
 0x8e3   : > { %v8165_v7 = vpop.f32.mrf.mxu3 }
 0x8e6   : > { %v8115_v57 = vpop.f32.mrf.mxu0  ;;  %v8139_v46 = vpop.f32.mrf.mxu2 }
 0x8e7   : > { %v8126_v17 = vpop.f32.mrf.mxu1 }
 0x8e8   : > { %v8127_v55 = vadd.f32 %v8126_v17, %v8114_v42 }
 0x8ea   : > { %v14556_v21 = vadd.f32 %v8139_v46, %v8127_v55  ;;  %v8327_v46 = vadd.f32 %v8326_v63, %v8320_v56 }
 0x8eb   : > { %v8167_v41 = vpop.f32.mrf.mxu3 }
 0x8ec   : > { %v8303_v52 = vmul.f32 %v14556_v21, %v12642_v0 }
 0x8ee   : > { %v8141_v8 = vpop.f32.mrf.mxu2  ;;  %v8321_v5 = vmul.f32 %v8303_v52, %v14556_v21  ;;  %v8310_v17 = vadd.f32 %v8309_v44, %v8303_v52 }
 0x8ef   : > { %v8128_v31 = vpop.f32.mrf.mxu1 }
 0x8f0   : > { %v8328_v8 = vadd.f32 %v8327_v46, %v8321_v5 }
 0x8f9   : > { %v8191_v34 = vpop.f32.mrf.mxu1 }
 0x8fe   : > { %v8178_v54 = vpop.f32.mrf.mxu0 }
 0x901   : > { %v8193_v29 = vpop.f32.mrf.mxu1 }
 0x906   : > { %v8180_v53 = vpop.f32.mrf.mxu0  ;;  %v8152_v58 = vpop.f32.mrf.mxu2 }
 0x907   : > { %v8166_v27 = vadd.f32 %v8165_v7, %v8152_v58 }
 0x909   : > { %v8179_v13 = vadd.f32 %v8178_v54, %v8166_v27 }
 0x90b   : > { %v14558_v9 = vadd.f32 %v8191_v34, %v8179_v13 }
 0x90d   : > { %v8304_v60 = vmul.f32 %v14558_v9, %v12653_v10 }
 0x90e   : > { %v8154_v45 = vpop.f32.mrf.mxu2 }
 0x90f   : > { %v8322_v55 = vmul.f32 %v8304_v60, %v14558_v9  ;;  %v8311_v31 = vadd.f32 %v8310_v17, %v8304_v60 }
 0x911   : > { %v8329_v29 = vadd.f32 %v8328_v8, %v8322_v55 }
 0x913   : > { %v8204_v6 = vpop.f32.mrf.mxu1 }
 0x91b   : > { %v8206_v43 = vpop.f32.mrf.mxu1 }
 0x926   : > { %v8217_v49 = vpop.f32.mrf.mxu2 }
 0x927   : > { %v8243_v32 = vpop.f32.mrf.mxu0  ;;  %v8218_v40 = vadd.f32 %v8217_v49, %v8204_v6 }
 0x92b   : > { %v8230_v19 = vpop.f32.mrf.mxu3 }
 0x92c   : > { %v8231_v59 = vadd.f32 %v8230_v19, %v8218_v40 }
 0x92e   : > { %v8219_v12 = vpop.f32.mrf.mxu2  ;;  %v14573_v51 = vadd.f32 %v8243_v32, %v8231_v59 }
 0x92f   : > { %v8245_v35 = vpop.f32.mrf.mxu0 }
 0x930   : > { %v8305_v42 = vmul.f32 %v14573_v51, %v12668_v16 }
 0x932   : > { %v8323_v54 = vmul.f32 %v8305_v42, %v14573_v51  ;;  %v8312_v58 = vadd.f32 %v8311_v31, %v8305_v42 }
 0x933   : > { %v8269_v28 = vpop.f32.mrf.mxu1  ;;  %v8232_v1 = vpop.f32.mrf.mxu3 }
 0x934   : > { %v8330_v6 = vadd.f32 %v8329_v29, %v8323_v54 }
 0x93b   : > { %v8271_v4 = vpop.f32.mrf.mxu1  ;;  %v8295_v26 = vpop.f32.mrf.mxu3 }
 0x943   : > { %v8297_v36 = vpop.f32.mrf.mxu3 }
 0x946   : > { %v8282_v48 = vpop.f32.mrf.mxu2 }
 0x947   : > { %v8256_v37 = vpop.f32.mrf.mxu0 }
 0x948   : > { %v8270_v57 = vadd.f32 %v8269_v28, %v8256_v37 }
 0x94a   : > { %v8283_v41 = vadd.f32 %v8282_v48, %v8270_v57 }
 0x94c   : > { %v8296_v34 = vadd.f32 %v8295_v26, %v8283_v41 }
 0x94e   : > { %v8284_v7 = vpop.f32.mrf.mxu2  ;;  %v8306_v53 = vmul.f32 %v8296_v34, %v12698_v18 }
 0x94f   : > { %v8258_v27 = vpop.f32.mrf.mxu0 }
 0x950   : > { %v8313_v13 = vadd.f32 %v8312_v58, %v8306_v53  ;;  %v8324_v45 = vmul.f32 %v8306_v53, %v8296_v34 }
 0x952   : > { %8314 = vadd.xlane.f32.xlu1 %v8313_v13  ;;  %v8331_v43 = vadd.f32 %v8330_v6, %v8324_v45 }
 0x954   : > { %8332 = vadd.xlane.f32.xlu0 %v8331_v43 }
 0x9c5   : > { %v8315_v49 = vpop.xlane.xlu1 %8314 }
 0x9c6   : > { %v8316_v32 = vmul.f32 0.001953125, %v8315_v49 }
 0x9c7   : > { %v8333_v12 = vpop.xlane.xlu0 %8332 }
 0x9c8   : > { %v8334_v19 = vmul.f32 0.001953125, %v8333_v12  ;;  %v8335_v28 = vmul.f32 %v8316_v32, %v8316_v32  ;;  %v8337_v22 = vsub.f32 %v14468_v30, %v8316_v32  ;;  %v8338_v2 = vsub.f32 %v14504_v24, %v8316_v32 }
 0x9c9   : > { %v8339_v59 = vsub.f32 %v14541_v33, %v8316_v32  ;;  %v8340_v48 = vsub.f32 %v14553_v14, %v8316_v32  ;;  %v8341_v20 = vsub.f32 %v14556_v21, %v8316_v32  ;;  %v8342_v39 = vsub.f32 %v14558_v9, %v8316_v32 }
 0x9ca   : > { %v8336_v35 = vsub.f32 %v8334_v19, %v8335_v28  ;;  %v8343_v25 = vsub.f32 %v14573_v51, %v8316_v32  ;;  %v8344_v11 = vsub.f32 %v8296_v34, %v8316_v32 }
 0x9cc   : > { %v8345_v1 = vadd.f32 1e-05, %v8336_v35 }
 0x9ce   : > { %10853 = vrsqrt.f32 %v8345_v1  ;;  %vm8352_vm1 = vweird.f32 %v8345_v1 }
 0x9d4   : > { %v10854_v4 = vpop.eup %10853 }
 0x9d5   : > { %v8347_v23 = vmul.f32 %v10854_v4, %v8345_v1  ;;  %vm8353_vm15 = vweird.f32 %v10854_v4 }
 0x9d6   : > { %vm8354_vm2 = vmor %vm8352_vm1, %vm8353_vm15 }
 0x9d7   : > { %v8348_v62 = vmul.f32 %v10854_v4, %v8347_v23 }
 0x9d9   : > { %v8349_v40 = vmul.f32 0.5, %v8348_v62 }
 0x9db   : > { %v8350_v26 = vsub.f32 1.5, %v8349_v40 }
 0x9dd   : > { %v8351_v47 = vmul.f32 %v10854_v4, %v8350_v26 }
 0x9df   : > { %v8355_v52 = vsel %vm8354_vm2, %v10854_v4, %v8351_v47 }
 0x9e0   : > { %v8356_v30 = vmul.f32 %v8355_v52, %v8337_v22  ;;  %v8357_v61 = vmul.f32 %v8355_v52, %v8338_v2  ;;  %v8358_v56 = vmul.f32 %v8355_v52, %v8339_v59  ;;  %v8359_v60 = vmul.f32 %v8355_v52, %v8340_v48 }
 0x9e1   : > { %v8360_v24 = vmul.f32 %v8355_v52, %v8341_v20  ;;  %v8361_v36 = vmul.f32 %v8355_v52, %v8342_v39  ;;  %v8362_v33 = vmul.f32 %v8355_v52, %v8343_v25  ;;  %v8363_v63 = vmul.f32 %v8355_v52, %v8344_v11 }
 0x9e2   : > { %v8364_v14 = vmax.f32 %v8356_v30, 0.0  ;;  %v8365_v37 = vmax.f32 %v8357_v61, 0.0  ;;  %v8366_v21 = vmax.f32 %v8358_v56, 0.0  ;;  %v8367_v44 = vmax.f32 %v8359_v60, 0.0 }
 0x9e3   : > { %v8368_v9 = vmax.f32 %v8360_v24, 0.0  ;;  %v8369_v5 = vmax.f32 %v8361_v36, 0.0  ;;  %v8370_v51 = vmax.f32 %v8362_v33, 0.0  ;;  %v8371_v46 = vmax.f32 %v8363_v63, 0.0 }
 0x9e4   : > { %v8372_v42 = vmul.f32 %v8364_v14, %v12620_v50  ;;  %v8373_v57 = vmul.f32 %v8365_v37, %v12617_v15  ;;  %v8374_v7 = vmul.f32 %v8366_v21, %v12625_v3  ;;  %v8375_v17 = vmul.f32 %v8367_v44, %v12632_v38 }
 0x9e5   : > { %v8376_v55 = vmul.f32 %v8368_v9, %v12642_v0  ;;  %v8377_v41 = vmul.f32 %v8369_v5, %v12653_v10  ;;  %v8378_v50 = vmul.f32 %v8370_v51, %v12668_v16  ;;  %v8379_v15 = vmul.f32 %v8371_v46, %v12698_v18 }
 0x9e6   : > { %8380 = vst [vmem:[%s265_s20] sm:$0xff] %v8372_v42 }
 0x9e7   : > { %8381 = vst [vmem:[%s265_s20 + $0x8] sm:$0xff] %v8373_v57 }
 0x9e8   : > { %8382 = vst [vmem:[%s265_s20 + $0x10] sm:$0xff] %v8374_v7 }
 0x9e9   : > { %8383 = vst [vmem:[%s265_s20 + $0x18] sm:$0xff] %v8375_v17 }
 0x9ea   : > { %8384 = vst [vmem:[%s265_s20 + $0x20] sm:$0xff] %v8376_v55 }
 0x9eb   : > { %8385 = vst [vmem:[%s265_s20 + $0x28] sm:$0xff] %v8377_v41 }
 0x9ec   : > { %8386 = vst [vmem:[%s265_s20 + $0x30] sm:$0xff] %v8378_v50 }
 0x9ed   : > { %8387 = vst [vmem:[%s265_s20 + $0x38] sm:$0xff] %v8379_v15 }
 0x9ee   : > { %11002 = shalt.err (!%p10999_p10)
}
 0x9ef   : > { %10755 = dma.vmem_to_hbm [thread:$0]  (%p11193_p7), %s8403_s19, 1024, %s8405_s21, %s8389_s26  }
 0x9f0 PF: > { %s8416_s8 = sand.u32 1, %s11037_s15   ;;  %p14918_p12 = scmp.ge.s32.totalorder %s11049_s18, 2 }
 0x9f1   : > { %s8417_s29 = scalar_lea.sflag [#allocation6], %s8416_s8 }
 0x9f2   : > { %p10772_p13 = pnand %p14918_p12, %p11145_p6 }
 0x9f4   : > { %p10773_p0 = pneg %p10772_p13 }
 0x9f6   : > { %11032 = dma.done.wait (%p10773_p0), %s8417_s29, 1024  }
 0x9f7   : > { %11034 = vsyncadd (%p10773_p0), %s8417_s29, 4294966272  ;;  %p19_p3 = scmp.ge.s32.totalorder %s11177_s23, 4   ;;  %s14919_s15 = smov %s11041_s16 }
 0x9f8   : > { %s14920_s16 = smov %s11045_s17  ;;  %s14921_s17 = smov %s11189_s27 }
 0x9f9   : > { %s14922_s18 = smov %s11177_s23  ;;  %21 = sbr.rel (!%p19_p3) target bundleno = 7 (0x7), region = 93 }
 0x9fe   :  { %8423 = vsyncpa [#allocation5], 1 }
 0x9ff   :  { %8425 = vsyncpa [#allocation5 + $0x1], 1 }
 0xa00   :  { %8426 = vsyncpa [#allocation8], 1 }
 0xa01   :  { %8427 = vsyncpa [#allocation11], 1 }
 0xa02   :  { %8428 = vsyncpa [#allocation6], 1 }
 0xa03   :  { %8430 = vsyncpa [#allocation6 + $0x1], 1 }

</bundles_post_ra>
